<compile_context>
chip_gen: v6e
topology: v6e:2x2x1
jax: 0.10.0
libtpu: 0.0.40
codegen_flags: <defaults>
</compile_context>

<pallas_src>
import jax
import jax.numpy as jnp
from jax.experimental import pallas as pl
from jax.experimental.pallas import tpu as pltpu

VMEM_LIMIT = 32 * 1024 * 1024  # explicit, portable across v5e/v6e/v7x


# ----------------------------------------------------------------------------
# Tile-size helpers
# ----------------------------------------------------------------------------
def _pick_m_tile(m):
    """Prefer big row tiles with >=2 blocks (megacore), else a divisor, else full."""
    for t in (512, 256, 128, 64, 32, 16, 8):
        if m % t == 0 and m // t >= 2:
            return t
    for t in (512, 256, 128, 64, 32, 16, 8):
        if m % t == 0:
            return t
    return m


def _pick_row_tile(m):
    for t in (1024, 512, 256, 128, 64, 32, 16, 8):
        if m % t == 0 and m // t >= 2:
            return t
    return m


def _pick_lane_tile(n):
    for t in (512, 256, 128):
        if n % t == 0:
            return t
    return n


def _pick_k_tile(k):
    for t in (512, 256, 128):
        if k % t == 0:
            return t
    return k


# ----------------------------------------------------------------------------
# Pallas kernels
# ----------------------------------------------------------------------------
def _matmul_bias_kernel(x_ref, w_ref, b_ref, o_ref, acc_ref):
    """Phase-batched tiled matmul: bf16 operands, fp32 acc, fused bias add."""
    @pl.when(pl.program_id(3) == 0)
    def _():
        acc_ref[...] = jnp.zeros_like(acc_ref)

    acc_ref[...] += jnp.dot(x_ref[...], w_ref[...],
                            preferred_element_type=jnp.float32)

    @pl.when(pl.program_id(3) == pl.num_programs(3) - 1)
    def _():
        o_ref[...] = (acc_ref[...] + b_ref[...]).astype(o_ref.dtype)


def _matmul_bias_tanh_kernel(x_ref, w_ref, b_ref, o_ref, t_ref, acc_ref):
    """Same as above but also emits tanh(pre) in the epilogue (final layer)."""
    @pl.when(pl.program_id(3) == 0)
    def _():
        acc_ref[...] = jnp.zeros_like(acc_ref)

    acc_ref[...] += jnp.dot(x_ref[...], w_ref[...],
                            preferred_element_type=jnp.float32)

    @pl.when(pl.program_id(3) == pl.num_programs(3) - 1)
    def _():
        y = acc_ref[...] + b_ref[...]
        o_ref[...] = y.astype(o_ref.dtype)
        t_ref[...] = jnp.tanh(y).astype(t_ref.dtype)


def _bn_stats_kernel(y_ref, sum_ref, ssq_ref):
    """Single-pass per-channel (sum, sum of squares), fp32 accumulation."""
    @pl.when(pl.program_id(0) == 0)
    def _():
        sum_ref[...] = jnp.zeros_like(sum_ref)
        ssq_ref[...] = jnp.zeros_like(ssq_ref)
    y = y_ref[...]
    sum_ref[...] += jnp.sum(y, axis=0, keepdims=True)
    ssq_ref[...] += jnp.sum(y * y, axis=0, keepdims=True)


def _bn_apply_relu_kernel(y_ref, scale_ref, shift_ref, o_ref):
    """Fused normalize (precomputed scale/shift) + ReLU, bf16 output."""
    o_ref[...] = jnp.maximum(
        y_ref[...] * scale_ref[...] + shift_ref[...], 0.0).astype(o_ref.dtype)


# ----------------------------------------------------------------------------
# Pallas wrappers
# ----------------------------------------------------------------------------
def batched_matmul_bias(x3, w3, bias, fuse_tanh=False):
    """(P, M, K) @ (P, K, N) + bias -> (P, M, N) fp32 (optionally also tanh)."""
    p_dim, m_dim, k_dim = x3.shape
    p2, k2, n_dim = w3.shape
    assert p_dim == p2 and k_dim == k2
    tm = _pick_m_tile(m_dim)
    tk = _pick_k_tile(k_dim)
    tn = _pick_lane_tile(n_dim)
    assert m_dim % tm == 0 and k_dim % tk == 0 and n_dim % tn == 0
    grid = (p_dim, m_dim // tm, n_dim // tn, k_dim // tk)

    b2 = bias.reshape(1, n_dim).astype(jnp.float32)
    in_specs = [
        pl.BlockSpec((None, tm, tk), lambda p, i, j, k: (p, i, k)),
        pl.BlockSpec((None, tk, tn), lambda p, i, j, k: (p, k, j)),
        pl.BlockSpec((1, tn), lambda p, i, j, k: (0, j)),
    ]
    cparams = pltpu.CompilerParams(
        dimension_semantics=("parallel", "parallel", "parallel", "arbitrary"),
        vmem_limit_bytes=VMEM_LIMIT)

    if fuse_tanh:
        out_specs = (pl.BlockSpec((None, tm, tn), lambda p, i, j, k: (p, i, j)),
                     pl.BlockSpec((None, tm, tn), lambda p, i, j, k: (p, i, j)))
        return pl.pallas_call(
            _matmul_bias_tanh_kernel,
            out_shape=(jax.ShapeDtypeStruct((p_dim, m_dim, n_dim), jnp.float32),
                       jax.ShapeDtypeStruct((p_dim, m_dim, n_dim), jnp.float32)),
            grid_spec=pltpu.PrefetchScalarGridSpec(
                num_scalar_prefetch=0, grid=grid,
                in_specs=in_specs, out_specs=out_specs,
                scratch_shapes=[pltpu.VMEM((tm, tn), jnp.float32)]),
            compiler_params=cparams,
        )(x3.astype(jnp.bfloat16), w3.astype(jnp.bfloat16), b2)

    return pl.pallas_call(
        _matmul_bias_kernel,
        out_shape=jax.ShapeDtypeStruct((p_dim, m_dim, n_dim), jnp.float32),
        grid_spec=pltpu.PrefetchScalarGridSpec(
            num_scalar_prefetch=0, grid=grid,
            in_specs=in_specs,
            out_specs=pl.BlockSpec((None, tm, tn), lambda p, i, j, k: (p, i, j)),
            scratch_shapes=[pltpu.VMEM((tm, tn), jnp.float32)]),
        compiler_params=cparams,
    )(x3.astype(jnp.bfloat16), w3.astype(jnp.bfloat16), b2)


def batch_norm_relu(y, gamma, beta, eps=1e-5):
    """Training-mode BatchNorm + ReLU. y: (M, C) fp32 -> (M, C) bf16."""
    m_dim, c_dim = y.shape
    tile_m = _pick_row_tile(m_dim)
    assert m_dim % tile_m == 0
    grid = (m_dim // tile_m,)

    sums, ssq = pl.pallas_call(
        _bn_stats_kernel,
        out_shape=(jax.ShapeDtypeStruct((1, c_dim), jnp.float32),
                   jax.ShapeDtypeStruct((1, c_dim), jnp.float32)),
        grid_spec=pltpu.PrefetchScalarGridSpec(
            num_scalar_prefetch=0, grid=grid,
            in_specs=[pl.BlockSpec((tile_m, c_dim), lambda i: (i, 0))],
            out_specs=(pl.BlockSpec((1, c_dim), lambda i: (0, 0)),
                       pl.BlockSpec((1, c_dim), lambda i: (0, 0)))),
        compiler_params=pltpu.CompilerParams(
            dimension_semantics=("arbitrary",),
            vmem_limit_bytes=VMEM_LIMIT),
    )(y)

    # Finalize per-channel stats on tiny (1, C) vectors (fp32, clamped var to
    # guard the E[y^2]-mean^2 cancellation).
    inv_m = 1.0 / m_dim
    mean = sums * inv_m
    var = jnp.maximum(ssq * inv_m - mean * mean, 0.0)   # biased, training mode
    invstd = jax.lax.rsqrt(var + eps)
    scale = gamma.reshape(1, c_dim).astype(jnp.float32) * invstd
    shift = beta.reshape(1, c_dim).astype(jnp.float32) - mean * scale

    return pl.pallas_call(
        _bn_apply_relu_kernel,
        out_shape=jax.ShapeDtypeStruct((m_dim, c_dim), jnp.bfloat16),
        grid_spec=pltpu.PrefetchScalarGridSpec(
            num_scalar_prefetch=0, grid=grid,
            in_specs=[pl.BlockSpec((tile_m, c_dim), lambda i: (i, 0)),
                      pl.BlockSpec((1, c_dim), lambda i: (0, 0)),
                      pl.BlockSpec((1, c_dim), lambda i: (0, 0))],
            out_specs=pl.BlockSpec((tile_m, c_dim), lambda i: (i, 0))),
        compiler_params=pltpu.CompilerParams(
            dimension_semantics=("parallel",),
            vmem_limit_bytes=VMEM_LIMIT),
    )(y, scale, shift)


# ----------------------------------------------------------------------------
# Stride-2 ConvTranspose (k=4, s=2, p=1) via phase decomposition
# ----------------------------------------------------------------------------
# Output pixel (2*qy+ry, 2*qx+rx) only touches kernel taps ky = 3-ry-2*dy and
# input rows iy = qy+ry+dy-1, dy in {0,1} (same in x) -> 4 dense 2x2-tap convs.
_KY = {0: (3, 1), 1: (2, 0)}   # phase r -> (k at d=0, k at d=1)

# TODO(synk): the phase im2col / padding / interleave below is thin XLA data
# movement glue; it could be folded into the matmul kernel with manual DMA.


def _phase_patches(x_nhwc):
    """x: (N, H, W, C) bf16 -> (4, N*H*W, C*4) patch matrices (one per phase)."""
    n, h, w, c = x_nhwc.shape
    xp = jnp.pad(x_nhwc, ((0, 0), (1, 1), (1, 1), (0, 0)))
    phases = []
    for ry in (0, 1):
        for rx in (0, 1):
            taps = []
            for dy in (0, 1):
                for dx in (0, 1):
                    taps.append(xp[:, ry + dy:ry + dy + h, rx + dx:rx + dx + w, :])
            p = jnp.stack(taps, axis=-1)              # (N, H, W, C, 4)
            phases.append(p.reshape(n * h * w, c * 4))
    return jnp.stack(phases, axis=0)                  # (4, N*H*W, C*4)


def _phase_weights(w):
    """w: (Cin, Cout, 4, 4) PyTorch layout -> (4, Cin*4, Cout) per-phase mats."""
    cin, cout = w.shape[0], w.shape[1]
    mats = []
    for ry in (0, 1):
        for rx in (0, 1):
            taps = []
            for dy in (0, 1):
                for dx in (0, 1):
                    taps.append(w[:, :, _KY[ry][dy], _KY[rx][dx]])  # (Cin, Cout)
            wp = jnp.stack(taps, axis=1)              # (Cin, 4, Cout)
            mats.append(wp.reshape(cin * 4, cout))
    return jnp.stack(mats, axis=0)                    # (4, Cin*4, Cout)


def _interleave_phases(yp, n, h, w):
    """(4, N*H*W, C) phase-major -> (N, 2H, 2W, C) NHWC."""
    c = yp.shape[-1]
    y = yp.reshape(2, 2, n, h, w, c)
    y = jnp.transpose(y, (2, 3, 0, 4, 1, 5))
    return y.reshape(n, 2 * h, 2 * w, c)


def conv_transpose_s2_phases(x_nhwc, w, b, cout_pad=None, fuse_tanh=False):
    """Returns per-phase conv output(s) of shape (4, N*H*W, Cout[_pad])."""
    cout = w.shape[1]
    patches = _phase_patches(x_nhwc.astype(jnp.bfloat16))
    wph = _phase_weights(w)
    bias = b
    if cout_pad is not None and cout < cout_pad:      # lane-dense output channels
        wph = jnp.pad(wph, ((0, 0), (0, 0), (0, cout_pad - cout)))
        bias = jnp.pad(b, (0, cout_pad - cout))
    return batched_matmul_bias(patches, wph, bias, fuse_tanh=fuse_tanh)


# ----------------------------------------------------------------------------
# Generator
# ----------------------------------------------------------------------------
_LAYER_SPECS = lambda nz, channels: [
    (nz, 512), (512, 256), (256, 128), (128, 64), (64, channels)]


def init_generator_params(key, nz, channels):
    params = []
    specs = _LAYER_SPECS(nz, channels)
    for idx, (cin, cout) in enumerate(specs):
        key, kw, kb, kg, kbeta = jax.random.split(key, 5)
        w = 0.02 * jax.random.normal(kw, (cin, cout, 4, 4), jnp.float32)
        b = 0.01 * jax.random.normal(kb, (cout,), jnp.float32)
        has_bn = idx < len(specs) - 1
        gamma = (1.0 + 0.01 * jax.random.normal(kg, (cout,), jnp.float32)) if has_bn else None
        beta = (0.01 * jax.random.normal(kbeta, (cout,), jnp.float32)) if has_bn else None
        params.append(dict(w=w, b=b, gamma=gamma, beta=beta))
    return params


def generator_forward(params, z):
    """z: (N, nz, 1, 1) NCHW. Returns (tanh output NCHW, pre-tanh embeddings NCHW)."""
    n, nz = z.shape[0], z.shape[1]
    channels = params[-1]["w"].shape[1]

    # Layer 1: ConvTranspose2d(nz, 512, k=4, s=1, p=0) on a 1x1 input is a pure
    # projection: out[n, oy, ox, co] = sum_ci z[n, ci] * w[ci, co, oy, ox] + b.
    p0 = params[0]
    c0 = p0["w"].shape[1]
    w0 = jnp.transpose(p0["w"], (0, 2, 3, 1)).reshape(nz, 16 * c0)
    b0 = jnp.tile(p0["b"], 16)
    y = batched_matmul_bias(z.reshape(1, n, nz), w0.reshape(1, nz, 16 * c0), b0)
    y = batch_norm_relu(y.reshape(n * 16, c0), p0["gamma"], p0["beta"])
    h = y.reshape(n, 4, 4, c0)                                        # NHWC bf16

    # Layers 2..4: stride-2 transposed conv + BatchNorm + ReLU (phase layout).
    for p in params[1:-1]:
        cout = p["w"].shape[1]
        _, hh, ww, _ = h.shape
        yp = conv_transpose_s2_phases(h, p["w"], p["b"])              # (4, n*hh*ww, cout)
        mp = yp.shape[1]
        yf = batch_norm_relu(yp.reshape(4 * mp, cout), p["gamma"], p["beta"])
        h = _interleave_phases(yf.reshape(4, mp, cout), n, hh, ww)    # (n, 2hh, 2ww, cout)

    # Final layer: stride-2 transposed conv, channels padded to 128, fused tanh.
    p_last = params[-1]
    _, hh, ww, _ = h.shape
    pre, act = conv_transpose_s2_phases(h, p_last["w"], p_last["b"],
                                        cout_pad=128, fuse_tanh=True)
    emb_nhwc = _interleave_phases(pre, n, hh, ww)[..., :channels]
    out_nhwc = _interleave_phases(act, n, hh, ww)[..., :channels]
    embeddings = jnp.transpose(emb_nhwc, (0, 3, 1, 2))   # pre-tanh activations (NCHW)
    out = jnp.transpose(out_nhwc, (0, 3, 1, 2))          # tanh output (NCHW)
    return out, embeddings


if __name__ == "__main__":
    nz = 16
    channels = 3
    batch = 2

    key = jax.random.PRNGKey(0)
    kp, kz = jax.random.split(key)
    params = init_generator_params(kp, nz, channels)
    z = jax.random.normal(kz, (batch, nz, 1, 1), jnp.float32)

    fwd = jax.jit(generator_forward)
    out, emb = fwd(params, z)
    out = jax.block_until_ready(out)
    emb = jax.block_until_ready(emb)

    assert out.shape == (batch, channels, 64, 64), out.shape
    assert emb.shape == (batch, channels, 64, 64), emb.shape
    assert bool(jnp.all(jnp.isfinite(out)))
    assert bool(jnp.all(jnp.abs(out) <= 1.0))
    print("KERNEL_OK")
</pallas_src>

<mosaic_0001>
module attributes {stable_mosaic.version = 11 : i64} {
  func.func @_matmul_bias_kernel(%arg0: i32, %arg1: i32, %arg2: i32, %arg3: i32, %arg4: memref<1x2x16xbf16, #tpu.memory_space<vmem>>, %arg5: memref<1x16x512xbf16, #tpu.memory_space<vmem>>, %arg6: memref<1x512xf32, #tpu.memory_space<vmem>>, %arg7: memref<1x2x512xf32, #tpu.memory_space<vmem>>, %arg8: memref<2x512xf32, #tpu.memory_space<vmem>>) attributes {dimension_semantics = [#tpu.dimension_semantics<parallel>, #tpu.dimension_semantics<parallel>, #tpu.dimension_semantics<parallel>, #tpu.dimension_semantics<arbitrary>], iteration_bounds = array<i64: 1, 1, 16, 1>, scalar_prefetch = 0 : i64, scratch_operands = 1 : i64, tpu.core_type = #tpu.core_type<tc>, window_params = [{transform_indices = @transform_0, window_bounds = array<i64: 1, 2, 16>}, {transform_indices = @transform_1, window_bounds = array<i64: 1, 16, 512>}, {transform_indices = @transform_2, window_bounds = array<i64: 1, 512>}, {transform_indices = @transform_3, window_bounds = array<i64: 1, 2, 512>}]} {
    %c0_i32 = arith.constant 0 : i32
    %0 = arith.cmpi eq, %arg3, %c0_i32 : i32
    %1 = arith.extui %0 : i1 to i32
    %c0_i32_0 = arith.constant 0 : i32
    %2 = arith.cmpi ne, %1, %c0_i32_0 : i32
    scf.if %2 {
      %cst_12 = arith.constant 0.000000e+00 : f32
      %14 = vector.broadcast %cst_12 : f32 to vector<2x512xf32>
      %c0_13 = arith.constant 0 : index
      %c0_14 = arith.constant 0 : index
      %15 = vector.load %arg8[%c0_13, %c0_14] : memref<2x512xf32, #tpu.memory_space<vmem>>, vector<2x512xf32>
      tpu.vector_store %arg8[%c0_13, %c0_14], %14 {strides = array<i32>} : memref<2x512xf32, #tpu.memory_space<vmem>>, vector<2x512xf32>,
    } else {
    }
    %c0 = arith.constant 0 : index
    %c0_1 = arith.constant 0 : index
    %3 = vector.load %arg8[%c0, %c0_1] : memref<2x512xf32, #tpu.memory_space<vmem>>, vector<2x512xf32>
    %c0_2 = arith.constant 0 : index
    %c0_3 = arith.constant 0 : index
    %c0_4 = arith.constant 0 : index
    %4 = vector.load %arg4[%c0_2, %c0_3, %c0_4] : memref<1x2x16xbf16, #tpu.memory_space<vmem>>, vector<1x2x16xbf16>
    %5 = vector.shape_cast %4 : vector<1x2x16xbf16> to vector<2x16xbf16>
    %c0_5 = arith.constant 0 : index
    %c0_6 = arith.constant 0 : index
    %c0_7 = arith.constant 0 : index
    %6 = vector.load %arg5[%c0_5, %c0_6, %c0_7] : memref<1x16x512xbf16, #tpu.memory_space<vmem>>, vector<1x16x512xbf16>
    %7 = vector.shape_cast %6 : vector<1x16x512xbf16> to vector<16x512xbf16>
    %cst = arith.constant dense<0.000000e+00> : vector<2x512xf32>
    %8 = tpu.matmul %5, %7, %cst {dimension_numbers = #tpu.dot_dimension_numbers<[1], [0], [0], [1], [0, 0, 1, 1], [], []>} : vector<2x16xbf16>, vector<16x512xbf16>, vector<2x512xf32> -> vector<2x512xf32>
    %9 = arith.addf %3, %8 : vector<2x512xf32>
    %c0_8 = arith.constant 0 : index
    %c0_9 = arith.constant 0 : index
    %10 = vector.load %arg8[%c0_8, %c0_9] : memref<2x512xf32, #tpu.memory_space<vmem>>, vector<2x512xf32>
    tpu.vector_store %arg8[%c0_8, %c0_9], %9 {strides = array<i32>} : memref<2x512xf32, #tpu.memory_space<vmem>>, vector<2x512xf32>,
    %c0_i32_10 = arith.constant 0 : i32
    %11 = arith.cmpi eq, %arg3, %c0_i32_10 : i32
    %12 = arith.extui %11 : i1 to i32
    %c0_i32_11 = arith.constant 0 : i32
    %13 = arith.cmpi ne, %12, %c0_i32_11 : i32
    scf.if %13 {
      %c0_12 = arith.constant 0 : index
      %c0_13 = arith.constant 0 : index
      %14 = vector.load %arg8[%c0_12, %c0_13] : memref<2x512xf32, #tpu.memory_space<vmem>>, vector<2x512xf32>
      %c0_14 = arith.constant 0 : index
      %c0_15 = arith.constant 0 : index
      %15 = vector.load %arg6[%c0_14, %c0_15] : memref<1x512xf32, #tpu.memory_space<vmem>>, vector<1x512xf32>
      %16 = vector.broadcast %15 : vector<1x512xf32> to vector<2x512xf32>
      %17 = arith.addf %14, %16 : vector<2x512xf32>
      %c0_16 = arith.constant 0 : index
      %c0_17 = arith.constant 0 : index
      %c0_18 = arith.constant 0 : index
      %18 = vector.load %arg7[%c0_16, %c0_17, %c0_18] : memref<1x2x512xf32, #tpu.memory_space<vmem>>, vector<1x2x512xf32>
      %19 = vector.shape_cast %18 : vector<1x2x512xf32> to vector<2x512xf32>
      %20 = vector.shape_cast %17 : vector<2x512xf32> to vector<1x2x512xf32>
      tpu.vector_store %arg7[%c0_16, %c0_17, %c0_18], %20 {strides = array<i32>} : memref<1x2x512xf32, #tpu.memory_space<vmem>>, vector<1x2x512xf32>,
    } else {
    }
    return
  }
  func.func @transform_0(%arg0: i32, %arg1: i32, %arg2: i32, %arg3: i32) -> (i32, i32, i32) {
    %c0_i32 = arith.constant 0 : i32
    return %arg0, %arg1, %arg3 : i32, i32, i32
  }
  func.func @transform_1(%arg0: i32, %arg1: i32, %arg2: i32, %arg3: i32) -> (i32, i32, i32) {
    %c0_i32 = arith.constant 0 : i32
    return %arg0, %arg3, %arg2 : i32, i32, i32
  }
  func.func @transform_2(%arg0: i32, %arg1: i32, %arg2: i32, %arg3: i32) -> (i32, i32) {
    %c0_i32 = arith.constant 0 : i32
    %c0_i32_0 = arith.constant 0 : i32
    return %c0_i32, %arg2 : i32, i32
  }
  func.func @transform_3(%arg0: i32, %arg1: i32, %arg2: i32, %arg3: i32) -> (i32, i32, i32) {
    %c0_i32 = arith.constant 0 : i32
    return %arg0, %arg1, %arg2 : i32, i32, i32
  }
}

module attributes {stable_mosaic.version = 11 : i64} {
  func.func @_bn_stats_kernel(%arg0: i32, %arg1: memref<16x512xf32, #tpu.memory_space<vmem>>, %arg2: memref<1x512xf32, #tpu.memory_space<vmem>>, %arg3: memref<1x512xf32, #tpu.memory_space<vmem>>) attributes {dimension_semantics = [#tpu.dimension_semantics<arbitrary>], iteration_bounds = array<i64: 2>, scalar_prefetch = 0 : i64, scratch_operands = 0 : i64, tpu.core_type = #tpu.core_type<tc>, window_params = [{transform_indices = @transform_0, window_bounds = array<i64: 16, 512>}, {pipeline_mode = #tpu.pipeline_mode<synchronous>, transform_indices = @transform_1, window_bounds = array<i64: 1, 512>}, {pipeline_mode = #tpu.pipeline_mode<synchronous>, transform_indices = @transform_2, window_bounds = array<i64: 1, 512>}]} {
    %c0_i32 = arith.constant 0 : i32
    %0 = arith.cmpi eq, %arg0, %c0_i32 : i32
    %1 = arith.extui %0 : i1 to i32
    %c0_i32_0 = arith.constant 0 : i32
    %2 = arith.cmpi ne, %1, %c0_i32_0 : i32
    scf.if %2 {
      %cst_11 = arith.constant 0.000000e+00 : f32
      %15 = vector.broadcast %cst_11 : f32 to vector<1x512xf32>
      %c0_12 = arith.constant 0 : index
      %c0_13 = arith.constant 0 : index
      %16 = vector.load %arg2[%c0_12, %c0_13] : memref<1x512xf32, #tpu.memory_space<vmem>>, vector<1x512xf32>
      tpu.vector_store %arg2[%c0_12, %c0_13], %15 {strides = array<i32>} : memref<1x512xf32, #tpu.memory_space<vmem>>, vector<1x512xf32>,
      %cst_14 = arith.constant 0.000000e+00 : f32
      %17 = vector.broadcast %cst_14 : f32 to vector<1x512xf32>
      %c0_15 = arith.constant 0 : index
      %c0_16 = arith.constant 0 : index
      %18 = vector.load %arg3[%c0_15, %c0_16] : memref<1x512xf32, #tpu.memory_space<vmem>>, vector<1x512xf32>
      tpu.vector_store %arg3[%c0_15, %c0_16], %17 {strides = array<i32>} : memref<1x512xf32, #tpu.memory_space<vmem>>, vector<1x512xf32>,
    } else {
    }
    %c0 = arith.constant 0 : index
    %c0_1 = arith.constant 0 : index
    %3 = vector.load %arg1[%c0, %c0_1] : memref<16x512xf32, #tpu.memory_space<vmem>>, vector<16x512xf32>
    %c0_2 = arith.constant 0 : index
    %c0_3 = arith.constant 0 : index
    %4 = vector.load %arg2[%c0_2, %c0_3] : memref<1x512xf32, #tpu.memory_space<vmem>>, vector<1x512xf32>
    %cst = arith.constant dense<0.000000e+00> : vector<512xf32>
    %5 = vector.multi_reduction <add>, %3, %cst [0] : vector<16x512xf32> to vector<512xf32>
    %6 = vector.shape_cast %5 : vector<512xf32> to vector<1x512xf32>
    %7 = arith.addf %4, %6 : vector<1x512xf32>
    %c0_4 = arith.constant 0 : index
    %c0_5 = arith.constant 0 : index
    %8 = vector.load %arg2[%c0_4, %c0_5] : memref<1x512xf32, #tpu.memory_space<vmem>>, vector<1x512xf32>
    tpu.vector_store %arg2[%c0_4, %c0_5], %7 {strides = array<i32>} : memref<1x512xf32, #tpu.memory_space<vmem>>, vector<1x512xf32>,
    %c0_6 = arith.constant 0 : index
    %c0_7 = arith.constant 0 : index
    %9 = vector.load %arg3[%c0_6, %c0_7] : memref<1x512xf32, #tpu.memory_space<vmem>>, vector<1x512xf32>
    %10 = arith.mulf %3, %3 : vector<16x512xf32>
    %cst_8 = arith.constant dense<0.000000e+00> : vector<512xf32>
    %11 = vector.multi_reduction <add>, %10, %cst_8 [0] : vector<16x512xf32> to vector<512xf32>
    %12 = vector.shape_cast %11 : vector<512xf32> to vector<1x512xf32>
    %13 = arith.addf %9, %12 : vector<1x512xf32>
    %c0_9 = arith.constant 0 : index
    %c0_10 = arith.constant 0 : index
    %14 = vector.load %arg3[%c0_9, %c0_10] : memref<1x512xf32, #tpu.memory_space<vmem>>, vector<1x512xf32>
    tpu.vector_store %arg3[%c0_9, %c0_10], %13 {strides = array<i32>} : memref<1x512xf32, #tpu.memory_space<vmem>>, vector<1x512xf32>,
    return
  }
  func.func @transform_0(%arg0: i32) -> (i32, i32) {
    %c0_i32 = arith.constant 0 : i32
    %c0_i32_0 = arith.constant 0 : i32
    return %arg0, %c0_i32 : i32, i32
  }
  func.func @transform_1(%arg0: i32) -> (i32, i32) {
    %c0_i32 = arith.constant 0 : i32
    %c0_i32_0 = arith.constant 0 : i32
    %c0_i32_1 = arith.constant 0 : i32
    return %c0_i32, %c0_i32_0 : i32, i32
  }
  func.func @transform_2(%arg0: i32) -> (i32, i32) {
    %c0_i32 = arith.constant 0 : i32
    %c0_i32_0 = arith.constant 0 : i32
    %c0_i32_1 = arith.constant 0 : i32
    return %c0_i32, %c0_i32_0 : i32, i32
  }
}

module attributes {stable_mosaic.version = 11 : i64} {
  func.func @_bn_apply_relu_kernel(%arg0: i32, %arg1: memref<16x512xf32, #tpu.memory_space<vmem>>, %arg2: memref<1x512xf32, #tpu.memory_space<vmem>>, %arg3: memref<1x512xf32, #tpu.memory_space<vmem>>, %arg4: memref<16x512xbf16, #tpu.memory_space<vmem>>) attributes {dimension_semantics = [#tpu.dimension_semantics<parallel>], iteration_bounds = array<i64: 2>, scalar_prefetch = 0 : i64, scratch_operands = 0 : i64, tpu.core_type = #tpu.core_type<tc>, window_params = [{transform_indices = @transform_0, window_bounds = array<i64: 16, 512>}, {pipeline_mode = #tpu.pipeline_mode<synchronous>, transform_indices = @transform_1, window_bounds = array<i64: 1, 512>}, {pipeline_mode = #tpu.pipeline_mode<synchronous>, transform_indices = @transform_2, window_bounds = array<i64: 1, 512>}, {transform_indices = @transform_3, window_bounds = array<i64: 16, 512>}]} {
    %c0 = arith.constant 0 : index
    %c0_0 = arith.constant 0 : index
    %0 = vector.load %arg1[%c0, %c0_0] : memref<16x512xf32, #tpu.memory_space<vmem>>, vector<16x512xf32>
    %c0_1 = arith.constant 0 : index
    %c0_2 = arith.constant 0 : index
    %1 = vector.load %arg2[%c0_1, %c0_2] : memref<1x512xf32, #tpu.memory_space<vmem>>, vector<1x512xf32>
    %2 = vector.broadcast %1 : vector<1x512xf32> to vector<16x512xf32>
    %3 = arith.mulf %0, %2 : vector<16x512xf32>
    %c0_3 = arith.constant 0 : index
    %c0_4 = arith.constant 0 : index
    %4 = vector.load %arg3[%c0_3, %c0_4] : memref<1x512xf32, #tpu.memory_space<vmem>>, vector<1x512xf32>
    %5 = vector.broadcast %4 : vector<1x512xf32> to vector<16x512xf32>
    %6 = arith.addf %3, %5 : vector<16x512xf32>
    %cst = arith.constant 0.000000e+00 : f32
    %7 = vector.broadcast %cst : f32 to vector<16x512xf32>
    %8 = arith.maximumf %6, %7 : vector<16x512xf32>
    %9 = arith.truncf %8 : vector<16x512xf32> to vector<16x512xbf16>
    %c0_5 = arith.constant 0 : index
    %c0_6 = arith.constant 0 : index
    %10 = vector.load %arg4[%c0_5, %c0_6] : memref<16x512xbf16, #tpu.memory_space<vmem>>, vector<16x512xbf16>
    tpu.vector_store %arg4[%c0_5, %c0_6], %9 {strides = array<i32>} : memref<16x512xbf16, #tpu.memory_space<vmem>>, vector<16x512xbf16>,
    return
  }
  func.func @transform_0(%arg0: i32) -> (i32, i32) {
    %c0_i32 = arith.constant 0 : i32
    %c0_i32_0 = arith.constant 0 : i32
    return %arg0, %c0_i32 : i32, i32
  }
  func.func @transform_1(%arg0: i32) -> (i32, i32) {
    %c0_i32 = arith.constant 0 : i32
    %c0_i32_0 = arith.constant 0 : i32
    %c0_i32_1 = arith.constant 0 : i32
    return %c0_i32, %c0_i32_0 : i32, i32
  }
  func.func @transform_2(%arg0: i32) -> (i32, i32) {
    %c0_i32 = arith.constant 0 : i32
    %c0_i32_0 = arith.constant 0 : i32
    %c0_i32_1 = arith.constant 0 : i32
    return %c0_i32, %c0_i32_0 : i32, i32
  }
  func.func @transform_3(%arg0: i32) -> (i32, i32) {
    %c0_i32 = arith.constant 0 : i32
    %c0_i32_0 = arith.constant 0 : i32
    return %arg0, %c0_i32 : i32, i32
  }
}

module attributes {stable_mosaic.version = 11 : i64} {
  func.func @_matmul_bias_kernel(%arg0: i32, %arg1: i32, %arg2: i32, %arg3: i32, %arg4: memref<1x16x512xbf16, #tpu.memory_space<vmem>>, %arg5: memref<1x512x256xbf16, #tpu.memory_space<vmem>>, %arg6: memref<1x256xf32, #tpu.memory_space<vmem>>, %arg7: memref<1x16x256xf32, #tpu.memory_space<vmem>>, %arg8: memref<16x256xf32, #tpu.memory_space<vmem>>) attributes {dimension_semantics = [#tpu.dimension_semantics<parallel>, #tpu.dimension_semantics<parallel>, #tpu.dimension_semantics<parallel>, #tpu.dimension_semantics<arbitrary>], iteration_bounds = array<i64: 4, 2, 1, 4>, scalar_prefetch = 0 : i64, scratch_operands = 1 : i64, tpu.core_type = #tpu.core_type<tc>, window_params = [{transform_indices = @transform_0, window_bounds = array<i64: 1, 16, 512>}, {transform_indices = @transform_1, window_bounds = array<i64: 1, 512, 256>}, {transform_indices = @transform_2, window_bounds = array<i64: 1, 256>}, {transform_indices = @transform_3, window_bounds = array<i64: 1, 16, 256>}]} {
    %c0_i32 = arith.constant 0 : i32
    %0 = arith.cmpi eq, %arg3, %c0_i32 : i32
    %1 = arith.extui %0 : i1 to i32
    %c0_i32_0 = arith.constant 0 : i32
    %2 = arith.cmpi ne, %1, %c0_i32_0 : i32
    scf.if %2 {
      %cst_11 = arith.constant 0.000000e+00 : f32
      %14 = vector.broadcast %cst_11 : f32 to vector<16x256xf32>
      %c0_12 = arith.constant 0 : index
      %c0_13 = arith.constant 0 : index
      %15 = vector.load %arg8[%c0_12, %c0_13] : memref<16x256xf32, #tpu.memory_space<vmem>>, vector<16x256xf32>
      tpu.vector_store %arg8[%c0_12, %c0_13], %14 {strides = array<i32>} : memref<16x256xf32, #tpu.memory_space<vmem>>, vector<16x256xf32>,
    } else {
    }
    %c0 = arith.constant 0 : index
    %c0_1 = arith.constant 0 : index
    %3 = vector.load %arg8[%c0, %c0_1] : memref<16x256xf32, #tpu.memory_space<vmem>>, vector<16x256xf32>
    %c0_2 = arith.constant 0 : index
    %c0_3 = arith.constant 0 : index
    %c0_4 = arith.constant 0 : index
    %4 = vector.load %arg4[%c0_2, %c0_3, %c0_4] : memref<1x16x512xbf16, #tpu.memory_space<vmem>>, vector<1x16x512xbf16>
    %5 = vector.shape_cast %4 : vector<1x16x512xbf16> to vector<16x512xbf16>
    %c0_5 = arith.constant 0 : index
    %c0_6 = arith.constant 0 : index
    %c0_7 = arith.constant 0 : index
    %6 = vector.load %arg5[%c0_5, %c0_6, %c0_7] : memref<1x512x256xbf16, #tpu.memory_space<vmem>>, vector<1x512x256xbf16>
    %7 = vector.shape_cast %6 : vector<1x512x256xbf16> to vector<512x256xbf16>
    %cst = arith.constant dense<0.000000e+00> : vector<16x256xf32>
    %8 = tpu.matmul %5, %7, %cst {dimension_numbers = #tpu.dot_dimension_numbers<[1], [0], [0], [1], [0, 0, 1, 1], [], []>} : vector<16x512xbf16>, vector<512x256xbf16>, vector<16x256xf32> -> vector<16x256xf32>
    %9 = arith.addf %3, %8 : vector<16x256xf32>
    %c0_8 = arith.constant 0 : index
    %c0_9 = arith.constant 0 : index
    %10 = vector.load %arg8[%c0_8, %c0_9] : memref<16x256xf32, #tpu.memory_space<vmem>>, vector<16x256xf32>
    tpu.vector_store %arg8[%c0_8, %c0_9], %9 {strides = array<i32>} : memref<16x256xf32, #tpu.memory_space<vmem>>, vector<16x256xf32>,
    %c3_i32 = arith.constant 3 : i32
    %11 = arith.cmpi eq, %arg3, %c3_i32 : i32
    %12 = arith.extui %11 : i1 to i32
    %c0_i32_10 = arith.constant 0 : i32
    %13 = arith.cmpi ne, %12, %c0_i32_10 : i32
    scf.if %13 {
      %c0_11 = arith.constant 0 : index
      %c0_12 = arith.constant 0 : index
      %14 = vector.load %arg8[%c0_11, %c0_12] : memref<16x256xf32, #tpu.memory_space<vmem>>, vector<16x256xf32>
      %c0_13 = arith.constant 0 : index
      %c0_14 = arith.constant 0 : index
      %15 = vector.load %arg6[%c0_13, %c0_14] : memref<1x256xf32, #tpu.memory_space<vmem>>, vector<1x256xf32>
      %16 = vector.broadcast %15 : vector<1x256xf32> to vector<16x256xf32>
      %17 = arith.addf %14, %16 : vector<16x256xf32>
      %c0_15 = arith.constant 0 : index
      %c0_16 = arith.constant 0 : index
      %c0_17 = arith.constant 0 : index
      %18 = vector.load %arg7[%c0_15, %c0_16, %c0_17] : memref<1x16x256xf32, #tpu.memory_space<vmem>>, vector<1x16x256xf32>
      %19 = vector.shape_cast %18 : vector<1x16x256xf32> to vector<16x256xf32>
      %20 = vector.shape_cast %17 : vector<16x256xf32> to vector<1x16x256xf32>
      tpu.vector_store %arg7[%c0_15, %c0_16, %c0_17], %20 {strides = array<i32>} : memref<1x16x256xf32, #tpu.memory_space<vmem>>, vector<1x16x256xf32>,
    } else {
    }
    return
  }
  func.func @transform_0(%arg0: i32, %arg1: i32, %arg2: i32, %arg3: i32) -> (i32, i32, i32) {
    %c0_i32 = arith.constant 0 : i32
    return %arg0, %arg1, %arg3 : i32, i32, i32
  }
  func.func @transform_1(%arg0: i32, %arg1: i32, %arg2: i32, %arg3: i32) -> (i32, i32, i32) {
    %c0_i32 = arith.constant 0 : i32
    return %arg0, %arg3, %arg2 : i32, i32, i32
  }
  func.func @transform_2(%arg0: i32, %arg1: i32, %arg2: i32, %arg3: i32) -> (i32, i32) {
    %c0_i32 = arith.constant 0 : i32
    %c0_i32_0 = arith.constant 0 : i32
    return %c0_i32, %arg2 : i32, i32
  }
  func.func @transform_3(%arg0: i32, %arg1: i32, %arg2: i32, %arg3: i32) -> (i32, i32, i32) {
    %c0_i32 = arith.constant 0 : i32
    return %arg0, %arg1, %arg2 : i32, i32, i32
  }
}

module attributes {stable_mosaic.version = 11 : i64} {
  func.func @_bn_stats_kernel(%arg0: i32, %arg1: memref<64x256xf32, #tpu.memory_space<vmem>>, %arg2: memref<1x256xf32, #tpu.memory_space<vmem>>, %arg3: memref<1x256xf32, #tpu.memory_space<vmem>>) attributes {dimension_semantics = [#tpu.dimension_semantics<arbitrary>], iteration_bounds = array<i64: 2>, scalar_prefetch = 0 : i64, scratch_operands = 0 : i64, tpu.core_type = #tpu.core_type<tc>, window_params = [{transform_indices = @transform_0, window_bounds = array<i64: 64, 256>}, {pipeline_mode = #tpu.pipeline_mode<synchronous>, transform_indices = @transform_1, window_bounds = array<i64: 1, 256>}, {pipeline_mode = #tpu.pipeline_mode<synchronous>, transform_indices = @transform_2, window_bounds = array<i64: 1, 256>}]} {
    %c0_i32 = arith.constant 0 : i32
    %0 = arith.cmpi eq, %arg0, %c0_i32 : i32
    %1 = arith.extui %0 : i1 to i32
    %c0_i32_0 = arith.constant 0 : i32
    %2 = arith.cmpi ne, %1, %c0_i32_0 : i32
    scf.if %2 {
      %cst_11 = arith.constant 0.000000e+00 : f32
      %15 = vector.broadcast %cst_11 : f32 to vector<1x256xf32>
      %c0_12 = arith.constant 0 : index
      %c0_13 = arith.constant 0 : index
      %16 = vector.load %arg2[%c0_12, %c0_13] : memref<1x256xf32, #tpu.memory_space<vmem>>, vector<1x256xf32>
      tpu.vector_store %arg2[%c0_12, %c0_13], %15 {strides = array<i32>} : memref<1x256xf32, #tpu.memory_space<vmem>>, vector<1x256xf32>,
      %cst_14 = arith.constant 0.000000e+00 : f32
      %17 = vector.broadcast %cst_14 : f32 to vector<1x256xf32>
      %c0_15 = arith.constant 0 : index
      %c0_16 = arith.constant 0 : index
      %18 = vector.load %arg3[%c0_15, %c0_16] : memref<1x256xf32, #tpu.memory_space<vmem>>, vector<1x256xf32>
      tpu.vector_store %arg3[%c0_15, %c0_16], %17 {strides = array<i32>} : memref<1x256xf32, #tpu.memory_space<vmem>>, vector<1x256xf32>,
    } else {
    }
    %c0 = arith.constant 0 : index
    %c0_1 = arith.constant 0 : index
    %3 = vector.load %arg1[%c0, %c0_1] : memref<64x256xf32, #tpu.memory_space<vmem>>, vector<64x256xf32>
    %c0_2 = arith.constant 0 : index
    %c0_3 = arith.constant 0 : index
    %4 = vector.load %arg2[%c0_2, %c0_3] : memref<1x256xf32, #tpu.memory_space<vmem>>, vector<1x256xf32>
    %cst = arith.constant dense<0.000000e+00> : vector<256xf32>
    %5 = vector.multi_reduction <add>, %3, %cst [0] : vector<64x256xf32> to vector<256xf32>
    %6 = vector.shape_cast %5 : vector<256xf32> to vector<1x256xf32>
    %7 = arith.addf %4, %6 : vector<1x256xf32>
    %c0_4 = arith.constant 0 : index
    %c0_5 = arith.constant 0 : index
    %8 = vector.load %arg2[%c0_4, %c0_5] : memref<1x256xf32, #tpu.memory_space<vmem>>, vector<1x256xf32>
    tpu.vector_store %arg2[%c0_4, %c0_5], %7 {strides = array<i32>} : memref<1x256xf32, #tpu.memory_space<vmem>>, vector<1x256xf32>,
    %c0_6 = arith.constant 0 : index
    %c0_7 = arith.constant 0 : index
    %9 = vector.load %arg3[%c0_6, %c0_7] : memref<1x256xf32, #tpu.memory_space<vmem>>, vector<1x256xf32>
    %10 = arith.mulf %3, %3 : vector<64x256xf32>
    %cst_8 = arith.constant dense<0.000000e+00> : vector<256xf32>
    %11 = vector.multi_reduction <add>, %10, %cst_8 [0] : vector<64x256xf32> to vector<256xf32>
    %12 = vector.shape_cast %11 : vector<256xf32> to vector<1x256xf32>
    %13 = arith.addf %9, %12 : vector<1x256xf32>
    %c0_9 = arith.constant 0 : index
    %c0_10 = arith.constant 0 : index
    %14 = vector.load %arg3[%c0_9, %c0_10] : memref<1x256xf32, #tpu.memory_space<vmem>>, vector<1x256xf32>
    tpu.vector_store %arg3[%c0_9, %c0_10], %13 {strides = array<i32>} : memref<1x256xf32, #tpu.memory_space<vmem>>, vector<1x256xf32>,
    return
  }
  func.func @transform_0(%arg0: i32) -> (i32, i32) {
    %c0_i32 = arith.constant 0 : i32
    %c0_i32_0 = arith.constant 0 : i32
    return %arg0, %c0_i32 : i32, i32
  }
  func.func @transform_1(%arg0: i32) -> (i32, i32) {
    %c0_i32 = arith.constant 0 : i32
    %c0_i32_0 = arith.constant 0 : i32
    %c0_i32_1 = arith.constant 0 : i32
    return %c0_i32, %c0_i32_0 : i32, i32
  }
  func.func @transform_2(%arg0: i32) -> (i32, i32) {
    %c0_i32 = arith.constant 0 : i32
    %c0_i32_0 = arith.constant 0 : i32
    %c0_i32_1 = arith.constant 0 : i32
    return %c0_i32, %c0_i32_0 : i32, i32
  }
}

module attributes {stable_mosaic.version = 11 : i64} {
  func.func @_bn_apply_relu_kernel(%arg0: i32, %arg1: memref<64x256xf32, #tpu.memory_space<vmem>>, %arg2: memref<1x256xf32, #tpu.memory_space<vmem>>, %arg3: memref<1x256xf32, #tpu.memory_space<vmem>>, %arg4: memref<64x256xbf16, #tpu.memory_space<vmem>>) attributes {dimension_semantics = [#tpu.dimension_semantics<parallel>], iteration_bounds = array<i64: 2>, scalar_prefetch = 0 : i64, scratch_operands = 0 : i64, tpu.core_type = #tpu.core_type<tc>, window_params = [{transform_indices = @transform_0, window_bounds = array<i64: 64, 256>}, {pipeline_mode = #tpu.pipeline_mode<synchronous>, transform_indices = @transform_1, window_bounds = array<i64: 1, 256>}, {pipeline_mode = #tpu.pipeline_mode<synchronous>, transform_indices = @transform_2, window_bounds = array<i64: 1, 256>}, {transform_indices = @transform_3, window_bounds = array<i64: 64, 256>}]} {
    %c0 = arith.constant 0 : index
    %c0_0 = arith.constant 0 : index
    %0 = vector.load %arg1[%c0, %c0_0] : memref<64x256xf32, #tpu.memory_space<vmem>>, vector<64x256xf32>
    %c0_1 = arith.constant 0 : index
    %c0_2 = arith.constant 0 : index
    %1 = vector.load %arg2[%c0_1, %c0_2] : memref<1x256xf32, #tpu.memory_space<vmem>>, vector<1x256xf32>
    %2 = vector.broadcast %1 : vector<1x256xf32> to vector<64x256xf32>
    %3 = arith.mulf %0, %2 : vector<64x256xf32>
    %c0_3 = arith.constant 0 : index
    %c0_4 = arith.constant 0 : index
    %4 = vector.load %arg3[%c0_3, %c0_4] : memref<1x256xf32, #tpu.memory_space<vmem>>, vector<1x256xf32>
    %5 = vector.broadcast %4 : vector<1x256xf32> to vector<64x256xf32>
    %6 = arith.addf %3, %5 : vector<64x256xf32>
    %cst = arith.constant 0.000000e+00 : f32
    %7 = vector.broadcast %cst : f32 to vector<64x256xf32>
    %8 = arith.maximumf %6, %7 : vector<64x256xf32>
    %9 = arith.truncf %8 : vector<64x256xf32> to vector<64x256xbf16>
    %c0_5 = arith.constant 0 : index
    %c0_6 = arith.constant 0 : index
    %10 = vector.load %arg4[%c0_5, %c0_6] : memref<64x256xbf16, #tpu.memory_space<vmem>>, vector<64x256xbf16>
    tpu.vector_store %arg4[%c0_5, %c0_6], %9 {strides = array<i32>} : memref<64x256xbf16, #tpu.memory_space<vmem>>, vector<64x256xbf16>,
    return
  }
  func.func @transform_0(%arg0: i32) -> (i32, i32) {
    %c0_i32 = arith.constant 0 : i32
    %c0_i32_0 = arith.constant 0 : i32
    return %arg0, %c0_i32 : i32, i32
  }
  func.func @transform_1(%arg0: i32) -> (i32, i32) {
    %c0_i32 = arith.constant 0 : i32
    %c0_i32_0 = arith.constant 0 : i32
    %c0_i32_1 = arith.constant 0 : i32
    return %c0_i32, %c0_i32_0 : i32, i32
  }
  func.func @transform_2(%arg0: i32) -> (i32, i32) {
    %c0_i32 = arith.constant 0 : i32
    %c0_i32_0 = arith.constant 0 : i32
    %c0_i32_1 = arith.constant 0 : i32
    return %c0_i32, %c0_i32_0 : i32, i32
  }
  func.func @transform_3(%arg0: i32) -> (i32, i32) {
    %c0_i32 = arith.constant 0 : i32
    %c0_i32_0 = arith.constant 0 : i32
    return %arg0, %c0_i32 : i32, i32
  }
}

module attributes {stable_mosaic.version = 11 : i64} {
  func.func @_matmul_bias_kernel(%arg0: i32, %arg1: i32, %arg2: i32, %arg3: i32, %arg4: memref<1x64x512xbf16, #tpu.memory_space<vmem>>, %arg5: memref<1x512x128xbf16, #tpu.memory_space<vmem>>, %arg6: memref<1x128xf32, #tpu.memory_space<vmem>>, %arg7: memref<1x64x128xf32, #tpu.memory_space<vmem>>, %arg8: memref<64x128xf32, #tpu.memory_space<vmem>>) attributes {dimension_semantics = [#tpu.dimension_semantics<parallel>, #tpu.dimension_semantics<parallel>, #tpu.dimension_semantics<parallel>, #tpu.dimension_semantics<arbitrary>], iteration_bounds = array<i64: 4, 2, 1, 2>, scalar_prefetch = 0 : i64, scratch_operands = 1 : i64, tpu.core_type = #tpu.core_type<tc>, window_params = [{transform_indices = @transform_0, window_bounds = array<i64: 1, 64, 512>}, {transform_indices = @transform_1, window_bounds = array<i64: 1, 512, 128>}, {transform_indices = @transform_2, window_bounds = array<i64: 1, 128>}, {transform_indices = @transform_3, window_bounds = array<i64: 1, 64, 128>}]} {
    %c0_i32 = arith.constant 0 : i32
    %0 = arith.cmpi eq, %arg3, %c0_i32 : i32
    %1 = arith.extui %0 : i1 to i32
    %c0_i32_0 = arith.constant 0 : i32
    %2 = arith.cmpi ne, %1, %c0_i32_0 : i32
    scf.if %2 {
      %cst_11 = arith.constant 0.000000e+00 : f32
      %14 = vector.broadcast %cst_11 : f32 to vector<64x128xf32>
      %c0_12 = arith.constant 0 : index
      %c0_13 = arith.constant 0 : index
      %15 = vector.load %arg8[%c0_12, %c0_13] : memref<64x128xf32, #tpu.memory_space<vmem>>, vector<64x128xf32>
      tpu.vector_store %arg8[%c0_12, %c0_13], %14 {strides = array<i32>} : memref<64x128xf32, #tpu.memory_space<vmem>>, vector<64x128xf32>,
    } else {
    }
    %c0 = arith.constant 0 : index
    %c0_1 = arith.constant 0 : index
    %3 = vector.load %arg8[%c0, %c0_1] : memref<64x128xf32, #tpu.memory_space<vmem>>, vector<64x128xf32>
    %c0_2 = arith.constant 0 : index
    %c0_3 = arith.constant 0 : index
    %c0_4 = arith.constant 0 : index
    %4 = vector.load %arg4[%c0_2, %c0_3, %c0_4] : memref<1x64x512xbf16, #tpu.memory_space<vmem>>, vector<1x64x512xbf16>
    %5 = vector.shape_cast %4 : vector<1x64x512xbf16> to vector<64x512xbf16>
    %c0_5 = arith.constant 0 : index
    %c0_6 = arith.constant 0 : index
    %c0_7 = arith.constant 0 : index
    %6 = vector.load %arg5[%c0_5, %c0_6, %c0_7] : memref<1x512x128xbf16, #tpu.memory_space<vmem>>, vector<1x512x128xbf16>
    %7 = vector.shape_cast %6 : vector<1x512x128xbf16> to vector<512x128xbf16>
    %cst = arith.constant dense<0.000000e+00> : vector<64x128xf32>
    %8 = tpu.matmul %5, %7, %cst {dimension_numbers = #tpu.dot_dimension_numbers<[1], [0], [0], [1], [0, 0, 1, 1], [], []>} : vector<64x512xbf16>, vector<512x128xbf16>, vector<64x128xf32> -> vector<64x128xf32>
    %9 = arith.addf %3, %8 : vector<64x128xf32>
    %c0_8 = arith.constant 0 : index
    %c0_9 = arith.constant 0 : index
    %10 = vector.load %arg8[%c0_8, %c0_9] : memref<64x128xf32, #tpu.memory_space<vmem>>, vector<64x128xf32>
    tpu.vector_store %arg8[%c0_8, %c0_9], %9 {strides = array<i32>} : memref<64x128xf32, #tpu.memory_space<vmem>>, vector<64x128xf32>,
    %c1_i32 = arith.constant 1 : i32
    %11 = arith.cmpi eq, %arg3, %c1_i32 : i32
    %12 = arith.extui %11 : i1 to i32
    %c0_i32_10 = arith.constant 0 : i32
    %13 = arith.cmpi ne, %12, %c0_i32_10 : i32
    scf.if %13 {
      %c0_11 = arith.constant 0 : index
      %c0_12 = arith.constant 0 : index
      %14 = vector.load %arg8[%c0_11, %c0_12] : memref<64x128xf32, #tpu.memory_space<vmem>>, vector<64x128xf32>
      %c0_13 = arith.constant 0 : index
      %c0_14 = arith.constant 0 : index
      %15 = vector.load %arg6[%c0_13, %c0_14] : memref<1x128xf32, #tpu.memory_space<vmem>>, vector<1x128xf32>
      %16 = vector.broadcast %15 : vector<1x128xf32> to vector<64x128xf32>
      %17 = arith.addf %14, %16 : vector<64x128xf32>
      %c0_15 = arith.constant 0 : index
      %c0_16 = arith.constant 0 : index
      %c0_17 = arith.constant 0 : index
      %18 = vector.load %arg7[%c0_15, %c0_16, %c0_17] : memref<1x64x128xf32, #tpu.memory_space<vmem>>, vector<1x64x128xf32>
      %19 = vector.shape_cast %18 : vector<1x64x128xf32> to vector<64x128xf32>
      %20 = vector.shape_cast %17 : vector<64x128xf32> to vector<1x64x128xf32>
      tpu.vector_store %arg7[%c0_15, %c0_16, %c0_17], %20 {strides = array<i32>} : memref<1x64x128xf32, #tpu.memory_space<vmem>>, vector<1x64x128xf32>,
    } else {
    }
    return
  }
  func.func @transform_0(%arg0: i32, %arg1: i32, %arg2: i32, %arg3: i32) -> (i32, i32, i32) {
    %c0_i32 = arith.constant 0 : i32
    return %arg0, %arg1, %arg3 : i32, i32, i32
  }
  func.func @transform_1(%arg0: i32, %arg1: i32, %arg2: i32, %arg3: i32) -> (i32, i32, i32) {
    %c0_i32 = arith.constant 0 : i32
    return %arg0, %arg3, %arg2 : i32, i32, i32
  }
  func.func @transform_2(%arg0: i32, %arg1: i32, %arg2: i32, %arg3: i32) -> (i32, i32) {
    %c0_i32 = arith.constant 0 : i32
    %c0_i32_0 = arith.constant 0 : i32
    return %c0_i32, %arg2 : i32, i32
  }
  func.func @transform_3(%arg0: i32, %arg1: i32, %arg2: i32, %arg3: i32) -> (i32, i32, i32) {
    %c0_i32 = arith.constant 0 : i32
    return %arg0, %arg1, %arg2 : i32, i32, i32
  }
}

module attributes {stable_mosaic.version = 11 : i64} {
  func.func @_bn_stats_kernel(%arg0: i32, %arg1: memref<256x128xf32, #tpu.memory_space<vmem>>, %arg2: memref<1x128xf32, #tpu.memory_space<vmem>>, %arg3: memref<1x128xf32, #tpu.memory_space<vmem>>) attributes {dimension_semantics = [#tpu.dimension_semantics<arbitrary>], iteration_bounds = array<i64: 2>, scalar_prefetch = 0 : i64, scratch_operands = 0 : i64, tpu.core_type = #tpu.core_type<tc>, window_params = [{transform_indices = @transform_0, window_bounds = array<i64: 256, 128>}, {pipeline_mode = #tpu.pipeline_mode<synchronous>, transform_indices = @transform_1, window_bounds = array<i64: 1, 128>}, {pipeline_mode = #tpu.pipeline_mode<synchronous>, transform_indices = @transform_2, window_bounds = array<i64: 1, 128>}]} {
    %c0_i32 = arith.constant 0 : i32
    %0 = arith.cmpi eq, %arg0, %c0_i32 : i32
    %1 = arith.extui %0 : i1 to i32
    %c0_i32_0 = arith.constant 0 : i32
    %2 = arith.cmpi ne, %1, %c0_i32_0 : i32
    scf.if %2 {
      %cst_11 = arith.constant 0.000000e+00 : f32
      %15 = vector.broadcast %cst_11 : f32 to vector<1x128xf32>
      %c0_12 = arith.constant 0 : index
      %c0_13 = arith.constant 0 : index
      %16 = vector.load %arg2[%c0_12, %c0_13] : memref<1x128xf32, #tpu.memory_space<vmem>>, vector<1x128xf32>
      tpu.vector_store %arg2[%c0_12, %c0_13], %15 {strides = array<i32>} : memref<1x128xf32, #tpu.memory_space<vmem>>, vector<1x128xf32>,
      %cst_14 = arith.constant 0.000000e+00 : f32
      %17 = vector.broadcast %cst_14 : f32 to vector<1x128xf32>
      %c0_15 = arith.constant 0 : index
      %c0_16 = arith.constant 0 : index
      %18 = vector.load %arg3[%c0_15, %c0_16] : memref<1x128xf32, #tpu.memory_space<vmem>>, vector<1x128xf32>
      tpu.vector_store %arg3[%c0_15, %c0_16], %17 {strides = array<i32>} : memref<1x128xf32, #tpu.memory_space<vmem>>, vector<1x128xf32>,
    } else {
    }
    %c0 = arith.constant 0 : index
    %c0_1 = arith.constant 0 : index
    %3 = vector.load %arg1[%c0, %c0_1] : memref<256x128xf32, #tpu.memory_space<vmem>>, vector<256x128xf32>
    %c0_2 = arith.constant 0 : index
    %c0_3 = arith.constant 0 : index
    %4 = vector.load %arg2[%c0_2, %c0_3] : memref<1x128xf32, #tpu.memory_space<vmem>>, vector<1x128xf32>
    %cst = arith.constant dense<0.000000e+00> : vector<128xf32>
    %5 = vector.multi_reduction <add>, %3, %cst [0] : vector<256x128xf32> to vector<128xf32>
    %6 = vector.shape_cast %5 : vector<128xf32> to vector<1x128xf32>
    %7 = arith.addf %4, %6 : vector<1x128xf32>
    %c0_4 = arith.constant 0 : index
    %c0_5 = arith.constant 0 : index
    %8 = vector.load %arg2[%c0_4, %c0_5] : memref<1x128xf32, #tpu.memory_space<vmem>>, vector<1x128xf32>
    tpu.vector_store %arg2[%c0_4, %c0_5], %7 {strides = array<i32>} : memref<1x128xf32, #tpu.memory_space<vmem>>, vector<1x128xf32>,
    %c0_6 = arith.constant 0 : index
    %c0_7 = arith.constant 0 : index
    %9 = vector.load %arg3[%c0_6, %c0_7] : memref<1x128xf32, #tpu.memory_space<vmem>>, vector<1x128xf32>
    %10 = arith.mulf %3, %3 : vector<256x128xf32>
    %cst_8 = arith.constant dense<0.000000e+00> : vector<128xf32>
    %11 = vector.multi_reduction <add>, %10, %cst_8 [0] : vector<256x128xf32> to vector<128xf32>
    %12 = vector.shape_cast %11 : vector<128xf32> to vector<1x128xf32>
    %13 = arith.addf %9, %12 : vector<1x128xf32>
    %c0_9 = arith.constant 0 : index
    %c0_10 = arith.constant 0 : index
    %14 = vector.load %arg3[%c0_9, %c0_10] : memref<1x128xf32, #tpu.memory_space<vmem>>, vector<1x128xf32>
    tpu.vector_store %arg3[%c0_9, %c0_10], %13 {strides = array<i32>} : memref<1x128xf32, #tpu.memory_space<vmem>>, vector<1x128xf32>,
    return
  }
  func.func @transform_0(%arg0: i32) -> (i32, i32) {
    %c0_i32 = arith.constant 0 : i32
    %c0_i32_0 = arith.constant 0 : i32
    return %arg0, %c0_i32 : i32, i32
  }
  func.func @transform_1(%arg0: i32) -> (i32, i32) {
    %c0_i32 = arith.constant 0 : i32
    %c0_i32_0 = arith.constant 0 : i32
    %c0_i32_1 = arith.constant 0 : i32
    return %c0_i32, %c0_i32_0 : i32, i32
  }
  func.func @transform_2(%arg0: i32) -> (i32, i32) {
    %c0_i32 = arith.constant 0 : i32
    %c0_i32_0 = arith.constant 0 : i32
    %c0_i32_1 = arith.constant 0 : i32
    return %c0_i32, %c0_i32_0 : i32, i32
  }
}

module attributes {stable_mosaic.version = 11 : i64} {
  func.func @_bn_apply_relu_kernel(%arg0: i32, %arg1: memref<256x128xf32, #tpu.memory_space<vmem>>, %arg2: memref<1x128xf32, #tpu.memory_space<vmem>>, %arg3: memref<1x128xf32, #tpu.memory_space<vmem>>, %arg4: memref<256x128xbf16, #tpu.memory_space<vmem>>) attributes {dimension_semantics = [#tpu.dimension_semantics<parallel>], iteration_bounds = array<i64: 2>, scalar_prefetch = 0 : i64, scratch_operands = 0 : i64, tpu.core_type = #tpu.core_type<tc>, window_params = [{transform_indices = @transform_0, window_bounds = array<i64: 256, 128>}, {pipeline_mode = #tpu.pipeline_mode<synchronous>, transform_indices = @transform_1, window_bounds = array<i64: 1, 128>}, {pipeline_mode = #tpu.pipeline_mode<synchronous>, transform_indices = @transform_2, window_bounds = array<i64: 1, 128>}, {transform_indices = @transform_3, window_bounds = array<i64: 256, 128>}]} {
    %c0 = arith.constant 0 : index
    %c0_0 = arith.constant 0 : index
    %0 = vector.load %arg1[%c0, %c0_0] : memref<256x128xf32, #tpu.memory_space<vmem>>, vector<256x128xf32>
    %c0_1 = arith.constant 0 : index
    %c0_2 = arith.constant 0 : index
    %1 = vector.load %arg2[%c0_1, %c0_2] : memref<1x128xf32, #tpu.memory_space<vmem>>, vector<1x128xf32>
    %2 = vector.broadcast %1 : vector<1x128xf32> to vector<256x128xf32>
    %3 = arith.mulf %0, %2 : vector<256x128xf32>
    %c0_3 = arith.constant 0 : index
    %c0_4 = arith.constant 0 : index
    %4 = vector.load %arg3[%c0_3, %c0_4] : memref<1x128xf32, #tpu.memory_space<vmem>>, vector<1x128xf32>
    %5 = vector.broadcast %4 : vector<1x128xf32> to vector<256x128xf32>
    %6 = arith.addf %3, %5 : vector<256x128xf32>
    %cst = arith.constant 0.000000e+00 : f32
    %7 = vector.broadcast %cst : f32 to vector<256x128xf32>
    %8 = arith.maximumf %6, %7 : vector<256x128xf32>
    %9 = arith.truncf %8 : vector<256x128xf32> to vector<256x128xbf16>
    %c0_5 = arith.constant 0 : index
    %c0_6 = arith.constant 0 : index
    %10 = vector.load %arg4[%c0_5, %c0_6] : memref<256x128xbf16, #tpu.memory_space<vmem>>, vector<256x128xbf16>
    tpu.vector_store %arg4[%c0_5, %c0_6], %9 {strides = array<i32>} : memref<256x128xbf16, #tpu.memory_space<vmem>>, vector<256x128xbf16>,
    return
  }
  func.func @transform_0(%arg0: i32) -> (i32, i32) {
    %c0_i32 = arith.constant 0 : i32
    %c0_i32_0 = arith.constant 0 : i32
    return %arg0, %c0_i32 : i32, i32
  }
  func.func @transform_1(%arg0: i32) -> (i32, i32) {
    %c0_i32 = arith.constant 0 : i32
    %c0_i32_0 = arith.constant 0 : i32
    %c0_i32_1 = arith.constant 0 : i32
    return %c0_i32, %c0_i32_0 : i32, i32
  }
  func.func @transform_2(%arg0: i32) -> (i32, i32) {
    %c0_i32 = arith.constant 0 : i32
    %c0_i32_0 = arith.constant 0 : i32
    %c0_i32_1 = arith.constant 0 : i32
    return %c0_i32, %c0_i32_0 : i32, i32
  }
  func.func @transform_3(%arg0: i32) -> (i32, i32) {
    %c0_i32 = arith.constant 0 : i32
    %c0_i32_0 = arith.constant 0 : i32
    return %arg0, %c0_i32 : i32, i32
  }
}

module attributes {stable_mosaic.version = 11 : i64} {
  func.func @_matmul_bias_kernel(%arg0: i32, %arg1: i32, %arg2: i32, %arg3: i32, %arg4: memref<1x256x512xbf16, #tpu.memory_space<vmem>>, %arg5: memref<1x512x64xbf16, #tpu.memory_space<vmem>>, %arg6: memref<1x64xf32, #tpu.memory_space<vmem>>, %arg7: memref<1x256x64xf32, #tpu.memory_space<vmem>>, %arg8: memref<256x64xf32, #tpu.memory_space<vmem>>) attributes {dimension_semantics = [#tpu.dimension_semantics<parallel>, #tpu.dimension_semantics<parallel>, #tpu.dimension_semantics<parallel>, #tpu.dimension_semantics<arbitrary>], iteration_bounds = array<i64: 4, 2, 1, 1>, scalar_prefetch = 0 : i64, scratch_operands = 1 : i64, tpu.core_type = #tpu.core_type<tc>, window_params = [{transform_indices = @transform_0, window_bounds = array<i64: 1, 256, 512>}, {transform_indices = @transform_1, window_bounds = array<i64: 1, 512, 64>}, {transform_indices = @transform_2, window_bounds = array<i64: 1, 64>}, {transform_indices = @transform_3, window_bounds = array<i64: 1, 256, 64>}]} {
    %c0_i32 = arith.constant 0 : i32
    %0 = arith.cmpi eq, %arg3, %c0_i32 : i32
    %1 = arith.extui %0 : i1 to i32
    %c0_i32_0 = arith.constant 0 : i32
    %2 = arith.cmpi ne, %1, %c0_i32_0 : i32
    scf.if %2 {
      %cst_12 = arith.constant 0.000000e+00 : f32
      %14 = vector.broadcast %cst_12 : f32 to vector<256x64xf32>
      %c0_13 = arith.constant 0 : index
      %c0_14 = arith.constant 0 : index
      %15 = vector.load %arg8[%c0_13, %c0_14] : memref<256x64xf32, #tpu.memory_space<vmem>>, vector<256x64xf32>
      tpu.vector_store %arg8[%c0_13, %c0_14], %14 {strides = array<i32>} : memref<256x64xf32, #tpu.memory_space<vmem>>, vector<256x64xf32>,
    } else {
    }
    %c0 = arith.constant 0 : index
    %c0_1 = arith.constant 0 : index
    %3 = vector.load %arg8[%c0, %c0_1] : memref<256x64xf32, #tpu.memory_space<vmem>>, vector<256x64xf32>
    %c0_2 = arith.constant 0 : index
    %c0_3 = arith.constant 0 : index
    %c0_4 = arith.constant 0 : index
    %4 = vector.load %arg4[%c0_2, %c0_3, %c0_4] : memref<1x256x512xbf16, #tpu.memory_space<vmem>>, vector<1x256x512xbf16>
    %5 = vector.shape_cast %4 : vector<1x256x512xbf16> to vector<256x512xbf16>
    %c0_5 = arith.constant 0 : index
    %c0_6 = arith.constant 0 : index
    %c0_7 = arith.constant 0 : index
    %6 = vector.load %arg5[%c0_5, %c0_6, %c0_7] : memref<1x512x64xbf16, #tpu.memory_space<vmem>>, vector<1x512x64xbf16>
    %7 = vector.shape_cast %6 : vector<1x512x64xbf16> to vector<512x64xbf16>
    %cst = arith.constant dense<0.000000e+00> : vector<256x64xf32>
    %8 = tpu.matmul %5, %7, %cst {dimension_numbers = #tpu.dot_dimension_numbers<[1], [0], [0], [1], [0, 0, 1, 1], [], []>} : vector<256x512xbf16>, vector<512x64xbf16>, vector<256x64xf32> -> vector<256x64xf32>
    %9 = arith.addf %3, %8 : vector<256x64xf32>
    %c0_8 = arith.constant 0 : index
    %c0_9 = arith.constant 0 : index
    %10 = vector.load %arg8[%c0_8, %c0_9] : memref<256x64xf32, #tpu.memory_space<vmem>>, vector<256x64xf32>
    tpu.vector_store %arg8[%c0_8, %c0_9], %9 {strides = array<i32>} : memref<256x64xf32, #tpu.memory_space<vmem>>, vector<256x64xf32>,
    %c0_i32_10 = arith.constant 0 : i32
    %11 = arith.cmpi eq, %arg3, %c0_i32_10 : i32
    %12 = arith.extui %11 : i1 to i32
    %c0_i32_11 = arith.constant 0 : i32
    %13 = arith.cmpi ne, %12, %c0_i32_11 : i32
    scf.if %13 {
      %c0_12 = arith.constant 0 : index
      %c0_13 = arith.constant 0 : index
      %14 = vector.load %arg8[%c0_12, %c0_13] : memref<256x64xf32, #tpu.memory_space<vmem>>, vector<256x64xf32>
      %c0_14 = arith.constant 0 : index
      %c0_15 = arith.constant 0 : index
      %15 = vector.load %arg6[%c0_14, %c0_15] : memref<1x64xf32, #tpu.memory_space<vmem>>, vector<1x64xf32>
      %16 = vector.broadcast %15 : vector<1x64xf32> to vector<256x64xf32>
      %17 = arith.addf %14, %16 : vector<256x64xf32>
      %c0_16 = arith.constant 0 : index
      %c0_17 = arith.constant 0 : index
      %c0_18 = arith.constant 0 : index
      %18 = vector.load %arg7[%c0_16, %c0_17, %c0_18] : memref<1x256x64xf32, #tpu.memory_space<vmem>>, vector<1x256x64xf32>
      %19 = vector.shape_cast %18 : vector<1x256x64xf32> to vector<256x64xf32>
      %20 = vector.shape_cast %17 : vector<256x64xf32> to vector<1x256x64xf32>
      tpu.vector_store %arg7[%c0_16, %c0_17, %c0_18], %20 {strides = array<i32>} : memref<1x256x64xf32, #tpu.memory_space<vmem>>, vector<1x256x64xf32>,
    } else {
    }
    return
  }
  func.func @transform_0(%arg0: i32, %arg1: i32, %arg2: i32, %arg3: i32) -> (i32, i32, i32) {
    %c0_i32 = arith.constant 0 : i32
    return %arg0, %arg1, %arg3 : i32, i32, i32
  }
  func.func @transform_1(%arg0: i32, %arg1: i32, %arg2: i32, %arg3: i32) -> (i32, i32, i32) {
    %c0_i32 = arith.constant 0 : i32
    return %arg0, %arg3, %arg2 : i32, i32, i32
  }
  func.func @transform_2(%arg0: i32, %arg1: i32, %arg2: i32, %arg3: i32) -> (i32, i32) {
    %c0_i32 = arith.constant 0 : i32
    %c0_i32_0 = arith.constant 0 : i32
    return %c0_i32, %arg2 : i32, i32
  }
  func.func @transform_3(%arg0: i32, %arg1: i32, %arg2: i32, %arg3: i32) -> (i32, i32, i32) {
    %c0_i32 = arith.constant 0 : i32
    return %arg0, %arg1, %arg2 : i32, i32, i32
  }
}

module attributes {stable_mosaic.version = 11 : i64} {
  func.func @_bn_stats_kernel(%arg0: i32, %arg1: memref<1024x64xf32, #tpu.memory_space<vmem>>, %arg2: memref<1x64xf32, #tpu.memory_space<vmem>>, %arg3: memref<1x64xf32, #tpu.memory_space<vmem>>) attributes {dimension_semantics = [#tpu.dimension_semantics<arbitrary>], iteration_bounds = array<i64: 2>, scalar_prefetch = 0 : i64, scratch_operands = 0 : i64, tpu.core_type = #tpu.core_type<tc>, window_params = [{transform_indices = @transform_0, window_bounds = array<i64: 1024, 64>}, {pipeline_mode = #tpu.pipeline_mode<synchronous>, transform_indices = @transform_1, window_bounds = array<i64: 1, 64>}, {pipeline_mode = #tpu.pipeline_mode<synchronous>, transform_indices = @transform_2, window_bounds = array<i64: 1, 64>}]} {
    %c0_i32 = arith.constant 0 : i32
    %0 = arith.cmpi eq, %arg0, %c0_i32 : i32
    %1 = arith.extui %0 : i1 to i32
    %c0_i32_0 = arith.constant 0 : i32
    %2 = arith.cmpi ne, %1, %c0_i32_0 : i32
    scf.if %2 {
      %cst_11 = arith.constant 0.000000e+00 : f32
      %15 = vector.broadcast %cst_11 : f32 to vector<1x64xf32>
      %c0_12 = arith.constant 0 : index
      %c0_13 = arith.constant 0 : index
      %16 = vector.load %arg2[%c0_12, %c0_13] : memref<1x64xf32, #tpu.memory_space<vmem>>, vector<1x64xf32>
      tpu.vector_store %arg2[%c0_12, %c0_13], %15 {strides = array<i32>} : memref<1x64xf32, #tpu.memory_space<vmem>>, vector<1x64xf32>,
      %cst_14 = arith.constant 0.000000e+00 : f32
      %17 = vector.broadcast %cst_14 : f32 to vector<1x64xf32>
      %c0_15 = arith.constant 0 : index
      %c0_16 = arith.constant 0 : index
      %18 = vector.load %arg3[%c0_15, %c0_16] : memref<1x64xf32, #tpu.memory_space<vmem>>, vector<1x64xf32>
      tpu.vector_store %arg3[%c0_15, %c0_16], %17 {strides = array<i32>} : memref<1x64xf32, #tpu.memory_space<vmem>>, vector<1x64xf32>,
    } else {
    }
    %c0 = arith.constant 0 : index
    %c0_1 = arith.constant 0 : index
    %3 = vector.load %arg1[%c0, %c0_1] : memref<1024x64xf32, #tpu.memory_space<vmem>>, vector<1024x64xf32>
    %c0_2 = arith.constant 0 : index
    %c0_3 = arith.constant 0 : index
    %4 = vector.load %arg2[%c0_2, %c0_3] : memref<1x64xf32, #tpu.memory_space<vmem>>, vector<1x64xf32>
    %cst = arith.constant dense<0.000000e+00> : vector<64xf32>
    %5 = vector.multi_reduction <add>, %3, %cst [0] : vector<1024x64xf32> to vector<64xf32>
    %6 = vector.shape_cast %5 : vector<64xf32> to vector<1x64xf32>
    %7 = arith.addf %4, %6 : vector<1x64xf32>
    %c0_4 = arith.constant 0 : index
    %c0_5 = arith.constant 0 : index
    %8 = vector.load %arg2[%c0_4, %c0_5] : memref<1x64xf32, #tpu.memory_space<vmem>>, vector<1x64xf32>
    tpu.vector_store %arg2[%c0_4, %c0_5], %7 {strides = array<i32>} : memref<1x64xf32, #tpu.memory_space<vmem>>, vector<1x64xf32>,
    %c0_6 = arith.constant 0 : index
    %c0_7 = arith.constant 0 : index
    %9 = vector.load %arg3[%c0_6, %c0_7] : memref<1x64xf32, #tpu.memory_space<vmem>>, vector<1x64xf32>
    %10 = arith.mulf %3, %3 : vector<1024x64xf32>
    %cst_8 = arith.constant dense<0.000000e+00> : vector<64xf32>
    %11 = vector.multi_reduction <add>, %10, %cst_8 [0] : vector<1024x64xf32> to vector<64xf32>
    %12 = vector.shape_cast %11 : vector<64xf32> to vector<1x64xf32>
    %13 = arith.addf %9, %12 : vector<1x64xf32>
    %c0_9 = arith.constant 0 : index
    %c0_10 = arith.constant 0 : index
    %14 = vector.load %arg3[%c0_9, %c0_10] : memref<1x64xf32, #tpu.memory_space<vmem>>, vector<1x64xf32>
    tpu.vector_store %arg3[%c0_9, %c0_10], %13 {strides = array<i32>} : memref<1x64xf32, #tpu.memory_space<vmem>>, vector<1x64xf32>,
    return
  }
  func.func @transform_0(%arg0: i32) -> (i32, i32) {
    %c0_i32 = arith.constant 0 : i32
    %c0_i32_0 = arith.constant 0 : i32
    return %arg0, %c0_i32 : i32, i32
  }
  func.func @transform_1(%arg0: i32) -> (i32, i32) {
    %c0_i32 = arith.constant 0 : i32
    %c0_i32_0 = arith.constant 0 : i32
    %c0_i32_1 = arith.constant 0 : i32
    return %c0_i32, %c0_i32_0 : i32, i32
  }
  func.func @transform_2(%arg0: i32) -> (i32, i32) {
    %c0_i32 = arith.constant 0 : i32
    %c0_i32_0 = arith.constant 0 : i32
    %c0_i32_1 = arith.constant 0 : i32
    return %c0_i32, %c0_i32_0 : i32, i32
  }
}

module attributes {stable_mosaic.version = 11 : i64} {
  func.func @_bn_apply_relu_kernel(%arg0: i32, %arg1: memref<1024x64xf32, #tpu.memory_space<vmem>>, %arg2: memref<1x64xf32, #tpu.memory_space<vmem>>, %arg3: memref<1x64xf32, #tpu.memory_space<vmem>>, %arg4: memref<1024x64xbf16, #tpu.memory_space<vmem>>) attributes {dimension_semantics = [#tpu.dimension_semantics<parallel>], iteration_bounds = array<i64: 2>, scalar_prefetch = 0 : i64, scratch_operands = 0 : i64, tpu.core_type = #tpu.core_type<tc>, window_params = [{transform_indices = @transform_0, window_bounds = array<i64: 1024, 64>}, {pipeline_mode = #tpu.pipeline_mode<synchronous>, transform_indices = @transform_1, window_bounds = array<i64: 1, 64>}, {pipeline_mode = #tpu.pipeline_mode<synchronous>, transform_indices = @transform_2, window_bounds = array<i64: 1, 64>}, {transform_indices = @transform_3, window_bounds = array<i64: 1024, 64>}]} {
    %c0 = arith.constant 0 : index
    %c0_0 = arith.constant 0 : index
    %0 = vector.load %arg1[%c0, %c0_0] : memref<1024x64xf32, #tpu.memory_space<vmem>>, vector<1024x64xf32>
    %c0_1 = arith.constant 0 : index
    %c0_2 = arith.constant 0 : index
    %1 = vector.load %arg2[%c0_1, %c0_2] : memref<1x64xf32, #tpu.memory_space<vmem>>, vector<1x64xf32>
    %2 = vector.broadcast %1 : vector<1x64xf32> to vector<1024x64xf32>
    %3 = arith.mulf %0, %2 : vector<1024x64xf32>
    %c0_3 = arith.constant 0 : index
    %c0_4 = arith.constant 0 : index
    %4 = vector.load %arg3[%c0_3, %c0_4] : memref<1x64xf32, #tpu.memory_space<vmem>>, vector<1x64xf32>
    %5 = vector.broadcast %4 : vector<1x64xf32> to vector<1024x64xf32>
    %6 = arith.addf %3, %5 : vector<1024x64xf32>
    %cst = arith.constant 0.000000e+00 : f32
    %7 = vector.broadcast %cst : f32 to vector<1024x64xf32>
    %8 = arith.maximumf %6, %7 : vector<1024x64xf32>
    %9 = arith.truncf %8 : vector<1024x64xf32> to vector<1024x64xbf16>
    %c0_5 = arith.constant 0 : index
    %c0_6 = arith.constant 0 : index
    %10 = vector.load %arg4[%c0_5, %c0_6] : memref<1024x64xbf16, #tpu.memory_space<vmem>>, vector<1024x64xbf16>
    tpu.vector_store %arg4[%c0_5, %c0_6], %9 {strides = array<i32>} : memref<1024x64xbf16, #tpu.memory_space<vmem>>, vector<1024x64xbf16>,
    return
  }
  func.func @transform_0(%arg0: i32) -> (i32, i32) {
    %c0_i32 = arith.constant 0 : i32
    %c0_i32_0 = arith.constant 0 : i32
    return %arg0, %c0_i32 : i32, i32
  }
  func.func @transform_1(%arg0: i32) -> (i32, i32) {
    %c0_i32 = arith.constant 0 : i32
    %c0_i32_0 = arith.constant 0 : i32
    %c0_i32_1 = arith.constant 0 : i32
    return %c0_i32, %c0_i32_0 : i32, i32
  }
  func.func @transform_2(%arg0: i32) -> (i32, i32) {
    %c0_i32 = arith.constant 0 : i32
    %c0_i32_0 = arith.constant 0 : i32
    %c0_i32_1 = arith.constant 0 : i32
    return %c0_i32, %c0_i32_0 : i32, i32
  }
  func.func @transform_3(%arg0: i32) -> (i32, i32) {
    %c0_i32 = arith.constant 0 : i32
    %c0_i32_0 = arith.constant 0 : i32
    return %arg0, %c0_i32 : i32, i32
  }
}

module attributes {stable_mosaic.version = 11 : i64} {
  func.func @_matmul_bias_tanh_kernel(%arg0: i32, %arg1: i32, %arg2: i32, %arg3: i32, %arg4: memref<1x512x256xbf16, #tpu.memory_space<vmem>>, %arg5: memref<1x256x128xbf16, #tpu.memory_space<vmem>>, %arg6: memref<1x128xf32, #tpu.memory_space<vmem>>, %arg7: memref<1x512x128xf32, #tpu.memory_space<vmem>>, %arg8: memref<1x512x128xf32, #tpu.memory_space<vmem>>, %arg9: memref<512x128xf32, #tpu.memory_space<vmem>>) attributes {dimension_semantics = [#tpu.dimension_semantics<parallel>, #tpu.dimension_semantics<parallel>, #tpu.dimension_semantics<parallel>, #tpu.dimension_semantics<arbitrary>], iteration_bounds = array<i64: 4, 4, 1, 1>, scalar_prefetch = 0 : i64, scratch_operands = 1 : i64, tpu.core_type = #tpu.core_type<tc>, window_params = [{transform_indices = @transform_0, window_bounds = array<i64: 1, 512, 256>}, {transform_indices = @transform_1, window_bounds = array<i64: 1, 256, 128>}, {transform_indices = @transform_2, window_bounds = array<i64: 1, 128>}, {transform_indices = @transform_3, window_bounds = array<i64: 1, 512, 128>}, {transform_indices = @transform_4, window_bounds = array<i64: 1, 512, 128>}]} {
    %c0_i32 = arith.constant 0 : i32
    %0 = arith.cmpi eq, %arg3, %c0_i32 : i32
    %1 = arith.extui %0 : i1 to i32
    %c0_i32_0 = arith.constant 0 : i32
    %2 = arith.cmpi ne, %1, %c0_i32_0 : i32
    scf.if %2 {
      %cst_12 = arith.constant 0.000000e+00 : f32
      %14 = vector.broadcast %cst_12 : f32 to vector<512x128xf32>
      %c0_13 = arith.constant 0 : index
      %c0_14 = arith.constant 0 : index
      %15 = vector.load %arg9[%c0_13, %c0_14] : memref<512x128xf32, #tpu.memory_space<vmem>>, vector<512x128xf32>
      tpu.vector_store %arg9[%c0_13, %c0_14], %14 {strides = array<i32>} : memref<512x128xf32, #tpu.memory_space<vmem>>, vector<512x128xf32>,
    } else {
    }
    %c0 = arith.constant 0 : index
    %c0_1 = arith.constant 0 : index
    %3 = vector.load %arg9[%c0, %c0_1] : memref<512x128xf32, #tpu.memory_space<vmem>>, vector<512x128xf32>
    %c0_2 = arith.constant 0 : index
    %c0_3 = arith.constant 0 : index
    %c0_4 = arith.constant 0 : index
    %4 = vector.load %arg4[%c0_2, %c0_3, %c0_4] : memref<1x512x256xbf16, #tpu.memory_space<vmem>>, vector<1x512x256xbf16>
    %5 = vector.shape_cast %4 : vector<1x512x256xbf16> to vector<512x256xbf16>
    %c0_5 = arith.constant 0 : index
    %c0_6 = arith.constant 0 : index
    %c0_7 = arith.constant 0 : index
    %6 = vector.load %arg5[%c0_5, %c0_6, %c0_7] : memref<1x256x128xbf16, #tpu.memory_space<vmem>>, vector<1x256x128xbf16>
    %7 = vector.shape_cast %6 : vector<1x256x128xbf16> to vector<256x128xbf16>
    %cst = arith.constant dense<0.000000e+00> : vector<512x128xf32>
    %8 = tpu.matmul %5, %7, %cst {dimension_numbers = #tpu.dot_dimension_numbers<[1], [0], [0], [1], [0, 0, 1, 1], [], []>} : vector<512x256xbf16>, vector<256x128xbf16>, vector<512x128xf32> -> vector<512x128xf32>
    %9 = arith.addf %3, %8 : vector<512x128xf32>
    %c0_8 = arith.constant 0 : index
    %c0_9 = arith.constant 0 : index
    %10 = vector.load %arg9[%c0_8, %c0_9] : memref<512x128xf32, #tpu.memory_space<vmem>>, vector<512x128xf32>
    tpu.vector_store %arg9[%c0_8, %c0_9], %9 {strides = array<i32>} : memref<512x128xf32, #tpu.memory_space<vmem>>, vector<512x128xf32>,
    %c0_i32_10 = arith.constant 0 : i32
    %11 = arith.cmpi eq, %arg3, %c0_i32_10 : i32
    %12 = arith.extui %11 : i1 to i32
    %c0_i32_11 = arith.constant 0 : i32
    %13 = arith.cmpi ne, %12, %c0_i32_11 : i32
    scf.if %13 {
      %c0_12 = arith.constant 0 : index
      %c0_13 = arith.constant 0 : index
      %14 = vector.load %arg9[%c0_12, %c0_13] : memref<512x128xf32, #tpu.memory_space<vmem>>, vector<512x128xf32>
      %c0_14 = arith.constant 0 : index
      %c0_15 = arith.constant 0 : index
      %15 = vector.load %arg6[%c0_14, %c0_15] : memref<1x128xf32, #tpu.memory_space<vmem>>, vector<1x128xf32>
      %16 = vector.broadcast %15 : vector<1x128xf32> to vector<512x128xf32>
      %17 = arith.addf %14, %16 : vector<512x128xf32>
      %c0_16 = arith.constant 0 : index
      %c0_17 = arith.constant 0 : index
      %c0_18 = arith.constant 0 : index
      %18 = vector.load %arg7[%c0_16, %c0_17, %c0_18] : memref<1x512x128xf32, #tpu.memory_space<vmem>>, vector<1x512x128xf32>
      %19 = vector.shape_cast %18 : vector<1x512x128xf32> to vector<512x128xf32>
      %20 = vector.shape_cast %17 : vector<512x128xf32> to vector<1x512x128xf32>
      tpu.vector_store %arg7[%c0_16, %c0_17, %c0_18], %20 {strides = array<i32>} : memref<1x512x128xf32, #tpu.memory_space<vmem>>, vector<1x512x128xf32>,
      %21 = math.tanh %17 : vector<512x128xf32>
      %c0_19 = arith.constant 0 : index
      %c0_20 = arith.constant 0 : index
      %c0_21 = arith.constant 0 : index
      %22 = vector.load %arg8[%c0_19, %c0_20, %c0_21] : memref<1x512x128xf32, #tpu.memory_space<vmem>>, vector<1x512x128xf32>
      %23 = vector.shape_cast %22 : vector<1x512x128xf32> to vector<512x128xf32>
      %24 = vector.shape_cast %21 : vector<512x128xf32> to vector<1x512x128xf32>
      tpu.vector_store %arg8[%c0_19, %c0_20, %c0_21], %24 {strides = array<i32>} : memref<1x512x128xf32, #tpu.memory_space<vmem>>, vector<1x512x128xf32>,
    } else {
    }
    return
  }
  func.func @transform_0(%arg0: i32, %arg1: i32, %arg2: i32, %arg3: i32) -> (i32, i32, i32) {
    %c0_i32 = arith.constant 0 : i32
    return %arg0, %arg1, %arg3 : i32, i32, i32
  }
  func.func @transform_1(%arg0: i32, %arg1: i32, %arg2: i32, %arg3: i32) -> (i32, i32, i32) {
    %c0_i32 = arith.constant 0 : i32
    return %arg0, %arg3, %arg2 : i32, i32, i32
  }
  func.func @transform_2(%arg0: i32, %arg1: i32, %arg2: i32, %arg3: i32) -> (i32, i32) {
    %c0_i32 = arith.constant 0 : i32
    %c0_i32_0 = arith.constant 0 : i32
    return %c0_i32, %arg2 : i32, i32
  }
  func.func @transform_3(%arg0: i32, %arg1: i32, %arg2: i32, %arg3: i32) -> (i32, i32, i32) {
    %c0_i32 = arith.constant 0 : i32
    return %arg0, %arg1, %arg2 : i32, i32, i32
  }
  func.func @transform_4(%arg0: i32, %arg1: i32, %arg2: i32, %arg3: i32) -> (i32, i32, i32) {
    %c0_i32 = arith.constant 0 : i32
    return %arg0, %arg1, %arg2 : i32, i32, i32
  }
}

</mosaic_0001>

<bundles_post_ra>
// kernel: generator_forward.15
= control target key start
LH: loop header
LB: loop body
LE: loop exit
PB: predicated region body
PF: predicated region fallthrough
CT: control target
= control target key end

     0   :  { %s400_s12 = smov 0   ;;  %s427_s0 = inlined_call_operand.vmem [shape: f32[32,512], index: 0, kind: input, shape index: {}]   ;;  %s428_s1 = inlined_call_operand.vmem [shape: f32[1,512], index: 1, kind: input, shape index: {}]   ;;  %s429_s2 = inlined_call_operand.vmem [shape: f32[1,512], index: 2, kind: input, shape index: {}]   ;;  %s430_s3 = inlined_call_operand.vmem [shape: bf16[32,512], index: 3, kind: output, shape index: {}]  }
   0x1 LB: > { %s341_s13 = sadd.s32 4294967295, %s378_s12   ;;  %p345_p0 = scmp.ge.s32.totalorder %s378_s12, 1  ;;  %s378_s12 = sphi %s400_s12, %s13_s12  }
   0x2   : > { %p139_p1 = scmp.lt.s32.totalorder %s378_s12, 3 }
   0x4   : > { %p140_p2 = pnand %p345_p0, %p139_p1 }
   0x5   : > { %s346_s14 = sshll.u32 (!%p140_p2), %s341_s13, 1 }
   0x6   : > { %143 = sbr.rel (%p140_p2) target bundleno = 29 (0x1d), region = 32  ;;  %p166_p3 = scmp.lt.s32.totalorder (!%p140_p2), %s346_s14, 3 }
   0xb   : > { %v189_v0 = vlaneseq  ;;  %s432_s14 = smov (!%p166_p3, %s346_s14), 3  ;;  %v187_v2 = vld [vmem:[%s428_s1] sm:$0xf] }
   0xc   : > { %v217_v3 = vld [vmem:[%s429_s2] sm:$0xf]  ;;  %s358_s19 = sshll.u32 %s432_s14, 5  ;;  %s359_s23 = sshll.u32 %s432_s14, 4 }
   0xd   : > { %v190_v1 = vshrl.u32 %v189_v0, 7  ;;  %s170_s22 = scalar_lea.vmem %s427_s0, %s358_s19  ;;  %s177_s26 = scalar_lea.vmem %s430_s3, %s359_s23 }
   0xe   : > { %v179_v12 = vld [vmem:[%s170_s22] sm:$0xff]  ;;  %v180_v13 = vld [vmem:[%s170_s22 + $0x8] sm:$0xff]  ;;  %v181_v14 = vld [vmem:[%s170_s22 + $0x10] sm:$0xff] }
   0xf   : > { %v191_v4 = vsub.s32 0, %v190_v1  ;;  %v195_v5 = vsub.s32 1, %v190_v1  ;;  %v199_v6 = vsub.s32 2, %v190_v1  ;;  %v203_v7 = vsub.s32 3, %v190_v1  ;;  %v182_v21 = vld [vmem:[%s170_s22 + $0x18] sm:$0xff]  ;;  %v183_v22 = vld [vmem:[%s170_s22 + $0x20] sm:$0xff] }
  0x10   : > { %v184_v23 = vld [vmem:[%s170_s22 + $0x28] sm:$0xff]  ;;  %v185_v28 = vld [vmem:[%s170_s22 + $0x30] sm:$0xff]  ;;  %v186_v29 = vld [vmem:[%s170_s22 + $0x38] sm:$0xff] }
  0x11   : > { %v192_v8 = vrot.slane %v187_v2, %v191_v4  ;;  %v196_v9 = vrot.slane %v187_v2, %v195_v5  ;;  %v222_v10 = vrot.slane %v217_v3, %v191_v4  ;;  %v226_v11 = vrot.slane %v217_v3, %v195_v5 }
  0x12   : > { %v200_v15 = vrot.slane %v187_v2, %v199_v6  ;;  %v204_v16 = vrot.slane %v187_v2, %v203_v7  ;;  %v230_v17 = vrot.slane %v217_v3, %v199_v6  ;;  %v234_v18 = vrot.slane %v217_v3, %v203_v7 }
  0x13   : > { %v209_v19 = vmul.f32 %v192_v8, %v179_v12  ;;  %v210_v20 = vmul.f32 %v196_v9, %v180_v13  ;;  %v213_v26 = vmul.f32 %v192_v8, %v183_v22  ;;  %v214_v27 = vmul.f32 %v196_v9, %v184_v23 }
  0x14   : > { %v211_v24 = vmul.f32 %v200_v15, %v181_v14  ;;  %v212_v25 = vmul.f32 %v204_v16, %v182_v21  ;;  %v215_v32 = vmul.f32 %v200_v15, %v185_v28  ;;  %v216_v33 = vmul.f32 %v204_v16, %v186_v29 }
  0x15   : > { %v239_v30 = vadd.f32 %v222_v10, %v209_v19  ;;  %v240_v31 = vadd.f32 %v226_v11, %v210_v20  ;;  %v243_v36 = vadd.f32 %v222_v10, %v213_v26  ;;  %v244_v37 = vadd.f32 %v226_v11, %v214_v27 }
  0x16   : > { %v241_v34 = vadd.f32 %v230_v17, %v211_v24  ;;  %v242_v35 = vadd.f32 %v234_v18, %v212_v25  ;;  %v245_v40 = vadd.f32 %v230_v17, %v215_v32  ;;  %v246_v41 = vadd.f32 %v234_v18, %v216_v33 }
  0x17   : > { %v247_v38 = vmax.f32 %v239_v30, 0.0  ;;  %v248_v39 = vmax.f32 %v240_v31, 0.0  ;;  %v251_v44 = vmax.f32 %v243_v36, 0.0  ;;  %v252_v45 = vmax.f32 %v244_v37, 0.0 }
  0x18   : > { %v249_v42 = vmax.f32 %v241_v34, 0.0  ;;  %v250_v43 = vmax.f32 %v242_v35, 0.0  ;;  %v253_v47 = vmax.f32 %v245_v40, 0.0  ;;  %v254_v48 = vmax.f32 %v246_v41, 0.0 }
  0x19   : > { %v360_v46 = vpack.c.bf16 %v248_v39, %v247_v38  ;;  %v362_v50 = vpack.c.bf16 %v252_v45, %v251_v44 }
  0x1a   : > { %v361_v49 = vpack.c.bf16 %v250_v43, %v249_v42  ;;  %v363_v51 = vpack.c.bf16 %v254_v48, %v253_v47 }
  0x1b   : > { %279 = vst [vmem:[%s177_s26] sm:$0xff] %v360_v46  ;;  %281 = vst [vmem:[%s177_s26 + $0x10] sm:$0xff] %v362_v50 }
  0x1c   : > { %280 = vst [vmem:[%s177_s26 + $0x8] sm:$0xff] %v361_v49  ;;  %282 = vst [vmem:[%s177_s26 + $0x18] sm:$0xff] %v363_v51 }
  0x1d PF: > { %s13_s12 = sadd.s32 1, %s378_s12  }
  0x1e   : > { %p10_p4 = scmp.ge.s32.totalorder %s13_s12, 4  }
  0x20   :  { %12 = sbr.rel (!%p10_p4) target bundleno = 1 (0x1), region = 62 }

// kernel: generator_forward.13
= control target key start
LH: loop header
LB: loop body
LE: loop exit
PB: predicated region body
PF: predicated region fallthrough
CT: control target
= control target key end

     0   :  { %s767_s12 = smov 0   ;;  %s769_s13 = smov 0   ;;  %s842_s0 = inlined_call_operand.vmem [shape: bf16[1,2,16], index: 0, kind: input, shape index: {}]   ;;  %s843_s1 = inlined_call_operand.vmem [shape: bf16[1,16,8192], index: 1, kind: input, shape index: {}]   ;;  %s844_s2 = inlined_call_operand.vmem [shape: f32[1,8192], index: 2, kind: input, shape index: {}]   ;;  %s845_s3 = inlined_call_operand.vmem [shape: f32[1,2,8192], index: 3, kind: output, shape index: {}]  }
   0x1   :  { %s771_s14 = smov 0   ;;  %s773_s15 = smov 0  }
   0x2   :  { %s775_s16 = smov 0  }
   0x3 LB: > { %s31_s17 = sadd.s32 1, %s739_s15  ;;  %p87_p1 = scmp.ne.s32.totalorder %s731_s13, %s727_s12  ;;  %s743_s16 = sphi %s775_s16, %s13_s16   ;;  %s739_s15 = sphi %s773_s15, %s849_s15   ;;  %s735_s14 = sphi %s771_s14, %s848_s14   ;;  %s731_s13 = sphi %s769_s13, %s847_s13   ;;  %s727_s12 = sphi %s767_s12, %s846_s12  }
   0x4   : > { %p33_p0 = scmp.ge.s32.totalorder %s31_s17, 16  ;;  %p88_p2 = scmp.eq.s32.totalorder %s743_s16, 0 }
   0x5   : > { %s80_s19 = sadd.s32 1, %s731_s13  ;;  %p639_p5 = scmp.ge.s32.totalorder %s743_s16, 16 }
   0x6   : > { %s851_s17 = smov (%p33_p0, %s31_s17), 0  ;;  %p89_p3 = por %p88_p2, %p87_p1 }
   0x7   : > { %s76_s18 = ssub.s32 %s739_s15, %s851_s17  ;;  %181 = sbr.rel (%p639_p5) target bundleno = 18 (0x12), region = 20 }
   0x8   : > { %p78_p4 = scmp.eq.s32.totalorder %s76_s18, 0 }
   0xa   : > { %s802_s20 = scalar_select %p78_p4, %s731_s13, %s80_s19  }
   0xc   : > { %184 = sbr.rel (!%p89_p3) target bundleno = 18 (0x12), region = 24  ;;  %s186_s21 = sand.u32 (%p89_p3), 1, %s731_s13  }
   0xd   : > { %s656_s22 = sshll.u32 (%p89_p3), %s739_s15, 4  ;;  %s640_s23 = sshll.u32 (%p89_p3), %s186_s21, 5 }
   0xe   : > { %s196_s26 = scalar_lea.vmem (%p89_p3), %s843_s1, %s656_s22  ;;  %s188_s27 = scalar_lea.vmem (%p89_p3), [#allocation3], %s640_s23 }
   0xf   : > { %v209_v0 = vld [vmem:[%s196_s26] sm:$0xff] (%p89_p3)  ;;  %v211_v1 = vld [vmem:[%s196_s26 + $0x8] sm:$0xff] (%p89_p3) }
  0x10   : > { %v213_v2 = vld [vmem:[%s196_s26 + $0x100] sm:$0xff] (%p89_p3)  ;;  %210 = vst [vmem:[%s188_s27] sm:$0xff] (%p89_p3), %v209_v0  ;;  %212 = vst [vmem:[%s188_s27 + $0x8] sm:$0xff] (%p89_p3), %v211_v1  ;;  %v215_v3 = vld [vmem:[%s196_s26 + $0x108] sm:$0xff] (%p89_p3) }
  0x11   : > { %214 = vst [vmem:[%s188_s27 + $0x10] sm:$0xff] %v213_v2  ;;  %216 = vst [vmem:[%s188_s27 + $0x18] sm:$0xff] %v215_v3 }
  0x12 PF: > { %p643_p6 = scmp.ge.s32.totalorder %s743_s16, 1  ;;  %p229_p7 = scmp.lt.s32.totalorder %s743_s16, 17 }
  0x14   : > { %p230_p8 = pnand %p643_p6, %p229_p7 }
  0x15   : > { %s236_s28 = sand.u32 (!%p230_p8), 1, %s727_s12   ;;  %s645_s6 = sshll.u32 (!%p230_p8), %s735_s14, 2 }
  0x16   : > { %233 = sbr.rel (%p230_p8) target bundleno = 237 (0xed), region = 51  ;;  %s644_s29 = sshll.u32 (!%p230_p8), %s236_s28, 5 }
  0x17   : > { %s238_s30 = scalar_lea.vmem (!%p230_p8), [#allocation3], %s644_s29  ;;  %p292_p9 = scmp.lt.s32.totalorder (!%p230_p8), %s645_s6, 63 }
  0x1b   : > { %v745_v4 = vmov 0   ;;  %v699_v5 = vld [vmem:[%s238_s30 + $0x4] ss:$16 sps:$4 sm:$0xff]   ;;  %v701_v6 = vld [vmem:[%s238_s30 + $0xc] ss:$16 sps:$4 sm:$0xff]   ;;  %vm342_vm0 = vcmask 130048   ;;  %v437_v10 = vlaneseq }
  0x1c   : > { %378 = vmatprep.mubr.bf16.mxu0 %v745_v4  ;;  %419 = vmatprep.mubr.bf16.mxu1 %v745_v4  ;;  %v703_v7 = vld [vmem:[%s238_s30] ss:$16 sps:$4 sm:$0xff]   ;;  %v704_v8 = vld [vmem:[%s238_s30 + $0x8] ss:$16 sps:$4 sm:$0xff]   ;;  %s853_s6 = smov (!%p292_p9, %s645_s6), 63 }
  0x1d   : > { %360 = vmatprep.subr.bf16.mxu0 %v699_v5  ;;  %401 = vmatprep.subr.bf16.mxu1 %v701_v6  ;;  %v317_v9 = vld [vmem:[%s842_s0] sm:$0x1]  ;;  %v438_v11 = vshrl.u32 %v437_v10, 7  ;;  %s294_s9 = scalar_lea.vmem %s844_s2, %s853_s6  ;;  %v746_v12 = vmov 1983009808   ;;  %s647_s10 = sshll.u32 %s853_s6, 1 }
  0x1e   : > { %361 = vmatpush1.bf16.msra.mxu0 %v703_v7  ;;  %402 = vmatpush1.bf16.msra.mxu1 %v704_v8  ;;  %v435_v13 = vunpack.c.l.s4 %v746_v12  ;;  %v456_v18 = vld [vmem:[%s294_s9] sm:$0xf]  ;;  %s308_s14 = scalar_lea.vmem %s845_s3, %s647_s10 }
  0x1f   : > { %v460_v14 = vsub.s32 0, %v438_v11  ;;  %v464_v15 = vsub.s32 1, %v438_v11  ;;  %v468_v16 = vsub.s32 2, %v438_v11  ;;  %v472_v17 = vsub.s32 3, %v438_v11 }
  0x20   : > { %v436_v19 = vunpack.c.0.s8 %v435_v13 }
  0x21   : > { %652 = vmatmul.mubr.msk.bf16.vlgmr.msra.gmra.mxu0 %vm342_vm0, %v317_v9  ;;  %653 = vmatmul.mubr.msk.bf16.vlgmr.msra.gmra.mxu1 %vm342_vm0, %v317_v9  ;;  %v461_v20 = vrot.slane %v456_v18, %v460_v14  ;;  %v465_v21 = vrot.slane %v456_v18, %v464_v15  ;;  %v469_v22 = vrot.slane %v456_v18, %v468_v16 }
  0x22   : > { %v473_v23 = vrot.slane %v456_v18, %v472_v17  ;;  %v439_v24 = vsub.s32 %v436_v19, %v438_v11 }
  0x23   : > { %v474_v25 = vcombine.low %v461_v20, %v465_v21 }
  0x24   : > { %v475_v26 = vcombine.low %v469_v22, %v473_v23 }
  0x25   : > { %v482_v29 = vrot.slane %v474_v25, %v439_v24 }
  0x26   : > { %v489_v30 = vrot.slane %v475_v26, %v439_v24 }
  0x28   : > { %v490_v39 = vcombine.low %v482_v29, %v489_v30 }
  0xe1   : > { %v380_v27 = vpop.f32.mrf.mxu0  ;;  %v421_v28 = vpop.f32.mrf.mxu1 }
  0xe3   : > { %v382_v31 = vpop.f32.mrf.mxu0  ;;  %v423_v32 = vpop.f32.mrf.mxu1 }
  0xe4   : > { %v432_v33 = vcombine.low %v380_v27, %v382_v31  ;;  %v433_v34 = vcombine.low %v421_v28, %v423_v32 }
  0xe5   : > { %v384_v35 = vpop.f32.mrf.mxu0  ;;  %v425_v36 = vpop.f32.mrf.mxu1 }
  0xe6   : > { %v440_v37 = vrot.slane %v432_v33, %v439_v24  ;;  %v447_v38 = vrot.slane %v433_v34, %v439_v24 }
  0xe7   : > { %v385_v40 = vpop.f32.mrf.mxu0  ;;  %v426_v41 = vpop.f32.mrf.mxu1 }
  0xe8   : > { %v448_v42 = vcombine.low %v440_v37, %v447_v38 }
  0xea   : > { %v492_v43 = vadd.f32 %v490_v39, %v448_v42 }
  0xec   : > { %493 = vst [vmem:[%s308_s14] sm:$0xff] %v492_v43 }
  0xed PF: > { %s13_s16 = sadd.s32 1, %s743_s16   ;;  %s846_s12 = smov %s731_s13 }
  0xee   : > { %p10_p10 = scmp.ge.s32.totalorder %s13_s16, 18   ;;  %s847_s13 = smov %s802_s20 }
  0xef   : > { %s848_s14 = smov %s739_s15  ;;  %s849_s15 = smov %s851_s17 }
  0xf0   :  { %12 = sbr.rel (!%p10_p10) target bundleno = 3 (0x3), region = 104 }

// kernel: generator_forward.14
= control target key start
LH: loop header
LB: loop body
LE: loop exit
PB: predicated region body
PF: predicated region fallthrough
CT: control target
= control target key end

     0   :  { %s362_s9 = smov 0   ;;  %s404_s0 = inlined_call_operand.vmem [shape: f32[32,512], index: 0, kind: input, shape index: {}]   ;;  %s405_s1 = inlined_call_operand.vmem [shape: f32[1,512], index: 1, kind: output, shape index: {0}]   ;;  %s406_s2 = inlined_call_operand.vmem [shape: f32[1,512], index: 2, kind: output, shape index: {1}]  }
   0x1 LB: > { %s316_s10 = sadd.s32 4294967295, %s343_s9   ;;  %p319_p0 = scmp.ge.s32.totalorder %s343_s9, 1  ;;  %s343_s9 = sphi %s362_s9, %s13_s9  }
   0x2   : > { %p107_p1 = scmp.lt.s32.totalorder %s343_s9, 3 }
   0x4   : > { %p108_p2 = pnand %p319_p0, %p107_p1 }
   0x5   : > { %s320_s11 = sshll.u32 (!%p108_p2), %s316_s10, 1  ;;  %p323_p4 = scmp.ne.s32.totalorder (!%p108_p2), %s316_s10, 0 }
   0x6   : > { %111 = sbr.rel (%p108_p2) target bundleno = 52 (0x34), region = 24  ;;  %p126_p3 = scmp.lt.s32.totalorder (!%p108_p2), %s320_s11, 3 }
   0xb   : > { %s408_s11 = smov (!%p126_p3, %s320_s11), 3  ;;  %135 = sbr.rel (%p323_p4) target bundleno = 20 (0x14), region = 28 }
   0xc   : > { %s326_s12 = sshll.u32 %s408_s11, 5 }
   0xd   : > { %s130_s15 = scalar_lea.vmem %s404_s0, %s326_s12 }
  0x10   : > { %v136_v0 = vlaneseq  ;;  %v345_v1 = vmov 0.0  }
  0x12   : > { %vm138_vm0 = vcmp.lt.s32.totalorder %v136_v0, 512 }
  0x13   : > { %140 = vst.msk [vmem:[%s405_s1] sm:$0xf] %vm138_vm0, %v345_v1  ;;  %141 = vst.msk [vmem:[%s406_s2] sm:$0xf] %vm138_vm0, %v345_v1 }
  0x14 PF: > { %v142_v2 = vld [vmem:[%s130_s15] sm:$0xff]  ;;  %v143_v3 = vld [vmem:[%s130_s15 + $0x8] sm:$0xff]  ;;  %v144_v4 = vld [vmem:[%s130_s15 + $0x10] sm:$0xff]  ;;  %v188_v5 = vlaneseq  ;;  %v346_v9 = vmov 1966171168  }
  0x15   : > { %v145_v6 = vld [vmem:[%s130_s15 + $0x18] sm:$0xff]  ;;  %v146_v7 = vld [vmem:[%s130_s15 + $0x20] sm:$0xff]  ;;  %v147_v8 = vld [vmem:[%s130_s15 + $0x28] sm:$0xff]  ;;  %v186_v10 = vunpack.c.l.s4 %v346_v9  ;;  %v215_v11 = vmul.f32 %v142_v2, %v142_v2  ;;  %v216_v12 = vmul.f32 %v143_v3, %v143_v3  ;;  %v217_v18 = vmul.f32 %v144_v4, %v144_v4 }
  0x16   : > { %v148_v13 = vld [vmem:[%s130_s15 + $0x30] sm:$0xff]  ;;  %v149_v14 = vld [vmem:[%s130_s15 + $0x38] sm:$0xff]  ;;  %v151_v15 = vadd.f32 %v146_v7, %v142_v2  ;;  %v158_v16 = vadd.f32 %v147_v8, %v143_v3  ;;  %v189_v17 = vshrl.u32 %v188_v5, 7  ;;  %v218_v22 = vmul.f32 %v145_v6, %v145_v6 }
  0x17   : > { %v165_v19 = vadd.f32 %v148_v13, %v144_v4  ;;  %v172_v20 = vadd.f32 %v149_v14, %v145_v6  ;;  %v187_v21 = vunpack.c.0.s8 %v186_v10  ;;  %v219_v25 = vmul.f32 %v146_v7, %v146_v7 }
  0x18   : > { %v152_v23 = vrot.slane %v151_v15, 4  ;;  %v159_v24 = vrot.slane %v158_v16, 4  ;;  %v220_v26 = vmul.f32 %v147_v8, %v147_v8  ;;  %v221_v30 = vmul.f32 %v148_v13, %v148_v13 }
  0x19   : > { %v166_v27 = vrot.slane %v165_v19, 4  ;;  %v173_v28 = vrot.slane %v172_v20, 4  ;;  %v380_v29 = vsub.s32 %v187_v21, %v189_v17  ;;  %v222_v33 = vmul.f32 %v149_v14, %v149_v14 }
  0x1a   : > { %v153_v31 = vadd.f32 %v152_v23, %v151_v15  ;;  %v160_v32 = vadd.f32 %v159_v24, %v158_v16  ;;  %v223_v34 = vadd.f32 %v219_v25, %v215_v11  ;;  %v230_v37 = vadd.f32 %v220_v26, %v216_v12  ;;  %v150_v23 = vld [vmem:[%s405_s1] sm:$0xf] }
  0x1b   : > { %v167_v35 = vadd.f32 %v166_v27, %v165_v19  ;;  %v174_v36 = vadd.f32 %v173_v28, %v172_v20  ;;  %v237_v38 = vadd.f32 %v221_v30, %v217_v18  ;;  %v244_v42 = vadd.f32 %v222_v33, %v218_v22 }
  0x1c   : > { %v154_v39 = vrot.slane %v153_v31, 2  ;;  %v161_v40 = vrot.slane %v160_v32, 2  ;;  %v224_v41 = vrot.slane %v223_v34, 4  ;;  %v231_v45 = vrot.slane %v230_v37, 4 }
  0x1d   : > { %v168_v43 = vrot.slane %v167_v35, 2  ;;  %v175_v44 = vrot.slane %v174_v36, 2  ;;  %v238_v46 = vrot.slane %v237_v38, 4  ;;  %v245_v50 = vrot.slane %v244_v42, 4 }
  0x1e   : > { %v155_v47 = vadd.f32 %v154_v39, %v153_v31  ;;  %v162_v48 = vadd.f32 %v161_v40, %v160_v32  ;;  %v225_v49 = vadd.f32 %v224_v41, %v223_v34  ;;  %v232_v53 = vadd.f32 %v231_v45, %v230_v37  ;;  %v214_v31 = vld [vmem:[%s406_s2] sm:$0xf] }
  0x1f   : > { %v169_v51 = vadd.f32 %v168_v43, %v167_v35  ;;  %v176_v52 = vadd.f32 %v175_v44, %v174_v36  ;;  %v239_v54 = vadd.f32 %v238_v46, %v237_v38  ;;  %v246_v58 = vadd.f32 %v245_v50, %v244_v42 }
  0x20   : > { %v156_v55 = vrot.slane %v155_v47, 1  ;;  %v163_v56 = vrot.slane %v162_v48, 1  ;;  %v226_v57 = vrot.slane %v225_v49, 2  ;;  %v233_v61 = vrot.slane %v232_v53, 2 }
  0x21   : > { %v170_v59 = vrot.slane %v169_v51, 1  ;;  %v177_v60 = vrot.slane %v176_v52, 1  ;;  %v240_v62 = vrot.slane %v239_v54, 2  ;;  %v247_v2 = vrot.slane %v246_v58, 2 }
  0x22   : > { %v157_v63 = vadd.f32 %v156_v55, %v155_v47  ;;  %v164_v0 = vadd.f32 %v163_v56, %v162_v48  ;;  %v227_v1 = vadd.f32 %v226_v57, %v225_v49  ;;  %v234_v6 = vadd.f32 %v233_v61, %v232_v53 }
  0x23   : > { %v171_v3 = vadd.f32 %v170_v59, %v169_v51  ;;  %v178_v4 = vadd.f32 %v177_v60, %v176_v52  ;;  %v241_v7 = vadd.f32 %v240_v62, %v239_v54  ;;  %v248_v10 = vadd.f32 %v247_v2, %v246_v58 }
  0x24   : > { %v183_v8 = vcombine.low %v157_v63, %v164_v0  ;;  %v228_v9 = vrot.slane %v227_v1, 1  ;;  %v235_v12 = vrot.slane %v234_v6, 1  ;;  %vm211_vm1 = vcmp.lt.s32.totalorder %v188_v5, 512 }
  0x25   : > { %v184_v11 = vcombine.low %v171_v3, %v178_v4  ;;  %v242_v13 = vrot.slane %v241_v7, 1  ;;  %v249_v16 = vrot.slane %v248_v10, 1 }
  0x26   : > { %v191_v14 = vrot.slane %v183_v8, %v380_v29  ;;  %v229_v15 = vadd.f32 %v228_v9, %v227_v1  ;;  %v236_v18 = vadd.f32 %v235_v12, %v234_v6 }
  0x27   : > { %v198_v17 = vrot.slane %v184_v11, %v380_v29  ;;  %v243_v19 = vadd.f32 %v242_v13, %v241_v7  ;;  %v250_v20 = vadd.f32 %v249_v16, %v248_v10 }
  0x28   : > { %v255_v22 = vcombine.low %v229_v15, %v236_v18 }
  0x29   : > { %v199_v21 = vcombine.low %v191_v14, %v198_v17  ;;  %v256_v24 = vcombine.low %v243_v19, %v250_v20 }
  0x2a   : > { %v263_v26 = vrot.slane %v255_v22, %v380_v29 }
  0x2b   : > { %v206_v25 = vrot.slane %v199_v21, %v380_v29  ;;  %v270_v27 = vrot.slane %v256_v24, %v380_v29 }
  0x2d   : > { %v208_v28 = vadd.f32 %v206_v25, %v150_v23  ;;  %v271_v30 = vcombine.low %v263_v26, %v270_v27 }
  0x2f   : > { %213 = vst.msk [vmem:[%s405_s1] sm:$0xf] %vm211_vm1, %v208_v28  ;;  %v278_v32 = vrot.slane %v271_v30, %v380_v29 }
  0x31   : > { %v280_v33 = vadd.f32 %v278_v32, %v214_v31 }
  0x33   : > { %281 = vst.msk [vmem:[%s406_s2] sm:$0xf] %vm211_vm1, %v280_v33 }
  0x34 PF: > { %s13_s9 = sadd.s32 1, %s343_s9  }
  0x35   : > { %p10_p5 = scmp.ge.s32.totalorder %s13_s9, 4  }
  0x37   :  { %12 = sbr.rel (!%p10_p5) target bundleno = 1 (0x1), region = 62 }

// kernel: generator_forward.17
= control target key start
LH: loop header
LB: loop body
LE: loop exit
PB: predicated region body
PF: predicated region fallthrough
CT: control target
= control target key end

     0   :  { %s352_s9 = smov 0   ;;  %s402_s0 = inlined_call_operand.vmem [shape: f32[128,256], index: 0, kind: input, shape index: {}]   ;;  %s403_s1 = inlined_call_operand.vmem [shape: f32[1,256], index: 1, kind: output, shape index: {0}]   ;;  %s404_s2 = inlined_call_operand.vmem [shape: f32[1,256], index: 2, kind: output, shape index: {1}]  }
   0x1 LB: > { %s306_s10 = sadd.s32 4294967295, %s333_s9   ;;  %p309_p0 = scmp.ge.s32.totalorder %s333_s9, 1  ;;  %s333_s9 = sphi %s352_s9, %s13_s9  }
   0x2   : > { %p107_p1 = scmp.lt.s32.totalorder %s333_s9, 3 }
   0x4   : > { %p108_p2 = pnand %p309_p0, %p107_p1 }
   0x5   : > { %s310_s11 = sshll.u32 (!%p108_p2), %s306_s10, 3  ;;  %p313_p4 = scmp.ne.s32.totalorder (!%p108_p2), %s306_s10, 0 }
   0x6   : > { %111 = sbr.rel (%p108_p2) target bundleno = 59 (0x3b), region = 24  ;;  %p126_p3 = scmp.lt.s32.totalorder (!%p108_p2), %s310_s11, 15 }
   0xb   : > { %s406_s11 = smov (!%p126_p3, %s310_s11), 15  ;;  %135 = sbr.rel (%p313_p4) target bundleno = 20 (0x14), region = 28 }
   0xc   : > { %s316_s12 = sshll.u32 %s406_s11, 4 }
   0xd   : > { %s363_s15 = scalar_lea.vmem %s402_s0, %s316_s12 }
  0x10   : > { %v136_v0 = vlaneseq  ;;  %v335_v1 = vmov 0.0  }
  0x12   : > { %vm138_vm0 = vcmp.lt.s32.totalorder %v136_v0, 256 }
  0x13   : > { %140 = vst.msk [vmem:[%s403_s1] sm:$0x3] %vm138_vm0, %v335_v1  ;;  %141 = vst.msk [vmem:[%s404_s2] sm:$0x3] %vm138_vm0, %v335_v1 }
  0x14 PF: > { %v142_v2 = vld [vmem:[%s363_s15] sm:$0xff]  ;;  %v144_v3 = vld [vmem:[%s363_s15 + $0x10] sm:$0xff]  ;;  %v143_v4 = vld [vmem:[%s363_s15 + $0x8] sm:$0xff]  ;;  %v191_v61 = vlaneseq  ;;  %v336_v63 = vmov 1966171168  }
  0x15   : > { %v145_v5 = vld [vmem:[%s363_s15 + $0x18] sm:$0xff]  ;;  %v159_v6 = vadd.f32 %v144_v3, %v142_v2  ;;  %v146_v7 = vld [vmem:[%s363_s15 + $0x20] sm:$0xff]  ;;  %v147_v9 = vld [vmem:[%s363_s15 + $0x28] sm:$0xff]  ;;  %v210_v11 = vmul.f32 %v142_v2, %v142_v2  ;;  %v211_v14 = vmul.f32 %v143_v4, %v143_v4  ;;  %v212_v15 = vmul.f32 %v144_v3, %v144_v3 }
  0x16   : > { %v172_v8 = vadd.f32 %v145_v5, %v143_v4  ;;  %v148_v12 = vld [vmem:[%s363_s15 + $0x30] sm:$0xff]  ;;  %v213_v16 = vmul.f32 %v145_v5, %v145_v5  ;;  %v149_v17 = vld [vmem:[%s363_s15 + $0x38] sm:$0xff]  ;;  %v150_v19 = vld [vmem:[%s363_s15 + $0x40] sm:$0xff]  ;;  %v214_v21 = vmul.f32 %v146_v7, %v146_v7  ;;  %v215_v22 = vmul.f32 %v147_v9, %v147_v9 }
  0x17   : > { %v160_v10 = vadd.f32 %v159_v6, %v146_v7  ;;  %v151_v23 = vld [vmem:[%s363_s15 + $0x48] sm:$0xff]  ;;  %v216_v25 = vmul.f32 %v148_v12, %v148_v12  ;;  %v152_v26 = vld [vmem:[%s363_s15 + $0x50] sm:$0xff]  ;;  %v217_v28 = vmul.f32 %v149_v17, %v149_v17  ;;  %v226_v29 = vadd.f32 %v212_v15, %v210_v11  ;;  %v153_v31 = vld [vmem:[%s363_s15 + $0x58] sm:$0xff] }
  0x18   : > { %v173_v13 = vadd.f32 %v172_v8, %v147_v9  ;;  %v239_v30 = vadd.f32 %v213_v16, %v211_v14  ;;  %v218_v33 = vmul.f32 %v150_v19, %v150_v19  ;;  %v154_v34 = vld [vmem:[%s363_s15 + $0x60] sm:$0xff]  ;;  %v219_v36 = vmul.f32 %v151_v23, %v151_v23  ;;  %v155_v39 = vld [vmem:[%s363_s15 + $0x68] sm:$0xff]  ;;  %v156_v42 = vld [vmem:[%s363_s15 + $0x70] sm:$0xff] }
  0x19   : > { %v161_v18 = vadd.f32 %v160_v10, %v148_v12  ;;  %v227_v37 = vadd.f32 %v226_v29, %v214_v21  ;;  %v220_v41 = vmul.f32 %v152_v26, %v152_v26  ;;  %v221_v44 = vmul.f32 %v153_v31, %v153_v31  ;;  %v157_v47 = vld [vmem:[%s363_s15 + $0x78] sm:$0xff] }
  0x1a   : > { %v174_v20 = vadd.f32 %v173_v13, %v149_v17  ;;  %v240_v38 = vadd.f32 %v239_v30, %v215_v22  ;;  %v222_v49 = vmul.f32 %v154_v34, %v154_v34  ;;  %v223_v51 = vmul.f32 %v155_v39, %v155_v39 }
  0x1b   : > { %v162_v24 = vadd.f32 %v161_v18, %v150_v19  ;;  %v228_v45 = vadd.f32 %v227_v37, %v216_v25  ;;  %v224_v55 = vmul.f32 %v156_v42, %v156_v42  ;;  %v225_v57 = vmul.f32 %v157_v47, %v157_v47 }
  0x1c   : > { %v175_v27 = vadd.f32 %v174_v20, %v151_v23  ;;  %v241_v46 = vadd.f32 %v240_v38, %v217_v28  ;;  %v189_v0 = vunpack.c.l.s4 %v336_v63  ;;  %v192_v8 = vshrl.u32 %v191_v61, 7  ;;  %v158_v28 = vld [vmem:[%s403_s1] sm:$0x3] }
  0x1d   : > { %v163_v32 = vadd.f32 %v162_v24, %v152_v26  ;;  %v229_v52 = vadd.f32 %v228_v45, %v218_v33  ;;  %vm206_vm1 = vcmp.lt.s32.totalorder %v191_v61, 256 }
  0x1e   : > { %v176_v35 = vadd.f32 %v175_v27, %v153_v31  ;;  %v242_v53 = vadd.f32 %v241_v46, %v219_v36  ;;  %v190_v10 = vunpack.c.0.s8 %v189_v0 }
  0x1f   : > { %v164_v40 = vadd.f32 %v163_v32, %v154_v34  ;;  %v230_v58 = vadd.f32 %v229_v52, %v220_v41 }
  0x20   : > { %v177_v43 = vadd.f32 %v176_v35, %v155_v39  ;;  %v243_v59 = vadd.f32 %v242_v53, %v221_v44  ;;  %v193_v19 = vsub.s32 %v190_v10, %v192_v8  ;;  %v209_v35 = vld [vmem:[%s404_s2] sm:$0x3] }
  0x21   : > { %v165_v48 = vadd.f32 %v164_v40, %v156_v42  ;;  %v231_v1 = vadd.f32 %v230_v58, %v222_v49 }
  0x22   : > { %v178_v50 = vadd.f32 %v177_v43, %v157_v47  ;;  %v244_v2 = vadd.f32 %v243_v59, %v223_v51 }
  0x23   : > { %v166_v54 = vrot.slane %v165_v48, 4  ;;  %v232_v5 = vadd.f32 %v231_v1, %v224_v55 }
  0x24   : > { %v179_v56 = vrot.slane %v178_v50, 4  ;;  %v245_v6 = vadd.f32 %v244_v2, %v225_v57 }
  0x25   : > { %v167_v60 = vadd.f32 %v166_v54, %v165_v48  ;;  %v233_v11 = vrot.slane %v232_v5, 4 }
  0x26   : > { %v180_v62 = vadd.f32 %v179_v56, %v178_v50  ;;  %v246_v12 = vrot.slane %v245_v6, 4 }
  0x27   : > { %v168_v3 = vrot.slane %v167_v60, 2  ;;  %v234_v15 = vadd.f32 %v233_v11, %v232_v5 }
  0x28   : > { %v181_v4 = vrot.slane %v180_v62, 2  ;;  %v247_v16 = vadd.f32 %v246_v12, %v245_v6 }
  0x29   : > { %v169_v7 = vadd.f32 %v168_v3, %v167_v60  ;;  %v235_v20 = vrot.slane %v234_v15, 2 }
  0x2a   : > { %v182_v9 = vadd.f32 %v181_v4, %v180_v62  ;;  %v248_v21 = vrot.slane %v247_v16, 2 }
  0x2b   : > { %v170_v13 = vrot.slane %v169_v7, 1  ;;  %v236_v23 = vadd.f32 %v235_v20, %v234_v15 }
  0x2c   : > { %v183_v14 = vrot.slane %v182_v9, 1  ;;  %v249_v24 = vadd.f32 %v248_v21, %v247_v16 }
  0x2d   : > { %v171_v17 = vadd.f32 %v170_v13, %v169_v7  ;;  %v237_v26 = vrot.slane %v236_v23, 1 }
  0x2e   : > { %v184_v18 = vadd.f32 %v183_v14, %v182_v9  ;;  %v250_v27 = vrot.slane %v249_v24, 1 }
  0x2f   : > { %v238_v30 = vadd.f32 %v237_v26, %v236_v23 }
  0x30   : > { %v187_v22 = vcombine.low %v171_v17, %v184_v18  ;;  %v251_v31 = vadd.f32 %v250_v27, %v249_v24 }
  0x32   : > { %v194_v25 = vrot.slane %v187_v22, %v193_v19  ;;  %v254_v33 = vcombine.low %v238_v30, %v251_v31 }
  0x34   : > { %v201_v29 = vrot.slane %v194_v25, %v193_v19  ;;  %v261_v34 = vrot.slane %v254_v33, %v193_v19 }
  0x36   : > { %v203_v32 = vadd.f32 %v201_v29, %v158_v28  ;;  %v268_v36 = vrot.slane %v261_v34, %v193_v19 }
  0x38   : > { %208 = vst.msk [vmem:[%s403_s1] sm:$0x3] %vm206_vm1, %v203_v32  ;;  %v270_v37 = vadd.f32 %v268_v36, %v209_v35 }
  0x3a   : > { %271 = vst.msk [vmem:[%s404_s2] sm:$0x3] %vm206_vm1, %v270_v37 }
  0x3b PF: > { %s13_s9 = sadd.s32 1, %s333_s9  }
  0x3c   : > { %p10_p5 = scmp.ge.s32.totalorder %s13_s9, 4  }
  0x3e   :  { %12 = sbr.rel (!%p10_p5) target bundleno = 1 (0x1), region = 62 }

// kernel: generator_forward.16
= control target key start
LH: loop header
LB: loop body
LE: loop exit
PB: predicated region body
PF: predicated region fallthrough
CT: control target
= control target key end

     0   :  { %s1601_s0 = inlined_call_operand.vmem [shape: bf16[4,32,2048], index: 0, kind: input, shape index: {}]   ;;  %s1602_s1 = inlined_call_operand.vmem [shape: bf16[4,2048,256], index: 1, kind: input, shape index: {}]   ;;  %s1603_s2 = inlined_call_operand.vmem [shape: f32[1,256], index: 2, kind: input, shape index: {}]   ;;  %s1604_s3 = inlined_call_operand.vmem [shape: f32[4,32,256], index: 3, kind: output, shape index: {}]  }
   0x1   :  { %1606 = sst [smem:[#allocation5_spill]] %s1601_s0 }
   0x2   :  { %s1395_s12 = smov 0   ;;  %s1397_s13 = smov 0  }
   0x3   :  { %s1399_s14 = smov 0   ;;  %s1401_s15 = smov 0  }
   0x4   :  { %s1403_s16 = smov 0   ;;  %s1405_s17 = smov 0  }
   0x5   :  { %s1407_s18 = smov 0   ;;  %s1409_s19 = smov 0  }
   0x6   :  { %s1411_s20 = smov 0  }
   0x7 LB: > { %s28_s21 = sadd.s32 1, %s1360_s17  ;;  %s35_s22 = sadd.s32 1, %s1364_s18  ;;  %s1372_s20 = sphi %s1411_s20, %s13_s20   ;;  %s1368_s19 = sphi %s1409_s19, %s1618_s19   ;;  %s1364_s18 = sphi %s1407_s18, %s1617_s18   ;;  %s1360_s17 = sphi %s1405_s17, %s1616_s17   ;;  %s1356_s16 = sphi %s1403_s16, %s1615_s16   ;;  %s1352_s15 = sphi %s1401_s15, %s1614_s15   ;;  %s1348_s14 = sphi %s1399_s14, %s1613_s14   ;;  %s1344_s13 = sphi %s1397_s13, %s1612_s13   ;;  %s1340_s12 = sphi %s1395_s12, %s1611_s12  }
   0x8   : > { %p29_p0 = scmp.ge.s32.totalorder %s28_s21, 4  ;;  %p57_p1 = scmp.ne.s32.totalorder %s1344_s13, %s1340_s12 }
   0x9   : > { %p58_p2 = scmp.eq.s32.totalorder %s1372_s20, 0  ;;  %s39_s23 = sadd.s32 1, %s1368_s19 }
   0xa   : > { %s1620_s22 = smov (!%p29_p0, %s35_s22), %s1364_s18  ;;  %s1626_s21 = smov (%p29_p0, %s28_s21), 0 }
   0xb   : > { %p37_p3 = scmp.ge.s32.totalorder %s1620_s22, 2  ;;  %p1447_p4 = por %p58_p2, %p57_p1 }
   0xc   : > { %s46_s26 = ssub.s32 %s1360_s17, %s1626_s21  ;;  %s50_s30 = sadd.s32 1, %s1344_s13 }
   0xd   : > { %s1622_s22 = smov (%p37_p3, %s1620_s22), 0  ;;  %s1624_s23 = smov (!%p37_p3, %s39_s23), %s1368_s19 }
   0xe   : > { %p41_p5 = scmp.ge.s32.totalorder %s1624_s23, 4  ;;  %s44_s25 = ssub.s32 %s1364_s18, %s1622_s22 }
   0xf   : > { %p1037_p7 = scmp.ge.s32.totalorder %s1372_s20, 32 }
  0x10   : > { %s1628_s23 = smov (%p41_p5, %s1624_s23), 0 }
  0x11   : > { %1608 = sst [smem:[#allocation4_spill]] %s1628_s23  ;;  %s43_s27 = ssub.s32 %s1368_s19, %s1628_s23 }
  0x12   : > { %s45_s28 = sor.u32 %s44_s25, %s43_s27  ;;  %177 = sbr.rel (%p1037_p7) target bundleno = 36 (0x24), region = 20 }
  0x13   : > { %s47_s29 = sor.u32 %s46_s26, %s45_s28 }
  0x14   : > { %p48_p6 = scmp.eq.s32.totalorder %s47_s29, 0 }
  0x16   : > { %s1466_s4 = scalar_select %p48_p6, %s1344_s13, %s50_s30  }
  0x17   : > { %180 = sbr.rel (!%p1447_p4) target bundleno = 36 (0x24), region = 24  ;;  %s182_s5 = sand.u32 (%p1447_p4), 1, %s1344_s13  }
  0x18   : > { %s1040_s6 = sshll.u32 (%p1447_p4), %s1360_s17, 2  ;;  %s1126_s7 = sshll.u32 (%p1447_p4), %s1364_s18, 5 }
  0x19   : > { %s1038_s8 = sshll.u32 (%p1447_p4), %s182_s5, 5  ;;  %s188_s9 = sadd.s32 (%p1447_p4), %s1126_s7, %s1040_s6 }
  0x1a   : > { %s1042_s10 = sshll.u32 (%p1447_p4), %s1368_s19, 6  ;;  %s1609_s0 = sld [smem:[#allocation5_spill]] (%p1447_p4) }
  0x1b   : > { %s190_s11 = sadd.s32 (%p1447_p4), %s1042_s10, %s188_s9  ;;  %s184_s24 = scalar_lea.vmem (%p1447_p4), [#allocation3], %s1038_s8 }
  0x1c   : > { %s1043_s25 = sshll.u32 %s190_s11, 2 }
  0x20   : > { %s192_s28 = scalar_lea.vmem %s1609_s0, %s1043_s25 }
  0x21   : > { %v205_v0 = vld [vmem:[%s192_s28] sm:$0xff]  ;;  %v207_v1 = vld [vmem:[%s192_s28 + $0x8] sm:$0xff] }
  0x22   : > { %v209_v2 = vld [vmem:[%s192_s28 + $0x40] sm:$0xff]  ;;  %206 = vst [vmem:[%s184_s24] sm:$0xff] %v205_v0  ;;  %208 = vst [vmem:[%s184_s24 + $0x8] sm:$0xff] %v207_v1  ;;  %v211_v3 = vld [vmem:[%s192_s28 + $0x48] sm:$0xff] }
  0x23   : > { %210 = vst [vmem:[%s184_s24 + $0x10] sm:$0xff] %v209_v2  ;;  %212 = vst [vmem:[%s184_s24 + $0x18] sm:$0xff] %v211_v3 }
  0x24 PF: > { %p1044_p8 = scmp.ge.s32.totalorder %s1372_s20, 1  ;;  %p236_p9 = scmp.lt.s32.totalorder %s1372_s20, 33 }
  0x26   : > { %p237_p10 = pnand %p1044_p8, %p236_p9 }
  0x27   : > { %s243_s29 = sand.u32 (!%p237_p10), 1, %s1340_s12   ;;  %s1046_s30 = sshll.u32 (!%p237_p10), %s1348_s14, 6 }
  0x28   : > { %240 = sbr.rel (%p237_p10) target bundleno = 340 (0x154), region = 51  ;;  %s1045_s5 = sshll.u32 (!%p237_p10), %s243_s29, 5 }
  0x29   : > { %p297_p11 = scmp.lt.s32.totalorder (!%p237_p10), %s1356_s16, 3  ;;  %p299_p12 = scmp.lt.s32.totalorder (!%p237_p10), %s1046_s30, 255 }
  0x2a   : > { %s1050_s7 = sshll.u32 (!%p237_p10), %s1352_s15, 1  ;;  %s1495_s15 = scalar_lea.vmem (!%p237_p10), [#allocation3], %s1045_s5 }
  0x2b   : > { %p320_p13 = scmp.lt.s32.totalorder (!%p237_p10), %s1050_s7, 3  ;;  %p1054_p0 = scmp.ne.s32.totalorder (!%p237_p10), %s1348_s14, 0 }
  0x2d   : > { %s1630_s16 = smov (!%p297_p11, %s1356_s16), 3  ;;  %s1632_s30 = smov (!%p299_p12, %s1046_s30), 255 }
  0x2e   : > { %s1048_s6 = sshll.u32 %s1630_s16, 9  ;;  %s1047_s8 = sshll.u32 %s1632_s30, 1 }
  0x2f   : > { %s306_s9 = sadd.s32 %s1048_s6, %s1047_s8  ;;  %s1052_s27 = sshll.u32 %s1630_s16, 3 }
  0x30   : > { %s1049_s10 = sshll.u32 %s306_s9, 2  ;;  %s1634_s7 = smov (!%p320_p13, %s1050_s7), 3 }
  0x31   : > { %s1488_s26 = scalar_lea.vmem %s1602_s1, %s1049_s10  ;;  %s1051_s12 = sshll.u32 %s1634_s7, 1 }
  0x32   : > { %s327_s28 = sadd.s32 %s1052_s27, %s1051_s12  ;;  %335 = sbr.rel (%p1054_p0) target bundleno = 58 (0x3a), region = 59 }
  0x33   : > { %s1053_s24 = sshll.u32 %s327_s28, 3 }
  0x34   : > { %s1493_s23 = scalar_lea.vmem %s1604_s3, %s1053_s24 }
  0x37   : > { %v1374_v4 = vmov 0.0  }
  0x38   : > { %336 = vst [vmem:[#allocation2 + $0x10] sm:$0xff] %v1374_v4  ;;  %337 = vst [vmem:[#allocation2] sm:$0xff] %v1374_v4 }
  0x39   : > { %338 = vst [vmem:[#allocation2 + $0x18] sm:$0xff] %v1374_v4  ;;  %339 = vst [vmem:[#allocation2 + $0x8] sm:$0xff] %v1374_v4 }
  0x3a PF: > { %v1200_v5 = vld [vmem:[%s1488_s26 + $0x74] ss:$8 sps:$4 sm:$0xff]   ;;  %v1204_v7 = vld [vmem:[%s1488_s26 + $0x70] ss:$8 sps:$4 sm:$0xff]   ;;  %v1206_v9 = vld [vmem:[%s1488_s26 + $0x64] ss:$8 sps:$4 sm:$0xff]  }
  0x3b   : > { %v1202_v6 = vld [vmem:[%s1488_s26 + $0x174] ss:$8 sps:$4 sm:$0xff]   ;;  %752 = vmatprep.subr.bf16.mxu0 %v1200_v5  ;;  %v1205_v8 = vld [vmem:[%s1488_s26 + $0x170] ss:$8 sps:$4 sm:$0xff]   ;;  %v1208_v10 = vld [vmem:[%s1488_s26 + $0x164] ss:$8 sps:$4 sm:$0xff]  }
  0x3c   : > { %795 = vmatprep.subr.bf16.mxu1 %v1202_v6  ;;  %753 = vmatpush1.bf16.msra.mxu0 %v1204_v7  ;;  %v1210_v11 = vld [vmem:[%s1488_s26 + $0x60] ss:$8 sps:$4 sm:$0xff]   ;;  %v1212_v13 = vld [vmem:[%s1488_s26 + $0x54] ss:$8 sps:$4 sm:$0xff]   ;;  %v1216_v15 = vld [vmem:[%s1488_s26 + $0x50] ss:$8 sps:$4 sm:$0xff]  }
  0x3d   : > { %796 = vmatpush1.bf16.msra.mxu1 %v1205_v8  ;;  %754 = vmatprep.subr.bf16.mxu0 %v1206_v9  ;;  %v1211_v12 = vld [vmem:[%s1488_s26 + $0x160] ss:$8 sps:$4 sm:$0xff]   ;;  %v1214_v14 = vld [vmem:[%s1488_s26 + $0x154] ss:$8 sps:$4 sm:$0xff]   ;;  %v1217_v16 = vld [vmem:[%s1488_s26 + $0x150] ss:$8 sps:$4 sm:$0xff]  }
  0x3e   : > { %797 = vmatprep.subr.bf16.mxu1 %v1208_v10  ;;  %v1218_v17 = vld [vmem:[%s1488_s26 + $0x44] ss:$8 sps:$4 sm:$0xff]   ;;  %v1222_v19 = vld [vmem:[%s1488_s26 + $0x40] ss:$8 sps:$4 sm:$0xff]   ;;  %v1224_v21 = vld [vmem:[%s1488_s26 + $0x34] ss:$8 sps:$4 sm:$0xff]  }
  0x3f   : > { %v1220_v18 = vld [vmem:[%s1488_s26 + $0x144] ss:$8 sps:$4 sm:$0xff]   ;;  %v1223_v20 = vld [vmem:[%s1488_s26 + $0x140] ss:$8 sps:$4 sm:$0xff]   ;;  %v1226_v22 = vld [vmem:[%s1488_s26 + $0x134] ss:$8 sps:$4 sm:$0xff]  }
  0x40   : > { %755 = vmatpush1.bf16.msra.mxu0 %v1210_v11  ;;  %v1228_v23 = vld [vmem:[%s1488_s26 + $0x30] ss:$8 sps:$4 sm:$0xff]   ;;  %v1230_v25 = vld [vmem:[%s1488_s26 + $0x24] ss:$8 sps:$4 sm:$0xff]   ;;  %v1234_v27 = vld [vmem:[%s1488_s26 + $0x20] ss:$8 sps:$4 sm:$0xff]  }
  0x41   : > { %798 = vmatpush1.bf16.msra.mxu1 %v1211_v12  ;;  %756 = vmatprep.subr.bf16.mxu0 %v1212_v13  ;;  %v1229_v24 = vld [vmem:[%s1488_s26 + $0x130] ss:$8 sps:$4 sm:$0xff]   ;;  %v1232_v26 = vld [vmem:[%s1488_s26 + $0x124] ss:$8 sps:$4 sm:$0xff]   ;;  %v1235_v28 = vld [vmem:[%s1488_s26 + $0x120] ss:$8 sps:$4 sm:$0xff]  }
  0x42   : > { %799 = vmatprep.subr.bf16.mxu1 %v1214_v14  ;;  %v1236_v29 = vld [vmem:[%s1488_s26 + $0x14] ss:$8 sps:$4 sm:$0xff]   ;;  %v1240_v31 = vld [vmem:[%s1488_s26 + $0x10] ss:$8 sps:$4 sm:$0xff]   ;;  %v1242_v33 = vld [vmem:[%s1488_s26 + $0x4] ss:$8 sps:$4 sm:$0xff]  }
  0x43   : > { %v1238_v30 = vld [vmem:[%s1488_s26 + $0x114] ss:$8 sps:$4 sm:$0xff]   ;;  %v1241_v32 = vld [vmem:[%s1488_s26 + $0x110] ss:$8 sps:$4 sm:$0xff]   ;;  %v1244_v34 = vld [vmem:[%s1488_s26 + $0x104] ss:$8 sps:$4 sm:$0xff]  }
  0x44   : > { %757 = vmatpush1.bf16.msra.mxu0 %v1216_v15  ;;  %v1246_v35 = vld [vmem:[%s1488_s26] ss:$8 sps:$4 sm:$0xff]   ;;  %v1248_v37 = vld [vmem:[%s1488_s26 + $0xf4] ss:$8 sps:$4 sm:$0xff]   ;;  %v1252_v39 = vld [vmem:[%s1488_s26 + $0xf0] ss:$8 sps:$4 sm:$0xff]  }
  0x45   : > { %800 = vmatpush1.bf16.msra.mxu1 %v1217_v16  ;;  %758 = vmatprep.subr.bf16.mxu0 %v1218_v17  ;;  %v1247_v36 = vld [vmem:[%s1488_s26 + $0x100] ss:$8 sps:$4 sm:$0xff]   ;;  %v1250_v38 = vld [vmem:[%s1488_s26 + $0x1f4] ss:$8 sps:$4 sm:$0xff]   ;;  %v1253_v40 = vld [vmem:[%s1488_s26 + $0x1f0] ss:$8 sps:$4 sm:$0xff]  }
  0x46   : > { %801 = vmatprep.subr.bf16.mxu1 %v1220_v18  ;;  %v1254_v41 = vld [vmem:[%s1488_s26 + $0xe4] ss:$8 sps:$4 sm:$0xff]   ;;  %v1258_v43 = vld [vmem:[%s1488_s26 + $0xe0] ss:$8 sps:$4 sm:$0xff]   ;;  %v1260_v45 = vld [vmem:[%s1488_s26 + $0xd4] ss:$8 sps:$4 sm:$0xff]  }
  0x47   : > { %v1256_v42 = vld [vmem:[%s1488_s26 + $0x1e4] ss:$8 sps:$4 sm:$0xff]   ;;  %v1259_v44 = vld [vmem:[%s1488_s26 + $0x1e0] ss:$8 sps:$4 sm:$0xff]   ;;  %v1262_v46 = vld [vmem:[%s1488_s26 + $0x1d4] ss:$8 sps:$4 sm:$0xff]  }
  0x48   : > { %759 = vmatpush1.bf16.msra.mxu0 %v1222_v19  ;;  %v1264_v47 = vld [vmem:[%s1488_s26 + $0xd0] ss:$8 sps:$4 sm:$0xff]   ;;  %v1266_v49 = vld [vmem:[%s1488_s26 + $0xc4] ss:$8 sps:$4 sm:$0xff]   ;;  %v1270_v51 = vld [vmem:[%s1488_s26 + $0xc0] ss:$8 sps:$4 sm:$0xff]  }
  0x49   : > { %802 = vmatpush1.bf16.msra.mxu1 %v1223_v20  ;;  %760 = vmatprep.subr.bf16.mxu0 %v1224_v21  ;;  %v1265_v48 = vld [vmem:[%s1488_s26 + $0x1d0] ss:$8 sps:$4 sm:$0xff]   ;;  %v1268_v50 = vld [vmem:[%s1488_s26 + $0x1c4] ss:$8 sps:$4 sm:$0xff]   ;;  %v1271_v53 = vld [vmem:[%s1488_s26 + $0x1c0] ss:$8 sps:$4 sm:$0xff]  }
  0x4a   : > { %803 = vmatprep.subr.bf16.mxu1 %v1226_v22  ;;  %v1298_v52 = vld [vmem:[%s1495_s15 + $0x4] ss:$16 sps:$4 sm:$0xff]   ;;  %v1301_v56 = vld [vmem:[%s1495_s15 + $0xc] ss:$16 sps:$4 sm:$0xff]   ;;  %v1276_v57 = vld [vmem:[%s1488_s26 + $0xb0] ss:$8 sps:$4 sm:$0xff]  }
  0x4b   : > { %v1272_v54 = vld [vmem:[%s1488_s26 + $0xb4] ss:$8 sps:$4 sm:$0xff]   ;;  %784 = vmatprep.mubr.bf16.mxu0 %v1298_v52  ;;  %827 = vmatprep.mubr.bf16.mxu1 %v1301_v56  ;;  %v1277_v58 = vld [vmem:[%s1488_s26 + $0x1b0] ss:$8 sps:$4 sm:$0xff]   ;;  %v1278_v59 = vld [vmem:[%s1488_s26 + $0xa4] ss:$8 sps:$4 sm:$0xff]  }
  0x4c   : > { %761 = vmatpush1.bf16.msra.mxu0 %v1228_v23  ;;  %v1274_v55 = vld [vmem:[%s1488_s26 + $0x1b4] ss:$8 sps:$4 sm:$0xff]   ;;  %v1280_v60 = vld [vmem:[%s1488_s26 + $0x1a4] ss:$8 sps:$4 sm:$0xff]   ;;  %v1282_v61 = vld [vmem:[%s1488_s26 + $0xa0] ss:$8 sps:$4 sm:$0xff]  }
  0x4d   : > { %804 = vmatpush1.bf16.msra.mxu1 %v1229_v24  ;;  %762 = vmatprep.subr.bf16.mxu0 %v1230_v25  ;;  %v1283_v62 = vld [vmem:[%s1488_s26 + $0x1a0] ss:$8 sps:$4 sm:$0xff]   ;;  %v1284_v63 = vld [vmem:[%s1488_s26 + $0x94] ss:$8 sps:$4 sm:$0xff]   ;;  %v1288_v1 = vld [vmem:[%s1488_s26 + $0x90] ss:$8 sps:$4 sm:$0xff]  }
  0x4e   : > { %805 = vmatprep.subr.bf16.mxu1 %v1232_v26  ;;  %v1286_v0 = vld [vmem:[%s1488_s26 + $0x194] ss:$8 sps:$4 sm:$0xff]   ;;  %v1289_v2 = vld [vmem:[%s1488_s26 + $0x190] ss:$8 sps:$4 sm:$0xff]   ;;  %v1290_v3 = vld [vmem:[%s1488_s26 + $0x84] ss:$8 sps:$4 sm:$0xff]  }
  0x4f   : > { %v1292_v4 = vld [vmem:[%s1488_s26 + $0x184] ss:$8 sps:$4 sm:$0xff]   ;;  %v1294_v5 = vld [vmem:[%s1488_s26 + $0x80] ss:$8 sps:$4 sm:$0xff]   ;;  %v340_v10 = vld [vmem:[#allocation2 + $0x10] sm:$0xff]  ;;  %p1123_p1 = scmp.ne.s32.totalorder %s1348_s14, 3 }
  0x50   : > { %763 = vmatpush1.bf16.msra.mxu0 %v1234_v27  ;;  %v1295_v6 = vld [vmem:[%s1488_s26 + $0x180] ss:$8 sps:$4 sm:$0xff]   ;;  %v342_v19 = vld [vmem:[#allocation2 + $0x18] sm:$0xff] }
  0x51   : > { %806 = vmatpush1.bf16.msra.mxu1 %v1235_v28  ;;  %764 = vmatprep.subr.bf16.mxu0 %v1236_v29  ;;  %v1296_v7 = vld [vmem:[%s1495_s15] ss:$16 sps:$4 sm:$0xff]   ;;  %v1299_v8 = vld [vmem:[%s1495_s15 + $0x8] ss:$16 sps:$4 sm:$0xff]  }
  0x52   : > { %807 = vmatprep.subr.bf16.mxu1 %v1238_v30  ;;  %v341_v14 = vld [vmem:[#allocation2] sm:$0xff]  ;;  %v343_v24 = vld [vmem:[#allocation2 + $0x8] sm:$0xff] }
  0x54   : > { %765 = vmatpush1.bf16.msra.mxu0 %v1240_v31 }
  0x55   : > { %808 = vmatpush1.bf16.msra.mxu1 %v1241_v32  ;;  %766 = vmatprep.subr.bf16.mxu0 %v1242_v33 }
  0x56   : > { %809 = vmatprep.subr.bf16.mxu1 %v1244_v34 }
  0x58   : > { %767 = vmatpush1.bf16.msra.mxu0 %v1246_v35 }
  0x59   : > { %810 = vmatpush1.bf16.msra.mxu1 %v1247_v36  ;;  %768 = vmatprep.subr.bf16.mxu0 %v1248_v37 }
  0x5a   : > { %811 = vmatprep.subr.bf16.mxu1 %v1250_v38 }
  0x5c   : > { %769 = vmatpush2.bf16.msra.mxu0 %v1252_v39 }
  0x5d   : > { %812 = vmatpush2.bf16.msra.mxu1 %v1253_v40  ;;  %770 = vmatprep.subr.bf16.mxu0 %v1254_v41 }
  0x5e   : > { %813 = vmatprep.subr.bf16.mxu1 %v1256_v42 }
  0x60   : > { %771 = vmatpush2.bf16.msra.mxu0 %v1258_v43 }
  0x61   : > { %814 = vmatpush2.bf16.msra.mxu1 %v1259_v44  ;;  %772 = vmatprep.subr.bf16.mxu0 %v1260_v45 }
  0x62   : > { %815 = vmatprep.subr.bf16.mxu1 %v1262_v46 }
  0x64   : > { %773 = vmatpush2.bf16.msra.mxu0 %v1264_v47 }
  0x65   : > { %816 = vmatpush2.bf16.msra.mxu1 %v1265_v48  ;;  %774 = vmatprep.subr.bf16.mxu0 %v1266_v49 }
  0x66   : > { %817 = vmatprep.subr.bf16.mxu1 %v1268_v50 }
  0x68   : > { %775 = vmatpush2.bf16.msra.mxu0 %v1270_v51 }
  0x69   : > { %818 = vmatpush2.bf16.msra.mxu1 %v1271_v53  ;;  %776 = vmatprep.subr.bf16.mxu0 %v1272_v54 }
  0x6a   : > { %819 = vmatprep.subr.bf16.mxu1 %v1274_v55 }
  0x6c   : > { %777 = vmatpush2.bf16.msra.mxu0 %v1276_v57 }
  0x6d   : > { %820 = vmatpush2.bf16.msra.mxu1 %v1277_v58  ;;  %778 = vmatprep.subr.bf16.mxu0 %v1278_v59 }
  0x6e   : > { %821 = vmatprep.subr.bf16.mxu1 %v1280_v60 }
  0x70   : > { %779 = vmatpush2.bf16.msra.mxu0 %v1282_v61 }
  0x71   : > { %822 = vmatpush2.bf16.msra.mxu1 %v1283_v62  ;;  %780 = vmatprep.subr.bf16.mxu0 %v1284_v63 }
  0x72   : > { %823 = vmatprep.subr.bf16.mxu1 %v1286_v0 }
  0x74   : > { %781 = vmatpush2.bf16.msra.mxu0 %v1288_v1 }
  0x75   : > { %824 = vmatpush2.bf16.msra.mxu1 %v1289_v2  ;;  %782 = vmatprep.subr.bf16.mxu0 %v1290_v3 }
  0x76   : > { %825 = vmatprep.subr.bf16.mxu1 %v1292_v4 }
  0x78   : > { %783 = vmatpush2.bf16.msra.mxu0 %v1294_v5 }
  0x79   : > { %826 = vmatpush2.bf16.msra.mxu1 %v1295_v6 }
  0x7b   : > { %785 = vmatmul.mubr.bf16.vlgmr.msra.gmra.mxu0 %v1296_v7 }
  0x7c   : > { %828 = vmatmul.mubr.bf16.vlgmr.msra.gmra.mxu1 %v1299_v8 }
 0x13b   : > { %v786_v9 = vpop.f32.mrf.mxu0 }
 0x13c   : > { %v829_v11 = vpop.f32.mrf.mxu1 }
 0x13d   : > { %v830_v12 = vadd.f32 %v829_v11, %v786_v9  ;;  %v788_v13 = vpop.f32.mrf.mxu0 }
 0x13e   : > { %v831_v15 = vpop.f32.mrf.mxu1 }
 0x13f   : > { %v838_v16 = vadd.f32 %v830_v12, %v340_v10  ;;  %v832_v17 = vadd.f32 %v831_v15, %v788_v13  ;;  %v790_v18 = vpop.f32.mrf.mxu0 }
 0x140   : > { %v833_v20 = vpop.f32.mrf.mxu1 }
 0x141   : > { %842 = vst [vmem:[#allocation2 + $0x10] sm:$0xff] %v838_v16  ;;  %v839_v21 = vadd.f32 %v832_v17, %v341_v14  ;;  %v834_v22 = vadd.f32 %v833_v20, %v790_v18  ;;  %v792_v23 = vpop.f32.mrf.mxu0 }
 0x142   : > { %v835_v25 = vpop.f32.mrf.mxu1 }
 0x143   : > { %843 = vst [vmem:[#allocation2] sm:$0xff] %v839_v21  ;;  %v840_v26 = vadd.f32 %v834_v22, %v342_v19  ;;  %v836_v27 = vadd.f32 %v835_v25, %v792_v23  ;;  %849 = sbr.rel (%p1123_p1) target bundleno = 340 (0x154), region = 63 }
 0x145   : > { %844 = vst [vmem:[#allocation2 + $0x18] sm:$0xff] %v840_v26  ;;  %v841_v28 = vadd.f32 %v836_v27, %v343_v24 }
 0x147   : > { %845 = vst [vmem:[#allocation2 + $0x8] sm:$0xff] %v841_v28 }
 0x148   : > { %v856_v29 = vlaneseq  ;;  %v854_v31 = vld [vmem:[%s1603_s2] sm:$0x3]  ;;  %v850_v32 = vld [vmem:[#allocation2 + $0x10] sm:$0xff] }
 0x14a   : > { %v857_v30 = vshrl.u32 %v856_v29, 7  ;;  %v851_v35 = vld [vmem:[#allocation2] sm:$0xff] }
 0x14c   : > { %v858_v33 = vsub.s32 0, %v857_v30  ;;  %v862_v34 = vsub.s32 1, %v857_v30  ;;  %v852_v36 = vld [vmem:[#allocation2 + $0x18] sm:$0xff] }
 0x14e   : > { %v853_v37 = vld [vmem:[#allocation2 + $0x8] sm:$0xff]  ;;  %v859_v38 = vrot.slane %v854_v31, %v858_v33  ;;  %v863_v39 = vrot.slane %v854_v31, %v862_v34 }
 0x150   : > { %v866_v40 = vadd.f32 %v859_v38, %v850_v32  ;;  %v867_v41 = vadd.f32 %v863_v39, %v851_v35  ;;  %v868_v42 = vadd.f32 %v859_v38, %v852_v36  ;;  %v869_v43 = vadd.f32 %v863_v39, %v853_v37 }
 0x152   : > { %870 = vst [vmem:[%s1493_s23] sm:$0xff] %v866_v40  ;;  %871 = vst [vmem:[%s1493_s23 + $0x8] sm:$0xff] %v867_v41 }
 0x153   : > { %872 = vst [vmem:[%s1493_s23 + $0x10] sm:$0xff] %v868_v42  ;;  %873 = vst [vmem:[%s1493_s23 + $0x18] sm:$0xff] %v869_v43 }
 0x154 PF: > { %s13_s20 = sadd.s32 1, %s1372_s20   ;;  %s1610_s30 = sld [smem:[#allocation4_spill]] }
 0x155   : > { %p10_p2 = scmp.ge.s32.totalorder %s13_s20, 34   ;;  %s1611_s12 = smov %s1344_s13 }
 0x156   : > { %s1612_s13 = smov %s1466_s4  ;;  %s1613_s14 = smov %s1360_s17 }
 0x157   : > { %s1614_s15 = smov %s1364_s18  ;;  %s1615_s16 = smov %s1368_s19 }
 0x158   : > { %s1616_s17 = smov %s1626_s21  ;;  %s1617_s18 = smov %s1622_s22 }
 0x159   :  { %12 = sbr.rel (!%p10_p2) target bundleno = 7 (0x7), region = 104 }
 0x15a   : > { %s1618_s19 = smov %s1610_s30 }

// kernel: generator_forward.18
= control target key start
LH: loop header
LB: loop body
LE: loop exit
PB: predicated region body
PF: predicated region fallthrough
CT: control target
= control target key end

     0   :  { %s448_s12 = smov 0   ;;  %s533_s0 = inlined_call_operand.vmem [shape: f32[128,256], index: 0, kind: input, shape index: {}]   ;;  %s534_s1 = inlined_call_operand.vmem [shape: f32[1,256], index: 1, kind: input, shape index: {}]   ;;  %s535_s2 = inlined_call_operand.vmem [shape: f32[1,256], index: 2, kind: input, shape index: {}]   ;;  %s536_s3 = inlined_call_operand.vmem [shape: bf16[128,256], index: 3, kind: output, shape index: {}]  }
   0x1 LB: > { %s381_s13 = sadd.s32 4294967295, %s426_s12   ;;  %p385_p0 = scmp.ge.s32.totalorder %s426_s12, 1  ;;  %s426_s12 = sphi %s448_s12, %s13_s12  }
   0x2   : > { %p139_p1 = scmp.lt.s32.totalorder %s426_s12, 3 }
   0x4   : > { %p140_p2 = pnand %p385_p0, %p139_p1 }
   0x5   : > { %s386_s14 = sshll.u32 (!%p140_p2), %s381_s13, 3 }
   0x6   : > { %143 = sbr.rel (%p140_p2) target bundleno = 38 (0x26), region = 32  ;;  %p166_p3 = scmp.lt.s32.totalorder (!%p140_p2), %s386_s14, 15 }
   0xb   : > { %v197_v0 = vlaneseq  ;;  %s538_s14 = smov (!%p166_p3, %s386_s14), 15  ;;  %v195_v2 = vld [vmem:[%s534_s1] sm:$0x3] }
   0xc   : > { %v223_v3 = vld [vmem:[%s535_s2] sm:$0x3]  ;;  %s402_s19 = sshll.u32 %s538_s14, 4  ;;  %s403_s23 = sshll.u32 %s538_s14, 3 }
   0xd   : > { %v198_v1 = vshrl.u32 %v197_v0, 7  ;;  %s468_s22 = scalar_lea.vmem %s533_s0, %s402_s19  ;;  %s502_s26 = scalar_lea.vmem %s536_s3, %s403_s23 }
   0xe   : > { %v179_v10 = vld [vmem:[%s468_s22] sm:$0xff]  ;;  %v180_v11 = vld [vmem:[%s468_s22 + $0x8] sm:$0xff]  ;;  %v181_v12 = vld [vmem:[%s468_s22 + $0x10] sm:$0xff] }
   0xf   : > { %v199_v4 = vsub.s32 0, %v198_v1  ;;  %v203_v5 = vsub.s32 1, %v198_v1  ;;  %v182_v15 = vld [vmem:[%s468_s22 + $0x18] sm:$0xff]  ;;  %v183_v17 = vld [vmem:[%s468_s22 + $0x20] sm:$0xff]  ;;  %v184_v18 = vld [vmem:[%s468_s22 + $0x28] sm:$0xff] }
  0x10   : > { %v185_v22 = vld [vmem:[%s468_s22 + $0x30] sm:$0xff]  ;;  %v186_v23 = vld [vmem:[%s468_s22 + $0x38] sm:$0xff]  ;;  %v187_v32 = vld [vmem:[%s468_s22 + $0x40] sm:$0xff] }
  0x11   : > { %v200_v6 = vrot.slane %v195_v2, %v199_v4  ;;  %v470_v7 = vrot.slane %v195_v2, %v203_v5  ;;  %v472_v8 = vrot.slane %v223_v3, %v199_v4  ;;  %v474_v9 = vrot.slane %v223_v3, %v203_v5  ;;  %v188_v33 = vld [vmem:[%s468_s22 + $0x48] sm:$0xff]  ;;  %v189_v38 = vld [vmem:[%s468_s22 + $0x50] sm:$0xff]  ;;  %v190_v43 = vld [vmem:[%s468_s22 + $0x58] sm:$0xff] }
  0x12   : > { %v191_v44 = vld [vmem:[%s468_s22 + $0x60] sm:$0xff]  ;;  %v192_v49 = vld [vmem:[%s468_s22 + $0x68] sm:$0xff]  ;;  %v193_v50 = vld [vmem:[%s468_s22 + $0x70] sm:$0xff] }
  0x13   : > { %v207_v13 = vmul.f32 %v200_v6, %v179_v10  ;;  %v208_v14 = vmul.f32 %v470_v7, %v180_v11  ;;  %v209_v16 = vmul.f32 %v200_v6, %v181_v12  ;;  %v210_v19 = vmul.f32 %v470_v7, %v182_v15  ;;  %v194_v59 = vld [vmem:[%s468_s22 + $0x78] sm:$0xff] }
  0x14   : > { %v211_v20 = vmul.f32 %v200_v6, %v183_v17  ;;  %v212_v21 = vmul.f32 %v470_v7, %v184_v18  ;;  %v213_v27 = vmul.f32 %v200_v6, %v185_v22  ;;  %v214_v31 = vmul.f32 %v470_v7, %v186_v23 }
  0x15   : > { %v235_v24 = vadd.f32 %v472_v8, %v207_v13  ;;  %v236_v25 = vadd.f32 %v474_v9, %v208_v14  ;;  %v237_v26 = vadd.f32 %v472_v8, %v209_v16  ;;  %v238_v28 = vadd.f32 %v474_v9, %v210_v19 }
  0x16   : > { %v239_v29 = vadd.f32 %v472_v8, %v211_v20  ;;  %v240_v30 = vadd.f32 %v474_v9, %v212_v21  ;;  %v241_v37 = vadd.f32 %v472_v8, %v213_v27  ;;  %v242_v42 = vadd.f32 %v474_v9, %v214_v31 }
  0x17   : > { %v251_v34 = vmax.f32 %v235_v24, 0.0  ;;  %v252_v35 = vmax.f32 %v236_v25, 0.0  ;;  %v253_v36 = vmax.f32 %v237_v26, 0.0  ;;  %v254_v39 = vmax.f32 %v238_v28, 0.0 }
  0x18   : > { %v255_v40 = vmax.f32 %v239_v29, 0.0  ;;  %v256_v41 = vmax.f32 %v240_v30, 0.0  ;;  %v257_v46 = vmax.f32 %v241_v37, 0.0  ;;  %v215_v47 = vmul.f32 %v200_v6, %v187_v32 }
  0x19   : > { %v404_v45 = vpack.c.bf16 %v252_v35, %v251_v34  ;;  %v216_v48 = vmul.f32 %v470_v7, %v188_v33  ;;  %v405_v51 = vpack.c.bf16 %v254_v39, %v253_v36  ;;  %v258_v53 = vmax.f32 %v242_v42, 0.0 }
  0x1a   : > { %v406_v52 = vpack.c.bf16 %v256_v41, %v255_v40  ;;  %v217_v54 = vmul.f32 %v200_v6, %v189_v38  ;;  %v243_v55 = vadd.f32 %v472_v8, %v215_v47  ;;  %v218_v57 = vmul.f32 %v470_v7, %v190_v43 }
  0x1b   : > { %315 = vst [vmem:[%s502_s26] sm:$0xff] %v404_v45  ;;  %v244_v56 = vadd.f32 %v474_v9, %v216_v48  ;;  %v219_v58 = vmul.f32 %v200_v6, %v191_v44  ;;  %316 = vst [vmem:[%s502_s26 + $0x8] sm:$0xff] %v405_v51  ;;  %v407_v60 = vpack.c.bf16 %v258_v53, %v257_v46 }
  0x1c   : > { %317 = vst [vmem:[%s502_s26 + $0x10] sm:$0xff] %v406_v52  ;;  %v245_v61 = vadd.f32 %v472_v8, %v217_v54  ;;  %v220_v62 = vmul.f32 %v470_v7, %v192_v49  ;;  %v221_v63 = vmul.f32 %v200_v6, %v193_v50  ;;  %v259_v0 = vmax.f32 %v243_v55, 0.0 }
  0x1d   : > { %v260_v1 = vmax.f32 %v244_v56, 0.0  ;;  %v246_v2 = vadd.f32 %v474_v9, %v218_v57  ;;  %v247_v3 = vadd.f32 %v472_v8, %v219_v58  ;;  %318 = vst [vmem:[%s502_s26 + $0x18] sm:$0xff] %v407_v60  ;;  %v222_v10 = vmul.f32 %v470_v7, %v194_v59 }
  0x1e   : > { %v261_v4 = vmax.f32 %v245_v61, 0.0  ;;  %v248_v5 = vadd.f32 %v474_v9, %v220_v62  ;;  %v249_v11 = vadd.f32 %v472_v8, %v221_v63 }
  0x1f   : > { %v408_v12 = vpack.c.bf16 %v260_v1, %v259_v0  ;;  %v262_v6 = vmax.f32 %v246_v2, 0.0  ;;  %v263_v13 = vmax.f32 %v247_v3, 0.0  ;;  %v250_v15 = vadd.f32 %v474_v9, %v222_v10 }
  0x20   : > { %v264_v14 = vmax.f32 %v248_v5, 0.0  ;;  %v265_v16 = vmax.f32 %v249_v11, 0.0 }
  0x21   : > { %319 = vst [vmem:[%s502_s26 + $0x20] sm:$0xff] %v408_v12  ;;  %v409_v17 = vpack.c.bf16 %v262_v6, %v261_v4  ;;  %v266_v19 = vmax.f32 %v250_v15, 0.0 }
  0x22   : > { %v410_v18 = vpack.c.bf16 %v264_v14, %v263_v13 }
  0x23   : > { %320 = vst [vmem:[%s502_s26 + $0x28] sm:$0xff] %v409_v17  ;;  %v411_v20 = vpack.c.bf16 %v266_v19, %v265_v16 }
  0x24   : > { %321 = vst [vmem:[%s502_s26 + $0x30] sm:$0xff] %v410_v18 }
  0x25   : > { %322 = vst [vmem:[%s502_s26 + $0x38] sm:$0xff] %v411_v20 }
  0x26 PF: > { %s13_s12 = sadd.s32 1, %s426_s12  }
  0x27   : > { %p10_p4 = scmp.ge.s32.totalorder %s13_s12, 4  }
  0x29   :  { %12 = sbr.rel (!%p10_p4) target bundleno = 1 (0x1), region = 62 }

// kernel: generator_forward.19
= control target key start
LH: loop header
LB: loop body
LE: loop exit
PB: predicated region body
PF: predicated region fallthrough
CT: control target
= control target key end

     0   :  { %s1622_s0 = inlined_call_operand.vmem [shape: bf16[4,128,1024], index: 0, kind: input, shape index: {}]   ;;  %s1623_s1 = inlined_call_operand.vmem [shape: bf16[4,1024,128], index: 1, kind: input, shape index: {}]   ;;  %s1624_s2 = inlined_call_operand.vmem [shape: f32[1,128], index: 2, kind: input, shape index: {}]   ;;  %s1625_s3 = inlined_call_operand.vmem [shape: f32[4,128,128], index: 3, kind: output, shape index: {}]  }
   0x1   :  { %1626 = sst [smem:[#allocation4_spill]] %s1622_s0 }
   0x2   :  { %s1414_s12 = smov 0   ;;  %s1416_s13 = smov 0  }
   0x3   :  { %s1418_s14 = smov 0   ;;  %s1420_s15 = smov 0  }
   0x4   :  { %s1422_s16 = smov 0   ;;  %s1424_s17 = smov 0  }
   0x5   :  { %s1426_s18 = smov 0   ;;  %s1428_s19 = smov 0  }
   0x6   :  { %s1430_s20 = smov 0  }
   0x7 LB: > { %s28_s21 = sadd.s32 1, %s1379_s17  ;;  %s35_s22 = sadd.s32 1, %s1383_s18  ;;  %s1391_s20 = sphi %s1430_s20, %s13_s20   ;;  %s1387_s19 = sphi %s1428_s19, %s1636_s19   ;;  %s1383_s18 = sphi %s1426_s18, %s1635_s18   ;;  %s1379_s17 = sphi %s1424_s17, %s1634_s17   ;;  %s1375_s16 = sphi %s1422_s16, %s1633_s16   ;;  %s1371_s15 = sphi %s1420_s15, %s1632_s15   ;;  %s1367_s14 = sphi %s1418_s14, %s1631_s14   ;;  %s1363_s13 = sphi %s1416_s13, %s1630_s13   ;;  %s1359_s12 = sphi %s1414_s12, %s1629_s12  }
   0x8   : > { %p29_p0 = scmp.ge.s32.totalorder %s28_s21, 2  ;;  %p57_p1 = scmp.ne.s32.totalorder %s1363_s13, %s1359_s12 }
   0x9   : > { %p58_p2 = scmp.eq.s32.totalorder %s1391_s20, 0  ;;  %s39_s23 = sadd.s32 1, %s1387_s19 }
   0xa   : > { %s1638_s22 = smov (!%p29_p0, %s35_s22), %s1383_s18  ;;  %s1644_s21 = smov (%p29_p0, %s28_s21), 0 }
   0xb   : > { %p37_p3 = scmp.ge.s32.totalorder %s1638_s22, 2  ;;  %p1466_p4 = por %p58_p2, %p57_p1 }
   0xc   : > { %s46_s26 = ssub.s32 %s1379_s17, %s1644_s21  ;;  %s50_s30 = sadd.s32 1, %s1363_s13 }
   0xd   : > { %s1640_s22 = smov (%p37_p3, %s1638_s22), 0  ;;  %s1642_s23 = smov (!%p37_p3, %s39_s23), %s1387_s19 }
   0xe   : > { %p41_p5 = scmp.ge.s32.totalorder %s1642_s23, 4  ;;  %s44_s25 = ssub.s32 %s1383_s18, %s1640_s22 }
   0xf   : > { %p1043_p7 = scmp.ge.s32.totalorder %s1391_s20, 16 }
  0x10   : > { %s1646_s23 = smov (%p41_p5, %s1642_s23), 0 }
  0x11   : > { %s43_s27 = ssub.s32 %s1387_s19, %s1646_s23 }
  0x12   : > { %s45_s28 = sor.u32 %s44_s25, %s43_s27  ;;  %175 = sbr.rel (%p1043_p7) target bundleno = 42 (0x2a), region = 20 }
  0x13   : > { %s47_s29 = sor.u32 %s46_s26, %s45_s28 }
  0x14   : > { %p48_p6 = scmp.eq.s32.totalorder %s47_s29, 0 }
  0x16   : > { %s1485_s4 = scalar_select %p48_p6, %s1363_s13, %s50_s30  }
  0x17   : > { %178 = sbr.rel (!%p1466_p4) target bundleno = 42 (0x2a), region = 24  ;;  %s180_s5 = sand.u32 (%p1466_p4), 1, %s1363_s13  }
  0x18   : > { %s1046_s6 = sshll.u32 (%p1466_p4), %s1379_s17, 2  ;;  %s1111_s7 = sshll.u32 (%p1466_p4), %s1383_s18, 6 }
  0x19   : > { %s1044_s8 = sshll.u32 (%p1466_p4), %s180_s5, 7  ;;  %s186_s9 = sadd.s32 (%p1466_p4), %s1111_s7, %s1046_s6 }
  0x1a   : > { %s1048_s10 = sshll.u32 (%p1466_p4), %s1387_s19, 7  ;;  %s1628_s0 = sld [smem:[#allocation4_spill]] (%p1466_p4) }
  0x1b   : > { %s188_s11 = sadd.s32 (%p1466_p4), %s1048_s10, %s186_s9  ;;  %s182_s24 = scalar_lea.vmem (%p1466_p4), [#allocation3], %s1044_s8 }
  0x1c   : > { %s1049_s25 = sshll.u32 %s188_s11, 2 }
  0x20   : > { %s1497_s28 = scalar_lea.vmem %s1628_s0, %s1049_s25 }
  0x21   : > { %v203_v0 = vld [vmem:[%s1497_s28] sm:$0xff]  ;;  %v205_v1 = vld [vmem:[%s1497_s28 + $0x8] sm:$0xff] }
  0x22   : > { %v207_v2 = vld [vmem:[%s1497_s28 + $0x20] sm:$0xff]  ;;  %204 = vst [vmem:[%s182_s24] sm:$0xff] %v203_v0  ;;  %206 = vst [vmem:[%s182_s24 + $0x8] sm:$0xff] %v205_v1  ;;  %v209_v3 = vld [vmem:[%s1497_s28 + $0x28] sm:$0xff] }
  0x23   : > { %208 = vst [vmem:[%s182_s24 + $0x10] sm:$0xff] %v207_v2  ;;  %v211_v4 = vld [vmem:[%s1497_s28 + $0x40] sm:$0xff]  ;;  %v213_v5 = vld [vmem:[%s1497_s28 + $0x48] sm:$0xff]  ;;  %210 = vst [vmem:[%s182_s24 + $0x18] sm:$0xff] %v209_v3 }
  0x24   : > { %212 = vst [vmem:[%s182_s24 + $0x20] sm:$0xff] %v211_v4  ;;  %214 = vst [vmem:[%s182_s24 + $0x28] sm:$0xff] %v213_v5  ;;  %v215_v6 = vld [vmem:[%s1497_s28 + $0x60] sm:$0xff]  ;;  %v217_v7 = vld [vmem:[%s1497_s28 + $0x68] sm:$0xff] }
  0x25   : > { %v219_v8 = vld [vmem:[%s1497_s28 + $0x80] sm:$0xff]  ;;  %216 = vst [vmem:[%s182_s24 + $0x30] sm:$0xff] %v215_v6  ;;  %218 = vst [vmem:[%s182_s24 + $0x38] sm:$0xff] %v217_v7  ;;  %v221_v9 = vld [vmem:[%s1497_s28 + $0x88] sm:$0xff] }
  0x26   : > { %220 = vst [vmem:[%s182_s24 + $0x40] sm:$0xff] %v219_v8  ;;  %v223_v10 = vld [vmem:[%s1497_s28 + $0xa0] sm:$0xff]  ;;  %v225_v11 = vld [vmem:[%s1497_s28 + $0xa8] sm:$0xff]  ;;  %222 = vst [vmem:[%s182_s24 + $0x48] sm:$0xff] %v221_v9 }
  0x27   : > { %224 = vst [vmem:[%s182_s24 + $0x50] sm:$0xff] %v223_v10  ;;  %226 = vst [vmem:[%s182_s24 + $0x58] sm:$0xff] %v225_v11  ;;  %v227_v12 = vld [vmem:[%s1497_s28 + $0xc0] sm:$0xff]  ;;  %v229_v13 = vld [vmem:[%s1497_s28 + $0xc8] sm:$0xff] }
  0x28   : > { %v231_v14 = vld [vmem:[%s1497_s28 + $0xe0] sm:$0xff]  ;;  %228 = vst [vmem:[%s182_s24 + $0x60] sm:$0xff] %v227_v12  ;;  %230 = vst [vmem:[%s182_s24 + $0x68] sm:$0xff] %v229_v13  ;;  %v233_v15 = vld [vmem:[%s1497_s28 + $0xe8] sm:$0xff] }
  0x29   : > { %232 = vst [vmem:[%s182_s24 + $0x70] sm:$0xff] %v231_v14  ;;  %234 = vst [vmem:[%s182_s24 + $0x78] sm:$0xff] %v233_v15 }
  0x2a PF: > { %p1050_p8 = scmp.ge.s32.totalorder %s1391_s20, 1  ;;  %p255_p9 = scmp.lt.s32.totalorder %s1391_s20, 17 }
  0x2c   : > { %p256_p10 = pnand %p1050_p8, %p255_p9 }
  0x2d   : > { %s262_s29 = sand.u32 (!%p256_p10), 1, %s1359_s12   ;;  %s1052_s30 = sshll.u32 (!%p256_p10), %s1367_s14, 6 }
  0x2e   : > { %259 = sbr.rel (%p256_p10) target bundleno = 341 (0x155), region = 51  ;;  %s1051_s5 = sshll.u32 (!%p256_p10), %s262_s29, 7 }
  0x2f   : > { %p310_p11 = scmp.lt.s32.totalorder (!%p256_p10), %s1375_s16, 3  ;;  %p312_p12 = scmp.lt.s32.totalorder (!%p256_p10), %s1052_s30, 127 }
  0x30   : > { %s1055_s7 = sshll.u32 (!%p256_p10), %s1371_s15, 3  ;;  %s1532_s0 = scalar_lea.vmem (!%p256_p10), [#allocation3], %s1051_s5 }
  0x31   : > { %p328_p13 = scmp.lt.s32.totalorder (!%p256_p10), %s1055_s7, 15  ;;  %p1058_p0 = scmp.ne.s32.totalorder (!%p256_p10), %s1367_s14, 0 }
  0x33   : > { %s1648_s16 = smov (!%p310_p11, %s1375_s16), 3  ;;  %s1650_s30 = smov (!%p312_p12, %s1052_s30), 127 }
  0x34   : > { %s1053_s6 = sshll.u32 %s1648_s16, 7  ;;  %s1056_s26 = sshll.u32 %s1648_s16, 4 }
  0x35   : > { %s318_s8 = sadd.s32 %s1053_s6, %s1650_s30  ;;  %s1652_s7 = smov (!%p328_p13, %s1055_s7), 15 }
  0x36   : > { %s1054_s9 = sshll.u32 %s318_s8, 2  ;;  %s334_s27 = sadd.s32 %s1056_s26, %s1652_s7 }
  0x37   : > { %s1525_s25 = scalar_lea.vmem %s1623_s1, %s1054_s9  ;;  %s1057_s12 = sshll.u32 %s334_s27, 3 }
  0x38   : > { %s1530_s29 = scalar_lea.vmem %s1625_s3, %s1057_s12  ;;  %342 = sbr.rel (%p1058_p0) target bundleno = 66 (0x42), region = 59 }
  0x3d   : > { %v1393_v16 = vmov 0.0  }
  0x3e   : > { %343 = vst [vmem:[#allocation2 + $0x30] sm:$0xff] %v1393_v16  ;;  %344 = vst [vmem:[#allocation2] sm:$0xff] %v1393_v16 }
  0x3f   : > { %345 = vst [vmem:[#allocation2 + $0x18] sm:$0xff] %v1393_v16  ;;  %346 = vst [vmem:[#allocation2 + $0x10] sm:$0xff] %v1393_v16 }
  0x40   : > { %347 = vst [vmem:[#allocation2 + $0x8] sm:$0xff] %v1393_v16  ;;  %348 = vst [vmem:[#allocation2 + $0x20] sm:$0xff] %v1393_v16 }
  0x41   : > { %349 = vst [vmem:[#allocation2 + $0x28] sm:$0xff] %v1393_v16  ;;  %350 = vst [vmem:[#allocation2 + $0x38] sm:$0xff] %v1393_v16 }
  0x42 PF: > { %v1265_v17 = vld [vmem:[%s1525_s25 + $0x78] sm:$0xff]   ;;  %v1269_v21 = vld [vmem:[%s1525_s25 + $0x70] sm:$0xff]   ;;  %v1273_v25 = vld [vmem:[%s1525_s25 + $0x68] sm:$0xff]   ;;  %p1107_p1 = scmp.ne.s32.totalorder %s1367_s14, 1 }
  0x43   : > { %v1266_v18 = vld [vmem:[%s1525_s25 + $0xf8] sm:$0xff]   ;;  %1112 = vmatprep.subr.bf16.mxu0 %v1265_v17  ;;  %v1270_v22 = vld [vmem:[%s1525_s25 + $0xf0] sm:$0xff]   ;;  %v1274_v26 = vld [vmem:[%s1525_s25 + $0xe8] sm:$0xff]  }
  0x44   : > { %v1267_v19 = vld [vmem:[%s1525_s25 + $0x38] sm:$0xff]   ;;  %1152 = vmatprep.subr.bf16.mxu1 %v1266_v18  ;;  %v1271_v23 = vld [vmem:[%s1525_s25 + $0x30] sm:$0xff]   ;;  %v1275_v27 = vld [vmem:[%s1525_s25 + $0x28] sm:$0xff]  }
  0x45   : > { %v1268_v20 = vld [vmem:[%s1525_s25 + $0xb8] sm:$0xff]   ;;  %1113 = vmatpush3.bf16.msra.mxu0 %v1267_v19  ;;  %v1272_v24 = vld [vmem:[%s1525_s25 + $0xb0] sm:$0xff]   ;;  %v1276_v28 = vld [vmem:[%s1525_s25 + $0xa8] sm:$0xff]  }
  0x46   : > { %1153 = vmatpush3.bf16.msra.mxu1 %v1268_v20  ;;  %1114 = vmatprep.subr.bf16.mxu0 %v1269_v21  ;;  %v1277_v29 = vld [vmem:[%s1525_s25 + $0x60] sm:$0xff]   ;;  %v1281_v33 = vld [vmem:[%s1525_s25 + $0x58] sm:$0xff]   ;;  %v1285_v37 = vld [vmem:[%s1525_s25 + $0x50] sm:$0xff]  }
  0x47   : > { %1154 = vmatprep.subr.bf16.mxu1 %v1270_v22  ;;  %v1278_v30 = vld [vmem:[%s1525_s25 + $0xe0] sm:$0xff]   ;;  %v1282_v34 = vld [vmem:[%s1525_s25 + $0xd8] sm:$0xff]   ;;  %v1286_v38 = vld [vmem:[%s1525_s25 + $0xd0] sm:$0xff]  }
  0x48   : > { %v1279_v31 = vld [vmem:[%s1525_s25 + $0x20] sm:$0xff]   ;;  %v1283_v35 = vld [vmem:[%s1525_s25 + $0x18] sm:$0xff]   ;;  %v1287_v39 = vld [vmem:[%s1525_s25 + $0x10] sm:$0xff]  }
  0x49   : > { %1115 = vmatpush3.bf16.msra.mxu0 %v1271_v23  ;;  %v1280_v32 = vld [vmem:[%s1525_s25 + $0xa0] sm:$0xff]   ;;  %v1284_v36 = vld [vmem:[%s1525_s25 + $0x98] sm:$0xff]   ;;  %v1288_v40 = vld [vmem:[%s1525_s25 + $0x90] sm:$0xff]  }
  0x4a   : > { %1155 = vmatpush3.bf16.msra.mxu1 %v1272_v24  ;;  %1116 = vmatprep.subr.bf16.mxu0 %v1273_v25  ;;  %v1289_v41 = vld [vmem:[%s1525_s25 + $0x48] sm:$0xff]   ;;  %v1293_v45 = vld [vmem:[%s1525_s25 + $0x40] sm:$0xff]   ;;  %v351_v8 = vld [vmem:[#allocation2 + $0x30] sm:$0xff] }
  0x4b   : > { %1156 = vmatprep.subr.bf16.mxu1 %v1274_v26  ;;  %v1290_v42 = vld [vmem:[%s1525_s25 + $0xc8] sm:$0xff]   ;;  %v1294_v46 = vld [vmem:[%s1525_s25 + $0xc0] sm:$0xff]   ;;  %v353_v26 = vld [vmem:[#allocation2 + $0x18] sm:$0xff] }
  0x4c   : > { %v1291_v43 = vld [vmem:[%s1525_s25 + $0x8] sm:$0xff]   ;;  %v1295_v47 = vld [vmem:[%s1525_s25] sm:$0xff]  }
  0x4d   : > { %1117 = vmatpush3.bf16.msra.mxu0 %v1275_v27  ;;  %v1292_v44 = vld [vmem:[%s1525_s25 + $0x88] sm:$0xff]   ;;  %v1296_v48 = vld [vmem:[%s1525_s25 + $0x80] sm:$0xff]  }
  0x4e   : > { %1157 = vmatpush3.bf16.msra.mxu1 %v1276_v28  ;;  %1118 = vmatprep.subr.bf16.mxu0 %v1277_v29  ;;  %v1297_v49 = vld [vmem:[%s1532_s0] ss:$16 sps:$4 sm:$0xff]   ;;  %v1299_v50 = vld [vmem:[%s1532_s0 + $0x4] ss:$16 sps:$4 sm:$0xff]   ;;  %v1300_v51 = vld [vmem:[%s1532_s0 + $0x8] ss:$16 sps:$4 sm:$0xff]  }
  0x4f   : > { %1158 = vmatprep.subr.bf16.mxu1 %v1278_v30  ;;  %v1302_v52 = vld [vmem:[%s1532_s0 + $0xc] ss:$16 sps:$4 sm:$0xff]   ;;  %743 = vmatprep.mubr.bf16.mxu0 %v1299_v50  ;;  %v1303_v53 = vld [vmem:[%s1532_s0 + $0x24] ss:$16 sps:$4 sm:$0xff]   ;;  %v1307_v55 = vld [vmem:[%s1532_s0 + $0x20] ss:$16 sps:$4 sm:$0xff]  }
  0x50   : > { %808 = vmatprep.mubr.bf16.mxu1 %v1302_v52  ;;  %v1305_v54 = vld [vmem:[%s1532_s0 + $0x2c] ss:$16 sps:$4 sm:$0xff]   ;;  %v1308_v56 = vld [vmem:[%s1532_s0 + $0x28] ss:$16 sps:$4 sm:$0xff]   ;;  %v1309_v57 = vld [vmem:[%s1532_s0 + $0x44] ss:$16 sps:$4 sm:$0xff]  }
  0x51   : > { %1119 = vmatpush3.bf16.msra.mxu0 %v1279_v31  ;;  %v1311_v58 = vld [vmem:[%s1532_s0 + $0x4c] ss:$16 sps:$4 sm:$0xff]   ;;  %v1313_v59 = vld [vmem:[%s1532_s0 + $0x40] ss:$16 sps:$4 sm:$0xff]   ;;  %v1314_v60 = vld [vmem:[%s1532_s0 + $0x48] ss:$16 sps:$4 sm:$0xff]  }
  0x52   : > { %1159 = vmatpush3.bf16.msra.mxu1 %v1280_v32  ;;  %1120 = vmatprep.subr.bf16.mxu0 %v1281_v33  ;;  %v1315_v61 = vld [vmem:[%s1532_s0 + $0x64] ss:$16 sps:$4 sm:$0xff]   ;;  %v1317_v62 = vld [vmem:[%s1532_s0 + $0x6c] ss:$16 sps:$4 sm:$0xff]   ;;  %v1319_v63 = vld [vmem:[%s1532_s0 + $0x60] ss:$16 sps:$4 sm:$0xff]  }
  0x53   : > { %1160 = vmatprep.subr.bf16.mxu1 %v1282_v34  ;;  %v1320_v0 = vld [vmem:[%s1532_s0 + $0x68] ss:$16 sps:$4 sm:$0xff]   ;;  %v352_v17 = vld [vmem:[#allocation2] sm:$0xff] }
  0x55   : > { %1121 = vmatpush3.bf16.msra.mxu0 %v1283_v35  ;;  %v354_v35 = vld [vmem:[#allocation2 + $0x10] sm:$0xff] }
  0x56   : > { %1161 = vmatpush3.bf16.msra.mxu1 %v1284_v36  ;;  %1122 = vmatprep.subr.bf16.mxu0 %v1285_v37 }
  0x57   : > { %1162 = vmatprep.subr.bf16.mxu1 %v1286_v38 }
  0x59   : > { %1123 = vmatpush3.bf16.msra.mxu0 %v1287_v39 }
  0x5a   : > { %1163 = vmatpush3.bf16.msra.mxu1 %v1288_v40  ;;  %1124 = vmatprep.subr.bf16.mxu0 %v1289_v41 }
  0x5b   : > { %1164 = vmatprep.subr.bf16.mxu1 %v1290_v42 }
  0x5d   : > { %1125 = vmatpush3.bf16.msra.mxu0 %v1291_v43 }
  0x5e   : > { %1165 = vmatpush3.bf16.msra.mxu1 %v1292_v44  ;;  %1126 = vmatprep.subr.bf16.mxu0 %v1293_v45  ;;  %v355_v44 = vld [vmem:[#allocation2 + $0x8] sm:$0xff] }
  0x5f   : > { %1166 = vmatprep.subr.bf16.mxu1 %v1294_v46 }
  0x61   : > { %1127 = vmatpush3.bf16.msra.mxu0 %v1295_v47 }
  0x62   : > { %1167 = vmatpush3.bf16.msra.mxu1 %v1296_v48 }
  0x64   : > { %744 = vmatmul.mubr.bf16.vlgmr.msra.gmra.mxu0 %v1297_v49 }
  0x65   : > { %809 = vmatmul.mubr.bf16.vlgmr.msra.gmra.mxu1 %v1300_v51  ;;  %751 = vmatprep.mubr.bf16.mxu0 %v1303_v53  ;;  %v356_v53 = vld [vmem:[#allocation2 + $0x20] sm:$0xff] }
  0x66   : > { %816 = vmatprep.mubr.bf16.mxu1 %v1305_v54 }
  0x6c   : > { %752 = vmatmul.mubr.bf16.gmra.mxu0 %v1307_v55 }
  0x6d   : > { %817 = vmatmul.mubr.bf16.gmra.mxu1 %v1308_v56  ;;  %759 = vmatprep.mubr.bf16.mxu0 %v1309_v57 }
  0x6e   : > { %824 = vmatprep.mubr.bf16.mxu1 %v1311_v58 }
  0x74   : > { %760 = vmatmul.mubr.bf16.gmra.mxu0 %v1313_v59 }
  0x75   : > { %825 = vmatmul.mubr.bf16.gmra.mxu1 %v1314_v60  ;;  %767 = vmatprep.mubr.bf16.mxu0 %v1315_v61 }
  0x76   : > { %832 = vmatprep.mubr.bf16.mxu1 %v1317_v62  ;;  %v357_v62 = vld [vmem:[#allocation2 + $0x28] sm:$0xff] }
  0x7c   : > { %768 = vmatmul.mubr.bf16.gmra.mxu0 %v1319_v63 }
  0x7d   : > { %833 = vmatmul.mubr.bf16.gmra.mxu1 %v1320_v0 }
 0x124   : > { %v1128_v1 = vpop.f32.mrf.mxu0 }
 0x125   : > { %v1168_v2 = vpop.f32.mrf.mxu1 }
 0x126   : > { %v1129_v3 = vpop.f32.mrf.mxu0 }
 0x127   : > { %v1130_v4 = vadd.f32 %v1129_v3, %v1128_v1  ;;  %v1169_v5 = vpop.f32.mrf.mxu1 }
 0x128   : > { %v1170_v6 = vadd.f32 %v1169_v5, %v1168_v2  ;;  %v1131_v7 = vpop.f32.mrf.mxu0 }
 0x129   : > { %v1171_v9 = vpop.f32.mrf.mxu1 }
 0x12a   : > { %v811_v10 = vadd.f32 %v1170_v6, %v1130_v4  ;;  %v1132_v11 = vpop.f32.mrf.mxu0  ;;  %v358_v6 = vld [vmem:[#allocation2 + $0x38] sm:$0xff] }
 0x12b   : > { %v1133_v12 = vadd.f32 %v1132_v11, %v1131_v7  ;;  %v1172_v13 = vpop.f32.mrf.mxu1 }
 0x12c   : > { %v841_v14 = vadd.f32 %v811_v10, %v351_v8  ;;  %v1173_v15 = vadd.f32 %v1172_v13, %v1171_v9  ;;  %v1134_v16 = vpop.f32.mrf.mxu0 }
 0x12d   : > { %v1174_v18 = vpop.f32.mrf.mxu1 }
 0x12e   : > { %849 = vst [vmem:[#allocation2 + $0x30] sm:$0xff] %v841_v14  ;;  %v814_v19 = vadd.f32 %v1173_v15, %v1133_v12  ;;  %v1135_v20 = vpop.f32.mrf.mxu0 }
 0x12f   : > { %v1136_v21 = vadd.f32 %v1135_v20, %v1134_v16  ;;  %v1175_v22 = vpop.f32.mrf.mxu1 }
 0x130   : > { %v842_v23 = vadd.f32 %v814_v19, %v352_v17  ;;  %v1176_v24 = vadd.f32 %v1175_v22, %v1174_v18  ;;  %v1137_v25 = vpop.f32.mrf.mxu0 }
 0x131   : > { %v1177_v27 = vpop.f32.mrf.mxu1 }
 0x132   : > { %850 = vst [vmem:[#allocation2] sm:$0xff] %v842_v23  ;;  %v819_v28 = vadd.f32 %v1176_v24, %v1136_v21  ;;  %v1138_v29 = vpop.f32.mrf.mxu0 }
 0x133   : > { %v1139_v30 = vadd.f32 %v1138_v29, %v1137_v25  ;;  %v1178_v31 = vpop.f32.mrf.mxu1 }
 0x134   : > { %v843_v32 = vadd.f32 %v819_v28, %v353_v26  ;;  %v1179_v33 = vadd.f32 %v1178_v31, %v1177_v27  ;;  %v1140_v34 = vpop.f32.mrf.mxu0 }
 0x135   : > { %v1180_v36 = vpop.f32.mrf.mxu1 }
 0x136   : > { %851 = vst [vmem:[#allocation2 + $0x18] sm:$0xff] %v843_v32  ;;  %v822_v37 = vadd.f32 %v1179_v33, %v1139_v30  ;;  %v1141_v38 = vpop.f32.mrf.mxu0 }
 0x137   : > { %v1142_v39 = vadd.f32 %v1141_v38, %v1140_v34  ;;  %v1181_v40 = vpop.f32.mrf.mxu1 }
 0x138   : > { %v844_v41 = vadd.f32 %v822_v37, %v354_v35  ;;  %v1182_v42 = vadd.f32 %v1181_v40, %v1180_v36  ;;  %v1143_v43 = vpop.f32.mrf.mxu0 }
 0x139   : > { %v1183_v45 = vpop.f32.mrf.mxu1 }
 0x13a   : > { %852 = vst [vmem:[#allocation2 + $0x10] sm:$0xff] %v844_v41  ;;  %v827_v46 = vadd.f32 %v1182_v42, %v1142_v39  ;;  %v1144_v47 = vpop.f32.mrf.mxu0 }
 0x13b   : > { %v1145_v48 = vadd.f32 %v1144_v47, %v1143_v43  ;;  %v1184_v49 = vpop.f32.mrf.mxu1 }
 0x13c   : > { %v845_v50 = vadd.f32 %v827_v46, %v355_v44  ;;  %v1185_v51 = vadd.f32 %v1184_v49, %v1183_v45  ;;  %v1146_v52 = vpop.f32.mrf.mxu0 }
 0x13d   : > { %v1186_v54 = vpop.f32.mrf.mxu1 }
 0x13e   : > { %853 = vst [vmem:[#allocation2 + $0x8] sm:$0xff] %v845_v50  ;;  %v830_v55 = vadd.f32 %v1185_v51, %v1145_v48  ;;  %v1147_v56 = vpop.f32.mrf.mxu0 }
 0x13f   : > { %v1148_v57 = vadd.f32 %v1147_v56, %v1146_v52  ;;  %v1187_v58 = vpop.f32.mrf.mxu1 }
 0x140   : > { %v846_v59 = vadd.f32 %v830_v55, %v356_v53  ;;  %v1188_v60 = vadd.f32 %v1187_v58, %v1186_v54  ;;  %v1149_v61 = vpop.f32.mrf.mxu0 }
 0x141   : > { %v1189_v63 = vpop.f32.mrf.mxu1 }
 0x142   : > { %854 = vst [vmem:[#allocation2 + $0x20] sm:$0xff] %v846_v59  ;;  %v835_v0 = vadd.f32 %v1188_v60, %v1148_v57  ;;  %v1150_v1 = vpop.f32.mrf.mxu0 }
 0x143   : > { %v1151_v2 = vadd.f32 %v1150_v1, %v1149_v61  ;;  %v1190_v3 = vpop.f32.mrf.mxu1 }
 0x144   : > { %v847_v4 = vadd.f32 %v835_v0, %v357_v62  ;;  %v1191_v5 = vadd.f32 %v1190_v3, %v1189_v63 }
 0x146   : > { %855 = vst [vmem:[#allocation2 + $0x28] sm:$0xff] %v847_v4  ;;  %v838_v7 = vadd.f32 %v1191_v5, %v1151_v2  ;;  %860 = sbr.rel (%p1107_p1) target bundleno = 341 (0x155), region = 63 }
 0x148   : > { %v848_v8 = vadd.f32 %v838_v7, %v358_v6 }
 0x14a   : > { %856 = vst [vmem:[#allocation2 + $0x38] sm:$0xff] %v848_v8 }
 0x14b   : > { %v861_v9 = vld [vmem:[#allocation2 + $0x30] sm:$0xff]  ;;  %v1108_v10 = vld [vmem:[%s1624_s2] ss:$0 sm:$0xff]  ;;  %v863_v14 = vld [vmem:[#allocation2 + $0x18] sm:$0xff] }
 0x14c   : > { %v862_v11 = vld [vmem:[#allocation2] sm:$0xff]  ;;  %v876_v12 = vadd.f32 %v1108_v10, %v861_v9  ;;  %v864_v15 = vld [vmem:[#allocation2 + $0x10] sm:$0xff]  ;;  %v865_v16 = vld [vmem:[#allocation2 + $0x8] sm:$0xff]  ;;  %v878_v17 = vadd.f32 %v1108_v10, %v863_v14 }
 0x14d   : > { %v877_v13 = vadd.f32 %v1108_v10, %v862_v11  ;;  %v879_v18 = vadd.f32 %v1108_v10, %v864_v15  ;;  %v880_v19 = vadd.f32 %v1108_v10, %v865_v16  ;;  %v866_v20 = vld [vmem:[#allocation2 + $0x20] sm:$0xff]  ;;  %v867_v21 = vld [vmem:[#allocation2 + $0x28] sm:$0xff] }
 0x14e   : > { %884 = vst [vmem:[%s1530_s29] sm:$0xff] %v876_v12  ;;  %v881_v23 = vadd.f32 %v1108_v10, %v866_v20  ;;  %v882_v24 = vadd.f32 %v1108_v10, %v867_v21  ;;  %886 = vst [vmem:[%s1530_s29 + $0x10] sm:$0xff] %v878_v17 }
 0x14f   : > { %885 = vst [vmem:[%s1530_s29 + $0x8] sm:$0xff] %v877_v13  ;;  %887 = vst [vmem:[%s1530_s29 + $0x18] sm:$0xff] %v879_v18 }
 0x150   : > { %888 = vst [vmem:[%s1530_s29 + $0x20] sm:$0xff] %v880_v19  ;;  %889 = vst [vmem:[%s1530_s29 + $0x28] sm:$0xff] %v881_v23 }
 0x151   : > { %v868_v22 = vld [vmem:[#allocation2 + $0x38] sm:$0xff]  ;;  %890 = vst [vmem:[%s1530_s29 + $0x30] sm:$0xff] %v882_v24 }
 0x152   : > { %v883_v25 = vadd.f32 %v1108_v10, %v868_v22 }
 0x154   : > { %891 = vst [vmem:[%s1530_s29 + $0x38] sm:$0xff] %v883_v25 }
 0x155 PF: > { %s13_s20 = sadd.s32 1, %s1391_s20   ;;  %s1629_s12 = smov %s1363_s13 }
 0x156   : > { %p10_p2 = scmp.ge.s32.totalorder %s13_s20, 18   ;;  %s1630_s13 = smov %s1485_s4 }
 0x157   : > { %s1631_s14 = smov %s1379_s17  ;;  %s1632_s15 = smov %s1383_s18 }
 0x158   : > { %s1633_s16 = smov %s1387_s19  ;;  %s1634_s17 = smov %s1644_s21 }
 0x159   : > { %s1635_s18 = smov %s1640_s22  ;;  %s1636_s19 = smov %s1646_s23 }
 0x15a   :  { %12 = sbr.rel (!%p10_p2) target bundleno = 7 (0x7), region = 104 }

// kernel: generator_forward.20
= control target key start
LH: loop header
LB: loop body
LE: loop exit
PB: predicated region body
PF: predicated region fallthrough
CT: control target
= control target key end

     0   :  { %s355_s9 = smov 0   ;;  %s421_s0 = inlined_call_operand.vmem [shape: f32[512,128], index: 0, kind: input, shape index: {}]   ;;  %s422_s1 = inlined_call_operand.vmem [shape: f32[1,128], index: 1, kind: output, shape index: {0}]   ;;  %s423_s2 = inlined_call_operand.vmem [shape: f32[1,128], index: 2, kind: output, shape index: {1}]  }
   0x1 LB: > { %s313_s10 = sadd.s32 4294967295, %s337_s9   ;;  %p316_p0 = scmp.ge.s32.totalorder %s337_s9, 1  ;;  %s337_s9 = sphi %s355_s9, %s13_s9  }
   0x2   : > { %p106_p1 = scmp.lt.s32.totalorder %s337_s9, 3 }
   0x4   : > { %p107_p2 = pnand %p316_p0, %p106_p1 }
   0x5   : > { %s317_s11 = sshll.u32 (!%p107_p2), %s313_s10, 5  ;;  %p319_p4 = scmp.ne.s32.totalorder (!%p107_p2), %s313_s10, 0 }
   0x6   : > { %110 = sbr.rel (%p107_p2) target bundleno = 98 (0x62), region = 24  ;;  %p124_p3 = scmp.lt.s32.totalorder (!%p107_p2), %s317_s11, 63 }
   0xb   : > { %s425_s11 = smov (!%p124_p3, %s317_s11), 63  ;;  %132 = sbr.rel (%p319_p4) target bundleno = 18 (0x12), region = 28 }
   0xc   : > { %s318_s12 = sshll.u32 %s425_s11, 3 }
   0xd   : > { %s366_s15 = scalar_lea.vmem %s421_s0, %s318_s12 }
  0x10   : > { %v339_v0 = vmov 0.0  }
  0x11   : > { %133 = vst [vmem:[%s422_s1] sm:$0x1] %v339_v0  ;;  %134 = vst [vmem:[%s423_s2] sm:$0x1] %v339_v0 }
  0x12 PF: > { %v135_v1 = vld [vmem:[%s366_s15] sm:$0xff]  ;;  %v136_v2 = vld [vmem:[%s366_s15 + $0x8] sm:$0xff]  ;;  %v137_v3 = vld [vmem:[%s366_s15 + $0x10] sm:$0xff] }
  0x13   : > { %v138_v4 = vld [vmem:[%s366_s15 + $0x18] sm:$0xff]  ;;  %v168_v5 = vadd.f32 %v136_v2, %v135_v1  ;;  %v208_v6 = vmul.f32 %v135_v1, %v135_v1  ;;  %v209_v7 = vmul.f32 %v136_v2, %v136_v2  ;;  %v210_v8 = vmul.f32 %v137_v3, %v137_v3  ;;  %v139_v9 = vld [vmem:[%s366_s15 + $0x20] sm:$0xff]  ;;  %v140_v13 = vld [vmem:[%s366_s15 + $0x28] sm:$0xff] }
  0x14   : > { %v211_v11 = vmul.f32 %v138_v4, %v138_v4  ;;  %v212_v15 = vmul.f32 %v139_v9, %v139_v9  ;;  %v141_v17 = vld [vmem:[%s366_s15 + $0x30] sm:$0xff]  ;;  %v213_v19 = vmul.f32 %v140_v13, %v140_v13  ;;  %v142_v21 = vld [vmem:[%s366_s15 + $0x38] sm:$0xff]  ;;  %v143_v25 = vld [vmem:[%s366_s15 + $0x40] sm:$0xff] }
  0x15   : > { %v169_v10 = vadd.f32 %v168_v5, %v137_v3  ;;  %v240_v12 = vadd.f32 %v209_v7, %v208_v6  ;;  %v214_v23 = vmul.f32 %v141_v17, %v141_v17  ;;  %v215_v27 = vmul.f32 %v142_v21, %v142_v21  ;;  %v144_v29 = vld [vmem:[%s366_s15 + $0x48] sm:$0xff]  ;;  %v145_v33 = vld [vmem:[%s366_s15 + $0x50] sm:$0xff]  ;;  %v146_v37 = vld [vmem:[%s366_s15 + $0x58] sm:$0xff] }
  0x16   : > { %v216_v31 = vmul.f32 %v143_v25, %v143_v25  ;;  %v217_v35 = vmul.f32 %v144_v29, %v144_v29  ;;  %v218_v39 = vmul.f32 %v145_v33, %v145_v33  ;;  %v147_v41 = vld [vmem:[%s366_s15 + $0x60] sm:$0xff]  ;;  %v219_v43 = vmul.f32 %v146_v37, %v146_v37  ;;  %v148_v45 = vld [vmem:[%s366_s15 + $0x68] sm:$0xff]  ;;  %v149_v49 = vld [vmem:[%s366_s15 + $0x70] sm:$0xff] }
  0x17   : > { %v170_v14 = vadd.f32 %v169_v10, %v138_v4  ;;  %v241_v16 = vadd.f32 %v240_v12, %v210_v8  ;;  %v220_v47 = vmul.f32 %v147_v41, %v147_v41  ;;  %v221_v51 = vmul.f32 %v148_v45, %v148_v45  ;;  %v150_v53 = vld [vmem:[%s366_s15 + $0x78] sm:$0xff]  ;;  %v151_v57 = vld [vmem:[%s366_s15 + $0x80] sm:$0xff]  ;;  %v152_v61 = vld [vmem:[%s366_s15 + $0x88] sm:$0xff] }
  0x18   : > { %v222_v55 = vmul.f32 %v149_v49, %v149_v49  ;;  %v223_v59 = vmul.f32 %v150_v53, %v150_v53  ;;  %v224_v63 = vmul.f32 %v151_v57, %v151_v57  ;;  %v153_v1 = vld [vmem:[%s366_s15 + $0x90] sm:$0xff]  ;;  %v225_v3 = vmul.f32 %v152_v61, %v152_v61  ;;  %v154_v5 = vld [vmem:[%s366_s15 + $0x98] sm:$0xff] }
  0x19   : > { %v171_v18 = vadd.f32 %v170_v14, %v139_v9  ;;  %v242_v20 = vadd.f32 %v241_v16, %v211_v11  ;;  %v226_v7 = vmul.f32 %v153_v1, %v153_v1  ;;  %v155_v9 = vld [vmem:[%s366_s15 + $0xa0] sm:$0xff]  ;;  %v227_v11 = vmul.f32 %v154_v5, %v154_v5 }
  0x1b   : > { %v172_v22 = vadd.f32 %v171_v18, %v140_v13  ;;  %v243_v24 = vadd.f32 %v242_v20, %v212_v15  ;;  %v156_v13 = vld [vmem:[%s366_s15 + $0xa8] sm:$0xff]  ;;  %v228_v15 = vmul.f32 %v155_v9, %v155_v9 }
  0x1d   : > { %v173_v26 = vadd.f32 %v172_v22, %v141_v17  ;;  %v244_v28 = vadd.f32 %v243_v24, %v213_v19  ;;  %v157_v17 = vld [vmem:[%s366_s15 + $0xb0] sm:$0xff]  ;;  %v229_v19 = vmul.f32 %v156_v13, %v156_v13 }
  0x1f   : > { %v174_v30 = vadd.f32 %v173_v26, %v142_v21  ;;  %v245_v32 = vadd.f32 %v244_v28, %v214_v23  ;;  %v158_v21 = vld [vmem:[%s366_s15 + $0xb8] sm:$0xff]  ;;  %v230_v23 = vmul.f32 %v157_v17, %v157_v17 }
  0x21   : > { %v175_v34 = vadd.f32 %v174_v30, %v143_v25  ;;  %v246_v36 = vadd.f32 %v245_v32, %v215_v27  ;;  %v159_v25 = vld [vmem:[%s366_s15 + $0xc0] sm:$0xff]  ;;  %v231_v27 = vmul.f32 %v158_v21, %v158_v21 }
  0x23   : > { %v176_v38 = vadd.f32 %v175_v34, %v144_v29  ;;  %v247_v40 = vadd.f32 %v246_v36, %v216_v31  ;;  %v160_v29 = vld [vmem:[%s366_s15 + $0xc8] sm:$0xff]  ;;  %v232_v31 = vmul.f32 %v159_v25, %v159_v25 }
  0x25   : > { %v177_v42 = vadd.f32 %v176_v38, %v145_v33  ;;  %v248_v44 = vadd.f32 %v247_v40, %v217_v35  ;;  %v161_v33 = vld [vmem:[%s366_s15 + $0xd0] sm:$0xff]  ;;  %v233_v35 = vmul.f32 %v160_v29, %v160_v29 }
  0x27   : > { %v178_v46 = vadd.f32 %v177_v42, %v146_v37  ;;  %v249_v48 = vadd.f32 %v248_v44, %v218_v39  ;;  %v162_v37 = vld [vmem:[%s366_s15 + $0xd8] sm:$0xff]  ;;  %v234_v39 = vmul.f32 %v161_v33, %v161_v33 }
  0x29   : > { %v179_v50 = vadd.f32 %v178_v46, %v147_v41  ;;  %v250_v52 = vadd.f32 %v249_v48, %v219_v43  ;;  %v163_v41 = vld [vmem:[%s366_s15 + $0xe0] sm:$0xff]  ;;  %v235_v43 = vmul.f32 %v162_v37, %v162_v37 }
  0x2b   : > { %v180_v54 = vadd.f32 %v179_v50, %v148_v45  ;;  %v251_v56 = vadd.f32 %v250_v52, %v220_v47  ;;  %v164_v45 = vld [vmem:[%s366_s15 + $0xe8] sm:$0xff]  ;;  %v236_v47 = vmul.f32 %v163_v41, %v163_v41 }
  0x2d   : > { %v181_v58 = vadd.f32 %v180_v54, %v149_v49  ;;  %v252_v60 = vadd.f32 %v251_v56, %v221_v51  ;;  %v165_v49 = vld [vmem:[%s366_s15 + $0xf0] sm:$0xff]  ;;  %v237_v51 = vmul.f32 %v164_v45, %v164_v45 }
  0x2f   : > { %v182_v62 = vadd.f32 %v181_v58, %v150_v53  ;;  %v253_v0 = vadd.f32 %v252_v60, %v222_v55  ;;  %v166_v53 = vld [vmem:[%s366_s15 + $0xf8] sm:$0xff]  ;;  %v238_v55 = vmul.f32 %v165_v49, %v165_v49 }
  0x30   : > { %v239_v58 = vmul.f32 %v166_v53, %v166_v53 }
  0x31   : > { %v183_v2 = vadd.f32 %v182_v62, %v151_v57  ;;  %v254_v4 = vadd.f32 %v253_v0, %v223_v59 }
  0x33   : > { %v184_v6 = vadd.f32 %v183_v2, %v152_v61  ;;  %v255_v8 = vadd.f32 %v254_v4, %v224_v63 }
  0x35   : > { %v185_v10 = vadd.f32 %v184_v6, %v153_v1  ;;  %v256_v12 = vadd.f32 %v255_v8, %v225_v3 }
  0x37   : > { %v186_v14 = vadd.f32 %v185_v10, %v154_v5  ;;  %v257_v16 = vadd.f32 %v256_v12, %v226_v7  ;;  %v167_v7 = vld [vmem:[%s422_s1] sm:$0x1] }
  0x38   : > { %v207_v12 = vld [vmem:[%s423_s2] sm:$0x1] }
  0x39   : > { %v187_v18 = vadd.f32 %v186_v14, %v155_v9  ;;  %v258_v20 = vadd.f32 %v257_v16, %v227_v11 }
  0x3b   : > { %v188_v22 = vadd.f32 %v187_v18, %v156_v13  ;;  %v259_v24 = vadd.f32 %v258_v20, %v228_v15 }
  0x3d   : > { %v189_v26 = vadd.f32 %v188_v22, %v157_v17  ;;  %v260_v28 = vadd.f32 %v259_v24, %v229_v19 }
  0x3f   : > { %v190_v30 = vadd.f32 %v189_v26, %v158_v21  ;;  %v261_v32 = vadd.f32 %v260_v28, %v230_v23 }
  0x41   : > { %v191_v34 = vadd.f32 %v190_v30, %v159_v25  ;;  %v262_v36 = vadd.f32 %v261_v32, %v231_v27 }
  0x43   : > { %v192_v38 = vadd.f32 %v191_v34, %v160_v29  ;;  %v263_v40 = vadd.f32 %v262_v36, %v232_v31 }
  0x45   : > { %v193_v42 = vadd.f32 %v192_v38, %v161_v33  ;;  %v264_v44 = vadd.f32 %v263_v40, %v233_v35 }
  0x47   : > { %v194_v46 = vadd.f32 %v193_v42, %v162_v37  ;;  %v265_v48 = vadd.f32 %v264_v44, %v234_v39 }
  0x49   : > { %v195_v50 = vadd.f32 %v194_v46, %v163_v41  ;;  %v266_v52 = vadd.f32 %v265_v48, %v235_v43 }
  0x4b   : > { %v196_v54 = vadd.f32 %v195_v50, %v164_v45  ;;  %v267_v56 = vadd.f32 %v266_v52, %v236_v47 }
  0x4d   : > { %v197_v57 = vadd.f32 %v196_v54, %v165_v49  ;;  %v268_v59 = vadd.f32 %v267_v56, %v237_v51 }
  0x4f   : > { %v198_v60 = vadd.f32 %v197_v57, %v166_v53  ;;  %v269_v61 = vadd.f32 %v268_v59, %v238_v55 }
  0x51   : > { %v199_v62 = vrot.slane %v198_v60, 4  ;;  %v270_v63 = vadd.f32 %v269_v61, %v239_v58 }
  0x53   : > { %v200_v0 = vadd.f32 %v199_v62, %v198_v60  ;;  %v271_v1 = vrot.slane %v270_v63, 4 }
  0x55   : > { %v201_v2 = vrot.slane %v200_v0, 2  ;;  %v272_v3 = vadd.f32 %v271_v1, %v270_v63 }
  0x57   : > { %v202_v4 = vadd.f32 %v201_v2, %v200_v0  ;;  %v273_v5 = vrot.slane %v272_v3, 2 }
  0x59   : > { %v203_v6 = vrot.slane %v202_v4, 1  ;;  %v274_v8 = vadd.f32 %v273_v5, %v272_v3 }
  0x5b   : > { %v204_v9 = vadd.f32 %v203_v6, %v202_v4  ;;  %v275_v10 = vrot.slane %v274_v8, 1 }
  0x5d   : > { %v205_v11 = vadd.f32 %v204_v9, %v167_v7  ;;  %v276_v13 = vadd.f32 %v275_v10, %v274_v8 }
  0x5f   : > { %206 = vst [vmem:[%s422_s1] sm:$0x1] %v205_v11  ;;  %v277_v14 = vadd.f32 %v276_v13, %v207_v12 }
  0x61   : > { %278 = vst [vmem:[%s423_s2] sm:$0x1] %v277_v14 }
  0x62 PF: > { %s13_s9 = sadd.s32 1, %s337_s9  }
  0x63   : > { %p10_p5 = scmp.ge.s32.totalorder %s13_s9, 4  }
  0x65   :  { %12 = sbr.rel (!%p10_p5) target bundleno = 1 (0x1), region = 62 }

// kernel: generator_forward.21
= control target key start
LH: loop header
LB: loop body
LE: loop exit
PB: predicated region body
PF: predicated region fallthrough
CT: control target
= control target key end

     0   :  { %s740_s12 = smov 0   ;;  %s887_s0 = inlined_call_operand.vmem [shape: f32[512,128], index: 0, kind: input, shape index: {}]   ;;  %s888_s1 = inlined_call_operand.vmem [shape: f32[1,128], index: 1, kind: input, shape index: {}]   ;;  %s889_s2 = inlined_call_operand.vmem [shape: f32[1,128], index: 2, kind: input, shape index: {}]   ;;  %s890_s3 = inlined_call_operand.vmem [shape: bf16[512,128], index: 3, kind: output, shape index: {}]  }
   0x1 LB: > { %s532_s13 = sadd.s32 4294967295, %s718_s12   ;;  %p536_p0 = scmp.ge.s32.totalorder %s718_s12, 1  ;;  %s718_s12 = sphi %s740_s12, %s13_s12  }
   0x2   : > { %p138_p1 = scmp.lt.s32.totalorder %s718_s12, 3 }
   0x4   : > { %p139_p2 = pnand %p536_p0, %p138_p1 }
   0x5   : > { %s537_s14 = sshll.u32 (!%p139_p2), %s532_s13, 5 }
   0x6   : > { %142 = sbr.rel (%p139_p2) target bundleno = 49 (0x31), region = 32  ;;  %p163_p3 = scmp.lt.s32.totalorder (!%p139_p2), %s537_s14, 63 }
   0xb   : > { %s892_s14 = smov (!%p163_p3, %s537_s14), 63  ;;  %v754_v0 = vld [vmem:[%s888_s1] ss:$0 sm:$0xff] }
   0xc   : > { %s538_s15 = sshll.u32 %s892_s14, 3  ;;  %v764_v1 = vld [vmem:[%s889_s2] ss:$0 sm:$0xff]  ;;  %s540_s23 = sshll.u32 %s892_s14, 2 }
   0xd   : > { %s759_s20 = scalar_lea.vmem %s887_s0, %s538_s15  ;;  %s796_s26 = scalar_lea.vmem %s890_s3, %s540_s23 }
   0xe   : > { %v174_v2 = vld [vmem:[%s759_s20] sm:$0xff]  ;;  %v175_v3 = vld [vmem:[%s759_s20 + $0x8] sm:$0xff]  ;;  %v176_v4 = vld [vmem:[%s759_s20 + $0x10] sm:$0xff] }
   0xf   : > { %v213_v5 = vmul.f32 %v754_v0, %v174_v2  ;;  %v214_v6 = vmul.f32 %v754_v0, %v175_v3  ;;  %v177_v7 = vld [vmem:[%s759_s20 + $0x18] sm:$0xff]  ;;  %v215_v8 = vmul.f32 %v754_v0, %v176_v4  ;;  %v178_v9 = vld [vmem:[%s759_s20 + $0x20] sm:$0xff]  ;;  %v179_v10 = vld [vmem:[%s759_s20 + $0x28] sm:$0xff] }
  0x10   : > { %v216_v11 = vmul.f32 %v754_v0, %v177_v7  ;;  %v217_v12 = vmul.f32 %v754_v0, %v178_v9  ;;  %v218_v13 = vmul.f32 %v754_v0, %v179_v10  ;;  %v180_v14 = vld [vmem:[%s759_s20 + $0x30] sm:$0xff]  ;;  %v181_v15 = vld [vmem:[%s759_s20 + $0x38] sm:$0xff]  ;;  %v182_v24 = vld [vmem:[%s759_s20 + $0x40] sm:$0xff] }
  0x11   : > { %v252_v16 = vadd.f32 %v764_v1, %v213_v5  ;;  %v253_v17 = vadd.f32 %v764_v1, %v214_v6  ;;  %v254_v18 = vadd.f32 %v764_v1, %v215_v8  ;;  %v219_v19 = vmul.f32 %v754_v0, %v180_v14  ;;  %v183_v25 = vld [vmem:[%s759_s20 + $0x48] sm:$0xff]  ;;  %v184_v30 = vld [vmem:[%s759_s20 + $0x50] sm:$0xff]  ;;  %v185_v35 = vld [vmem:[%s759_s20 + $0x58] sm:$0xff] }
  0x12   : > { %v255_v20 = vadd.f32 %v764_v1, %v216_v11  ;;  %v256_v21 = vadd.f32 %v764_v1, %v217_v12  ;;  %v257_v22 = vadd.f32 %v764_v1, %v218_v13  ;;  %v220_v23 = vmul.f32 %v754_v0, %v181_v15  ;;  %v186_v36 = vld [vmem:[%s759_s20 + $0x60] sm:$0xff]  ;;  %v187_v41 = vld [vmem:[%s759_s20 + $0x68] sm:$0xff]  ;;  %v188_v42 = vld [vmem:[%s759_s20 + $0x70] sm:$0xff] }
  0x13   : > { %v284_v26 = vmax.f32 %v252_v16, 0.0  ;;  %v285_v27 = vmax.f32 %v253_v17, 0.0  ;;  %v286_v28 = vmax.f32 %v254_v18, 0.0  ;;  %v258_v29 = vadd.f32 %v764_v1, %v219_v19  ;;  %v189_v51 = vld [vmem:[%s759_s20 + $0x78] sm:$0xff]  ;;  %v190_v56 = vld [vmem:[%s759_s20 + $0x80] sm:$0xff]  ;;  %v191_v61 = vld [vmem:[%s759_s20 + $0x88] sm:$0xff] }
  0x14   : > { %v287_v31 = vmax.f32 %v255_v20, 0.0  ;;  %v288_v32 = vmax.f32 %v256_v21, 0.0  ;;  %v289_v33 = vmax.f32 %v257_v22, 0.0  ;;  %v259_v34 = vadd.f32 %v764_v1, %v220_v23  ;;  %v192_v4 = vld [vmem:[%s759_s20 + $0x90] sm:$0xff]  ;;  %v193_v5 = vld [vmem:[%s759_s20 + $0x98] sm:$0xff]  ;;  %v194_v10 = vld [vmem:[%s759_s20 + $0xa0] sm:$0xff] }
  0x15   : > { %v612_v37 = vpack.c.bf16 %v285_v27, %v284_v26  ;;  %v290_v38 = vmax.f32 %v258_v29, 0.0  ;;  %v221_v39 = vmul.f32 %v754_v0, %v182_v24  ;;  %v222_v40 = vmul.f32 %v754_v0, %v183_v25  ;;  %v195_v15 = vld [vmem:[%s759_s20 + $0xa8] sm:$0xff]  ;;  %v196_v20 = vld [vmem:[%s759_s20 + $0xb0] sm:$0xff]  ;;  %v197_v25 = vld [vmem:[%s759_s20 + $0xb8] sm:$0xff] }
  0x16   : > { %v617_v43 = vpack.c.bf16 %v287_v31, %v286_v28  ;;  %v622_v44 = vpack.c.bf16 %v289_v33, %v288_v32  ;;  %v291_v45 = vmax.f32 %v259_v34, 0.0  ;;  %v223_v46 = vmul.f32 %v754_v0, %v184_v30  ;;  %v198_v30 = vld [vmem:[%s759_s20 + $0xc0] sm:$0xff] }
  0x17   : > { %613 = vst [vmem:[%s796_s26] sm:$0xff] %v612_v37   ;;  %v260_v47 = vadd.f32 %v764_v1, %v221_v39  ;;  %v261_v48 = vadd.f32 %v764_v1, %v222_v40  ;;  %v224_v49 = vmul.f32 %v754_v0, %v185_v35  ;;  %v225_v50 = vmul.f32 %v754_v0, %v186_v36  ;;  %v199_v35 = vld [vmem:[%s759_s20 + $0xc8] sm:$0xff]  ;;  %v200_v40 = vld [vmem:[%s759_s20 + $0xd0] sm:$0xff] }
  0x18   : > { %689 = vst [vmem:[%s796_s26 + $0x8] sm:$0xff] %v617_v43   ;;  %690 = vst [vmem:[%s796_s26 + $0x10] sm:$0xff] %v622_v44   ;;  %v627_v52 = vpack.c.bf16 %v291_v45, %v290_v38  ;;  %v262_v53 = vadd.f32 %v764_v1, %v223_v46  ;;  %v226_v54 = vmul.f32 %v754_v0, %v187_v41  ;;  %v201_v41 = vld [vmem:[%s759_s20 + $0xd8] sm:$0xff]  ;;  %v202_v46 = vld [vmem:[%s759_s20 + $0xe0] sm:$0xff] }
  0x19   : > { %v227_v55 = vmul.f32 %v754_v0, %v188_v42  ;;  %v292_v57 = vmax.f32 %v260_v47, 0.0  ;;  %v293_v58 = vmax.f32 %v261_v48, 0.0  ;;  %v263_v59 = vadd.f32 %v764_v1, %v224_v49 }
  0x1a   : > { %v264_v60 = vadd.f32 %v764_v1, %v225_v50  ;;  %691 = vst [vmem:[%s796_s26 + $0x18] sm:$0xff] %v627_v52   ;;  %v294_v62 = vmax.f32 %v262_v53, 0.0  ;;  %v265_v63 = vadd.f32 %v764_v1, %v226_v54  ;;  %v228_v2 = vmul.f32 %v754_v0, %v189_v51  ;;  %v203_v51 = vld [vmem:[%s759_s20 + $0xe8] sm:$0xff] }
  0x1b   : > { %v266_v3 = vadd.f32 %v764_v1, %v227_v55  ;;  %v632_v6 = vpack.c.bf16 %v293_v58, %v292_v57  ;;  %v295_v7 = vmax.f32 %v263_v59, 0.0  ;;  %v229_v9 = vmul.f32 %v754_v0, %v190_v56  ;;  %v204_v56 = vld [vmem:[%s759_s20 + $0xf0] sm:$0xff] }
  0x1c   : > { %v296_v8 = vmax.f32 %v264_v60, 0.0  ;;  %v297_v11 = vmax.f32 %v265_v63, 0.0  ;;  %v267_v12 = vadd.f32 %v764_v1, %v228_v2  ;;  %v230_v14 = vmul.f32 %v754_v0, %v191_v61  ;;  %v205_v61 = vld [vmem:[%s759_s20 + $0xf8] sm:$0xff] }
  0x1d   : > { %v298_v13 = vmax.f32 %v266_v3, 0.0  ;;  %692 = vst [vmem:[%s796_s26 + $0x20] sm:$0xff] %v632_v6   ;;  %v637_v16 = vpack.c.bf16 %v295_v7, %v294_v62  ;;  %v268_v17 = vadd.f32 %v764_v1, %v229_v9  ;;  %v231_v18 = vmul.f32 %v754_v0, %v192_v4 }
  0x1e   : > { %v232_v19 = vmul.f32 %v754_v0, %v193_v5  ;;  %v642_v21 = vpack.c.bf16 %v297_v11, %v296_v8  ;;  %v299_v22 = vmax.f32 %v267_v12, 0.0  ;;  %v269_v23 = vadd.f32 %v764_v1, %v230_v14 }
  0x1f   : > { %v233_v24 = vmul.f32 %v754_v0, %v194_v10  ;;  %693 = vst [vmem:[%s796_s26 + $0x28] sm:$0xff] %v637_v16   ;;  %v300_v26 = vmax.f32 %v268_v17, 0.0  ;;  %v270_v27 = vadd.f32 %v764_v1, %v231_v18  ;;  %v234_v29 = vmul.f32 %v754_v0, %v195_v15 }
  0x20   : > { %v271_v28 = vadd.f32 %v764_v1, %v232_v19  ;;  %694 = vst [vmem:[%s796_s26 + $0x30] sm:$0xff] %v642_v21   ;;  %v647_v31 = vpack.c.bf16 %v299_v22, %v298_v13  ;;  %v301_v32 = vmax.f32 %v269_v23, 0.0  ;;  %v235_v34 = vmul.f32 %v754_v0, %v196_v20 }
  0x21   : > { %v272_v33 = vadd.f32 %v764_v1, %v233_v24  ;;  %v302_v36 = vmax.f32 %v270_v27, 0.0  ;;  %v273_v38 = vadd.f32 %v764_v1, %v234_v29  ;;  %v236_v39 = vmul.f32 %v754_v0, %v197_v25 }
  0x22   : > { %v303_v37 = vmax.f32 %v271_v28, 0.0  ;;  %695 = vst [vmem:[%s796_s26 + $0x38] sm:$0xff] %v647_v31   ;;  %v652_v42 = vpack.c.bf16 %v301_v32, %v300_v26  ;;  %v274_v44 = vadd.f32 %v764_v1, %v235_v34  ;;  %v237_v45 = vmul.f32 %v754_v0, %v198_v30 }
  0x23   : > { %v304_v43 = vmax.f32 %v272_v33, 0.0  ;;  %v305_v48 = vmax.f32 %v273_v38, 0.0  ;;  %v275_v49 = vadd.f32 %v764_v1, %v236_v39  ;;  %v238_v50 = vmul.f32 %v754_v0, %v199_v35 }
  0x24   : > { %v657_v47 = vpack.c.bf16 %v303_v37, %v302_v36  ;;  %696 = vst [vmem:[%s796_s26 + $0x40] sm:$0xff] %v652_v42   ;;  %v306_v52 = vmax.f32 %v274_v44, 0.0  ;;  %v276_v53 = vadd.f32 %v764_v1, %v237_v45  ;;  %v239_v54 = vmul.f32 %v754_v0, %v200_v40 }
  0x25   : > { %v240_v55 = vmul.f32 %v754_v0, %v201_v41  ;;  %v662_v57 = vpack.c.bf16 %v305_v48, %v304_v43  ;;  %v307_v58 = vmax.f32 %v275_v49, 0.0  ;;  %v277_v59 = vadd.f32 %v764_v1, %v238_v50 }
  0x26   : > { %697 = vst [vmem:[%s796_s26 + $0x48] sm:$0xff] %v657_v47   ;;  %v241_v60 = vmul.f32 %v754_v0, %v202_v46  ;;  %v308_v62 = vmax.f32 %v276_v53, 0.0  ;;  %v278_v63 = vadd.f32 %v764_v1, %v239_v54  ;;  %v242_v3 = vmul.f32 %v754_v0, %v203_v51 }
  0x27   : > { %v279_v2 = vadd.f32 %v764_v1, %v240_v55  ;;  %698 = vst [vmem:[%s796_s26 + $0x50] sm:$0xff] %v662_v57   ;;  %v667_v4 = vpack.c.bf16 %v307_v58, %v306_v52  ;;  %v309_v5 = vmax.f32 %v277_v59, 0.0  ;;  %v243_v7 = vmul.f32 %v754_v0, %v204_v56 }
  0x28   : > { %v280_v6 = vadd.f32 %v764_v1, %v241_v60  ;;  %v310_v8 = vmax.f32 %v278_v63, 0.0  ;;  %v281_v10 = vadd.f32 %v764_v1, %v242_v3  ;;  %v244_v11 = vmul.f32 %v754_v0, %v205_v61 }
  0x29   : > { %v311_v9 = vmax.f32 %v279_v2, 0.0  ;;  %699 = vst [vmem:[%s796_s26 + $0x58] sm:$0xff] %v667_v4   ;;  %v672_v12 = vpack.c.bf16 %v309_v5, %v308_v62  ;;  %v282_v14 = vadd.f32 %v764_v1, %v243_v7 }
  0x2a   : > { %v312_v13 = vmax.f32 %v280_v6, 0.0  ;;  %v313_v16 = vmax.f32 %v281_v10, 0.0  ;;  %v283_v17 = vadd.f32 %v764_v1, %v244_v11 }
  0x2b   : > { %v677_v15 = vpack.c.bf16 %v311_v9, %v310_v8  ;;  %700 = vst [vmem:[%s796_s26 + $0x60] sm:$0xff] %v672_v12   ;;  %v314_v18 = vmax.f32 %v282_v14, 0.0 }
  0x2c   : > { %v682_v19 = vpack.c.bf16 %v313_v16, %v312_v13  ;;  %v315_v20 = vmax.f32 %v283_v17, 0.0 }
  0x2d   : > { %701 = vst [vmem:[%s796_s26 + $0x68] sm:$0xff] %v677_v15  }
  0x2e   : > { %702 = vst [vmem:[%s796_s26 + $0x70] sm:$0xff] %v682_v19   ;;  %v687_v21 = vpack.c.bf16 %v315_v20, %v314_v18 }
  0x30   : > { %703 = vst [vmem:[%s796_s26 + $0x78] sm:$0xff] %v687_v21  }
  0x31 PF: > { %s13_s12 = sadd.s32 1, %s718_s12  }
  0x32   : > { %p10_p4 = scmp.ge.s32.totalorder %s13_s12, 4  }
  0x34   :  { %12 = sbr.rel (!%p10_p4) target bundleno = 1 (0x1), region = 62 }

// kernel: generator_forward.22
= control target key start
LH: loop header
LB: loop body
LE: loop exit
PB: predicated region body
PF: predicated region fallthrough
CT: control target
= control target key end

     0   :  { %s2229_s12 = smov 0   ;;  %s2231_s13 = smov 0   ;;  %s2565_s0 = inlined_call_operand.vmem [shape: bf16[4,512,512], index: 0, kind: input, shape index: {}]   ;;  %s2566_s1 = inlined_call_operand.vmem [shape: bf16[4,512,64], index: 1, kind: input, shape index: {}]   ;;  %s2567_s2 = inlined_call_operand.vmem [shape: f32[1,64], index: 2, kind: input, shape index: {}]   ;;  %s2568_s3 = inlined_call_operand.vmem [shape: f32[4,512,64], index: 3, kind: output, shape index: {}]  }
   0x1   :  { %s2233_s14 = smov 0   ;;  %s2235_s15 = smov 0  }
   0x2   :  { %s2237_s16 = smov 0  }
   0x3 LB: > { %s35_s17 = sadd.s32 1, %s2198_s14  ;;  %s39_s18 = sadd.s32 1, %s2202_s15  ;;  %s2206_s16 = sphi %s2237_s16, %s13_s16   ;;  %s2202_s15 = sphi %s2235_s15, %s2572_s15   ;;  %s2198_s14 = sphi %s2233_s14, %s2571_s14   ;;  %s2194_s13 = sphi %s2231_s13, %s2570_s13   ;;  %s2190_s12 = sphi %s2229_s12, %s2569_s12  }
   0x4   : > { %p37_p0 = scmp.ge.s32.totalorder %s35_s17, 2  ;;  %p1665_p1 = scmp.ge.s32.totalorder %s2206_s16, 1 }
   0x5   : > { %p212_p2 = scmp.lt.s32.totalorder %s2206_s16, 9 }
   0x6   : > { %s2574_s17 = smov (%p37_p0, %s35_s17), 0  ;;  %s2576_s18 = smov (!%p37_p0, %s39_s18), %s2202_s15 }
   0x7   : > { %p213_p3 = pnand %p1665_p1, %p212_p2  ;;  %p41_p4 = scmp.ge.s32.totalorder %s2576_s18, 4 }
   0x8   : > { %p269_p5 = scmp.lt.s32.totalorder (!%p213_p3), %s2194_s13, 3  ;;  %s1666_s23 = sshll.u32 (!%p213_p3), %s2190_s12, 5 }
   0x9   : > { %s2578_s18 = smov (%p41_p4, %s2576_s18), 0  ;;  %216 = sbr.rel (%p213_p3) target bundleno = 388 (0x184), region = 32 }
   0xa   : > { %p271_p6 = scmp.lt.s32.totalorder (!%p213_p3), %s1666_s23, 63 }
   0xe   : > { %s2580_s13 = smov (!%p269_p5, %s2194_s13), 3  ;;  %s2582_s23 = smov (!%p271_p6, %s1666_s23), 63  ;;  %vm317_vm0 = vcmask 523264  }
   0xf   : > { %s1668_s19 = sshll.u32 %s2580_s13, 8  ;;  %s1667_s24 = sshll.u32 %s2582_s23, 2 }
  0x10   : > { %s2269_s22 = scalar_lea.vmem %s2566_s1, %s1668_s19  ;;  %s278_s25 = sadd.s32 %s1668_s19, %s1667_s24 }
  0x11   : > { %v2040_v0 = vld [vmem:[%s2269_s22 + $0x78] sm:$0xff]   ;;  %v2044_v4 = vld [vmem:[%s2269_s22 + $0x70] sm:$0xff]   ;;  %v2048_v8 = vld [vmem:[%s2269_s22 + $0x68] sm:$0xff]   ;;  %s1669_s26 = sshll.u32 %s278_s25, 2  ;;  %s1673_s30 = sshll.u32 %s2580_s13, 6 }
  0x12   : > { %v2041_v1 = vld [vmem:[%s2269_s22 + $0xf8] sm:$0xff]   ;;  %1775 = vmatprep.subr.bf16.mxu0 %v2040_v0  ;;  %v2045_v5 = vld [vmem:[%s2269_s22 + $0xf0] sm:$0xff]   ;;  %v2049_v9 = vld [vmem:[%s2269_s22 + $0xe8] sm:$0xff]   ;;  %s2310_s29 = scalar_lea.vmem %s2565_s0, %s1669_s26  ;;  %s308_s4 = sadd.s32 %s1673_s30, %s2582_s23 }
  0x13   : > { %v2042_v2 = vld [vmem:[%s2269_s22 + $0x38] sm:$0xff]   ;;  %1887 = vmatprep.subr.bf16.mxu1 %v2041_v1  ;;  %v2046_v6 = vld [vmem:[%s2269_s22 + $0x30] sm:$0xff]   ;;  %v2050_v10 = vld [vmem:[%s2269_s22 + $0x28] sm:$0xff]   ;;  %s1674_s5 = sshll.u32 %s308_s4, 3 }
  0x14   : > { %v2043_v3 = vld [vmem:[%s2269_s22 + $0xb8] sm:$0xff]   ;;  %1776 = vmatpush3.bf16.msra.mxu0 %v2042_v2  ;;  %v2047_v7 = vld [vmem:[%s2269_s22 + $0xb0] sm:$0xff]   ;;  %v2051_v11 = vld [vmem:[%s2269_s22 + $0xa8] sm:$0xff]   ;;  %s2422_s10 = scalar_lea.vmem %s2568_s3, %s1674_s5 }
  0x15   : > { %1888 = vmatpush3.bf16.msra.mxu1 %v2043_v3  ;;  %1777 = vmatprep.subr.bf16.mxu0 %v2044_v4  ;;  %v2052_v12 = vld [vmem:[%s2269_s22 + $0x60] sm:$0xff]   ;;  %v2056_v16 = vld [vmem:[%s2269_s22 + $0x58] sm:$0xff]   ;;  %v2060_v20 = vld [vmem:[%s2269_s22 + $0x50] sm:$0xff]  }
  0x16   : > { %1889 = vmatprep.subr.bf16.mxu1 %v2045_v5  ;;  %v2053_v13 = vld [vmem:[%s2269_s22 + $0xe0] sm:$0xff]   ;;  %v2057_v17 = vld [vmem:[%s2269_s22 + $0xd8] sm:$0xff]   ;;  %v2061_v21 = vld [vmem:[%s2269_s22 + $0xd0] sm:$0xff]  }
  0x17   : > { %v2054_v14 = vld [vmem:[%s2269_s22 + $0x20] sm:$0xff]   ;;  %v2058_v18 = vld [vmem:[%s2269_s22 + $0x18] sm:$0xff]   ;;  %v2062_v22 = vld [vmem:[%s2269_s22 + $0x10] sm:$0xff]  }
  0x18   : > { %1778 = vmatpush3.bf16.msra.mxu0 %v2046_v6  ;;  %v2055_v15 = vld [vmem:[%s2269_s22 + $0xa0] sm:$0xff]   ;;  %v2059_v19 = vld [vmem:[%s2269_s22 + $0x98] sm:$0xff]   ;;  %v2063_v23 = vld [vmem:[%s2269_s22 + $0x90] sm:$0xff]   ;;  %v2208_v6 = vmov 0.0  }
  0x19   : > { %1890 = vmatpush3.bf16.msra.mxu1 %v2047_v7  ;;  %1779 = vmatprep.subr.bf16.mxu0 %v2048_v8  ;;  %v2064_v24 = vld [vmem:[%s2269_s22 + $0x48] sm:$0xff]   ;;  %v2068_v28 = vld [vmem:[%s2269_s22 + $0x40] sm:$0xff]   ;;  %318 = vst.msk [vmem:[#allocation2] sm:$0xff] %vm317_vm0, %v2208_v6  ;;  %319 = vst.msk [vmem:[#allocation2 + $0x8] sm:$0xff] %vm317_vm0, %v2208_v6 }
  0x1a   : > { %1891 = vmatprep.subr.bf16.mxu1 %v2049_v9  ;;  %v2065_v25 = vld [vmem:[%s2269_s22 + $0xc8] sm:$0xff]   ;;  %v2069_v29 = vld [vmem:[%s2269_s22 + $0xc0] sm:$0xff]   ;;  %320 = vst.msk [vmem:[#allocation2 + $0x10] sm:$0xff] %vm317_vm0, %v2208_v6  ;;  %321 = vst.msk [vmem:[#allocation2 + $0x18] sm:$0xff] %vm317_vm0, %v2208_v6 }
  0x1b   : > { %v2066_v26 = vld [vmem:[%s2269_s22 + $0x8] sm:$0xff]   ;;  %v2070_v30 = vld [vmem:[%s2269_s22] sm:$0xff]   ;;  %322 = vst.msk [vmem:[#allocation2 + $0x20] sm:$0xff] %vm317_vm0, %v2208_v6  ;;  %323 = vst.msk [vmem:[#allocation2 + $0x28] sm:$0xff] %vm317_vm0, %v2208_v6 }
  0x1c   : > { %1780 = vmatpush3.bf16.msra.mxu0 %v2050_v10  ;;  %v2067_v27 = vld [vmem:[%s2269_s22 + $0x88] sm:$0xff]   ;;  %v2071_v31 = vld [vmem:[%s2269_s22 + $0x80] sm:$0xff]   ;;  %324 = vst.msk [vmem:[#allocation2 + $0x30] sm:$0xff] %vm317_vm0, %v2208_v6  ;;  %325 = vst.msk [vmem:[#allocation2 + $0x38] sm:$0xff] %vm317_vm0, %v2208_v6 }
  0x1d   : > { %1892 = vmatpush3.bf16.msra.mxu1 %v2051_v11  ;;  %1781 = vmatprep.subr.bf16.mxu0 %v2052_v12  ;;  %v2072_v32 = vld [vmem:[%s2310_s29] ss:$16 sps:$4 sm:$0xff]   ;;  %v2074_v33 = vld [vmem:[%s2310_s29 + $0x4] ss:$16 sps:$4 sm:$0xff]   ;;  %v2075_v34 = vld [vmem:[%s2310_s29 + $0x8] ss:$16 sps:$4 sm:$0xff]  }
  0x1e   : > { %1893 = vmatprep.subr.bf16.mxu1 %v2053_v13  ;;  %v2077_v35 = vld [vmem:[%s2310_s29 + $0xc] ss:$16 sps:$4 sm:$0xff]   ;;  %1054 = vmatprep.mubr.bf16.mxu0 %v2074_v33  ;;  %v2078_v36 = vld [vmem:[%s2310_s29 + $0x24] ss:$16 sps:$4 sm:$0xff]   ;;  %v2082_v38 = vld [vmem:[%s2310_s29 + $0x20] ss:$16 sps:$4 sm:$0xff]  }
  0x1f   : > { %1215 = vmatprep.mubr.bf16.mxu1 %v2077_v35  ;;  %v2080_v37 = vld [vmem:[%s2310_s29 + $0x2c] ss:$16 sps:$4 sm:$0xff]   ;;  %v2083_v39 = vld [vmem:[%s2310_s29 + $0x28] ss:$16 sps:$4 sm:$0xff]   ;;  %v2084_v40 = vld [vmem:[%s2310_s29 + $0x44] ss:$16 sps:$4 sm:$0xff]  }
  0x20   : > { %1782 = vmatpush3.bf16.msra.mxu0 %v2054_v14  ;;  %v2086_v41 = vld [vmem:[%s2310_s29 + $0x4c] ss:$16 sps:$4 sm:$0xff]   ;;  %v2088_v42 = vld [vmem:[%s2310_s29 + $0x40] ss:$16 sps:$4 sm:$0xff]   ;;  %v2089_v43 = vld [vmem:[%s2310_s29 + $0x48] ss:$16 sps:$4 sm:$0xff]  }
  0x21   : > { %1894 = vmatpush3.bf16.msra.mxu1 %v2055_v15  ;;  %1783 = vmatprep.subr.bf16.mxu0 %v2056_v16  ;;  %v2090_v44 = vld [vmem:[%s2310_s29 + $0x64] ss:$16 sps:$4 sm:$0xff]   ;;  %v2092_v45 = vld [vmem:[%s2310_s29 + $0x6c] ss:$16 sps:$4 sm:$0xff]   ;;  %v2094_v46 = vld [vmem:[%s2310_s29 + $0x60] ss:$16 sps:$4 sm:$0xff]  }
  0x22   : > { %1895 = vmatprep.subr.bf16.mxu1 %v2057_v17  ;;  %v2095_v47 = vld [vmem:[%s2310_s29 + $0x68] ss:$16 sps:$4 sm:$0xff]   ;;  %v2096_v48 = vld [vmem:[%s2310_s29 + $0x84] ss:$16 sps:$4 sm:$0xff]   ;;  %v2098_v49 = vld [vmem:[%s2310_s29 + $0x8c] ss:$16 sps:$4 sm:$0xff]  }
  0x23   : > { %v2100_v50 = vld [vmem:[%s2310_s29 + $0x80] ss:$16 sps:$4 sm:$0xff]   ;;  %v2101_v51 = vld [vmem:[%s2310_s29 + $0x88] ss:$16 sps:$4 sm:$0xff]   ;;  %v2102_v52 = vld [vmem:[%s2310_s29 + $0xa4] ss:$16 sps:$4 sm:$0xff]  }
  0x24   : > { %1784 = vmatpush3.bf16.msra.mxu0 %v2058_v18  ;;  %v2104_v53 = vld [vmem:[%s2310_s29 + $0xac] ss:$16 sps:$4 sm:$0xff]   ;;  %v2106_v54 = vld [vmem:[%s2310_s29 + $0xa0] ss:$16 sps:$4 sm:$0xff]   ;;  %v2107_v55 = vld [vmem:[%s2310_s29 + $0xa8] ss:$16 sps:$4 sm:$0xff]  }
  0x25   : > { %1896 = vmatpush3.bf16.msra.mxu1 %v2059_v19  ;;  %1785 = vmatprep.subr.bf16.mxu0 %v2060_v20  ;;  %v2108_v56 = vld [vmem:[%s2310_s29 + $0xc4] ss:$16 sps:$4 sm:$0xff]   ;;  %v2110_v57 = vld [vmem:[%s2310_s29 + $0xcc] ss:$16 sps:$4 sm:$0xff]   ;;  %v2112_v58 = vld [vmem:[%s2310_s29 + $0xc0] ss:$16 sps:$4 sm:$0xff]  }
  0x26   : > { %1897 = vmatprep.subr.bf16.mxu1 %v2061_v21  ;;  %v2113_v59 = vld [vmem:[%s2310_s29 + $0xc8] ss:$16 sps:$4 sm:$0xff]   ;;  %v2114_v60 = vld [vmem:[%s2310_s29 + $0xe4] ss:$16 sps:$4 sm:$0xff]   ;;  %v2116_v61 = vld [vmem:[%s2310_s29 + $0xec] ss:$16 sps:$4 sm:$0xff]  }
  0x27   : > { %v2118_v62 = vld [vmem:[%s2310_s29 + $0xe0] ss:$16 sps:$4 sm:$0xff]   ;;  %v2119_v63 = vld [vmem:[%s2310_s29 + $0xe8] ss:$16 sps:$4 sm:$0xff]   ;;  %v2120_v0 = vld [vmem:[%s2310_s29 + $0x104] ss:$16 sps:$4 sm:$0xff]  }
  0x28   : > { %1786 = vmatpush3.bf16.msra.mxu0 %v2062_v22  ;;  %v2122_v1 = vld [vmem:[%s2310_s29 + $0x10c] ss:$16 sps:$4 sm:$0xff]   ;;  %v2124_v2 = vld [vmem:[%s2310_s29 + $0x100] ss:$16 sps:$4 sm:$0xff]   ;;  %v2125_v3 = vld [vmem:[%s2310_s29 + $0x108] ss:$16 sps:$4 sm:$0xff]  }
  0x29   : > { %1898 = vmatpush3.bf16.msra.mxu1 %v2063_v23  ;;  %1787 = vmatprep.subr.bf16.mxu0 %v2064_v24  ;;  %v2126_v4 = vld [vmem:[%s2310_s29 + $0x124] ss:$16 sps:$4 sm:$0xff]   ;;  %v2128_v5 = vld [vmem:[%s2310_s29 + $0x12c] ss:$16 sps:$4 sm:$0xff]   ;;  %326 = vst.msk [vmem:[#allocation2 + $0x40] sm:$0xff] %vm317_vm0, %v2208_v6  ;;  %327 = vst.msk [vmem:[#allocation2 + $0x48] sm:$0xff] %vm317_vm0, %v2208_v6 }
  0x2a   : > { %1899 = vmatprep.subr.bf16.mxu1 %v2065_v25  ;;  %328 = vst.msk [vmem:[#allocation2 + $0x50] sm:$0xff] %vm317_vm0, %v2208_v6  ;;  %329 = vst.msk [vmem:[#allocation2 + $0x58] sm:$0xff] %vm317_vm0, %v2208_v6  ;;  %v2130_v7 = vld [vmem:[%s2310_s29 + $0x120] ss:$16 sps:$4 sm:$0xff]   ;;  %v2131_v8 = vld [vmem:[%s2310_s29 + $0x128] ss:$16 sps:$4 sm:$0xff]  }
  0x2b   : > { %330 = vst.msk [vmem:[#allocation2 + $0x60] sm:$0xff] %vm317_vm0, %v2208_v6  ;;  %331 = vst.msk [vmem:[#allocation2 + $0x68] sm:$0xff] %vm317_vm0, %v2208_v6  ;;  %v2132_v9 = vld [vmem:[%s2310_s29 + $0x144] ss:$16 sps:$4 sm:$0xff]   ;;  %v2134_v10 = vld [vmem:[%s2310_s29 + $0x14c] ss:$16 sps:$4 sm:$0xff]  }
  0x2c   : > { %1788 = vmatpush3.bf16.msra.mxu0 %v2066_v26  ;;  %332 = vst.msk [vmem:[#allocation2 + $0x70] sm:$0xff] %vm317_vm0, %v2208_v6  ;;  %333 = vst.msk [vmem:[#allocation2 + $0x78] sm:$0xff] %vm317_vm0, %v2208_v6  ;;  %v2136_v11 = vld [vmem:[%s2310_s29 + $0x140] ss:$16 sps:$4 sm:$0xff]   ;;  %v2137_v12 = vld [vmem:[%s2310_s29 + $0x148] ss:$16 sps:$4 sm:$0xff]  }
  0x2d   : > { %1900 = vmatpush3.bf16.msra.mxu1 %v2067_v27  ;;  %1789 = vmatprep.subr.bf16.mxu0 %v2068_v28  ;;  %334 = vst.msk [vmem:[#allocation2 + $0x80] sm:$0xff] %vm317_vm0, %v2208_v6  ;;  %335 = vst.msk [vmem:[#allocation2 + $0x88] sm:$0xff] %vm317_vm0, %v2208_v6  ;;  %v2138_v13 = vld [vmem:[%s2310_s29 + $0x164] ss:$16 sps:$4 sm:$0xff]   ;;  %v2140_v14 = vld [vmem:[%s2310_s29 + $0x16c] ss:$16 sps:$4 sm:$0xff]  }
  0x2e   : > { %1901 = vmatprep.subr.bf16.mxu1 %v2069_v29  ;;  %336 = vst.msk [vmem:[#allocation2 + $0x90] sm:$0xff] %vm317_vm0, %v2208_v6  ;;  %337 = vst.msk [vmem:[#allocation2 + $0x98] sm:$0xff] %vm317_vm0, %v2208_v6  ;;  %v2142_v15 = vld [vmem:[%s2310_s29 + $0x160] ss:$16 sps:$4 sm:$0xff]   ;;  %v2143_v16 = vld [vmem:[%s2310_s29 + $0x168] ss:$16 sps:$4 sm:$0xff]  }
  0x2f   : > { %338 = vst.msk [vmem:[#allocation2 + $0xa0] sm:$0xff] %vm317_vm0, %v2208_v6  ;;  %339 = vst.msk [vmem:[#allocation2 + $0xa8] sm:$0xff] %vm317_vm0, %v2208_v6  ;;  %v2144_v17 = vld [vmem:[%s2310_s29 + $0x184] ss:$16 sps:$4 sm:$0xff]   ;;  %v2146_v18 = vld [vmem:[%s2310_s29 + $0x18c] ss:$16 sps:$4 sm:$0xff]  }
  0x30   : > { %1790 = vmatpush3.bf16.msra.mxu0 %v2070_v30  ;;  %340 = vst.msk [vmem:[#allocation2 + $0xb0] sm:$0xff] %vm317_vm0, %v2208_v6  ;;  %341 = vst.msk [vmem:[#allocation2 + $0xb8] sm:$0xff] %vm317_vm0, %v2208_v6  ;;  %v2148_v19 = vld [vmem:[%s2310_s29 + $0x180] ss:$16 sps:$4 sm:$0xff]   ;;  %v2149_v20 = vld [vmem:[%s2310_s29 + $0x188] ss:$16 sps:$4 sm:$0xff]  }
  0x31   : > { %1902 = vmatpush3.bf16.msra.mxu1 %v2071_v31  ;;  %342 = vst.msk [vmem:[#allocation2 + $0xc0] sm:$0xff] %vm317_vm0, %v2208_v6  ;;  %343 = vst.msk [vmem:[#allocation2 + $0xc8] sm:$0xff] %vm317_vm0, %v2208_v6  ;;  %v2150_v21 = vld [vmem:[%s2310_s29 + $0x1a4] ss:$16 sps:$4 sm:$0xff]   ;;  %v2152_v22 = vld [vmem:[%s2310_s29 + $0x1ac] ss:$16 sps:$4 sm:$0xff]  }
  0x32   : > { %344 = vst.msk [vmem:[#allocation2 + $0xd0] sm:$0xff] %vm317_vm0, %v2208_v6  ;;  %345 = vst.msk [vmem:[#allocation2 + $0xd8] sm:$0xff] %vm317_vm0, %v2208_v6  ;;  %v2154_v23 = vld [vmem:[%s2310_s29 + $0x1a0] ss:$16 sps:$4 sm:$0xff]   ;;  %v2155_v24 = vld [vmem:[%s2310_s29 + $0x1a8] ss:$16 sps:$4 sm:$0xff]  }
  0x33   : > { %1055 = vmatmul.mubr.bf16.vlgmr.msra.gmra.mxu0 %v2072_v32  ;;  %346 = vst.msk [vmem:[#allocation2 + $0xe0] sm:$0xff] %vm317_vm0, %v2208_v6  ;;  %347 = vst.msk [vmem:[#allocation2 + $0xe8] sm:$0xff] %vm317_vm0, %v2208_v6  ;;  %v2156_v25 = vld [vmem:[%s2310_s29 + $0x1c4] ss:$16 sps:$4 sm:$0xff]   ;;  %v2158_v26 = vld [vmem:[%s2310_s29 + $0x1cc] ss:$16 sps:$4 sm:$0xff]  }
  0x34   : > { %1216 = vmatmul.mubr.bf16.vlgmr.msra.gmra.mxu1 %v2075_v34  ;;  %1062 = vmatprep.mubr.bf16.mxu0 %v2078_v36  ;;  %348 = vst.msk [vmem:[#allocation2 + $0xf0] sm:$0xff] %vm317_vm0, %v2208_v6  ;;  %349 = vst.msk [vmem:[#allocation2 + $0xf8] sm:$0xff] %vm317_vm0, %v2208_v6  ;;  %v2160_v27 = vld [vmem:[%s2310_s29 + $0x1c0] ss:$16 sps:$4 sm:$0xff]   ;;  %v2161_v28 = vld [vmem:[%s2310_s29 + $0x1c8] ss:$16 sps:$4 sm:$0xff]  }
  0x35   : > { %1223 = vmatprep.mubr.bf16.mxu1 %v2080_v37  ;;  %v2162_v29 = vld [vmem:[%s2310_s29 + $0x1e4] ss:$16 sps:$4 sm:$0xff]   ;;  %v2164_v30 = vld [vmem:[%s2310_s29 + $0x1ec] ss:$16 sps:$4 sm:$0xff]   ;;  %v2166_v31 = vld [vmem:[%s2310_s29 + $0x1e0] ss:$16 sps:$4 sm:$0xff]  }
  0x36   : > { %v2167_v32 = vld [vmem:[%s2310_s29 + $0x1e8] ss:$16 sps:$4 sm:$0xff]  }
  0x3b   : > { %1063 = vmatmul.mubr.bf16.gmra.mxu0 %v2082_v38 }
  0x3c   : > { %1224 = vmatmul.mubr.bf16.gmra.mxu1 %v2083_v39  ;;  %1070 = vmatprep.mubr.bf16.mxu0 %v2084_v40  ;;  %v350_v40 = vld [vmem:[#allocation2] sm:$0xff] }
  0x3d   : > { %1231 = vmatprep.mubr.bf16.mxu1 %v2086_v41 }
  0x43   : > { %1071 = vmatmul.mubr.bf16.gmra.mxu0 %v2088_v42 }
  0x44   : > { %1232 = vmatmul.mubr.bf16.gmra.mxu1 %v2089_v43  ;;  %1078 = vmatprep.mubr.bf16.mxu0 %v2090_v44 }
  0x45   : > { %1239 = vmatprep.mubr.bf16.mxu1 %v2092_v45 }
  0x4b   : > { %1079 = vmatmul.mubr.bf16.gmra.mxu0 %v2094_v46 }
  0x4c   : > { %1240 = vmatmul.mubr.bf16.gmra.mxu1 %v2095_v47  ;;  %1086 = vmatprep.mubr.bf16.mxu0 %v2096_v48 }
  0x4d   : > { %1247 = vmatprep.mubr.bf16.mxu1 %v2098_v49  ;;  %v351_v49 = vld [vmem:[#allocation2 + $0x8] sm:$0xff] }
  0x53   : > { %1087 = vmatmul.mubr.bf16.gmra.mxu0 %v2100_v50 }
  0x54   : > { %1248 = vmatmul.mubr.bf16.gmra.mxu1 %v2101_v51  ;;  %1094 = vmatprep.mubr.bf16.mxu0 %v2102_v52 }
  0x55   : > { %1255 = vmatprep.mubr.bf16.mxu1 %v2104_v53 }
  0x5b   : > { %1095 = vmatmul.mubr.bf16.gmra.mxu0 %v2106_v54 }
  0x5c   : > { %1256 = vmatmul.mubr.bf16.gmra.mxu1 %v2107_v55  ;;  %1102 = vmatprep.mubr.bf16.mxu0 %v2108_v56 }
  0x5d   : > { %1263 = vmatprep.mubr.bf16.mxu1 %v2110_v57 }
  0x63   : > { %1103 = vmatmul.mubr.bf16.gmra.mxu0 %v2112_v58  ;;  %v352_v58 = vld [vmem:[#allocation2 + $0x10] sm:$0xff] }
  0x64   : > { %1264 = vmatmul.mubr.bf16.gmra.mxu1 %v2113_v59  ;;  %1110 = vmatprep.mubr.bf16.mxu0 %v2114_v60 }
  0x65   : > { %1271 = vmatprep.mubr.bf16.mxu1 %v2116_v61 }
  0x6b   : > { %1111 = vmatmul.mubr.bf16.gmra.mxu0 %v2118_v62  ;;  %v2417_v62 = vld [vmem:[%s2567_s2] ss:$0 sm:$0xff] }
  0x6c   : > { %1272 = vmatmul.mubr.bf16.gmra.mxu1 %v2119_v63  ;;  %1118 = vmatprep.mubr.bf16.mxu0 %v2120_v0 }
  0x6d   : > { %1279 = vmatprep.mubr.bf16.mxu1 %v2122_v1 }
  0x73   : > { %1119 = vmatmul.mubr.bf16.gmra.mxu0 %v2124_v2 }
  0x74   : > { %1280 = vmatmul.mubr.bf16.gmra.mxu1 %v2125_v3  ;;  %1126 = vmatprep.mubr.bf16.mxu0 %v2126_v4 }
  0x75   : > { %1287 = vmatprep.mubr.bf16.mxu1 %v2128_v5  ;;  %v353_v5 = vld [vmem:[#allocation2 + $0x18] sm:$0xff] }
  0x7b   : > { %1127 = vmatmul.mubr.bf16.gmra.mxu0 %v2130_v7 }
  0x7c   : > { %1288 = vmatmul.mubr.bf16.gmra.mxu1 %v2131_v8  ;;  %1134 = vmatprep.mubr.bf16.mxu0 %v2132_v9 }
  0x7d   : > { %1295 = vmatprep.mubr.bf16.mxu1 %v2134_v10 }
  0x83   : > { %1135 = vmatmul.mubr.bf16.gmra.mxu0 %v2136_v11 }
  0x84   : > { %1296 = vmatmul.mubr.bf16.gmra.mxu1 %v2137_v12  ;;  %1142 = vmatprep.mubr.bf16.mxu0 %v2138_v13 }
  0x85   : > { %1303 = vmatprep.mubr.bf16.mxu1 %v2140_v14 }
  0x8b   : > { %1143 = vmatmul.mubr.bf16.gmra.mxu0 %v2142_v15 }
  0x8c   : > { %1304 = vmatmul.mubr.bf16.gmra.mxu1 %v2143_v16  ;;  %1150 = vmatprep.mubr.bf16.mxu0 %v2144_v17  ;;  %v354_v16 = vld [vmem:[#allocation2 + $0x20] sm:$0xff] }
  0x8d   : > { %1311 = vmatprep.mubr.bf16.mxu1 %v2146_v18 }
  0x93   : > { %1151 = vmatmul.mubr.bf16.gmra.mxu0 %v2148_v19 }
  0x94   : > { %1312 = vmatmul.mubr.bf16.gmra.mxu1 %v2149_v20  ;;  %1158 = vmatprep.mubr.bf16.mxu0 %v2150_v21 }
  0x95   : > { %1319 = vmatprep.mubr.bf16.mxu1 %v2152_v22 }
  0x9b   : > { %1159 = vmatmul.mubr.bf16.gmra.mxu0 %v2154_v23 }
  0x9c   : > { %1320 = vmatmul.mubr.bf16.gmra.mxu1 %v2155_v24  ;;  %1166 = vmatprep.mubr.bf16.mxu0 %v2156_v25 }
  0x9d   : > { %1327 = vmatprep.mubr.bf16.mxu1 %v2158_v26 }
  0xa3   : > { %1167 = vmatmul.mubr.bf16.gmra.mxu0 %v2160_v27  ;;  %v355_v27 = vld [vmem:[#allocation2 + $0x28] sm:$0xff] }
  0xa4   : > { %1328 = vmatmul.mubr.bf16.gmra.mxu1 %v2161_v28  ;;  %1174 = vmatprep.mubr.bf16.mxu0 %v2162_v29 }
  0xa5   : > { %1335 = vmatprep.mubr.bf16.mxu1 %v2164_v30 }
  0xab   : > { %1175 = vmatmul.mubr.bf16.gmra.mxu0 %v2166_v31 }
  0xac   : > { %1336 = vmatmul.mubr.bf16.gmra.mxu1 %v2167_v32 }
  0xf3   : > { %v1791_v33 = vpop.f32.mrf.mxu0 }
  0xf4   : > { %v1903_v34 = vpop.f32.mrf.mxu1 }
  0xf5   : > { %v1792_v35 = vpop.f32.mrf.mxu0 }
  0xf6   : > { %v1793_v36 = vadd.f32 %v1792_v35, %v1791_v33  ;;  %v1904_v37 = vpop.f32.mrf.mxu1 }
  0xf7   : > { %v1905_v38 = vadd.f32 %v1904_v37, %v1903_v34  ;;  %v1794_v39 = vpop.f32.mrf.mxu0 }
  0xf8   : > { %v1906_v41 = vpop.f32.mrf.mxu1 }
  0xf9   : > { %v1218_v42 = vadd.f32 %v1905_v38, %v1793_v36  ;;  %v1795_v43 = vpop.f32.mrf.mxu0  ;;  %v356_v38 = vld [vmem:[#allocation2 + $0x30] sm:$0xff] }
  0xfa   : > { %v1796_v44 = vadd.f32 %v1795_v43, %v1794_v39  ;;  %v1907_v45 = vpop.f32.mrf.mxu1 }
  0xfb   : > { %v1344_v46 = vadd.f32 %v1218_v42, %v350_v40  ;;  %v1908_v47 = vadd.f32 %v1907_v45, %v1906_v41  ;;  %v1797_v48 = vpop.f32.mrf.mxu0 }
  0xfc   : > { %v1909_v50 = vpop.f32.mrf.mxu1 }
  0xfd   : > { %1377 = vst.msk [vmem:[#allocation2] sm:$0xff] %vm317_vm0, %v1344_v46  ;;  %v1221_v51 = vadd.f32 %v1908_v47, %v1796_v44  ;;  %v1798_v52 = vpop.f32.mrf.mxu0 }
  0xfe   : > { %v1799_v53 = vadd.f32 %v1798_v52, %v1797_v48  ;;  %v1910_v54 = vpop.f32.mrf.mxu1 }
  0xff   : > { %v1345_v55 = vadd.f32 %v1221_v51, %v351_v49  ;;  %v1911_v56 = vadd.f32 %v1910_v54, %v1909_v50  ;;  %v1800_v57 = vpop.f32.mrf.mxu0  ;;  %v357_v49 = vld [vmem:[#allocation2 + $0x38] sm:$0xff] }
 0x100   : > { %v1912_v59 = vpop.f32.mrf.mxu1 }
 0x101   : > { %1378 = vst.msk [vmem:[#allocation2 + $0x8] sm:$0xff] %vm317_vm0, %v1345_v55  ;;  %v1226_v60 = vadd.f32 %v1911_v56, %v1799_v53  ;;  %v1801_v61 = vpop.f32.mrf.mxu0 }
 0x102   : > { %v1802_v63 = vadd.f32 %v1801_v61, %v1800_v57  ;;  %v1913_v0 = vpop.f32.mrf.mxu1 }
 0x103   : > { %v1346_v1 = vadd.f32 %v1226_v60, %v352_v58  ;;  %v1914_v2 = vadd.f32 %v1913_v0, %v1912_v59  ;;  %v1803_v3 = vpop.f32.mrf.mxu0  ;;  %v358_v60 = vld [vmem:[#allocation2 + $0x40] sm:$0xff] }
 0x104   : > { %v1412_v4 = vld [vmem:[#allocation2] sm:$0xff]  ;;  %v1915_v6 = vpop.f32.mrf.mxu1 }
 0x105   : > { %v1451_v7 = vadd.f32 %v2417_v62, %v1412_v4  ;;  %1379 = vst.msk [vmem:[#allocation2 + $0x10] sm:$0xff] %vm317_vm0, %v1346_v1  ;;  %v1229_v8 = vadd.f32 %v1914_v2, %v1802_v63  ;;  %v1804_v9 = vpop.f32.mrf.mxu0 }
 0x106   : > { %v1805_v10 = vadd.f32 %v1804_v9, %v1803_v3  ;;  %v1916_v11 = vpop.f32.mrf.mxu1 }
 0x107   : > { %1483 = vst.msk [vmem:[%s2422_s10] sm:$0xff] %vm317_vm0, %v1451_v7  ;;  %v1347_v12 = vadd.f32 %v1229_v8, %v353_v5  ;;  %v1917_v13 = vadd.f32 %v1916_v11, %v1915_v6  ;;  %v1806_v14 = vpop.f32.mrf.mxu0  ;;  %v359_v8 = vld [vmem:[#allocation2 + $0x48] sm:$0xff] }
 0x108   : > { %v1413_v15 = vld [vmem:[#allocation2 + $0x8] sm:$0xff]  ;;  %v1918_v17 = vpop.f32.mrf.mxu1 }
 0x109   : > { %v1452_v18 = vadd.f32 %v2417_v62, %v1413_v15  ;;  %1380 = vst.msk [vmem:[#allocation2 + $0x18] sm:$0xff] %vm317_vm0, %v1347_v12  ;;  %v1234_v19 = vadd.f32 %v1917_v13, %v1805_v10  ;;  %v1807_v20 = vpop.f32.mrf.mxu0 }
 0x10a   : > { %v1808_v21 = vadd.f32 %v1807_v20, %v1806_v14  ;;  %v1919_v22 = vpop.f32.mrf.mxu1 }
 0x10b   : > { %1484 = vst.msk [vmem:[%s2422_s10 + $0x8] sm:$0xff] %vm317_vm0, %v1452_v18  ;;  %v1348_v23 = vadd.f32 %v1234_v19, %v354_v16  ;;  %v1920_v24 = vadd.f32 %v1919_v22, %v1918_v17  ;;  %v1809_v25 = vpop.f32.mrf.mxu0  ;;  %v360_v19 = vld [vmem:[#allocation2 + $0x50] sm:$0xff] }
 0x10c   : > { %v1414_v26 = vld [vmem:[#allocation2 + $0x10] sm:$0xff]  ;;  %v1921_v28 = vpop.f32.mrf.mxu1 }
 0x10d   : > { %v1453_v29 = vadd.f32 %v2417_v62, %v1414_v26  ;;  %1381 = vst.msk [vmem:[#allocation2 + $0x20] sm:$0xff] %vm317_vm0, %v1348_v23  ;;  %v1237_v30 = vadd.f32 %v1920_v24, %v1808_v21  ;;  %v1810_v31 = vpop.f32.mrf.mxu0 }
 0x10e   : > { %v1811_v32 = vadd.f32 %v1810_v31, %v1809_v25  ;;  %v1922_v33 = vpop.f32.mrf.mxu1 }
 0x10f   : > { %1485 = vst.msk [vmem:[%s2422_s10 + $0x10] sm:$0xff] %vm317_vm0, %v1453_v29  ;;  %v1349_v34 = vadd.f32 %v1237_v30, %v355_v27  ;;  %v1923_v35 = vadd.f32 %v1922_v33, %v1921_v28  ;;  %v1812_v36 = vpop.f32.mrf.mxu0  ;;  %v361_v30 = vld [vmem:[#allocation2 + $0x58] sm:$0xff] }
 0x110   : > { %v1415_v37 = vld [vmem:[#allocation2 + $0x18] sm:$0xff]  ;;  %v1924_v39 = vpop.f32.mrf.mxu1 }
 0x111   : > { %v1454_v40 = vadd.f32 %v2417_v62, %v1415_v37  ;;  %1382 = vst.msk [vmem:[#allocation2 + $0x28] sm:$0xff] %vm317_vm0, %v1349_v34  ;;  %v1242_v41 = vadd.f32 %v1923_v35, %v1811_v32  ;;  %v1813_v42 = vpop.f32.mrf.mxu0 }
 0x112   : > { %v1814_v43 = vadd.f32 %v1813_v42, %v1812_v36  ;;  %v1925_v44 = vpop.f32.mrf.mxu1 }
 0x113   : > { %1486 = vst.msk [vmem:[%s2422_s10 + $0x18] sm:$0xff] %vm317_vm0, %v1454_v40  ;;  %v1350_v45 = vadd.f32 %v1242_v41, %v356_v38  ;;  %v1926_v46 = vadd.f32 %v1925_v44, %v1924_v39  ;;  %v1815_v47 = vpop.f32.mrf.mxu0  ;;  %v362_v41 = vld [vmem:[#allocation2 + $0x60] sm:$0xff] }
 0x114   : > { %v1416_v48 = vld [vmem:[#allocation2 + $0x20] sm:$0xff]  ;;  %v1927_v50 = vpop.f32.mrf.mxu1 }
 0x115   : > { %v1455_v51 = vadd.f32 %v2417_v62, %v1416_v48  ;;  %1383 = vst.msk [vmem:[#allocation2 + $0x30] sm:$0xff] %vm317_vm0, %v1350_v45  ;;  %v1245_v52 = vadd.f32 %v1926_v46, %v1814_v43  ;;  %v1816_v53 = vpop.f32.mrf.mxu0 }
 0x116   : > { %v1817_v54 = vadd.f32 %v1816_v53, %v1815_v47  ;;  %v1928_v55 = vpop.f32.mrf.mxu1 }
 0x117   : > { %1487 = vst.msk [vmem:[%s2422_s10 + $0x20] sm:$0xff] %vm317_vm0, %v1455_v51  ;;  %v1351_v56 = vadd.f32 %v1245_v52, %v357_v49  ;;  %v1929_v57 = vadd.f32 %v1928_v55, %v1927_v50  ;;  %v1818_v58 = vpop.f32.mrf.mxu0  ;;  %v363_v52 = vld [vmem:[#allocation2 + $0x68] sm:$0xff] }
 0x118   : > { %v1417_v59 = vld [vmem:[#allocation2 + $0x28] sm:$0xff]  ;;  %v1930_v61 = vpop.f32.mrf.mxu1 }
 0x119   : > { %v1456_v63 = vadd.f32 %v2417_v62, %v1417_v59  ;;  %1384 = vst.msk [vmem:[#allocation2 + $0x38] sm:$0xff] %vm317_vm0, %v1351_v56  ;;  %v1250_v0 = vadd.f32 %v1929_v57, %v1817_v54  ;;  %v1819_v1 = vpop.f32.mrf.mxu0 }
 0x11a   : > { %v1820_v2 = vadd.f32 %v1819_v1, %v1818_v58  ;;  %v1931_v3 = vpop.f32.mrf.mxu1 }
 0x11b   : > { %1488 = vst.msk [vmem:[%s2422_s10 + $0x28] sm:$0xff] %vm317_vm0, %v1456_v63  ;;  %v1352_v4 = vadd.f32 %v1250_v0, %v358_v60  ;;  %v1932_v5 = vadd.f32 %v1931_v3, %v1930_v61  ;;  %v1821_v6 = vpop.f32.mrf.mxu0  ;;  %v364_v0 = vld [vmem:[#allocation2 + $0x70] sm:$0xff] }
 0x11c   : > { %v1418_v7 = vld [vmem:[#allocation2 + $0x30] sm:$0xff]  ;;  %v1933_v9 = vpop.f32.mrf.mxu1 }
 0x11d   : > { %v1457_v10 = vadd.f32 %v2417_v62, %v1418_v7  ;;  %1385 = vst.msk [vmem:[#allocation2 + $0x40] sm:$0xff] %vm317_vm0, %v1352_v4  ;;  %v1253_v11 = vadd.f32 %v1932_v5, %v1820_v2  ;;  %v1822_v12 = vpop.f32.mrf.mxu0 }
 0x11e   : > { %v1823_v13 = vadd.f32 %v1822_v12, %v1821_v6  ;;  %v1934_v14 = vpop.f32.mrf.mxu1 }
 0x11f   : > { %1489 = vst.msk [vmem:[%s2422_s10 + $0x30] sm:$0xff] %vm317_vm0, %v1457_v10  ;;  %v1353_v15 = vadd.f32 %v1253_v11, %v359_v8  ;;  %v1935_v16 = vadd.f32 %v1934_v14, %v1933_v9  ;;  %v1824_v17 = vpop.f32.mrf.mxu0  ;;  %v365_v11 = vld [vmem:[#allocation2 + $0x78] sm:$0xff] }
 0x120   : > { %v1419_v18 = vld [vmem:[#allocation2 + $0x38] sm:$0xff]  ;;  %v1936_v20 = vpop.f32.mrf.mxu1 }
 0x121   : > { %v1458_v21 = vadd.f32 %v2417_v62, %v1419_v18  ;;  %1386 = vst.msk [vmem:[#allocation2 + $0x48] sm:$0xff] %vm317_vm0, %v1353_v15  ;;  %v1258_v22 = vadd.f32 %v1935_v16, %v1823_v13  ;;  %v1825_v23 = vpop.f32.mrf.mxu0 }
 0x122   : > { %v1826_v24 = vadd.f32 %v1825_v23, %v1824_v17  ;;  %v1937_v25 = vpop.f32.mrf.mxu1 }
 0x123   : > { %1490 = vst.msk [vmem:[%s2422_s10 + $0x38] sm:$0xff] %vm317_vm0, %v1458_v21  ;;  %v1354_v26 = vadd.f32 %v1258_v22, %v360_v19  ;;  %v1938_v27 = vadd.f32 %v1937_v25, %v1936_v20  ;;  %v1827_v28 = vpop.f32.mrf.mxu0  ;;  %v366_v22 = vld [vmem:[#allocation2 + $0x80] sm:$0xff] }
 0x124   : > { %v1420_v29 = vld [vmem:[#allocation2 + $0x40] sm:$0xff]  ;;  %v1939_v31 = vpop.f32.mrf.mxu1 }
 0x125   : > { %v1459_v32 = vadd.f32 %v2417_v62, %v1420_v29  ;;  %1387 = vst.msk [vmem:[#allocation2 + $0x50] sm:$0xff] %vm317_vm0, %v1354_v26  ;;  %v1261_v33 = vadd.f32 %v1938_v27, %v1826_v24  ;;  %v1828_v34 = vpop.f32.mrf.mxu0 }
 0x126   : > { %v1829_v35 = vadd.f32 %v1828_v34, %v1827_v28  ;;  %v1940_v36 = vpop.f32.mrf.mxu1 }
 0x127   : > { %1491 = vst.msk [vmem:[%s2422_s10 + $0x40] sm:$0xff] %vm317_vm0, %v1459_v32  ;;  %v1355_v37 = vadd.f32 %v1261_v33, %v361_v30  ;;  %v1941_v38 = vadd.f32 %v1940_v36, %v1939_v31  ;;  %v1830_v39 = vpop.f32.mrf.mxu0  ;;  %v367_v33 = vld [vmem:[#allocation2 + $0x88] sm:$0xff] }
 0x128   : > { %v1421_v40 = vld [vmem:[#allocation2 + $0x48] sm:$0xff]  ;;  %v1942_v42 = vpop.f32.mrf.mxu1 }
 0x129   : > { %v1460_v43 = vadd.f32 %v2417_v62, %v1421_v40  ;;  %1388 = vst.msk [vmem:[#allocation2 + $0x58] sm:$0xff] %vm317_vm0, %v1355_v37  ;;  %v1266_v44 = vadd.f32 %v1941_v38, %v1829_v35  ;;  %v1831_v45 = vpop.f32.mrf.mxu0 }
 0x12a   : > { %v1832_v46 = vadd.f32 %v1831_v45, %v1830_v39  ;;  %v1943_v47 = vpop.f32.mrf.mxu1 }
 0x12b   : > { %1492 = vst.msk [vmem:[%s2422_s10 + $0x48] sm:$0xff] %vm317_vm0, %v1460_v43  ;;  %v1356_v48 = vadd.f32 %v1266_v44, %v362_v41  ;;  %v1944_v49 = vadd.f32 %v1943_v47, %v1942_v42  ;;  %v1833_v50 = vpop.f32.mrf.mxu0  ;;  %v368_v44 = vld [vmem:[#allocation2 + $0x90] sm:$0xff] }
 0x12c   : > { %v1422_v51 = vld [vmem:[#allocation2 + $0x50] sm:$0xff]  ;;  %v1945_v53 = vpop.f32.mrf.mxu1 }
 0x12d   : > { %v1461_v54 = vadd.f32 %v2417_v62, %v1422_v51  ;;  %1389 = vst.msk [vmem:[#allocation2 + $0x60] sm:$0xff] %vm317_vm0, %v1356_v48  ;;  %v1269_v55 = vadd.f32 %v1944_v49, %v1832_v46  ;;  %v1834_v56 = vpop.f32.mrf.mxu0 }
 0x12e   : > { %v1835_v57 = vadd.f32 %v1834_v56, %v1833_v50  ;;  %v1946_v58 = vpop.f32.mrf.mxu1 }
 0x12f   : > { %1493 = vst.msk [vmem:[%s2422_s10 + $0x50] sm:$0xff] %vm317_vm0, %v1461_v54  ;;  %v1357_v59 = vadd.f32 %v1269_v55, %v363_v52  ;;  %v1947_v60 = vadd.f32 %v1946_v58, %v1945_v53  ;;  %v1836_v61 = vpop.f32.mrf.mxu0  ;;  %v369_v55 = vld [vmem:[#allocation2 + $0x98] sm:$0xff] }
 0x130   : > { %v1423_v63 = vld [vmem:[#allocation2 + $0x58] sm:$0xff]  ;;  %v1948_v1 = vpop.f32.mrf.mxu1 }
 0x131   : > { %v1462_v2 = vadd.f32 %v2417_v62, %v1423_v63  ;;  %1390 = vst.msk [vmem:[#allocation2 + $0x68] sm:$0xff] %vm317_vm0, %v1357_v59  ;;  %v1274_v3 = vadd.f32 %v1947_v60, %v1835_v57  ;;  %v1837_v4 = vpop.f32.mrf.mxu0 }
 0x132   : > { %v1838_v5 = vadd.f32 %v1837_v4, %v1836_v61  ;;  %v1949_v6 = vpop.f32.mrf.mxu1 }
 0x133   : > { %1494 = vst.msk [vmem:[%s2422_s10 + $0x58] sm:$0xff] %vm317_vm0, %v1462_v2  ;;  %v1358_v7 = vadd.f32 %v1274_v3, %v364_v0  ;;  %v1950_v8 = vadd.f32 %v1949_v6, %v1948_v1  ;;  %v1839_v9 = vpop.f32.mrf.mxu0  ;;  %v370_v3 = vld [vmem:[#allocation2 + $0xa0] sm:$0xff] }
 0x134   : > { %v1424_v10 = vld [vmem:[#allocation2 + $0x60] sm:$0xff]  ;;  %v1951_v12 = vpop.f32.mrf.mxu1 }
 0x135   : > { %v1463_v13 = vadd.f32 %v2417_v62, %v1424_v10  ;;  %1391 = vst.msk [vmem:[#allocation2 + $0x70] sm:$0xff] %vm317_vm0, %v1358_v7  ;;  %v1277_v14 = vadd.f32 %v1950_v8, %v1838_v5  ;;  %v1840_v15 = vpop.f32.mrf.mxu0 }
 0x136   : > { %v1841_v16 = vadd.f32 %v1840_v15, %v1839_v9  ;;  %v1952_v17 = vpop.f32.mrf.mxu1 }
 0x137   : > { %1495 = vst.msk [vmem:[%s2422_s10 + $0x60] sm:$0xff] %vm317_vm0, %v1463_v13  ;;  %v1359_v18 = vadd.f32 %v1277_v14, %v365_v11  ;;  %v1953_v19 = vadd.f32 %v1952_v17, %v1951_v12  ;;  %v1842_v20 = vpop.f32.mrf.mxu0  ;;  %v371_v14 = vld [vmem:[#allocation2 + $0xa8] sm:$0xff] }
 0x138   : > { %v1425_v21 = vld [vmem:[#allocation2 + $0x68] sm:$0xff]  ;;  %v1954_v23 = vpop.f32.mrf.mxu1 }
 0x139   : > { %v1464_v24 = vadd.f32 %v2417_v62, %v1425_v21  ;;  %1392 = vst.msk [vmem:[#allocation2 + $0x78] sm:$0xff] %vm317_vm0, %v1359_v18  ;;  %v1282_v25 = vadd.f32 %v1953_v19, %v1841_v16  ;;  %v1843_v26 = vpop.f32.mrf.mxu0 }
 0x13a   : > { %v1844_v27 = vadd.f32 %v1843_v26, %v1842_v20  ;;  %v1955_v28 = vpop.f32.mrf.mxu1 }
 0x13b   : > { %1496 = vst.msk [vmem:[%s2422_s10 + $0x68] sm:$0xff] %vm317_vm0, %v1464_v24  ;;  %v1360_v29 = vadd.f32 %v1282_v25, %v366_v22  ;;  %v1956_v30 = vadd.f32 %v1955_v28, %v1954_v23  ;;  %v1845_v31 = vpop.f32.mrf.mxu0  ;;  %v372_v25 = vld [vmem:[#allocation2 + $0xb0] sm:$0xff] }
 0x13c   : > { %v1426_v32 = vld [vmem:[#allocation2 + $0x70] sm:$0xff]  ;;  %v1957_v34 = vpop.f32.mrf.mxu1 }
 0x13d   : > { %v1465_v35 = vadd.f32 %v2417_v62, %v1426_v32  ;;  %1393 = vst.msk [vmem:[#allocation2 + $0x80] sm:$0xff] %vm317_vm0, %v1360_v29  ;;  %v1285_v36 = vadd.f32 %v1956_v30, %v1844_v27  ;;  %v1846_v37 = vpop.f32.mrf.mxu0 }
 0x13e   : > { %v1847_v38 = vadd.f32 %v1846_v37, %v1845_v31  ;;  %v1958_v39 = vpop.f32.mrf.mxu1 }
 0x13f   : > { %1497 = vst.msk [vmem:[%s2422_s10 + $0x70] sm:$0xff] %vm317_vm0, %v1465_v35  ;;  %v1361_v40 = vadd.f32 %v1285_v36, %v367_v33  ;;  %v1959_v41 = vadd.f32 %v1958_v39, %v1957_v34  ;;  %v1848_v42 = vpop.f32.mrf.mxu0  ;;  %v373_v36 = vld [vmem:[#allocation2 + $0xb8] sm:$0xff] }
 0x140   : > { %v1427_v43 = vld [vmem:[#allocation2 + $0x78] sm:$0xff]  ;;  %v1960_v45 = vpop.f32.mrf.mxu1 }
 0x141   : > { %v1466_v46 = vadd.f32 %v2417_v62, %v1427_v43  ;;  %1394 = vst.msk [vmem:[#allocation2 + $0x88] sm:$0xff] %vm317_vm0, %v1361_v40  ;;  %v1290_v47 = vadd.f32 %v1959_v41, %v1847_v38  ;;  %v1849_v48 = vpop.f32.mrf.mxu0 }
 0x142   : > { %v1850_v49 = vadd.f32 %v1849_v48, %v1848_v42  ;;  %v1961_v50 = vpop.f32.mrf.mxu1 }
 0x143   : > { %1498 = vst.msk [vmem:[%s2422_s10 + $0x78] sm:$0xff] %vm317_vm0, %v1466_v46  ;;  %v1362_v51 = vadd.f32 %v1290_v47, %v368_v44  ;;  %v1962_v52 = vadd.f32 %v1961_v50, %v1960_v45  ;;  %v1851_v53 = vpop.f32.mrf.mxu0  ;;  %v374_v47 = vld [vmem:[#allocation2 + $0xc0] sm:$0xff] }
 0x144   : > { %v1428_v54 = vld [vmem:[#allocation2 + $0x80] sm:$0xff]  ;;  %v1963_v56 = vpop.f32.mrf.mxu1 }
 0x145   : > { %v1467_v57 = vadd.f32 %v2417_v62, %v1428_v54  ;;  %1395 = vst.msk [vmem:[#allocation2 + $0x90] sm:$0xff] %vm317_vm0, %v1362_v51  ;;  %v1293_v58 = vadd.f32 %v1962_v52, %v1850_v49  ;;  %v1852_v59 = vpop.f32.mrf.mxu0 }
 0x146   : > { %v1853_v60 = vadd.f32 %v1852_v59, %v1851_v53  ;;  %v1964_v61 = vpop.f32.mrf.mxu1 }
 0x147   : > { %1499 = vst.msk [vmem:[%s2422_s10 + $0x80] sm:$0xff] %vm317_vm0, %v1467_v57  ;;  %v1363_v63 = vadd.f32 %v1293_v58, %v369_v55  ;;  %v1965_v0 = vadd.f32 %v1964_v61, %v1963_v56  ;;  %v1854_v1 = vpop.f32.mrf.mxu0  ;;  %v375_v58 = vld [vmem:[#allocation2 + $0xc8] sm:$0xff] }
 0x148   : > { %v1429_v2 = vld [vmem:[#allocation2 + $0x88] sm:$0xff]  ;;  %v1966_v4 = vpop.f32.mrf.mxu1 }
 0x149   : > { %v1468_v5 = vadd.f32 %v2417_v62, %v1429_v2  ;;  %1396 = vst.msk [vmem:[#allocation2 + $0x98] sm:$0xff] %vm317_vm0, %v1363_v63  ;;  %v1298_v6 = vadd.f32 %v1965_v0, %v1853_v60  ;;  %v1855_v7 = vpop.f32.mrf.mxu0 }
 0x14a   : > { %v1856_v8 = vadd.f32 %v1855_v7, %v1854_v1  ;;  %v1967_v9 = vpop.f32.mrf.mxu1 }
 0x14b   : > { %1500 = vst.msk [vmem:[%s2422_s10 + $0x88] sm:$0xff] %vm317_vm0, %v1468_v5  ;;  %v1364_v10 = vadd.f32 %v1298_v6, %v370_v3  ;;  %v1968_v11 = vadd.f32 %v1967_v9, %v1966_v4  ;;  %v1857_v12 = vpop.f32.mrf.mxu0  ;;  %v376_v6 = vld [vmem:[#allocation2 + $0xd0] sm:$0xff] }
 0x14c   : > { %v1430_v13 = vld [vmem:[#allocation2 + $0x90] sm:$0xff]  ;;  %v1969_v15 = vpop.f32.mrf.mxu1 }
 0x14d   : > { %v1469_v16 = vadd.f32 %v2417_v62, %v1430_v13  ;;  %1397 = vst.msk [vmem:[#allocation2 + $0xa0] sm:$0xff] %vm317_vm0, %v1364_v10  ;;  %v1301_v17 = vadd.f32 %v1968_v11, %v1856_v8  ;;  %v1858_v18 = vpop.f32.mrf.mxu0 }
 0x14e   : > { %v1859_v19 = vadd.f32 %v1858_v18, %v1857_v12  ;;  %v1970_v20 = vpop.f32.mrf.mxu1 }
 0x14f   : > { %1501 = vst.msk [vmem:[%s2422_s10 + $0x90] sm:$0xff] %vm317_vm0, %v1469_v16  ;;  %v1365_v21 = vadd.f32 %v1301_v17, %v371_v14  ;;  %v1971_v22 = vadd.f32 %v1970_v20, %v1969_v15  ;;  %v1860_v23 = vpop.f32.mrf.mxu0  ;;  %v377_v17 = vld [vmem:[#allocation2 + $0xd8] sm:$0xff] }
 0x150   : > { %v1431_v24 = vld [vmem:[#allocation2 + $0x98] sm:$0xff]  ;;  %v1972_v26 = vpop.f32.mrf.mxu1 }
 0x151   : > { %v1470_v27 = vadd.f32 %v2417_v62, %v1431_v24  ;;  %1398 = vst.msk [vmem:[#allocation2 + $0xa8] sm:$0xff] %vm317_vm0, %v1365_v21  ;;  %v1306_v28 = vadd.f32 %v1971_v22, %v1859_v19  ;;  %v1861_v29 = vpop.f32.mrf.mxu0 }
 0x152   : > { %v1862_v30 = vadd.f32 %v1861_v29, %v1860_v23  ;;  %v1973_v31 = vpop.f32.mrf.mxu1 }
 0x153   : > { %1502 = vst.msk [vmem:[%s2422_s10 + $0x98] sm:$0xff] %vm317_vm0, %v1470_v27  ;;  %v1366_v32 = vadd.f32 %v1306_v28, %v372_v25  ;;  %v1974_v33 = vadd.f32 %v1973_v31, %v1972_v26  ;;  %v1863_v34 = vpop.f32.mrf.mxu0  ;;  %v378_v28 = vld [vmem:[#allocation2 + $0xe0] sm:$0xff] }
 0x154   : > { %v1432_v35 = vld [vmem:[#allocation2 + $0xa0] sm:$0xff]  ;;  %v1975_v37 = vpop.f32.mrf.mxu1 }
 0x155   : > { %v1471_v38 = vadd.f32 %v2417_v62, %v1432_v35  ;;  %1399 = vst.msk [vmem:[#allocation2 + $0xb0] sm:$0xff] %vm317_vm0, %v1366_v32  ;;  %v1309_v39 = vadd.f32 %v1974_v33, %v1862_v30  ;;  %v1864_v40 = vpop.f32.mrf.mxu0 }
 0x156   : > { %v1865_v41 = vadd.f32 %v1864_v40, %v1863_v34  ;;  %v1976_v42 = vpop.f32.mrf.mxu1 }
 0x157   : > { %1503 = vst.msk [vmem:[%s2422_s10 + $0xa0] sm:$0xff] %vm317_vm0, %v1471_v38  ;;  %v1367_v43 = vadd.f32 %v1309_v39, %v373_v36  ;;  %v1977_v44 = vadd.f32 %v1976_v42, %v1975_v37  ;;  %v1866_v45 = vpop.f32.mrf.mxu0  ;;  %v379_v39 = vld [vmem:[#allocation2 + $0xe8] sm:$0xff] }
 0x158   : > { %v1433_v46 = vld [vmem:[#allocation2 + $0xa8] sm:$0xff]  ;;  %v1978_v48 = vpop.f32.mrf.mxu1 }
 0x159   : > { %v1472_v49 = vadd.f32 %v2417_v62, %v1433_v46  ;;  %1400 = vst.msk [vmem:[#allocation2 + $0xb8] sm:$0xff] %vm317_vm0, %v1367_v43  ;;  %v1314_v50 = vadd.f32 %v1977_v44, %v1865_v41  ;;  %v1867_v51 = vpop.f32.mrf.mxu0 }
 0x15a   : > { %v1868_v52 = vadd.f32 %v1867_v51, %v1866_v45  ;;  %v1979_v53 = vpop.f32.mrf.mxu1 }
 0x15b   : > { %1504 = vst.msk [vmem:[%s2422_s10 + $0xa8] sm:$0xff] %vm317_vm0, %v1472_v49  ;;  %v1368_v54 = vadd.f32 %v1314_v50, %v374_v47  ;;  %v1980_v55 = vadd.f32 %v1979_v53, %v1978_v48  ;;  %v1869_v56 = vpop.f32.mrf.mxu0  ;;  %v380_v50 = vld [vmem:[#allocation2 + $0xf0] sm:$0xff] }
 0x15c   : > { %v1434_v57 = vld [vmem:[#allocation2 + $0xb0] sm:$0xff]  ;;  %v1981_v59 = vpop.f32.mrf.mxu1 }
 0x15d   : > { %v1473_v60 = vadd.f32 %v2417_v62, %v1434_v57  ;;  %1401 = vst.msk [vmem:[#allocation2 + $0xc0] sm:$0xff] %vm317_vm0, %v1368_v54  ;;  %v1317_v61 = vadd.f32 %v1980_v55, %v1868_v52  ;;  %v1870_v63 = vpop.f32.mrf.mxu0 }
 0x15e   : > { %v1871_v0 = vadd.f32 %v1870_v63, %v1869_v56  ;;  %v1982_v1 = vpop.f32.mrf.mxu1 }
 0x15f   : > { %1505 = vst.msk [vmem:[%s2422_s10 + $0xb0] sm:$0xff] %vm317_vm0, %v1473_v60  ;;  %v1369_v2 = vadd.f32 %v1317_v61, %v375_v58  ;;  %v1983_v3 = vadd.f32 %v1982_v1, %v1981_v59  ;;  %v1872_v4 = vpop.f32.mrf.mxu0  ;;  %v381_v60 = vld [vmem:[#allocation2 + $0xf8] sm:$0xff] }
 0x160   : > { %v1435_v5 = vld [vmem:[#allocation2 + $0xb8] sm:$0xff]  ;;  %v1984_v7 = vpop.f32.mrf.mxu1 }
 0x161   : > { %v1474_v8 = vadd.f32 %v2417_v62, %v1435_v5  ;;  %1402 = vst.msk [vmem:[#allocation2 + $0xc8] sm:$0xff] %vm317_vm0, %v1369_v2  ;;  %v1322_v9 = vadd.f32 %v1983_v3, %v1871_v0  ;;  %v1873_v10 = vpop.f32.mrf.mxu0 }
 0x162   : > { %v1874_v11 = vadd.f32 %v1873_v10, %v1872_v4  ;;  %v1985_v12 = vpop.f32.mrf.mxu1 }
 0x163   : > { %1506 = vst.msk [vmem:[%s2422_s10 + $0xb8] sm:$0xff] %vm317_vm0, %v1474_v8  ;;  %v1370_v13 = vadd.f32 %v1322_v9, %v376_v6  ;;  %v1986_v14 = vadd.f32 %v1985_v12, %v1984_v7  ;;  %v1875_v15 = vpop.f32.mrf.mxu0 }
 0x164   : > { %v1436_v16 = vld [vmem:[#allocation2 + $0xc0] sm:$0xff]  ;;  %v1987_v18 = vpop.f32.mrf.mxu1 }
 0x165   : > { %v1475_v19 = vadd.f32 %v2417_v62, %v1436_v16  ;;  %1403 = vst.msk [vmem:[#allocation2 + $0xd0] sm:$0xff] %vm317_vm0, %v1370_v13  ;;  %v1325_v20 = vadd.f32 %v1986_v14, %v1874_v11  ;;  %v1876_v21 = vpop.f32.mrf.mxu0 }
 0x166   : > { %v1877_v22 = vadd.f32 %v1876_v21, %v1875_v15  ;;  %v1988_v23 = vpop.f32.mrf.mxu1 }
 0x167   : > { %1507 = vst.msk [vmem:[%s2422_s10 + $0xc0] sm:$0xff] %vm317_vm0, %v1475_v19  ;;  %v1371_v24 = vadd.f32 %v1325_v20, %v377_v17  ;;  %v1989_v25 = vadd.f32 %v1988_v23, %v1987_v18  ;;  %v1878_v26 = vpop.f32.mrf.mxu0 }
 0x168   : > { %v1437_v27 = vld [vmem:[#allocation2 + $0xc8] sm:$0xff]  ;;  %v1990_v29 = vpop.f32.mrf.mxu1 }
 0x169   : > { %v1476_v30 = vadd.f32 %v2417_v62, %v1437_v27  ;;  %1404 = vst.msk [vmem:[#allocation2 + $0xd8] sm:$0xff] %vm317_vm0, %v1371_v24  ;;  %v1330_v31 = vadd.f32 %v1989_v25, %v1877_v22  ;;  %v1879_v32 = vpop.f32.mrf.mxu0 }
 0x16a   : > { %v1880_v33 = vadd.f32 %v1879_v32, %v1878_v26  ;;  %v1991_v34 = vpop.f32.mrf.mxu1 }
 0x16b   : > { %1508 = vst.msk [vmem:[%s2422_s10 + $0xc8] sm:$0xff] %vm317_vm0, %v1476_v30  ;;  %v1372_v35 = vadd.f32 %v1330_v31, %v378_v28  ;;  %v1992_v36 = vadd.f32 %v1991_v34, %v1990_v29  ;;  %v1881_v37 = vpop.f32.mrf.mxu0 }
 0x16c   : > { %v1438_v38 = vld [vmem:[#allocation2 + $0xd0] sm:$0xff]  ;;  %v1993_v40 = vpop.f32.mrf.mxu1 }
 0x16d   : > { %v1477_v41 = vadd.f32 %v2417_v62, %v1438_v38  ;;  %1405 = vst.msk [vmem:[#allocation2 + $0xe0] sm:$0xff] %vm317_vm0, %v1372_v35  ;;  %v1333_v42 = vadd.f32 %v1992_v36, %v1880_v33  ;;  %v1882_v43 = vpop.f32.mrf.mxu0 }
 0x16e   : > { %v1883_v44 = vadd.f32 %v1882_v43, %v1881_v37  ;;  %v1994_v45 = vpop.f32.mrf.mxu1 }
 0x16f   : > { %1509 = vst.msk [vmem:[%s2422_s10 + $0xd0] sm:$0xff] %vm317_vm0, %v1477_v41  ;;  %v1373_v46 = vadd.f32 %v1333_v42, %v379_v39  ;;  %v1995_v47 = vadd.f32 %v1994_v45, %v1993_v40  ;;  %v1884_v48 = vpop.f32.mrf.mxu0 }
 0x170   : > { %v1439_v49 = vld [vmem:[#allocation2 + $0xd8] sm:$0xff]  ;;  %v1996_v51 = vpop.f32.mrf.mxu1 }
 0x171   : > { %v1478_v52 = vadd.f32 %v2417_v62, %v1439_v49  ;;  %1406 = vst.msk [vmem:[#allocation2 + $0xe8] sm:$0xff] %vm317_vm0, %v1373_v46  ;;  %v1338_v53 = vadd.f32 %v1995_v47, %v1883_v44  ;;  %v1885_v54 = vpop.f32.mrf.mxu0 }
 0x172   : > { %v1886_v55 = vadd.f32 %v1885_v54, %v1884_v48  ;;  %v1997_v56 = vpop.f32.mrf.mxu1 }
 0x173   : > { %1510 = vst.msk [vmem:[%s2422_s10 + $0xd8] sm:$0xff] %vm317_vm0, %v1478_v52  ;;  %v1374_v57 = vadd.f32 %v1338_v53, %v380_v50  ;;  %v1998_v58 = vadd.f32 %v1997_v56, %v1996_v51 }
 0x174   : > { %v1440_v59 = vld [vmem:[#allocation2 + $0xe0] sm:$0xff] }
 0x175   : > { %v1479_v61 = vadd.f32 %v2417_v62, %v1440_v59  ;;  %1407 = vst.msk [vmem:[#allocation2 + $0xf0] sm:$0xff] %vm317_vm0, %v1374_v57  ;;  %v1341_v63 = vadd.f32 %v1998_v58, %v1886_v55 }
 0x177   : > { %1511 = vst.msk [vmem:[%s2422_s10 + $0xe0] sm:$0xff] %vm317_vm0, %v1479_v61  ;;  %v1375_v0 = vadd.f32 %v1341_v63, %v381_v60 }
 0x178   : > { %v1441_v1 = vld [vmem:[#allocation2 + $0xe8] sm:$0xff] }
 0x179   : > { %v1480_v2 = vadd.f32 %v2417_v62, %v1441_v1  ;;  %1408 = vst.msk [vmem:[#allocation2 + $0xf8] sm:$0xff] %vm317_vm0, %v1375_v0 }
 0x17b   : > { %1512 = vst.msk [vmem:[%s2422_s10 + $0xe8] sm:$0xff] %vm317_vm0, %v1480_v2 }
 0x17c   : > { %v1442_v3 = vld [vmem:[#allocation2 + $0xf0] sm:$0xff] }
 0x17d   : > { %v1481_v4 = vadd.f32 %v2417_v62, %v1442_v3 }
 0x17f   : > { %1513 = vst.msk [vmem:[%s2422_s10 + $0xf0] sm:$0xff] %vm317_vm0, %v1481_v4 }
 0x180   : > { %v1443_v5 = vld [vmem:[#allocation2 + $0xf8] sm:$0xff] }
 0x181   : > { %v1482_v6 = vadd.f32 %v2417_v62, %v1443_v5 }
 0x183   : > { %1514 = vst.msk [vmem:[%s2422_s10 + $0xf8] sm:$0xff] %vm317_vm0, %v1482_v6 }
 0x184 PF: > { %s13_s16 = sadd.s32 1, %s2206_s16   ;;  %s2569_s12 = smov %s2198_s14 }
 0x185   : > { %p10_p7 = scmp.ge.s32.totalorder %s13_s16, 10   ;;  %s2570_s13 = smov %s2202_s15 }
 0x186   : > { %s2571_s14 = smov %s2574_s17  ;;  %s2572_s15 = smov %s2578_s18 }
 0x187   :  { %12 = sbr.rel (!%p10_p7) target bundleno = 3 (0x3), region = 76 }

// kernel: generator_forward.23
= control target key start
LH: loop header
LB: loop body
LE: loop exit
PB: predicated region body
PF: predicated region fallthrough
CT: control target
= control target key end

     0   :  { %s998_s9 = smov 0   ;;  %s2058_s0 = inlined_call_operand.vmem [shape: f32[2048,64], index: 0, kind: input, shape index: {}]   ;;  %s2059_s1 = inlined_call_operand.vmem [shape: f32[1,64], index: 1, kind: output, shape index: {0}]   ;;  %s2060_s2 = inlined_call_operand.vmem [shape: f32[1,64], index: 2, kind: output, shape index: {1}]  }
   0x1 LB: > { %s956_s10 = sadd.s32 4294967295, %s980_s9   ;;  %p959_p0 = scmp.ge.s32.totalorder %s980_s9, 1  ;;  %s980_s9 = sphi %s998_s9, %s13_s9  }
   0x2   : > { %p106_p1 = scmp.lt.s32.totalorder %s980_s9, 3 }
   0x4   : > { %p107_p2 = pnand %p959_p0, %p106_p1 }
   0x5   : > { %s960_s11 = sshll.u32 (!%p107_p2), %s956_s10, 7  ;;  %p962_p4 = scmp.ne.s32.totalorder (!%p107_p2), %s956_s10, 0 }
   0x6   : > { %110 = sbr.rel (%p107_p2) target bundleno = 329 (0x149), region = 24  ;;  %p124_p3 = scmp.lt.s32.totalorder (!%p107_p2), %s960_s11, 255 }
   0xb   : > { %s2062_s11 = smov (!%p124_p3, %s960_s11), 255  ;;  %132 = sbr.rel (%p962_p4) target bundleno = 18 (0x12), region = 28 }
   0xc   : > { %s961_s12 = sshll.u32 %s2062_s11, 3 }
   0xd   : > { %s1009_s15 = scalar_lea.vmem %s2058_s0, %s961_s12 }
  0x10   : > { %vm133_vm0 = vcmask 516096   ;;  %v982_v0 = vmov 0.0  }
  0x11   : > { %134 = vst.msk [vmem:[%s2059_s1] sm:$0x1] %vm133_vm0, %v982_v0  ;;  %135 = vst.msk [vmem:[%s2060_s2] sm:$0x1] %vm133_vm0, %v982_v0 }
  0x12 PF: > { %v1018_v1 = vld [vmem:[%s1009_s15] sm:$0xff]  ;;  %v1021_v2 = vld [vmem:[%s1009_s15 + $0x8] sm:$0xff]  ;;  %v1024_v3 = vld [vmem:[%s1009_s15 + $0x10] sm:$0xff]  ;;  %vm265_vm1 = vcmask 523264   ;;  %vm528_vm2 = vcmask 516096  }
  0x13   : > { %v266_v4 = vsel %vm265_vm1, %v1018_v1, 0.0  ;;  %v267_v5 = vsel %vm265_vm1, %v1021_v2, 0.0  ;;  %v269_v6 = vsel %vm265_vm1, %v1024_v3, 0.0  ;;  %v1033_v7 = vld [vmem:[%s1009_s15 + $0x18] sm:$0xff]  ;;  %v1038_v10 = vld [vmem:[%s1009_s15 + $0x20] sm:$0xff]  ;;  %v1043_v13 = vld [vmem:[%s1009_s15 + $0x28] sm:$0xff] }
  0x14   : > { %v268_v8 = vadd.f32 %v267_v5, %v266_v4  ;;  %v271_v9 = vsel %vm265_vm1, %v1033_v7, 0.0  ;;  %v273_v12 = vsel %vm265_vm1, %v1038_v10, 0.0  ;;  %v275_v15 = vsel %vm265_vm1, %v1043_v13, 0.0  ;;  %v1048_v16 = vld [vmem:[%s1009_s15 + $0x30] sm:$0xff]  ;;  %v1053_v19 = vld [vmem:[%s1009_s15 + $0x38] sm:$0xff]  ;;  %v1058_v22 = vld [vmem:[%s1009_s15 + $0x40] sm:$0xff] }
  0x15   : > { %v277_v18 = vsel %vm265_vm1, %v1048_v16, 0.0  ;;  %v279_v21 = vsel %vm265_vm1, %v1053_v19, 0.0  ;;  %v281_v24 = vsel %vm265_vm1, %v1058_v22, 0.0  ;;  %v1063_v25 = vld [vmem:[%s1009_s15 + $0x48] sm:$0xff]  ;;  %v1068_v28 = vld [vmem:[%s1009_s15 + $0x50] sm:$0xff]  ;;  %v1073_v31 = vld [vmem:[%s1009_s15 + $0x58] sm:$0xff] }
  0x16   : > { %v270_v11 = vadd.f32 %v269_v6, %v268_v8  ;;  %v283_v27 = vsel %vm265_vm1, %v1063_v25, 0.0  ;;  %v285_v30 = vsel %vm265_vm1, %v1068_v28, 0.0  ;;  %v287_v33 = vsel %vm265_vm1, %v1073_v31, 0.0  ;;  %v1078_v34 = vld [vmem:[%s1009_s15 + $0x60] sm:$0xff]  ;;  %v1083_v37 = vld [vmem:[%s1009_s15 + $0x68] sm:$0xff]  ;;  %v1088_v40 = vld [vmem:[%s1009_s15 + $0x70] sm:$0xff] }
  0x17   : > { %v289_v36 = vsel %vm265_vm1, %v1078_v34, 0.0  ;;  %v291_v39 = vsel %vm265_vm1, %v1083_v37, 0.0  ;;  %v293_v42 = vsel %vm265_vm1, %v1088_v40, 0.0  ;;  %v1093_v43 = vld [vmem:[%s1009_s15 + $0x78] sm:$0xff]  ;;  %v1098_v46 = vld [vmem:[%s1009_s15 + $0x80] sm:$0xff]  ;;  %v1103_v49 = vld [vmem:[%s1009_s15 + $0x88] sm:$0xff] }
  0x18   : > { %v272_v14 = vadd.f32 %v271_v9, %v270_v11  ;;  %v295_v45 = vsel %vm265_vm1, %v1093_v43, 0.0  ;;  %v297_v48 = vsel %vm265_vm1, %v1098_v46, 0.0  ;;  %v299_v51 = vsel %vm265_vm1, %v1103_v49, 0.0  ;;  %v1108_v52 = vld [vmem:[%s1009_s15 + $0x90] sm:$0xff]  ;;  %v1113_v55 = vld [vmem:[%s1009_s15 + $0x98] sm:$0xff]  ;;  %v1118_v58 = vld [vmem:[%s1009_s15 + $0xa0] sm:$0xff] }
  0x19   : > { %v301_v54 = vsel %vm265_vm1, %v1108_v52, 0.0  ;;  %v303_v57 = vsel %vm265_vm1, %v1113_v55, 0.0  ;;  %v305_v60 = vsel %vm265_vm1, %v1118_v58, 0.0  ;;  %v1123_v61 = vld [vmem:[%s1009_s15 + $0xa8] sm:$0xff]  ;;  %v1128_v0 = vld [vmem:[%s1009_s15 + $0xb0] sm:$0xff]  ;;  %v1133_v6 = vld [vmem:[%s1009_s15 + $0xb8] sm:$0xff] }
  0x1a   : > { %v274_v17 = vadd.f32 %v273_v12, %v272_v14  ;;  %v307_v63 = vsel %vm265_vm1, %v1123_v61, 0.0  ;;  %v309_v5 = vsel %vm265_vm1, %v1128_v0, 0.0  ;;  %v311_v9 = vsel %vm265_vm1, %v1133_v6, 0.0  ;;  %v1138_v11 = vld [vmem:[%s1009_s15 + $0xc0] sm:$0xff] }
  0x1b   : > { %v313_v14 = vsel %vm265_vm1, %v1138_v11, 0.0 }
  0x1c   : > { %v276_v20 = vadd.f32 %v275_v15, %v274_v17  ;;  %v1143_v15 = vld [vmem:[%s1009_s15 + $0xc8] sm:$0xff] }
  0x1e   : > { %v278_v23 = vadd.f32 %v277_v18, %v276_v20  ;;  %v315_v18 = vsel %vm265_vm1, %v1143_v15, 0.0  ;;  %v1148_v20 = vld [vmem:[%s1009_s15 + $0xd0] sm:$0xff] }
  0x20   : > { %v280_v26 = vadd.f32 %v279_v21, %v278_v23  ;;  %v317_v23 = vsel %vm265_vm1, %v1148_v20, 0.0 }
  0x22   : > { %v282_v29 = vadd.f32 %v281_v24, %v280_v26  ;;  %v531_v24 = vmul.f32 %v1018_v1, %v1018_v1  ;;  %v532_v26 = vmul.f32 %v1021_v2, %v1021_v2  ;;  %v535_v1 = vmul.f32 %v1038_v10, %v1038_v10 }
  0x23   : > { %v536_v10 = vmul.f32 %v1043_v13, %v1043_v13 }
  0x24   : > { %v284_v32 = vadd.f32 %v283_v27, %v282_v29  ;;  %v533_v27 = vmul.f32 %v1024_v3, %v1024_v3  ;;  %v1159_v29 = vld [vmem:[%s1009_s15 + $0xd8] sm:$0xff]  ;;  %v659_v3 = vsel %vm265_vm1, %v531_v24, 0.0 }
  0x26   : > { %v286_v35 = vadd.f32 %v285_v30, %v284_v32  ;;  %v319_v32 = vsel %vm265_vm1, %v1159_v29, 0.0 }
  0x28   : > { %v288_v38 = vadd.f32 %v287_v33, %v286_v35  ;;  %v534_v33 = vmul.f32 %v1033_v7, %v1033_v7  ;;  %v1166_v35 = vld [vmem:[%s1009_s15 + $0xe0] sm:$0xff] }
  0x29   : > { %v321_v2 = vsel %vm265_vm1, %v1166_v35, 0.0 }
  0x2a   : > { %v290_v41 = vadd.f32 %v289_v36, %v288_v38  ;;  %v660_v38 = vsel %vm265_vm1, %v532_v26, 0.0 }
  0x2b   : > { %v661_v7 = vadd.f32 %v660_v38, %v659_v3  ;;  %v1232_v3 = vld [vmem:[%s1009_s15 + $0x120] sm:$0xff] }
  0x2c   : > { %v292_v44 = vadd.f32 %v291_v39, %v290_v41  ;;  %v662_v39 = vsel %vm265_vm1, %v533_v27, 0.0  ;;  %v1176_v41 = vld [vmem:[%s1009_s15 + $0xe8] sm:$0xff]  ;;  %v541_v27 = vmul.f32 %v1068_v28, %v1068_v28  ;;  %v337_v28 = vsel %vm265_vm1, %v1232_v3, 0.0 }
  0x2e   : > { %v294_v47 = vadd.f32 %v293_v42, %v292_v44  ;;  %v323_v44 = vsel %vm265_vm1, %v1176_v41, 0.0 }
  0x30   : > { %v296_v50 = vadd.f32 %v295_v45, %v294_v47  ;;  %v664_v45 = vsel %vm265_vm1, %v534_v33, 0.0  ;;  %v1184_v47 = vld [vmem:[%s1009_s15 + $0xf0] sm:$0xff] }
  0x32   : > { %v298_v53 = vadd.f32 %v297_v48, %v296_v50  ;;  %v663_v50 = vadd.f32 %v662_v39, %v661_v7  ;;  %v678_v7 = vsel %vm265_vm1, %v541_v27, 0.0 }
  0x34   : > { %v300_v56 = vadd.f32 %v299_v51, %v298_v53  ;;  %v325_v51 = vsel %vm265_vm1, %v1184_v47, 0.0  ;;  %v537_v53 = vmul.f32 %v1048_v16, %v1048_v16 }
  0x36   : > { %v302_v59 = vadd.f32 %v301_v54, %v300_v56  ;;  %v666_v54 = vsel %vm265_vm1, %v535_v1, 0.0  ;;  %v1192_v56 = vld [vmem:[%s1009_s15 + $0xf8] sm:$0xff]  ;;  %v542_v1 = vmul.f32 %v1073_v31, %v1073_v31 }
  0x37   : > { %v327_v13 = vsel %vm265_vm1, %v1192_v56, 0.0 }
  0x38   : > { %v304_v62 = vadd.f32 %v303_v57, %v302_v59  ;;  %v665_v59 = vadd.f32 %v664_v45, %v663_v50  ;;  %v680_v50 = vsel %vm265_vm1, %v542_v1, 0.0 }
  0x3a   : > { %v306_v4 = vadd.f32 %v305_v60, %v304_v62  ;;  %v538_v60 = vmul.f32 %v1053_v19, %v1053_v19  ;;  %v668_v62 = vsel %vm265_vm1, %v536_v10, 0.0 }
  0x3c   : > { %v308_v8 = vadd.f32 %v307_v63, %v306_v4  ;;  %v1200_v63 = vld [vmem:[%s1009_s15 + $0x100] sm:$0xff] }
  0x3d   : > { %v329_v16 = vsel %vm265_vm1, %v1200_v63, 0.0 }
  0x3e   : > { %v310_v12 = vadd.f32 %v309_v5, %v308_v8  ;;  %v667_v5 = vadd.f32 %v666_v54, %v665_v59  ;;  %v539_v8 = vmul.f32 %v1058_v22, %v1058_v22 }
  0x40   : > { %v312_v17 = vadd.f32 %v311_v9, %v310_v12  ;;  %v670_v9 = vsel %vm265_vm1, %v537_v53, 0.0  ;;  %v1208_v12 = vld [vmem:[%s1009_s15 + $0x108] sm:$0xff] }
  0x41   : > { %v331_v19 = vsel %vm265_vm1, %v1208_v12, 0.0 }
  0x42   : > { %v314_v21 = vadd.f32 %v313_v14, %v312_v17  ;;  %v669_v17 = vadd.f32 %v668_v62, %v667_v5 }
  0x44   : > { %v316_v30 = vadd.f32 %v315_v18, %v314_v21  ;;  %v540_v18 = vmul.f32 %v1063_v25, %v1063_v25  ;;  %v672_v21 = vsel %vm265_vm1, %v538_v60, 0.0  ;;  %v671_v26 = vadd.f32 %v670_v9, %v669_v17 }
  0x46   : > { %v318_v36 = vadd.f32 %v317_v23, %v316_v30  ;;  %v1216_v23 = vld [vmem:[%s1009_s15 + $0x110] sm:$0xff]  ;;  %v674_v30 = vsel %vm265_vm1, %v539_v8, 0.0 }
  0x47   : > { %v333_v22 = vsel %vm265_vm1, %v1216_v23, 0.0 }
  0x48   : > { %v320_v42 = vadd.f32 %v319_v32, %v318_v36  ;;  %v1224_v32 = vld [vmem:[%s1009_s15 + $0x118] sm:$0xff]  ;;  %v673_v36 = vadd.f32 %v672_v21, %v671_v26 }
  0x49   : > { %v335_v25 = vsel %vm265_vm1, %v1224_v32, 0.0 }
  0x4a   : > { %v322_v48 = vadd.f32 %v321_v2, %v320_v42  ;;  %v676_v2 = vsel %vm265_vm1, %v540_v18, 0.0  ;;  %v675_v39 = vadd.f32 %v674_v30, %v673_v36  ;;  %v543_v42 = vmul.f32 %v1078_v34, %v1078_v34 }
  0x4c   : > { %v324_v57 = vadd.f32 %v323_v44, %v322_v48  ;;  %v1240_v44 = vld [vmem:[%s1009_s15 + $0x128] sm:$0xff]  ;;  %v677_v45 = vadd.f32 %v676_v2, %v675_v39  ;;  %v544_v48 = vmul.f32 %v1083_v37, %v1083_v37  ;;  %v682_v59 = vsel %vm265_vm1, %v543_v42, 0.0 }
  0x4d   : > { %v339_v31 = vsel %vm265_vm1, %v1240_v44, 0.0 }
  0x4e   : > { %v326_v4 = vadd.f32 %v325_v51, %v324_v57  ;;  %v1248_v51 = vld [vmem:[%s1009_s15 + $0x130] sm:$0xff]  ;;  %v679_v54 = vadd.f32 %v678_v7, %v677_v45  ;;  %v545_v57 = vmul.f32 %v1088_v40, %v1088_v40  ;;  %v684_v5 = vsel %vm265_vm1, %v544_v48, 0.0 }
  0x4f   : > { %v341_v34 = vsel %vm265_vm1, %v1248_v51, 0.0 }
  0x50   : > { %v328_v14 = vadd.f32 %v327_v13, %v326_v4  ;;  %v1256_v13 = vld [vmem:[%s1009_s15 + $0x138] sm:$0xff]  ;;  %v681_v62 = vadd.f32 %v680_v50, %v679_v54  ;;  %v546_v4 = vmul.f32 %v1093_v43, %v1093_v43  ;;  %v686_v17 = vsel %vm265_vm1, %v545_v57, 0.0 }
  0x51   : > { %v343_v37 = vsel %vm265_vm1, %v1256_v13, 0.0 }
  0x52   : > { %v330_v24 = vadd.f32 %v329_v16, %v328_v14  ;;  %v1264_v16 = vld [vmem:[%s1009_s15 + $0x140] sm:$0xff]  ;;  %v683_v9 = vadd.f32 %v682_v59, %v681_v62  ;;  %v547_v14 = vmul.f32 %v1098_v46, %v1098_v46  ;;  %v688_v26 = vsel %vm265_vm1, %v546_v4, 0.0 }
  0x53   : > { %v345_v40 = vsel %vm265_vm1, %v1264_v16, 0.0 }
  0x54   : > { %v332_v33 = vadd.f32 %v331_v19, %v330_v24  ;;  %v1272_v19 = vld [vmem:[%s1009_s15 + $0x148] sm:$0xff]  ;;  %v685_v21 = vadd.f32 %v684_v5, %v683_v9  ;;  %v548_v24 = vmul.f32 %v1103_v49, %v1103_v49  ;;  %v690_v36 = vsel %vm265_vm1, %v547_v14, 0.0 }
  0x55   : > { %v347_v43 = vsel %vm265_vm1, %v1272_v19, 0.0 }
  0x56   : > { %v334_v38 = vadd.f32 %v333_v22, %v332_v33  ;;  %v1280_v22 = vld [vmem:[%s1009_s15 + $0x150] sm:$0xff]  ;;  %v687_v30 = vadd.f32 %v686_v17, %v685_v21  ;;  %v549_v33 = vmul.f32 %v1108_v52, %v1108_v52  ;;  %v692_v39 = vsel %vm265_vm1, %v548_v24, 0.0 }
  0x57   : > { %v349_v46 = vsel %vm265_vm1, %v1280_v22, 0.0 }
  0x58   : > { %v336_v10 = vadd.f32 %v335_v25, %v334_v38  ;;  %v1288_v25 = vld [vmem:[%s1009_s15 + $0x158] sm:$0xff]  ;;  %v689_v2 = vadd.f32 %v688_v26, %v687_v30  ;;  %v550_v38 = vmul.f32 %v1113_v55, %v1113_v55  ;;  %v694_v45 = vsel %vm265_vm1, %v549_v33, 0.0 }
  0x59   : > { %v351_v49 = vsel %vm265_vm1, %v1288_v25, 0.0 }
  0x5a   : > { %v338_v53 = vadd.f32 %v337_v28, %v336_v10  ;;  %v1296_v28 = vld [vmem:[%s1009_s15 + $0x160] sm:$0xff]  ;;  %v691_v7 = vadd.f32 %v690_v36, %v689_v2  ;;  %v551_v10 = vmul.f32 %v1118_v58, %v1118_v58  ;;  %v696_v54 = vsel %vm265_vm1, %v550_v38, 0.0 }
  0x5b   : > { %v353_v52 = vsel %vm265_vm1, %v1296_v28, 0.0 }
  0x5c   : > { %v340_v60 = vadd.f32 %v339_v31, %v338_v53  ;;  %v1304_v31 = vld [vmem:[%s1009_s15 + $0x168] sm:$0xff]  ;;  %v693_v50 = vadd.f32 %v692_v39, %v691_v7  ;;  %v552_v53 = vmul.f32 %v1123_v61, %v1123_v61  ;;  %v698_v62 = vsel %vm265_vm1, %v551_v10, 0.0 }
  0x5d   : > { %v355_v55 = vsel %vm265_vm1, %v1304_v31, 0.0 }
  0x5e   : > { %v342_v8 = vadd.f32 %v341_v34, %v340_v60  ;;  %v1312_v34 = vld [vmem:[%s1009_s15 + $0x170] sm:$0xff]  ;;  %v695_v59 = vadd.f32 %v694_v45, %v693_v50  ;;  %v553_v60 = vmul.f32 %v1128_v0, %v1128_v0  ;;  %v700_v9 = vsel %vm265_vm1, %v552_v53, 0.0 }
  0x5f   : > { %v357_v58 = vsel %vm265_vm1, %v1312_v34, 0.0 }
  0x60   : > { %v344_v18 = vadd.f32 %v343_v37, %v342_v8  ;;  %v1320_v37 = vld [vmem:[%s1009_s15 + $0x178] sm:$0xff]  ;;  %v697_v5 = vadd.f32 %v696_v54, %v695_v59  ;;  %v554_v8 = vmul.f32 %v1133_v6, %v1133_v6  ;;  %v702_v21 = vsel %vm265_vm1, %v553_v60, 0.0 }
  0x61   : > { %v359_v61 = vsel %vm265_vm1, %v1320_v37, 0.0 }
  0x62   : > { %v346_v27 = vadd.f32 %v345_v40, %v344_v18  ;;  %v1328_v40 = vld [vmem:[%s1009_s15 + $0x180] sm:$0xff]  ;;  %v699_v17 = vadd.f32 %v698_v62, %v697_v5  ;;  %v555_v18 = vmul.f32 %v1138_v11, %v1138_v11  ;;  %v704_v30 = vsel %vm265_vm1, %v554_v8, 0.0 }
  0x63   : > { %v361_v0 = vsel %vm265_vm1, %v1328_v40, 0.0 }
  0x64   : > { %v348_v1 = vadd.f32 %v347_v43, %v346_v27  ;;  %v1336_v43 = vld [vmem:[%s1009_s15 + $0x188] sm:$0xff]  ;;  %v701_v26 = vadd.f32 %v700_v9, %v699_v17  ;;  %v556_v27 = vmul.f32 %v1143_v15, %v1143_v15  ;;  %v706_v2 = vsel %vm265_vm1, %v555_v18, 0.0 }
  0x65   : > { %v363_v6 = vsel %vm265_vm1, %v1336_v43, 0.0 }
  0x66   : > { %v350_v42 = vadd.f32 %v349_v46, %v348_v1  ;;  %v1344_v46 = vld [vmem:[%s1009_s15 + $0x190] sm:$0xff]  ;;  %v703_v36 = vadd.f32 %v702_v21, %v701_v26  ;;  %v557_v1 = vmul.f32 %v1148_v20, %v1148_v20  ;;  %v708_v7 = vsel %vm265_vm1, %v556_v27, 0.0 }
  0x67   : > { %v365_v11 = vsel %vm265_vm1, %v1344_v46, 0.0 }
  0x68   : > { %v352_v48 = vadd.f32 %v351_v49, %v350_v42  ;;  %v1352_v49 = vld [vmem:[%s1009_s15 + $0x198] sm:$0xff]  ;;  %v705_v39 = vadd.f32 %v704_v30, %v703_v36  ;;  %v558_v42 = vmul.f32 %v1159_v29, %v1159_v29  ;;  %v710_v50 = vsel %vm265_vm1, %v557_v1, 0.0 }
  0x69   : > { %v367_v15 = vsel %vm265_vm1, %v1352_v49, 0.0 }
  0x6a   : > { %v354_v57 = vadd.f32 %v353_v52, %v352_v48  ;;  %v1360_v52 = vld [vmem:[%s1009_s15 + $0x1a0] sm:$0xff]  ;;  %v707_v45 = vadd.f32 %v706_v2, %v705_v39  ;;  %v559_v48 = vmul.f32 %v1166_v35, %v1166_v35  ;;  %v712_v59 = vsel %vm265_vm1, %v558_v42, 0.0 }
  0x6b   : > { %v369_v20 = vsel %vm265_vm1, %v1360_v52, 0.0 }
  0x6c   : > { %v356_v4 = vadd.f32 %v355_v55, %v354_v57  ;;  %v1368_v55 = vld [vmem:[%s1009_s15 + $0x1a8] sm:$0xff]  ;;  %v709_v54 = vadd.f32 %v708_v7, %v707_v45  ;;  %v560_v57 = vmul.f32 %v1176_v41, %v1176_v41  ;;  %v714_v5 = vsel %vm265_vm1, %v559_v48, 0.0 }
  0x6d   : > { %v371_v29 = vsel %vm265_vm1, %v1368_v55, 0.0 }
  0x6e   : > { %v358_v14 = vadd.f32 %v357_v58, %v356_v4  ;;  %v1376_v58 = vld [vmem:[%s1009_s15 + $0x1b0] sm:$0xff]  ;;  %v711_v62 = vadd.f32 %v710_v50, %v709_v54  ;;  %v561_v4 = vmul.f32 %v1184_v47, %v1184_v47  ;;  %v716_v17 = vsel %vm265_vm1, %v560_v57, 0.0 }
  0x6f   : > { %v373_v35 = vsel %vm265_vm1, %v1376_v58, 0.0 }
  0x70   : > { %v360_v24 = vadd.f32 %v359_v61, %v358_v14  ;;  %v1384_v61 = vld [vmem:[%s1009_s15 + $0x1b8] sm:$0xff]  ;;  %v713_v9 = vadd.f32 %v712_v59, %v711_v62  ;;  %v562_v14 = vmul.f32 %v1192_v56, %v1192_v56  ;;  %v718_v26 = vsel %vm265_vm1, %v561_v4, 0.0 }
  0x71   : > { %v375_v41 = vsel %vm265_vm1, %v1384_v61, 0.0 }
  0x72   : > { %v362_v33 = vadd.f32 %v361_v0, %v360_v24  ;;  %v1392_v0 = vld [vmem:[%s1009_s15 + $0x1c0] sm:$0xff]  ;;  %v715_v21 = vadd.f32 %v714_v5, %v713_v9  ;;  %v563_v24 = vmul.f32 %v1200_v63, %v1200_v63  ;;  %v720_v36 = vsel %vm265_vm1, %v562_v14, 0.0 }
  0x73   : > { %v377_v47 = vsel %vm265_vm1, %v1392_v0, 0.0 }
  0x74   : > { %v364_v38 = vadd.f32 %v363_v6, %v362_v33  ;;  %v1400_v6 = vld [vmem:[%s1009_s15 + $0x1c8] sm:$0xff]  ;;  %v717_v30 = vadd.f32 %v716_v17, %v715_v21  ;;  %v564_v33 = vmul.f32 %v1208_v12, %v1208_v12  ;;  %v722_v39 = vsel %vm265_vm1, %v563_v24, 0.0 }
  0x75   : > { %v379_v56 = vsel %vm265_vm1, %v1400_v6, 0.0 }
  0x76   : > { %v366_v10 = vadd.f32 %v365_v11, %v364_v38  ;;  %v1408_v11 = vld [vmem:[%s1009_s15 + $0x1d0] sm:$0xff]  ;;  %v719_v2 = vadd.f32 %v718_v26, %v717_v30  ;;  %v565_v38 = vmul.f32 %v1216_v23, %v1216_v23  ;;  %v724_v45 = vsel %vm265_vm1, %v564_v33, 0.0 }
  0x77   : > { %v381_v63 = vsel %vm265_vm1, %v1408_v11, 0.0 }
  0x78   : > { %v368_v53 = vadd.f32 %v367_v15, %v366_v10  ;;  %v1416_v15 = vld [vmem:[%s1009_s15 + $0x1d8] sm:$0xff]  ;;  %v721_v7 = vadd.f32 %v720_v36, %v719_v2  ;;  %v566_v10 = vmul.f32 %v1224_v32, %v1224_v32  ;;  %v726_v54 = vsel %vm265_vm1, %v565_v38, 0.0 }
  0x79   : > { %v383_v12 = vsel %vm265_vm1, %v1416_v15, 0.0 }
  0x7a   : > { %v370_v60 = vadd.f32 %v369_v20, %v368_v53  ;;  %v1424_v20 = vld [vmem:[%s1009_s15 + $0x1e0] sm:$0xff]  ;;  %v723_v50 = vadd.f32 %v722_v39, %v721_v7  ;;  %v567_v53 = vmul.f32 %v1232_v3, %v1232_v3  ;;  %v728_v62 = vsel %vm265_vm1, %v566_v10, 0.0 }
  0x7b   : > { %v385_v23 = vsel %vm265_vm1, %v1424_v20, 0.0 }
  0x7c   : > { %v372_v8 = vadd.f32 %v371_v29, %v370_v60  ;;  %v1432_v29 = vld [vmem:[%s1009_s15 + $0x1e8] sm:$0xff]  ;;  %v725_v59 = vadd.f32 %v724_v45, %v723_v50  ;;  %v568_v60 = vmul.f32 %v1240_v44, %v1240_v44  ;;  %v730_v9 = vsel %vm265_vm1, %v567_v53, 0.0 }
  0x7d   : > { %v387_v32 = vsel %vm265_vm1, %v1432_v29, 0.0 }
  0x7e   : > { %v374_v18 = vadd.f32 %v373_v35, %v372_v8  ;;  %v1440_v35 = vld [vmem:[%s1009_s15 + $0x1f0] sm:$0xff]  ;;  %v727_v5 = vadd.f32 %v726_v54, %v725_v59  ;;  %v569_v8 = vmul.f32 %v1248_v51, %v1248_v51  ;;  %v732_v21 = vsel %vm265_vm1, %v568_v60, 0.0 }
  0x7f   : > { %v389_v3 = vsel %vm265_vm1, %v1440_v35, 0.0 }
  0x80   : > { %v376_v27 = vadd.f32 %v375_v41, %v374_v18  ;;  %v1448_v41 = vld [vmem:[%s1009_s15 + $0x1f8] sm:$0xff]  ;;  %v729_v17 = vadd.f32 %v728_v62, %v727_v5  ;;  %v570_v18 = vmul.f32 %v1256_v13, %v1256_v13  ;;  %v734_v30 = vsel %vm265_vm1, %v569_v8, 0.0 }
  0x81   : > { %v391_v44 = vsel %vm265_vm1, %v1448_v41, 0.0 }
  0x82   : > { %v378_v1 = vadd.f32 %v377_v47, %v376_v27  ;;  %v1456_v47 = vld [vmem:[%s1009_s15 + $0x200] sm:$0xff]  ;;  %v731_v26 = vadd.f32 %v730_v9, %v729_v17  ;;  %v571_v27 = vmul.f32 %v1264_v16, %v1264_v16  ;;  %v736_v2 = vsel %vm265_vm1, %v570_v18, 0.0 }
  0x83   : > { %v393_v51 = vsel %vm265_vm1, %v1456_v47, 0.0 }
  0x84   : > { %v380_v42 = vadd.f32 %v379_v56, %v378_v1  ;;  %v1464_v56 = vld [vmem:[%s1009_s15 + $0x208] sm:$0xff]  ;;  %v733_v36 = vadd.f32 %v732_v21, %v731_v26  ;;  %v572_v1 = vmul.f32 %v1272_v19, %v1272_v19  ;;  %v738_v7 = vsel %vm265_vm1, %v571_v27, 0.0 }
  0x85   : > { %v395_v13 = vsel %vm265_vm1, %v1464_v56, 0.0 }
  0x86   : > { %v382_v48 = vadd.f32 %v381_v63, %v380_v42  ;;  %v1472_v63 = vld [vmem:[%s1009_s15 + $0x210] sm:$0xff]  ;;  %v735_v39 = vadd.f32 %v734_v30, %v733_v36  ;;  %v573_v42 = vmul.f32 %v1280_v22, %v1280_v22  ;;  %v740_v50 = vsel %vm265_vm1, %v572_v1, 0.0 }
  0x87   : > { %v397_v16 = vsel %vm265_vm1, %v1472_v63, 0.0 }
  0x88   : > { %v384_v57 = vadd.f32 %v383_v12, %v382_v48  ;;  %v1480_v12 = vld [vmem:[%s1009_s15 + $0x218] sm:$0xff]  ;;  %v737_v45 = vadd.f32 %v736_v2, %v735_v39  ;;  %v574_v48 = vmul.f32 %v1288_v25, %v1288_v25  ;;  %v742_v59 = vsel %vm265_vm1, %v573_v42, 0.0 }
  0x89   : > { %v399_v19 = vsel %vm265_vm1, %v1480_v12, 0.0 }
  0x8a   : > { %v386_v4 = vadd.f32 %v385_v23, %v384_v57  ;;  %v1488_v23 = vld [vmem:[%s1009_s15 + $0x220] sm:$0xff]  ;;  %v739_v54 = vadd.f32 %v738_v7, %v737_v45  ;;  %v575_v57 = vmul.f32 %v1296_v28, %v1296_v28  ;;  %v744_v5 = vsel %vm265_vm1, %v574_v48, 0.0 }
  0x8b   : > { %v401_v22 = vsel %vm265_vm1, %v1488_v23, 0.0 }
  0x8c   : > { %v388_v14 = vadd.f32 %v387_v32, %v386_v4  ;;  %v1496_v32 = vld [vmem:[%s1009_s15 + $0x228] sm:$0xff]  ;;  %v741_v62 = vadd.f32 %v740_v50, %v739_v54  ;;  %v576_v4 = vmul.f32 %v1304_v31, %v1304_v31  ;;  %v746_v17 = vsel %vm265_vm1, %v575_v57, 0.0 }
  0x8d   : > { %v403_v25 = vsel %vm265_vm1, %v1496_v32, 0.0 }
  0x8e   : > { %v390_v24 = vadd.f32 %v389_v3, %v388_v14  ;;  %v1504_v3 = vld [vmem:[%s1009_s15 + $0x230] sm:$0xff]  ;;  %v743_v9 = vadd.f32 %v742_v59, %v741_v62  ;;  %v577_v14 = vmul.f32 %v1312_v34, %v1312_v34  ;;  %v748_v26 = vsel %vm265_vm1, %v576_v4, 0.0 }
  0x8f   : > { %v405_v28 = vsel %vm265_vm1, %v1504_v3, 0.0 }
  0x90   : > { %v392_v33 = vadd.f32 %v391_v44, %v390_v24  ;;  %v1512_v44 = vld [vmem:[%s1009_s15 + $0x238] sm:$0xff]  ;;  %v745_v21 = vadd.f32 %v744_v5, %v743_v9  ;;  %v578_v24 = vmul.f32 %v1320_v37, %v1320_v37  ;;  %v750_v36 = vsel %vm265_vm1, %v577_v14, 0.0 }
  0x91   : > { %v407_v31 = vsel %vm265_vm1, %v1512_v44, 0.0 }
  0x92   : > { %v394_v38 = vadd.f32 %v393_v51, %v392_v33  ;;  %v1520_v51 = vld [vmem:[%s1009_s15 + $0x240] sm:$0xff]  ;;  %v747_v30 = vadd.f32 %v746_v17, %v745_v21  ;;  %v579_v33 = vmul.f32 %v1328_v40, %v1328_v40  ;;  %v752_v39 = vsel %vm265_vm1, %v578_v24, 0.0 }
  0x93   : > { %v409_v34 = vsel %vm265_vm1, %v1520_v51, 0.0 }
  0x94   : > { %v396_v10 = vadd.f32 %v395_v13, %v394_v38  ;;  %v1528_v13 = vld [vmem:[%s1009_s15 + $0x248] sm:$0xff]  ;;  %v749_v2 = vadd.f32 %v748_v26, %v747_v30  ;;  %v580_v38 = vmul.f32 %v1336_v43, %v1336_v43  ;;  %v754_v45 = vsel %vm265_vm1, %v579_v33, 0.0 }
  0x95   : > { %v411_v37 = vsel %vm265_vm1, %v1528_v13, 0.0 }
  0x96   : > { %v398_v53 = vadd.f32 %v397_v16, %v396_v10  ;;  %v1536_v16 = vld [vmem:[%s1009_s15 + $0x250] sm:$0xff]  ;;  %v751_v7 = vadd.f32 %v750_v36, %v749_v2  ;;  %v581_v10 = vmul.f32 %v1344_v46, %v1344_v46  ;;  %v756_v54 = vsel %vm265_vm1, %v580_v38, 0.0 }
  0x97   : > { %v413_v40 = vsel %vm265_vm1, %v1536_v16, 0.0 }
  0x98   : > { %v400_v60 = vadd.f32 %v399_v19, %v398_v53  ;;  %v1544_v19 = vld [vmem:[%s1009_s15 + $0x258] sm:$0xff]  ;;  %v753_v50 = vadd.f32 %v752_v39, %v751_v7  ;;  %v582_v53 = vmul.f32 %v1352_v49, %v1352_v49  ;;  %v758_v62 = vsel %vm265_vm1, %v581_v10, 0.0 }
  0x99   : > { %v415_v43 = vsel %vm265_vm1, %v1544_v19, 0.0 }
  0x9a   : > { %v402_v8 = vadd.f32 %v401_v22, %v400_v60  ;;  %v1552_v22 = vld [vmem:[%s1009_s15 + $0x260] sm:$0xff]  ;;  %v755_v59 = vadd.f32 %v754_v45, %v753_v50  ;;  %v583_v60 = vmul.f32 %v1360_v52, %v1360_v52  ;;  %v760_v9 = vsel %vm265_vm1, %v582_v53, 0.0 }
  0x9b   : > { %v417_v46 = vsel %vm265_vm1, %v1552_v22, 0.0 }
  0x9c   : > { %v404_v18 = vadd.f32 %v403_v25, %v402_v8  ;;  %v1560_v25 = vld [vmem:[%s1009_s15 + $0x268] sm:$0xff]  ;;  %v757_v5 = vadd.f32 %v756_v54, %v755_v59  ;;  %v584_v8 = vmul.f32 %v1368_v55, %v1368_v55  ;;  %v762_v21 = vsel %vm265_vm1, %v583_v60, 0.0 }
  0x9d   : > { %v419_v49 = vsel %vm265_vm1, %v1560_v25, 0.0 }
  0x9e   : > { %v406_v27 = vadd.f32 %v405_v28, %v404_v18  ;;  %v1568_v28 = vld [vmem:[%s1009_s15 + $0x270] sm:$0xff]  ;;  %v759_v17 = vadd.f32 %v758_v62, %v757_v5  ;;  %v585_v18 = vmul.f32 %v1376_v58, %v1376_v58  ;;  %v764_v30 = vsel %vm265_vm1, %v584_v8, 0.0 }
  0x9f   : > { %v421_v52 = vsel %vm265_vm1, %v1568_v28, 0.0 }
  0xa0   : > { %v408_v1 = vadd.f32 %v407_v31, %v406_v27  ;;  %v1576_v31 = vld [vmem:[%s1009_s15 + $0x278] sm:$0xff]  ;;  %v761_v26 = vadd.f32 %v760_v9, %v759_v17  ;;  %v586_v27 = vmul.f32 %v1384_v61, %v1384_v61  ;;  %v766_v2 = vsel %vm265_vm1, %v585_v18, 0.0 }
  0xa1   : > { %v423_v55 = vsel %vm265_vm1, %v1576_v31, 0.0 }
  0xa2   : > { %v410_v42 = vadd.f32 %v409_v34, %v408_v1  ;;  %v1584_v34 = vld [vmem:[%s1009_s15 + $0x280] sm:$0xff]  ;;  %v763_v36 = vadd.f32 %v762_v21, %v761_v26  ;;  %v587_v1 = vmul.f32 %v1392_v0, %v1392_v0  ;;  %v768_v7 = vsel %vm265_vm1, %v586_v27, 0.0 }
  0xa3   : > { %v425_v58 = vsel %vm265_vm1, %v1584_v34, 0.0 }
  0xa4   : > { %v412_v48 = vadd.f32 %v411_v37, %v410_v42  ;;  %v1592_v37 = vld [vmem:[%s1009_s15 + $0x288] sm:$0xff]  ;;  %v765_v39 = vadd.f32 %v764_v30, %v763_v36  ;;  %v588_v42 = vmul.f32 %v1400_v6, %v1400_v6  ;;  %v770_v50 = vsel %vm265_vm1, %v587_v1, 0.0 }
  0xa5   : > { %v427_v61 = vsel %vm265_vm1, %v1592_v37, 0.0 }
  0xa6   : > { %v414_v57 = vadd.f32 %v413_v40, %v412_v48  ;;  %v1600_v40 = vld [vmem:[%s1009_s15 + $0x290] sm:$0xff]  ;;  %v767_v45 = vadd.f32 %v766_v2, %v765_v39  ;;  %v589_v48 = vmul.f32 %v1408_v11, %v1408_v11  ;;  %v772_v59 = vsel %vm265_vm1, %v588_v42, 0.0 }
  0xa7   : > { %v429_v0 = vsel %vm265_vm1, %v1600_v40, 0.0 }
  0xa8   : > { %v416_v4 = vadd.f32 %v415_v43, %v414_v57  ;;  %v1608_v43 = vld [vmem:[%s1009_s15 + $0x298] sm:$0xff]  ;;  %v769_v54 = vadd.f32 %v768_v7, %v767_v45  ;;  %v590_v57 = vmul.f32 %v1416_v15, %v1416_v15  ;;  %v774_v5 = vsel %vm265_vm1, %v589_v48, 0.0 }
  0xa9   : > { %v431_v6 = vsel %vm265_vm1, %v1608_v43, 0.0 }
  0xaa   : > { %v418_v14 = vadd.f32 %v417_v46, %v416_v4  ;;  %v1616_v46 = vld [vmem:[%s1009_s15 + $0x2a0] sm:$0xff]  ;;  %v771_v62 = vadd.f32 %v770_v50, %v769_v54  ;;  %v591_v4 = vmul.f32 %v1424_v20, %v1424_v20  ;;  %v776_v17 = vsel %vm265_vm1, %v590_v57, 0.0 }
  0xab   : > { %v433_v11 = vsel %vm265_vm1, %v1616_v46, 0.0 }
  0xac   : > { %v420_v24 = vadd.f32 %v419_v49, %v418_v14  ;;  %v1624_v49 = vld [vmem:[%s1009_s15 + $0x2a8] sm:$0xff]  ;;  %v773_v9 = vadd.f32 %v772_v59, %v771_v62  ;;  %v592_v14 = vmul.f32 %v1432_v29, %v1432_v29  ;;  %v778_v26 = vsel %vm265_vm1, %v591_v4, 0.0 }
  0xad   : > { %v435_v15 = vsel %vm265_vm1, %v1624_v49, 0.0 }
  0xae   : > { %v422_v33 = vadd.f32 %v421_v52, %v420_v24  ;;  %v1632_v52 = vld [vmem:[%s1009_s15 + $0x2b0] sm:$0xff]  ;;  %v775_v21 = vadd.f32 %v774_v5, %v773_v9  ;;  %v593_v24 = vmul.f32 %v1440_v35, %v1440_v35  ;;  %v780_v36 = vsel %vm265_vm1, %v592_v14, 0.0 }
  0xaf   : > { %v437_v20 = vsel %vm265_vm1, %v1632_v52, 0.0 }
  0xb0   : > { %v424_v38 = vadd.f32 %v423_v55, %v422_v33  ;;  %v1640_v55 = vld [vmem:[%s1009_s15 + $0x2b8] sm:$0xff]  ;;  %v777_v30 = vadd.f32 %v776_v17, %v775_v21  ;;  %v594_v33 = vmul.f32 %v1448_v41, %v1448_v41  ;;  %v782_v39 = vsel %vm265_vm1, %v593_v24, 0.0 }
  0xb1   : > { %v439_v29 = vsel %vm265_vm1, %v1640_v55, 0.0 }
  0xb2   : > { %v426_v10 = vadd.f32 %v425_v58, %v424_v38  ;;  %v1648_v58 = vld [vmem:[%s1009_s15 + $0x2c0] sm:$0xff]  ;;  %v779_v2 = vadd.f32 %v778_v26, %v777_v30  ;;  %v595_v38 = vmul.f32 %v1456_v47, %v1456_v47  ;;  %v784_v45 = vsel %vm265_vm1, %v594_v33, 0.0 }
  0xb3   : > { %v441_v35 = vsel %vm265_vm1, %v1648_v58, 0.0 }
  0xb4   : > { %v428_v53 = vadd.f32 %v427_v61, %v426_v10  ;;  %v1656_v61 = vld [vmem:[%s1009_s15 + $0x2c8] sm:$0xff]  ;;  %v781_v7 = vadd.f32 %v780_v36, %v779_v2  ;;  %v596_v10 = vmul.f32 %v1464_v56, %v1464_v56  ;;  %v786_v54 = vsel %vm265_vm1, %v595_v38, 0.0 }
  0xb5   : > { %v443_v41 = vsel %vm265_vm1, %v1656_v61, 0.0 }
  0xb6   : > { %v430_v60 = vadd.f32 %v429_v0, %v428_v53  ;;  %v1664_v0 = vld [vmem:[%s1009_s15 + $0x2d0] sm:$0xff]  ;;  %v783_v50 = vadd.f32 %v782_v39, %v781_v7  ;;  %v597_v53 = vmul.f32 %v1472_v63, %v1472_v63  ;;  %v788_v62 = vsel %vm265_vm1, %v596_v10, 0.0 }
  0xb7   : > { %v445_v47 = vsel %vm265_vm1, %v1664_v0, 0.0 }
  0xb8   : > { %v432_v8 = vadd.f32 %v431_v6, %v430_v60  ;;  %v1672_v6 = vld [vmem:[%s1009_s15 + $0x2d8] sm:$0xff]  ;;  %v785_v59 = vadd.f32 %v784_v45, %v783_v50  ;;  %v598_v60 = vmul.f32 %v1480_v12, %v1480_v12  ;;  %v790_v9 = vsel %vm265_vm1, %v597_v53, 0.0 }
  0xb9   : > { %v447_v56 = vsel %vm265_vm1, %v1672_v6, 0.0 }
  0xba   : > { %v434_v18 = vadd.f32 %v433_v11, %v432_v8  ;;  %v1680_v11 = vld [vmem:[%s1009_s15 + $0x2e0] sm:$0xff]  ;;  %v787_v5 = vadd.f32 %v786_v54, %v785_v59  ;;  %v599_v8 = vmul.f32 %v1488_v23, %v1488_v23  ;;  %v792_v21 = vsel %vm265_vm1, %v598_v60, 0.0 }
  0xbb   : > { %v449_v63 = vsel %vm265_vm1, %v1680_v11, 0.0 }
  0xbc   : > { %v436_v27 = vadd.f32 %v435_v15, %v434_v18  ;;  %v1688_v15 = vld [vmem:[%s1009_s15 + $0x2e8] sm:$0xff]  ;;  %v789_v17 = vadd.f32 %v788_v62, %v787_v5  ;;  %v600_v18 = vmul.f32 %v1496_v32, %v1496_v32  ;;  %v794_v30 = vsel %vm265_vm1, %v599_v8, 0.0 }
  0xbd   : > { %v451_v12 = vsel %vm265_vm1, %v1688_v15, 0.0 }
  0xbe   : > { %v438_v1 = vadd.f32 %v437_v20, %v436_v27  ;;  %v1696_v20 = vld [vmem:[%s1009_s15 + $0x2f0] sm:$0xff]  ;;  %v791_v26 = vadd.f32 %v790_v9, %v789_v17  ;;  %v601_v27 = vmul.f32 %v1504_v3, %v1504_v3  ;;  %v796_v2 = vsel %vm265_vm1, %v600_v18, 0.0 }
  0xbf   : > { %v453_v23 = vsel %vm265_vm1, %v1696_v20, 0.0 }
  0xc0   : > { %v440_v42 = vadd.f32 %v439_v29, %v438_v1  ;;  %v1704_v29 = vld [vmem:[%s1009_s15 + $0x2f8] sm:$0xff]  ;;  %v793_v36 = vadd.f32 %v792_v21, %v791_v26  ;;  %v602_v1 = vmul.f32 %v1512_v44, %v1512_v44  ;;  %v798_v7 = vsel %vm265_vm1, %v601_v27, 0.0 }
  0xc1   : > { %v455_v32 = vsel %vm265_vm1, %v1704_v29, 0.0 }
  0xc2   : > { %v442_v48 = vadd.f32 %v441_v35, %v440_v42  ;;  %v1712_v35 = vld [vmem:[%s1009_s15 + $0x300] sm:$0xff]  ;;  %v795_v39 = vadd.f32 %v794_v30, %v793_v36  ;;  %v603_v42 = vmul.f32 %v1520_v51, %v1520_v51  ;;  %v800_v50 = vsel %vm265_vm1, %v602_v1, 0.0 }
  0xc3   : > { %v457_v3 = vsel %vm265_vm1, %v1712_v35, 0.0 }
  0xc4   : > { %v444_v57 = vadd.f32 %v443_v41, %v442_v48  ;;  %v1720_v41 = vld [vmem:[%s1009_s15 + $0x308] sm:$0xff]  ;;  %v797_v45 = vadd.f32 %v796_v2, %v795_v39  ;;  %v604_v48 = vmul.f32 %v1528_v13, %v1528_v13  ;;  %v802_v59 = vsel %vm265_vm1, %v603_v42, 0.0 }
  0xc5   : > { %v459_v44 = vsel %vm265_vm1, %v1720_v41, 0.0 }
  0xc6   : > { %v446_v4 = vadd.f32 %v445_v47, %v444_v57  ;;  %v1728_v47 = vld [vmem:[%s1009_s15 + $0x310] sm:$0xff]  ;;  %v799_v54 = vadd.f32 %v798_v7, %v797_v45  ;;  %v605_v57 = vmul.f32 %v1536_v16, %v1536_v16  ;;  %v804_v5 = vsel %vm265_vm1, %v604_v48, 0.0 }
  0xc7   : > { %v461_v51 = vsel %vm265_vm1, %v1728_v47, 0.0 }
  0xc8   : > { %v448_v14 = vadd.f32 %v447_v56, %v446_v4  ;;  %v1736_v56 = vld [vmem:[%s1009_s15 + $0x318] sm:$0xff]  ;;  %v801_v62 = vadd.f32 %v800_v50, %v799_v54  ;;  %v606_v4 = vmul.f32 %v1544_v19, %v1544_v19  ;;  %v806_v17 = vsel %vm265_vm1, %v605_v57, 0.0 }
  0xc9   : > { %v463_v13 = vsel %vm265_vm1, %v1736_v56, 0.0 }
  0xca   : > { %v450_v24 = vadd.f32 %v449_v63, %v448_v14  ;;  %v1744_v63 = vld [vmem:[%s1009_s15 + $0x320] sm:$0xff]  ;;  %v803_v9 = vadd.f32 %v802_v59, %v801_v62  ;;  %v607_v14 = vmul.f32 %v1552_v22, %v1552_v22  ;;  %v808_v26 = vsel %vm265_vm1, %v606_v4, 0.0 }
  0xcb   : > { %v465_v16 = vsel %vm265_vm1, %v1744_v63, 0.0 }
  0xcc   : > { %v452_v33 = vadd.f32 %v451_v12, %v450_v24  ;;  %v1752_v12 = vld [vmem:[%s1009_s15 + $0x328] sm:$0xff]  ;;  %v805_v21 = vadd.f32 %v804_v5, %v803_v9  ;;  %v608_v24 = vmul.f32 %v1560_v25, %v1560_v25  ;;  %v810_v36 = vsel %vm265_vm1, %v607_v14, 0.0 }
  0xcd   : > { %v467_v19 = vsel %vm265_vm1, %v1752_v12, 0.0 }
  0xce   : > { %v454_v38 = vadd.f32 %v453_v23, %v452_v33  ;;  %v1760_v23 = vld [vmem:[%s1009_s15 + $0x330] sm:$0xff]  ;;  %v807_v30 = vadd.f32 %v806_v17, %v805_v21  ;;  %v609_v33 = vmul.f32 %v1568_v28, %v1568_v28  ;;  %v812_v39 = vsel %vm265_vm1, %v608_v24, 0.0 }
  0xcf   : > { %v469_v22 = vsel %vm265_vm1, %v1760_v23, 0.0 }
  0xd0   : > { %v456_v10 = vadd.f32 %v455_v32, %v454_v38  ;;  %v1768_v32 = vld [vmem:[%s1009_s15 + $0x338] sm:$0xff]  ;;  %v809_v2 = vadd.f32 %v808_v26, %v807_v30  ;;  %v610_v38 = vmul.f32 %v1576_v31, %v1576_v31  ;;  %v814_v45 = vsel %vm265_vm1, %v609_v33, 0.0 }
  0xd1   : > { %v471_v25 = vsel %vm265_vm1, %v1768_v32, 0.0 }
  0xd2   : > { %v458_v53 = vadd.f32 %v457_v3, %v456_v10  ;;  %v1776_v3 = vld [vmem:[%s1009_s15 + $0x340] sm:$0xff]  ;;  %v811_v7 = vadd.f32 %v810_v36, %v809_v2  ;;  %v611_v10 = vmul.f32 %v1584_v34, %v1584_v34  ;;  %v816_v54 = vsel %vm265_vm1, %v610_v38, 0.0 }
  0xd3   : > { %v473_v28 = vsel %vm265_vm1, %v1776_v3, 0.0 }
  0xd4   : > { %v460_v60 = vadd.f32 %v459_v44, %v458_v53  ;;  %v1784_v44 = vld [vmem:[%s1009_s15 + $0x348] sm:$0xff]  ;;  %v813_v50 = vadd.f32 %v812_v39, %v811_v7  ;;  %v612_v53 = vmul.f32 %v1592_v37, %v1592_v37  ;;  %v818_v62 = vsel %vm265_vm1, %v611_v10, 0.0 }
  0xd5   : > { %v475_v31 = vsel %vm265_vm1, %v1784_v44, 0.0 }
  0xd6   : > { %v462_v8 = vadd.f32 %v461_v51, %v460_v60  ;;  %v1792_v51 = vld [vmem:[%s1009_s15 + $0x350] sm:$0xff]  ;;  %v815_v59 = vadd.f32 %v814_v45, %v813_v50  ;;  %v613_v60 = vmul.f32 %v1600_v40, %v1600_v40  ;;  %v820_v9 = vsel %vm265_vm1, %v612_v53, 0.0 }
  0xd7   : > { %v477_v34 = vsel %vm265_vm1, %v1792_v51, 0.0 }
  0xd8   : > { %v464_v18 = vadd.f32 %v463_v13, %v462_v8  ;;  %v1800_v13 = vld [vmem:[%s1009_s15 + $0x358] sm:$0xff]  ;;  %v817_v5 = vadd.f32 %v816_v54, %v815_v59  ;;  %v614_v8 = vmul.f32 %v1608_v43, %v1608_v43  ;;  %v822_v21 = vsel %vm265_vm1, %v613_v60, 0.0 }
  0xd9   : > { %v479_v37 = vsel %vm265_vm1, %v1800_v13, 0.0 }
  0xda   : > { %v466_v27 = vadd.f32 %v465_v16, %v464_v18  ;;  %v1808_v16 = vld [vmem:[%s1009_s15 + $0x360] sm:$0xff]  ;;  %v819_v17 = vadd.f32 %v818_v62, %v817_v5  ;;  %v615_v18 = vmul.f32 %v1616_v46, %v1616_v46  ;;  %v824_v30 = vsel %vm265_vm1, %v614_v8, 0.0 }
  0xdb   : > { %v481_v40 = vsel %vm265_vm1, %v1808_v16, 0.0 }
  0xdc   : > { %v468_v1 = vadd.f32 %v467_v19, %v466_v27  ;;  %v1816_v19 = vld [vmem:[%s1009_s15 + $0x368] sm:$0xff]  ;;  %v821_v26 = vadd.f32 %v820_v9, %v819_v17  ;;  %v616_v27 = vmul.f32 %v1624_v49, %v1624_v49  ;;  %v826_v2 = vsel %vm265_vm1, %v615_v18, 0.0 }
  0xdd   : > { %v483_v43 = vsel %vm265_vm1, %v1816_v19, 0.0 }
  0xde   : > { %v470_v42 = vadd.f32 %v469_v22, %v468_v1  ;;  %v1824_v22 = vld [vmem:[%s1009_s15 + $0x370] sm:$0xff]  ;;  %v823_v36 = vadd.f32 %v822_v21, %v821_v26  ;;  %v617_v1 = vmul.f32 %v1632_v52, %v1632_v52  ;;  %v828_v7 = vsel %vm265_vm1, %v616_v27, 0.0 }
  0xdf   : > { %v485_v46 = vsel %vm265_vm1, %v1824_v22, 0.0 }
  0xe0   : > { %v472_v48 = vadd.f32 %v471_v25, %v470_v42  ;;  %v1832_v25 = vld [vmem:[%s1009_s15 + $0x378] sm:$0xff]  ;;  %v825_v39 = vadd.f32 %v824_v30, %v823_v36  ;;  %v618_v42 = vmul.f32 %v1640_v55, %v1640_v55  ;;  %v830_v50 = vsel %vm265_vm1, %v617_v1, 0.0 }
  0xe1   : > { %v487_v49 = vsel %vm265_vm1, %v1832_v25, 0.0 }
  0xe2   : > { %v474_v57 = vadd.f32 %v473_v28, %v472_v48  ;;  %v1840_v28 = vld [vmem:[%s1009_s15 + $0x380] sm:$0xff]  ;;  %v827_v45 = vadd.f32 %v826_v2, %v825_v39  ;;  %v619_v48 = vmul.f32 %v1648_v58, %v1648_v58  ;;  %v832_v59 = vsel %vm265_vm1, %v618_v42, 0.0 }
  0xe3   : > { %v489_v52 = vsel %vm265_vm1, %v1840_v28, 0.0 }
  0xe4   : > { %v476_v4 = vadd.f32 %v475_v31, %v474_v57  ;;  %v1848_v31 = vld [vmem:[%s1009_s15 + $0x388] sm:$0xff]  ;;  %v829_v54 = vadd.f32 %v828_v7, %v827_v45  ;;  %v620_v57 = vmul.f32 %v1656_v61, %v1656_v61  ;;  %v834_v5 = vsel %vm265_vm1, %v619_v48, 0.0 }
  0xe5   : > { %v491_v55 = vsel %vm265_vm1, %v1848_v31, 0.0 }
  0xe6   : > { %v478_v14 = vadd.f32 %v477_v34, %v476_v4  ;;  %v1856_v34 = vld [vmem:[%s1009_s15 + $0x390] sm:$0xff]  ;;  %v831_v62 = vadd.f32 %v830_v50, %v829_v54  ;;  %v621_v4 = vmul.f32 %v1664_v0, %v1664_v0  ;;  %v836_v17 = vsel %vm265_vm1, %v620_v57, 0.0 }
  0xe7   : > { %v493_v58 = vsel %vm265_vm1, %v1856_v34, 0.0 }
  0xe8   : > { %v480_v24 = vadd.f32 %v479_v37, %v478_v14  ;;  %v1864_v37 = vld [vmem:[%s1009_s15 + $0x398] sm:$0xff]  ;;  %v833_v9 = vadd.f32 %v832_v59, %v831_v62  ;;  %v622_v14 = vmul.f32 %v1672_v6, %v1672_v6  ;;  %v838_v26 = vsel %vm265_vm1, %v621_v4, 0.0 }
  0xe9   : > { %v495_v61 = vsel %vm265_vm1, %v1864_v37, 0.0 }
  0xea   : > { %v482_v33 = vadd.f32 %v481_v40, %v480_v24  ;;  %v1872_v40 = vld [vmem:[%s1009_s15 + $0x3a0] sm:$0xff]  ;;  %v835_v21 = vadd.f32 %v834_v5, %v833_v9  ;;  %v623_v24 = vmul.f32 %v1680_v11, %v1680_v11  ;;  %v840_v36 = vsel %vm265_vm1, %v622_v14, 0.0 }
  0xeb   : > { %v497_v0 = vsel %vm265_vm1, %v1872_v40, 0.0 }
  0xec   : > { %v484_v38 = vadd.f32 %v483_v43, %v482_v33  ;;  %v1880_v43 = vld [vmem:[%s1009_s15 + $0x3a8] sm:$0xff]  ;;  %v837_v30 = vadd.f32 %v836_v17, %v835_v21  ;;  %v624_v33 = vmul.f32 %v1688_v15, %v1688_v15  ;;  %v842_v39 = vsel %vm265_vm1, %v623_v24, 0.0 }
  0xed   : > { %v499_v6 = vsel %vm265_vm1, %v1880_v43, 0.0 }
  0xee   : > { %v486_v10 = vadd.f32 %v485_v46, %v484_v38  ;;  %v1888_v46 = vld [vmem:[%s1009_s15 + $0x3b0] sm:$0xff]  ;;  %v839_v2 = vadd.f32 %v838_v26, %v837_v30  ;;  %v625_v38 = vmul.f32 %v1696_v20, %v1696_v20  ;;  %v844_v45 = vsel %vm265_vm1, %v624_v33, 0.0 }
  0xef   : > { %v501_v11 = vsel %vm265_vm1, %v1888_v46, 0.0 }
  0xf0   : > { %v488_v53 = vadd.f32 %v487_v49, %v486_v10  ;;  %v1896_v49 = vld [vmem:[%s1009_s15 + $0x3b8] sm:$0xff]  ;;  %v841_v7 = vadd.f32 %v840_v36, %v839_v2  ;;  %v626_v10 = vmul.f32 %v1704_v29, %v1704_v29  ;;  %v846_v54 = vsel %vm265_vm1, %v625_v38, 0.0 }
  0xf1   : > { %v503_v15 = vsel %vm265_vm1, %v1896_v49, 0.0 }
  0xf2   : > { %v490_v60 = vadd.f32 %v489_v52, %v488_v53  ;;  %v1904_v52 = vld [vmem:[%s1009_s15 + $0x3c0] sm:$0xff]  ;;  %v843_v50 = vadd.f32 %v842_v39, %v841_v7  ;;  %v627_v53 = vmul.f32 %v1712_v35, %v1712_v35  ;;  %v848_v62 = vsel %vm265_vm1, %v626_v10, 0.0 }
  0xf3   : > { %v505_v20 = vsel %vm265_vm1, %v1904_v52, 0.0 }
  0xf4   : > { %v492_v8 = vadd.f32 %v491_v55, %v490_v60  ;;  %v1912_v55 = vld [vmem:[%s1009_s15 + $0x3c8] sm:$0xff]  ;;  %v845_v59 = vadd.f32 %v844_v45, %v843_v50  ;;  %v628_v60 = vmul.f32 %v1720_v41, %v1720_v41  ;;  %v850_v9 = vsel %vm265_vm1, %v627_v53, 0.0 }
  0xf5   : > { %v507_v29 = vsel %vm265_vm1, %v1912_v55, 0.0 }
  0xf6   : > { %v494_v18 = vadd.f32 %v493_v58, %v492_v8  ;;  %v1920_v58 = vld [vmem:[%s1009_s15 + $0x3d0] sm:$0xff]  ;;  %v847_v5 = vadd.f32 %v846_v54, %v845_v59  ;;  %v629_v8 = vmul.f32 %v1728_v47, %v1728_v47  ;;  %v852_v21 = vsel %vm265_vm1, %v628_v60, 0.0 }
  0xf7   : > { %v509_v35 = vsel %vm265_vm1, %v1920_v58, 0.0  ;;  %v635_v54 = vmul.f32 %v1776_v3, %v1776_v3  ;;  %v638_v3 = vmul.f32 %v1800_v13, %v1800_v13  ;;  %v264_v13 = vld [vmem:[%s2059_s1] sm:$0x1] }
  0xf8   : > { %v496_v27 = vadd.f32 %v495_v61, %v494_v18  ;;  %v1928_v61 = vld [vmem:[%s1009_s15 + $0x3d8] sm:$0xff]  ;;  %v849_v17 = vadd.f32 %v848_v62, %v847_v5  ;;  %v630_v18 = vmul.f32 %v1736_v56, %v1736_v56  ;;  %v854_v30 = vsel %vm265_vm1, %v629_v8, 0.0 }
  0xf9   : > { %v511_v41 = vsel %vm265_vm1, %v1928_v61, 0.0  ;;  %v866_v5 = vsel %vm265_vm1, %v635_v54, 0.0  ;;  %v649_v54 = vmul.f32 %v1888_v46, %v1888_v46 }
  0xfa   : > { %v498_v1 = vadd.f32 %v497_v0, %v496_v27  ;;  %v1936_v0 = vld [vmem:[%s1009_s15 + $0x3e0] sm:$0xff]  ;;  %v851_v26 = vadd.f32 %v850_v9, %v849_v17  ;;  %v631_v27 = vmul.f32 %v1744_v63, %v1744_v63  ;;  %v856_v2 = vsel %vm265_vm1, %v630_v18, 0.0 }
  0xfb   : > { %v513_v47 = vsel %vm265_vm1, %v1936_v0, 0.0 }
  0xfc   : > { %v500_v42 = vadd.f32 %v499_v6, %v498_v1  ;;  %v1944_v6 = vld [vmem:[%s1009_s15 + $0x3e8] sm:$0xff]  ;;  %v853_v36 = vadd.f32 %v852_v21, %v851_v26  ;;  %v632_v1 = vmul.f32 %v1752_v12, %v1752_v12  ;;  %v858_v7 = vsel %vm265_vm1, %v631_v27, 0.0 }
  0xfd   : > { %v515_v56 = vsel %vm265_vm1, %v1944_v6, 0.0  ;;  %v641_v27 = vmul.f32 %v1824_v22, %v1824_v22 }
  0xfe   : > { %v502_v48 = vadd.f32 %v501_v11, %v500_v42  ;;  %v1952_v11 = vld [vmem:[%s1009_s15 + $0x3f0] sm:$0xff]  ;;  %v855_v39 = vadd.f32 %v854_v30, %v853_v36  ;;  %v633_v42 = vmul.f32 %v1760_v23, %v1760_v23  ;;  %v860_v50 = vsel %vm265_vm1, %v632_v1, 0.0 }
  0xff   : > { %v517_v63 = vsel %vm265_vm1, %v1952_v11, 0.0  ;;  %v642_v36 = vmul.f32 %v1832_v25, %v1832_v25 }
 0x100   : > { %v504_v57 = vadd.f32 %v503_v15, %v502_v48  ;;  %v1960_v15 = vld [vmem:[%s1009_s15 + $0x3f8] sm:$0xff]  ;;  %v857_v45 = vadd.f32 %v856_v2, %v855_v39  ;;  %v634_v48 = vmul.f32 %v1768_v32, %v1768_v32  ;;  %v862_v23 = vsel %vm265_vm1, %v633_v42, 0.0 }
 0x101   : > { %v519_v12 = vsel %vm265_vm1, %v1960_v15, 0.0  ;;  %v637_v32 = vmul.f32 %v1792_v51, %v1792_v51  ;;  %v640_v51 = vmul.f32 %v1816_v19, %v1816_v19  ;;  %v643_v2 = vmul.f32 %v1840_v28, %v1840_v28 }
 0x102   : > { %v506_v4 = vadd.f32 %v505_v20, %v504_v57  ;;  %v859_v53 = vadd.f32 %v858_v7, %v857_v45  ;;  %v864_v60 = vsel %vm265_vm1, %v634_v48, 0.0  ;;  %v644_v39 = vmul.f32 %v1848_v31, %v1848_v31 }
 0x103   : > { %v876_v19 = vsel %vm265_vm1, %v640_v51, 0.0  ;;  %v880_v25 = vsel %vm265_vm1, %v642_v36, 0.0  ;;  %v645_v42 = vmul.f32 %v1856_v34, %v1856_v34  ;;  %v882_v7 = vsel %vm265_vm1, %v643_v2, 0.0 }
 0x104   : > { %v508_v14 = vadd.f32 %v507_v29, %v506_v4  ;;  %v861_v59 = vadd.f32 %v860_v50, %v859_v53  ;;  %v636_v29 = vmul.f32 %v1784_v44, %v1784_v44  ;;  %v639_v44 = vmul.f32 %v1808_v16, %v1808_v16 }
 0x105   : > { %v884_v45 = vsel %vm265_vm1, %v644_v39, 0.0  ;;  %v647_v48 = vmul.f32 %v1872_v40, %v1872_v40  ;;  %v886_v31 = vsel %vm265_vm1, %v645_v42, 0.0 }
 0x106   : > { %v510_v24 = vadd.f32 %v509_v35, %v508_v14  ;;  %v863_v4 = vadd.f32 %v862_v23, %v861_v59  ;;  %v868_v9 = vsel %vm265_vm1, %v636_v29, 0.0  ;;  %v874_v16 = vsel %vm265_vm1, %v639_v44, 0.0 }
 0x107   : > { %v651_v29 = vmul.f32 %v1904_v52, %v1904_v52  ;;  %v657_v44 = vmul.f32 %v1952_v11, %v1952_v11 }
 0x108   : > { %v512_v33 = vadd.f32 %v511_v41, %v510_v24  ;;  %v865_v8 = vadd.f32 %v864_v60, %v863_v4  ;;  %v870_v41 = vsel %vm265_vm1, %v637_v32, 0.0  ;;  %v872_v24 = vsel %vm265_vm1, %v638_v3, 0.0 }
 0x109   : > { %v653_v32 = vmul.f32 %v1920_v58, %v1920_v58  ;;  %v655_v3 = vmul.f32 %v1936_v0, %v1936_v0  ;;  %v910_v51 = vsel %vm265_vm1, %v657_v44, 0.0 }
 0x10a   : > { %v514_v38 = vadd.f32 %v513_v47, %v512_v33  ;;  %v867_v17 = vadd.f32 %v866_v5, %v865_v8 }
 0x10c   : > { %v516_v10 = vadd.f32 %v515_v56, %v514_v38  ;;  %v869_v21 = vadd.f32 %v868_v9, %v867_v17  ;;  %v878_v38 = vsel %vm265_vm1, %v641_v27, 0.0 }
 0x10e   : > { %v518_v20 = vadd.f32 %v517_v63, %v516_v10  ;;  %v871_v47 = vadd.f32 %v870_v41, %v869_v21  ;;  %v646_v10 = vmul.f32 %v1864_v37, %v1864_v37  ;;  %v890_v37 = vsel %vm265_vm1, %v647_v48, 0.0 }
 0x110   : > { %v520_v57 = vadd.f32 %v519_v12, %v518_v20  ;;  %v873_v33 = vadd.f32 %v872_v24, %v871_v47  ;;  %v648_v20 = vmul.f32 %v1880_v43, %v1880_v43  ;;  %v888_v34 = vsel %vm265_vm1, %v646_v10, 0.0 }
 0x111   : > { %v894_v43 = vsel %vm265_vm1, %v649_v54, 0.0 }
 0x112   : > { %v521_v62 = vrot.slane %v520_v57, 4  ;;  %v875_v1 = vadd.f32 %v874_v16, %v873_v33  ;;  %v892_v40 = vsel %vm265_vm1, %v648_v20, 0.0  ;;  %v530_v33 = vld [vmem:[%s2060_s2] sm:$0x1] }
 0x114   : > { %v522_v35 = vadd.f32 %v521_v62, %v520_v57  ;;  %v877_v22 = vadd.f32 %v876_v19, %v875_v1  ;;  %v650_v57 = vmul.f32 %v1896_v49, %v1896_v49  ;;  %v652_v62 = vmul.f32 %v1912_v55, %v1912_v55 }
 0x115   : > { %v898_v49 = vsel %vm265_vm1, %v651_v29, 0.0  ;;  %v902_v55 = vsel %vm265_vm1, %v653_v32, 0.0 }
 0x116   : > { %v523_v14 = vrot.slane %v522_v35, 2  ;;  %v879_v63 = vadd.f32 %v878_v38, %v877_v22  ;;  %v896_v46 = vsel %vm265_vm1, %v650_v57, 0.0  ;;  %v900_v52 = vsel %vm265_vm1, %v652_v62, 0.0 }
 0x118   : > { %v524_v18 = vadd.f32 %v523_v14, %v522_v35  ;;  %v881_v28 = vadd.f32 %v880_v25, %v879_v63  ;;  %v654_v35 = vmul.f32 %v1928_v61, %v1928_v61  ;;  %v656_v14 = vmul.f32 %v1944_v6, %v1944_v6 }
 0x119   : > { %v906_v61 = vsel %vm265_vm1, %v655_v3, 0.0 }
 0x11a   : > { %v525_v26 = vrot.slane %v524_v18, 1  ;;  %v883_v12 = vadd.f32 %v882_v7, %v881_v28  ;;  %v904_v58 = vsel %vm265_vm1, %v654_v35, 0.0  ;;  %v908_v0 = vsel %vm265_vm1, %v656_v14, 0.0 }
 0x11c   : > { %v526_v30 = vadd.f32 %v525_v26, %v524_v18  ;;  %v885_v50 = vadd.f32 %v884_v45, %v883_v12  ;;  %v658_v18 = vmul.f32 %v1960_v15, %v1960_v15 }
 0x11e   : > { %v527_v56 = vadd.f32 %v526_v30, %v264_v13  ;;  %v887_v53 = vadd.f32 %v886_v31, %v885_v50  ;;  %v912_v6 = vsel %vm265_vm1, %v658_v18, 0.0 }
 0x120   : > { %529 = vst.msk [vmem:[%s2059_s1] sm:$0x1] %vm528_vm2, %v527_v56  ;;  %v889_v23 = vadd.f32 %v888_v34, %v887_v53 }
 0x122   : > { %v891_v59 = vadd.f32 %v890_v37, %v889_v23 }
 0x124   : > { %v893_v60 = vadd.f32 %v892_v40, %v891_v59 }
 0x126   : > { %v895_v4 = vadd.f32 %v894_v43, %v893_v60 }
 0x128   : > { %v897_v5 = vadd.f32 %v896_v46, %v895_v4 }
 0x12a   : > { %v899_v8 = vadd.f32 %v898_v49, %v897_v5 }
 0x12c   : > { %v901_v9 = vadd.f32 %v900_v52, %v899_v8 }
 0x12e   : > { %v903_v17 = vadd.f32 %v902_v55, %v901_v9 }
 0x130   : > { %v905_v41 = vadd.f32 %v904_v58, %v903_v17 }
 0x132   : > { %v907_v21 = vadd.f32 %v906_v61, %v905_v41 }
 0x134   : > { %v909_v24 = vadd.f32 %v908_v0, %v907_v21 }
 0x136   : > { %v911_v26 = vadd.f32 %v910_v51, %v909_v24 }
 0x138   : > { %v913_v47 = vadd.f32 %v912_v6, %v911_v26 }
 0x13a   : > { %v914_v13 = vrot.slane %v913_v47, 4 }
 0x13c   : > { %v915_v27 = vadd.f32 %v914_v13, %v913_v47 }
 0x13e   : > { %v916_v16 = vrot.slane %v915_v27, 2 }
 0x140   : > { %v917_v11 = vadd.f32 %v916_v16, %v915_v27 }
 0x142   : > { %v918_v30 = vrot.slane %v917_v11, 1 }
 0x144   : > { %v919_v15 = vadd.f32 %v918_v30, %v917_v11 }
 0x146   : > { %v920_v36 = vadd.f32 %v919_v15, %v530_v33 }
 0x148   : > { %921 = vst.msk [vmem:[%s2060_s2] sm:$0x1] %vm528_vm2, %v920_v36 }
 0x149 PF: > { %s13_s9 = sadd.s32 1, %s980_s9  }
 0x14a   : > { %p10_p5 = scmp.ge.s32.totalorder %s13_s9, 4  }
 0x14c   :  { %12 = sbr.rel (!%p10_p5) target bundleno = 1 (0x1), region = 62 }

// kernel: generator_forward.24
= control target key start
LH: loop header
LB: loop body
LE: loop exit
PB: predicated region body
PF: predicated region fallthrough
CT: control target
= control target key end

     0   :  { %s1704_s12 = smov 0   ;;  %s2389_s0 = inlined_call_operand.vmem [shape: f32[2048,64], index: 0, kind: input, shape index: {}]   ;;  %s2390_s1 = inlined_call_operand.vmem [shape: f32[1,64], index: 1, kind: input, shape index: {}]   ;;  %s2391_s2 = inlined_call_operand.vmem [shape: f32[1,64], index: 2, kind: input, shape index: {}]   ;;  %s2392_s3 = inlined_call_operand.vmem [shape: bf16[2048,64], index: 3, kind: output, shape index: {}]  }
   0x1 LB: > { %s1397_s13 = sadd.s32 4294967295, %s1682_s12   ;;  %p1401_p0 = scmp.ge.s32.totalorder %s1682_s12, 1  ;;  %s1682_s12 = sphi %s1704_s12, %s13_s12  }
   0x2   : > { %p138_p1 = scmp.lt.s32.totalorder %s1682_s12, 3 }
   0x4   : > { %p139_p2 = pnand %p1401_p0, %p138_p1 }
   0x5   : > { %s1402_s14 = sshll.u32 (!%p139_p2), %s1397_s13, 7 }
   0x6   : > { %142 = sbr.rel (%p139_p2) target bundleno = 162 (0xa2), region = 32  ;;  %p163_p3 = scmp.lt.s32.totalorder (!%p139_p2), %s1402_s14, 255 }
   0xb   : > { %s2394_s14 = smov (!%p163_p3, %s1402_s14), 255  ;;  %v1718_v0 = vld [vmem:[%s2390_s1] ss:$0 sm:$0xff]  ;;  %vm1212_vm0 = vcmask 519168  }
   0xc   : > { %s1403_s15 = sshll.u32 %s2394_s14, 3  ;;  %v1728_v1 = vld [vmem:[%s2391_s2] ss:$0 sm:$0xff]  ;;  %s1405_s23 = sshll.u32 %s2394_s14, 2 }
   0xd   : > { %s1723_s20 = scalar_lea.vmem %s2389_s0, %s1403_s15  ;;  %s1757_s26 = scalar_lea.vmem %s2392_s3, %s1405_s23 }
   0xe   : > { %v174_v2 = vld [vmem:[%s1723_s20] sm:$0xff]  ;;  %v175_v3 = vld [vmem:[%s1723_s20 + $0x8] sm:$0xff]  ;;  %v176_v4 = vld [vmem:[%s1723_s20 + $0x10] sm:$0xff] }
   0xf   : > { %v309_v5 = vmul.f32 %v1718_v0, %v174_v2  ;;  %v310_v6 = vmul.f32 %v1718_v0, %v175_v3  ;;  %v311_v7 = vmul.f32 %v1718_v0, %v176_v4  ;;  %v177_v8 = vld [vmem:[%s1723_s20 + $0x18] sm:$0xff]  ;;  %v178_v9 = vld [vmem:[%s1723_s20 + $0x20] sm:$0xff]  ;;  %v179_v10 = vld [vmem:[%s1723_s20 + $0x28] sm:$0xff] }
  0x10   : > { %v312_v11 = vmul.f32 %v1718_v0, %v177_v8  ;;  %v313_v12 = vmul.f32 %v1718_v0, %v178_v9  ;;  %v314_v13 = vmul.f32 %v1718_v0, %v179_v10  ;;  %v180_v14 = vld [vmem:[%s1723_s20 + $0x30] sm:$0xff]  ;;  %v181_v15 = vld [vmem:[%s1723_s20 + $0x38] sm:$0xff]  ;;  %v182_v32 = vld [vmem:[%s1723_s20 + $0x40] sm:$0xff] }
  0x11   : > { %v444_v16 = vadd.f32 %v1728_v1, %v309_v5  ;;  %v445_v17 = vadd.f32 %v1728_v1, %v310_v6  ;;  %v446_v18 = vadd.f32 %v1728_v1, %v311_v7  ;;  %v315_v19 = vmul.f32 %v1718_v0, %v180_v14  ;;  %v183_v33 = vld [vmem:[%s1723_s20 + $0x48] sm:$0xff]  ;;  %v184_v34 = vld [vmem:[%s1723_s20 + $0x50] sm:$0xff]  ;;  %v185_v39 = vld [vmem:[%s1723_s20 + $0x58] sm:$0xff] }
  0x12   : > { %v447_v20 = vadd.f32 %v1728_v1, %v312_v11  ;;  %v448_v21 = vadd.f32 %v1728_v1, %v313_v12  ;;  %v449_v22 = vadd.f32 %v1728_v1, %v314_v13  ;;  %v316_v23 = vmul.f32 %v1718_v0, %v181_v15  ;;  %v186_v40 = vld [vmem:[%s1723_s20 + $0x60] sm:$0xff]  ;;  %v187_v41 = vld [vmem:[%s1723_s20 + $0x68] sm:$0xff]  ;;  %v188_v46 = vld [vmem:[%s1723_s20 + $0x70] sm:$0xff] }
  0x13   : > { %v572_v24 = vmax.f32 %v444_v16, 0.0  ;;  %v573_v25 = vmax.f32 %v445_v17, 0.0  ;;  %v574_v26 = vmax.f32 %v446_v18, 0.0  ;;  %v450_v27 = vadd.f32 %v1728_v1, %v315_v19  ;;  %v189_v51 = vld [vmem:[%s1723_s20 + $0x78] sm:$0xff]  ;;  %v190_v10 = vld [vmem:[%s1723_s20 + $0x80] sm:$0xff]  ;;  %v191_v11 = vld [vmem:[%s1723_s20 + $0x88] sm:$0xff] }
  0x14   : > { %v575_v28 = vmax.f32 %v447_v20, 0.0  ;;  %v576_v29 = vmax.f32 %v448_v21, 0.0  ;;  %v577_v30 = vmax.f32 %v449_v22, 0.0  ;;  %v451_v31 = vadd.f32 %v1728_v1, %v316_v23  ;;  %v192_v12 = vld [vmem:[%s1723_s20 + $0x90] sm:$0xff]  ;;  %v193_v17 = vld [vmem:[%s1723_s20 + $0x98] sm:$0xff]  ;;  %v194_v18 = vld [vmem:[%s1723_s20 + $0xa0] sm:$0xff] }
  0x15   : > { %v1538_v35 = vpack.c.bf16 %v572_v24, %v572_v24  ;;  %v1539_v36 = vpack.c.bf16 %v573_v25, %v573_v25  ;;  %v1540_v37 = vpack.c.bf16 %v574_v26, %v574_v26  ;;  %v578_v38 = vmax.f32 %v450_v27, 0.0  ;;  %v195_v19 = vld [vmem:[%s1723_s20 + $0xa8] sm:$0xff]  ;;  %v196_v24 = vld [vmem:[%s1723_s20 + $0xb0] sm:$0xff] }
  0x16   : > { %v1541_v42 = vpack.c.bf16 %v575_v28, %v575_v28  ;;  %v1542_v43 = vpack.c.bf16 %v576_v29, %v576_v29  ;;  %v1543_v44 = vpack.c.bf16 %v577_v30, %v577_v30  ;;  %v579_v45 = vmax.f32 %v451_v31, 0.0  ;;  %v197_v29 = vld [vmem:[%s1723_s20 + $0xb8] sm:$0xff] }
  0x17   : > { %1213 = vst.msk [vmem:[%s1757_s26] sm:$0xf] %vm1212_vm0, %v1538_v35  ;;  %1214 = vst.msk [vmem:[%s1757_s26 + $0x4] sm:$0xf] %vm1212_vm0, %v1539_v36  ;;  %v1544_v47 = vpack.c.bf16 %v578_v38, %v578_v38  ;;  %v317_v48 = vmul.f32 %v1718_v0, %v182_v32  ;;  %v318_v49 = vmul.f32 %v1718_v0, %v183_v33 }
  0x18   : > { %1215 = vst.msk [vmem:[%s1757_s26 + $0x8] sm:$0xf] %vm1212_vm0, %v1540_v37  ;;  %v319_v50 = vmul.f32 %v1718_v0, %v184_v34  ;;  %1216 = vst.msk [vmem:[%s1757_s26 + $0xc] sm:$0xf] %vm1212_vm0, %v1541_v42  ;;  %v1545_v52 = vpack.c.bf16 %v579_v45, %v579_v45  ;;  %v320_v53 = vmul.f32 %v1718_v0, %v185_v39 }
  0x19   : > { %1217 = vst.msk [vmem:[%s1757_s26 + $0x10] sm:$0xf] %vm1212_vm0, %v1542_v43  ;;  %1218 = vst.msk [vmem:[%s1757_s26 + $0x14] sm:$0xf] %vm1212_vm0, %v1543_v44  ;;  %v321_v54 = vmul.f32 %v1718_v0, %v186_v40  ;;  %v322_v55 = vmul.f32 %v1718_v0, %v187_v41  ;;  %v452_v56 = vadd.f32 %v1728_v1, %v317_v48 }
  0x1a   : > { %1219 = vst.msk [vmem:[%s1757_s26 + $0x18] sm:$0xf] %vm1212_vm0, %v1544_v47  ;;  %v453_v57 = vadd.f32 %v1728_v1, %v318_v49  ;;  %v454_v58 = vadd.f32 %v1728_v1, %v319_v50  ;;  %v323_v59 = vmul.f32 %v1718_v0, %v188_v46  ;;  %1220 = vst.msk [vmem:[%s1757_s26 + $0x1c] sm:$0xf] %vm1212_vm0, %v1545_v52  ;;  %v198_v50 = vld [vmem:[%s1723_s20 + $0xc0] sm:$0xff]  ;;  %v200_v52 = vld [vmem:[%s1723_s20 + $0xd0] sm:$0xff] }
  0x1b   : > { %v455_v60 = vadd.f32 %v1728_v1, %v320_v53  ;;  %v456_v61 = vadd.f32 %v1728_v1, %v321_v54  ;;  %v457_v62 = vadd.f32 %v1728_v1, %v322_v55  ;;  %v324_v63 = vmul.f32 %v1718_v0, %v189_v51  ;;  %v199_v51 = vld [vmem:[%s1723_s20 + $0xc8] sm:$0xff] }
  0x1c   : > { %v580_v2 = vmax.f32 %v452_v56, 0.0  ;;  %v581_v3 = vmax.f32 %v453_v57, 0.0  ;;  %v582_v4 = vmax.f32 %v454_v58, 0.0  ;;  %v458_v5 = vadd.f32 %v1728_v1, %v323_v59  ;;  %v201_v57 = vld [vmem:[%s1723_s20 + $0xd8] sm:$0xff]  ;;  %v202_v58 = vld [vmem:[%s1723_s20 + $0xe0] sm:$0xff]  ;;  %v203_v59 = vld [vmem:[%s1723_s20 + $0xe8] sm:$0xff] }
  0x1d   : > { %v583_v6 = vmax.f32 %v455_v60, 0.0  ;;  %v584_v7 = vmax.f32 %v456_v61, 0.0  ;;  %v585_v8 = vmax.f32 %v457_v62, 0.0  ;;  %v459_v9 = vadd.f32 %v1728_v1, %v324_v63 }
  0x1e   : > { %v1546_v13 = vpack.c.bf16 %v580_v2, %v580_v2  ;;  %v1547_v14 = vpack.c.bf16 %v581_v3, %v581_v3  ;;  %v1548_v15 = vpack.c.bf16 %v582_v4, %v582_v4  ;;  %v586_v16 = vmax.f32 %v458_v5, 0.0  ;;  %v204_v2 = vld [vmem:[%s1723_s20 + $0xf0] sm:$0xff] }
  0x1f   : > { %v1549_v20 = vpack.c.bf16 %v583_v6, %v583_v6  ;;  %v1550_v21 = vpack.c.bf16 %v584_v7, %v584_v7  ;;  %v1551_v22 = vpack.c.bf16 %v585_v8, %v585_v8  ;;  %v587_v23 = vmax.f32 %v459_v9, 0.0  ;;  %v205_v7 = vld [vmem:[%s1723_s20 + $0xf8] sm:$0xff] }
  0x20   : > { %1221 = vst.msk [vmem:[%s1757_s26 + $0x20] sm:$0xf] %vm1212_vm0, %v1546_v13  ;;  %1222 = vst.msk [vmem:[%s1757_s26 + $0x24] sm:$0xf] %vm1212_vm0, %v1547_v14  ;;  %v1552_v25 = vpack.c.bf16 %v586_v16, %v586_v16  ;;  %v325_v26 = vmul.f32 %v1718_v0, %v190_v10  ;;  %v326_v27 = vmul.f32 %v1718_v0, %v191_v11 }
  0x21   : > { %1223 = vst.msk [vmem:[%s1757_s26 + $0x28] sm:$0xf] %vm1212_vm0, %v1548_v15  ;;  %v327_v28 = vmul.f32 %v1718_v0, %v192_v12  ;;  %1224 = vst.msk [vmem:[%s1757_s26 + $0x2c] sm:$0xf] %vm1212_vm0, %v1549_v20  ;;  %v1553_v30 = vpack.c.bf16 %v587_v23, %v587_v23  ;;  %v328_v31 = vmul.f32 %v1718_v0, %v193_v17 }
  0x22   : > { %1225 = vst.msk [vmem:[%s1757_s26 + $0x30] sm:$0xf] %vm1212_vm0, %v1550_v21  ;;  %1226 = vst.msk [vmem:[%s1757_s26 + $0x34] sm:$0xf] %vm1212_vm0, %v1551_v22  ;;  %v329_v32 = vmul.f32 %v1718_v0, %v194_v18  ;;  %v330_v33 = vmul.f32 %v1718_v0, %v195_v19  ;;  %v460_v34 = vadd.f32 %v1728_v1, %v325_v26 }
  0x23   : > { %1227 = vst.msk [vmem:[%s1757_s26 + $0x38] sm:$0xf] %vm1212_vm0, %v1552_v25  ;;  %v461_v35 = vadd.f32 %v1728_v1, %v326_v27  ;;  %v462_v36 = vadd.f32 %v1728_v1, %v327_v28  ;;  %v331_v37 = vmul.f32 %v1718_v0, %v196_v24  ;;  %1228 = vst.msk [vmem:[%s1757_s26 + $0x3c] sm:$0xf] %vm1212_vm0, %v1553_v30  ;;  %v206_v28 = vld [vmem:[%s1723_s20 + $0x100] sm:$0xff]  ;;  %v208_v30 = vld [vmem:[%s1723_s20 + $0x110] sm:$0xff] }
  0x24   : > { %v463_v38 = vadd.f32 %v1728_v1, %v328_v31  ;;  %v464_v39 = vadd.f32 %v1728_v1, %v329_v32  ;;  %v465_v40 = vadd.f32 %v1728_v1, %v330_v33  ;;  %v332_v41 = vmul.f32 %v1718_v0, %v197_v29  ;;  %v207_v29 = vld [vmem:[%s1723_s20 + $0x108] sm:$0xff] }
  0x25   : > { %v588_v42 = vmax.f32 %v460_v34, 0.0  ;;  %v589_v43 = vmax.f32 %v461_v35, 0.0  ;;  %v590_v44 = vmax.f32 %v462_v36, 0.0  ;;  %v466_v45 = vadd.f32 %v1728_v1, %v331_v37  ;;  %v209_v35 = vld [vmem:[%s1723_s20 + $0x118] sm:$0xff]  ;;  %v210_v36 = vld [vmem:[%s1723_s20 + $0x120] sm:$0xff]  ;;  %v211_v37 = vld [vmem:[%s1723_s20 + $0x128] sm:$0xff] }
  0x26   : > { %v591_v46 = vmax.f32 %v463_v38, 0.0  ;;  %v592_v47 = vmax.f32 %v464_v39, 0.0  ;;  %v593_v48 = vmax.f32 %v465_v40, 0.0  ;;  %v467_v49 = vadd.f32 %v1728_v1, %v332_v41 }
  0x27   : > { %v1554_v53 = vpack.c.bf16 %v588_v42, %v588_v42  ;;  %v1555_v54 = vpack.c.bf16 %v589_v43, %v589_v43  ;;  %v1556_v55 = vpack.c.bf16 %v590_v44, %v590_v44  ;;  %v594_v56 = vmax.f32 %v466_v45, 0.0  ;;  %v212_v42 = vld [vmem:[%s1723_s20 + $0x130] sm:$0xff] }
  0x28   : > { %v1557_v60 = vpack.c.bf16 %v591_v46, %v591_v46  ;;  %v1558_v61 = vpack.c.bf16 %v592_v47, %v592_v47  ;;  %v1559_v62 = vpack.c.bf16 %v593_v48, %v593_v48  ;;  %v595_v63 = vmax.f32 %v467_v49, 0.0  ;;  %v213_v47 = vld [vmem:[%s1723_s20 + $0x138] sm:$0xff] }
  0x29   : > { %1229 = vst.msk [vmem:[%s1757_s26 + $0x40] sm:$0xf] %vm1212_vm0, %v1554_v53  ;;  %1230 = vst.msk [vmem:[%s1757_s26 + $0x44] sm:$0xf] %vm1212_vm0, %v1555_v54  ;;  %v1560_v3 = vpack.c.bf16 %v594_v56, %v594_v56  ;;  %v333_v4 = vmul.f32 %v1718_v0, %v198_v50  ;;  %v334_v5 = vmul.f32 %v1718_v0, %v199_v51 }
  0x2a   : > { %1231 = vst.msk [vmem:[%s1757_s26 + $0x48] sm:$0xf] %vm1212_vm0, %v1556_v55  ;;  %v335_v6 = vmul.f32 %v1718_v0, %v200_v52  ;;  %1232 = vst.msk [vmem:[%s1757_s26 + $0x4c] sm:$0xf] %vm1212_vm0, %v1557_v60  ;;  %v1561_v8 = vpack.c.bf16 %v595_v63, %v595_v63  ;;  %v336_v9 = vmul.f32 %v1718_v0, %v201_v57 }
  0x2b   : > { %1233 = vst.msk [vmem:[%s1757_s26 + $0x50] sm:$0xf] %vm1212_vm0, %v1558_v61  ;;  %1234 = vst.msk [vmem:[%s1757_s26 + $0x54] sm:$0xf] %vm1212_vm0, %v1559_v62  ;;  %v337_v10 = vmul.f32 %v1718_v0, %v202_v58  ;;  %v338_v11 = vmul.f32 %v1718_v0, %v203_v59  ;;  %v468_v12 = vadd.f32 %v1728_v1, %v333_v4 }
  0x2c   : > { %1235 = vst.msk [vmem:[%s1757_s26 + $0x58] sm:$0xf] %vm1212_vm0, %v1560_v3  ;;  %v469_v13 = vadd.f32 %v1728_v1, %v334_v5  ;;  %v470_v14 = vadd.f32 %v1728_v1, %v335_v6  ;;  %v339_v15 = vmul.f32 %v1718_v0, %v204_v2  ;;  %1236 = vst.msk [vmem:[%s1757_s26 + $0x5c] sm:$0xf] %vm1212_vm0, %v1561_v8  ;;  %v214_v6 = vld [vmem:[%s1723_s20 + $0x140] sm:$0xff]  ;;  %v216_v8 = vld [vmem:[%s1723_s20 + $0x150] sm:$0xff] }
  0x2d   : > { %v471_v16 = vadd.f32 %v1728_v1, %v336_v9  ;;  %v472_v17 = vadd.f32 %v1728_v1, %v337_v10  ;;  %v473_v18 = vadd.f32 %v1728_v1, %v338_v11  ;;  %v340_v19 = vmul.f32 %v1718_v0, %v205_v7  ;;  %v215_v7 = vld [vmem:[%s1723_s20 + $0x148] sm:$0xff] }
  0x2e   : > { %v596_v20 = vmax.f32 %v468_v12, 0.0  ;;  %v597_v21 = vmax.f32 %v469_v13, 0.0  ;;  %v598_v22 = vmax.f32 %v470_v14, 0.0  ;;  %v474_v23 = vadd.f32 %v1728_v1, %v339_v15  ;;  %v217_v13 = vld [vmem:[%s1723_s20 + $0x158] sm:$0xff]  ;;  %v218_v14 = vld [vmem:[%s1723_s20 + $0x160] sm:$0xff]  ;;  %v219_v15 = vld [vmem:[%s1723_s20 + $0x168] sm:$0xff] }
  0x2f   : > { %v599_v24 = vmax.f32 %v471_v16, 0.0  ;;  %v600_v25 = vmax.f32 %v472_v17, 0.0  ;;  %v601_v26 = vmax.f32 %v473_v18, 0.0  ;;  %v475_v27 = vadd.f32 %v1728_v1, %v340_v19 }
  0x30   : > { %v1562_v31 = vpack.c.bf16 %v596_v20, %v596_v20  ;;  %v1563_v32 = vpack.c.bf16 %v597_v21, %v597_v21  ;;  %v1564_v33 = vpack.c.bf16 %v598_v22, %v598_v22  ;;  %v602_v34 = vmax.f32 %v474_v23, 0.0  ;;  %v220_v20 = vld [vmem:[%s1723_s20 + $0x170] sm:$0xff] }
  0x31   : > { %v1565_v38 = vpack.c.bf16 %v599_v24, %v599_v24  ;;  %v1566_v39 = vpack.c.bf16 %v600_v25, %v600_v25  ;;  %v1567_v40 = vpack.c.bf16 %v601_v26, %v601_v26  ;;  %v603_v41 = vmax.f32 %v475_v27, 0.0  ;;  %v221_v25 = vld [vmem:[%s1723_s20 + $0x178] sm:$0xff] }
  0x32   : > { %1237 = vst.msk [vmem:[%s1757_s26 + $0x60] sm:$0xf] %vm1212_vm0, %v1562_v31  ;;  %1238 = vst.msk [vmem:[%s1757_s26 + $0x64] sm:$0xf] %vm1212_vm0, %v1563_v32  ;;  %v1568_v43 = vpack.c.bf16 %v602_v34, %v602_v34  ;;  %v341_v44 = vmul.f32 %v1718_v0, %v206_v28  ;;  %v342_v45 = vmul.f32 %v1718_v0, %v207_v29 }
  0x33   : > { %1239 = vst.msk [vmem:[%s1757_s26 + $0x68] sm:$0xf] %vm1212_vm0, %v1564_v33  ;;  %v343_v46 = vmul.f32 %v1718_v0, %v208_v30  ;;  %1240 = vst.msk [vmem:[%s1757_s26 + $0x6c] sm:$0xf] %vm1212_vm0, %v1565_v38  ;;  %v1569_v48 = vpack.c.bf16 %v603_v41, %v603_v41  ;;  %v344_v49 = vmul.f32 %v1718_v0, %v209_v35 }
  0x34   : > { %1241 = vst.msk [vmem:[%s1757_s26 + $0x70] sm:$0xf] %vm1212_vm0, %v1566_v39  ;;  %1242 = vst.msk [vmem:[%s1757_s26 + $0x74] sm:$0xf] %vm1212_vm0, %v1567_v40  ;;  %v345_v50 = vmul.f32 %v1718_v0, %v210_v36  ;;  %v346_v51 = vmul.f32 %v1718_v0, %v211_v37  ;;  %v476_v52 = vadd.f32 %v1728_v1, %v341_v44 }
  0x35   : > { %1243 = vst.msk [vmem:[%s1757_s26 + $0x78] sm:$0xf] %vm1212_vm0, %v1568_v43  ;;  %v477_v53 = vadd.f32 %v1728_v1, %v342_v45  ;;  %v478_v54 = vadd.f32 %v1728_v1, %v343_v46  ;;  %v347_v55 = vmul.f32 %v1718_v0, %v212_v42  ;;  %1244 = vst.msk [vmem:[%s1757_s26 + $0x7c] sm:$0xf] %vm1212_vm0, %v1569_v48  ;;  %v222_v46 = vld [vmem:[%s1723_s20 + $0x180] sm:$0xff]  ;;  %v224_v48 = vld [vmem:[%s1723_s20 + $0x190] sm:$0xff] }
  0x36   : > { %v479_v56 = vadd.f32 %v1728_v1, %v344_v49  ;;  %v480_v57 = vadd.f32 %v1728_v1, %v345_v50  ;;  %v481_v58 = vadd.f32 %v1728_v1, %v346_v51  ;;  %v348_v59 = vmul.f32 %v1718_v0, %v213_v47  ;;  %v223_v47 = vld [vmem:[%s1723_s20 + $0x188] sm:$0xff] }
  0x37   : > { %v604_v60 = vmax.f32 %v476_v52, 0.0  ;;  %v605_v61 = vmax.f32 %v477_v53, 0.0  ;;  %v606_v62 = vmax.f32 %v478_v54, 0.0  ;;  %v482_v63 = vadd.f32 %v1728_v1, %v347_v55  ;;  %v225_v53 = vld [vmem:[%s1723_s20 + $0x198] sm:$0xff]  ;;  %v226_v54 = vld [vmem:[%s1723_s20 + $0x1a0] sm:$0xff]  ;;  %v227_v55 = vld [vmem:[%s1723_s20 + $0x1a8] sm:$0xff] }
  0x38   : > { %v607_v2 = vmax.f32 %v479_v56, 0.0  ;;  %v608_v3 = vmax.f32 %v480_v57, 0.0  ;;  %v609_v4 = vmax.f32 %v481_v58, 0.0  ;;  %v483_v5 = vadd.f32 %v1728_v1, %v348_v59 }
  0x39   : > { %v1570_v9 = vpack.c.bf16 %v604_v60, %v604_v60  ;;  %v1571_v10 = vpack.c.bf16 %v605_v61, %v605_v61  ;;  %v1572_v11 = vpack.c.bf16 %v606_v62, %v606_v62  ;;  %v610_v12 = vmax.f32 %v482_v63, 0.0  ;;  %v228_v60 = vld [vmem:[%s1723_s20 + $0x1b0] sm:$0xff] }
  0x3a   : > { %v1573_v16 = vpack.c.bf16 %v607_v2, %v607_v2  ;;  %v1574_v17 = vpack.c.bf16 %v608_v3, %v608_v3  ;;  %v1575_v18 = vpack.c.bf16 %v609_v4, %v609_v4  ;;  %v611_v19 = vmax.f32 %v483_v5, 0.0  ;;  %v229_v3 = vld [vmem:[%s1723_s20 + $0x1b8] sm:$0xff] }
  0x3b   : > { %1245 = vst.msk [vmem:[%s1757_s26 + $0x80] sm:$0xf] %vm1212_vm0, %v1570_v9  ;;  %1246 = vst.msk [vmem:[%s1757_s26 + $0x84] sm:$0xf] %vm1212_vm0, %v1571_v10  ;;  %v1576_v21 = vpack.c.bf16 %v610_v12, %v610_v12  ;;  %v349_v22 = vmul.f32 %v1718_v0, %v214_v6  ;;  %v350_v23 = vmul.f32 %v1718_v0, %v215_v7 }
  0x3c   : > { %1247 = vst.msk [vmem:[%s1757_s26 + $0x88] sm:$0xf] %vm1212_vm0, %v1572_v11  ;;  %v351_v24 = vmul.f32 %v1718_v0, %v216_v8  ;;  %1248 = vst.msk [vmem:[%s1757_s26 + $0x8c] sm:$0xf] %vm1212_vm0, %v1573_v16  ;;  %v1577_v26 = vpack.c.bf16 %v611_v19, %v611_v19  ;;  %v352_v27 = vmul.f32 %v1718_v0, %v217_v13 }
  0x3d   : > { %1249 = vst.msk [vmem:[%s1757_s26 + $0x90] sm:$0xf] %vm1212_vm0, %v1574_v17  ;;  %1250 = vst.msk [vmem:[%s1757_s26 + $0x94] sm:$0xf] %vm1212_vm0, %v1575_v18  ;;  %v353_v28 = vmul.f32 %v1718_v0, %v218_v14  ;;  %v354_v29 = vmul.f32 %v1718_v0, %v219_v15  ;;  %v484_v30 = vadd.f32 %v1728_v1, %v349_v22 }
  0x3e   : > { %1251 = vst.msk [vmem:[%s1757_s26 + $0x98] sm:$0xf] %vm1212_vm0, %v1576_v21  ;;  %v485_v31 = vadd.f32 %v1728_v1, %v350_v23  ;;  %v486_v32 = vadd.f32 %v1728_v1, %v351_v24  ;;  %v355_v33 = vmul.f32 %v1718_v0, %v220_v20  ;;  %1252 = vst.msk [vmem:[%s1757_s26 + $0x9c] sm:$0xf] %vm1212_vm0, %v1577_v26  ;;  %v230_v24 = vld [vmem:[%s1723_s20 + $0x1c0] sm:$0xff]  ;;  %v232_v26 = vld [vmem:[%s1723_s20 + $0x1d0] sm:$0xff] }
  0x3f   : > { %v487_v34 = vadd.f32 %v1728_v1, %v352_v27  ;;  %v488_v35 = vadd.f32 %v1728_v1, %v353_v28  ;;  %v489_v36 = vadd.f32 %v1728_v1, %v354_v29  ;;  %v356_v37 = vmul.f32 %v1718_v0, %v221_v25  ;;  %v231_v25 = vld [vmem:[%s1723_s20 + $0x1c8] sm:$0xff] }
  0x40   : > { %v612_v38 = vmax.f32 %v484_v30, 0.0  ;;  %v613_v39 = vmax.f32 %v485_v31, 0.0  ;;  %v614_v40 = vmax.f32 %v486_v32, 0.0  ;;  %v490_v41 = vadd.f32 %v1728_v1, %v355_v33  ;;  %v233_v31 = vld [vmem:[%s1723_s20 + $0x1d8] sm:$0xff]  ;;  %v234_v32 = vld [vmem:[%s1723_s20 + $0x1e0] sm:$0xff]  ;;  %v235_v33 = vld [vmem:[%s1723_s20 + $0x1e8] sm:$0xff] }
  0x41   : > { %v615_v42 = vmax.f32 %v487_v34, 0.0  ;;  %v616_v43 = vmax.f32 %v488_v35, 0.0  ;;  %v617_v44 = vmax.f32 %v489_v36, 0.0  ;;  %v491_v45 = vadd.f32 %v1728_v1, %v356_v37 }
  0x42   : > { %v1578_v49 = vpack.c.bf16 %v612_v38, %v612_v38  ;;  %v1579_v50 = vpack.c.bf16 %v613_v39, %v613_v39  ;;  %v1580_v51 = vpack.c.bf16 %v614_v40, %v614_v40  ;;  %v618_v52 = vmax.f32 %v490_v41, 0.0  ;;  %v236_v38 = vld [vmem:[%s1723_s20 + $0x1f0] sm:$0xff] }
  0x43   : > { %v1581_v56 = vpack.c.bf16 %v615_v42, %v615_v42  ;;  %v1582_v57 = vpack.c.bf16 %v616_v43, %v616_v43  ;;  %v1583_v58 = vpack.c.bf16 %v617_v44, %v617_v44  ;;  %v619_v59 = vmax.f32 %v491_v45, 0.0  ;;  %v237_v43 = vld [vmem:[%s1723_s20 + $0x1f8] sm:$0xff] }
  0x44   : > { %1253 = vst.msk [vmem:[%s1757_s26 + $0xa0] sm:$0xf] %vm1212_vm0, %v1578_v49  ;;  %1254 = vst.msk [vmem:[%s1757_s26 + $0xa4] sm:$0xf] %vm1212_vm0, %v1579_v50  ;;  %v1584_v61 = vpack.c.bf16 %v618_v52, %v618_v52  ;;  %v357_v62 = vmul.f32 %v1718_v0, %v222_v46  ;;  %v358_v63 = vmul.f32 %v1718_v0, %v223_v47 }
  0x45   : > { %1255 = vst.msk [vmem:[%s1757_s26 + $0xa8] sm:$0xf] %vm1212_vm0, %v1580_v51  ;;  %v359_v2 = vmul.f32 %v1718_v0, %v224_v48  ;;  %1256 = vst.msk [vmem:[%s1757_s26 + $0xac] sm:$0xf] %vm1212_vm0, %v1581_v56  ;;  %v1585_v4 = vpack.c.bf16 %v619_v59, %v619_v59  ;;  %v360_v5 = vmul.f32 %v1718_v0, %v225_v53 }
  0x46   : > { %1257 = vst.msk [vmem:[%s1757_s26 + $0xb0] sm:$0xf] %vm1212_vm0, %v1582_v57  ;;  %1258 = vst.msk [vmem:[%s1757_s26 + $0xb4] sm:$0xf] %vm1212_vm0, %v1583_v58  ;;  %v361_v6 = vmul.f32 %v1718_v0, %v226_v54  ;;  %v362_v7 = vmul.f32 %v1718_v0, %v227_v55  ;;  %v492_v8 = vadd.f32 %v1728_v1, %v357_v62 }
  0x47   : > { %1259 = vst.msk [vmem:[%s1757_s26 + $0xb8] sm:$0xf] %vm1212_vm0, %v1584_v61  ;;  %v493_v9 = vadd.f32 %v1728_v1, %v358_v63  ;;  %v494_v10 = vadd.f32 %v1728_v1, %v359_v2  ;;  %v363_v11 = vmul.f32 %v1718_v0, %v228_v60  ;;  %1260 = vst.msk [vmem:[%s1757_s26 + $0xbc] sm:$0xf] %vm1212_vm0, %v1585_v4  ;;  %v238_v2 = vld [vmem:[%s1723_s20 + $0x200] sm:$0xff]  ;;  %v240_v4 = vld [vmem:[%s1723_s20 + $0x210] sm:$0xff] }
  0x48   : > { %v495_v12 = vadd.f32 %v1728_v1, %v360_v5  ;;  %v496_v13 = vadd.f32 %v1728_v1, %v361_v6  ;;  %v497_v14 = vadd.f32 %v1728_v1, %v362_v7  ;;  %v364_v15 = vmul.f32 %v1718_v0, %v229_v3  ;;  %v239_v3 = vld [vmem:[%s1723_s20 + $0x208] sm:$0xff] }
  0x49   : > { %v620_v16 = vmax.f32 %v492_v8, 0.0  ;;  %v621_v17 = vmax.f32 %v493_v9, 0.0  ;;  %v622_v18 = vmax.f32 %v494_v10, 0.0  ;;  %v498_v19 = vadd.f32 %v1728_v1, %v363_v11  ;;  %v241_v9 = vld [vmem:[%s1723_s20 + $0x218] sm:$0xff]  ;;  %v242_v10 = vld [vmem:[%s1723_s20 + $0x220] sm:$0xff]  ;;  %v243_v11 = vld [vmem:[%s1723_s20 + $0x228] sm:$0xff] }
  0x4a   : > { %v623_v20 = vmax.f32 %v495_v12, 0.0  ;;  %v624_v21 = vmax.f32 %v496_v13, 0.0  ;;  %v625_v22 = vmax.f32 %v497_v14, 0.0  ;;  %v499_v23 = vadd.f32 %v1728_v1, %v364_v15 }
  0x4b   : > { %v1586_v27 = vpack.c.bf16 %v620_v16, %v620_v16  ;;  %v1587_v28 = vpack.c.bf16 %v621_v17, %v621_v17  ;;  %v1588_v29 = vpack.c.bf16 %v622_v18, %v622_v18  ;;  %v626_v30 = vmax.f32 %v498_v19, 0.0  ;;  %v244_v16 = vld [vmem:[%s1723_s20 + $0x230] sm:$0xff] }
  0x4c   : > { %v1589_v34 = vpack.c.bf16 %v623_v20, %v623_v20  ;;  %v1590_v35 = vpack.c.bf16 %v624_v21, %v624_v21  ;;  %v1591_v36 = vpack.c.bf16 %v625_v22, %v625_v22  ;;  %v627_v37 = vmax.f32 %v499_v23, 0.0  ;;  %v245_v21 = vld [vmem:[%s1723_s20 + $0x238] sm:$0xff] }
  0x4d   : > { %1261 = vst.msk [vmem:[%s1757_s26 + $0xc0] sm:$0xf] %vm1212_vm0, %v1586_v27  ;;  %1262 = vst.msk [vmem:[%s1757_s26 + $0xc4] sm:$0xf] %vm1212_vm0, %v1587_v28  ;;  %v1592_v39 = vpack.c.bf16 %v626_v30, %v626_v30  ;;  %v365_v40 = vmul.f32 %v1718_v0, %v230_v24  ;;  %v366_v41 = vmul.f32 %v1718_v0, %v231_v25 }
  0x4e   : > { %1263 = vst.msk [vmem:[%s1757_s26 + $0xc8] sm:$0xf] %vm1212_vm0, %v1588_v29  ;;  %v367_v42 = vmul.f32 %v1718_v0, %v232_v26  ;;  %1264 = vst.msk [vmem:[%s1757_s26 + $0xcc] sm:$0xf] %vm1212_vm0, %v1589_v34  ;;  %v1593_v44 = vpack.c.bf16 %v627_v37, %v627_v37  ;;  %v368_v45 = vmul.f32 %v1718_v0, %v233_v31 }
  0x4f   : > { %1265 = vst.msk [vmem:[%s1757_s26 + $0xd0] sm:$0xf] %vm1212_vm0, %v1590_v35  ;;  %1266 = vst.msk [vmem:[%s1757_s26 + $0xd4] sm:$0xf] %vm1212_vm0, %v1591_v36  ;;  %v369_v46 = vmul.f32 %v1718_v0, %v234_v32  ;;  %v370_v47 = vmul.f32 %v1718_v0, %v235_v33  ;;  %v500_v48 = vadd.f32 %v1728_v1, %v365_v40 }
  0x50   : > { %1267 = vst.msk [vmem:[%s1757_s26 + $0xd8] sm:$0xf] %vm1212_vm0, %v1592_v39  ;;  %v501_v49 = vadd.f32 %v1728_v1, %v366_v41  ;;  %v502_v50 = vadd.f32 %v1728_v1, %v367_v42  ;;  %v371_v51 = vmul.f32 %v1718_v0, %v236_v38  ;;  %1268 = vst.msk [vmem:[%s1757_s26 + $0xdc] sm:$0xf] %vm1212_vm0, %v1593_v44  ;;  %v246_v42 = vld [vmem:[%s1723_s20 + $0x240] sm:$0xff]  ;;  %v248_v44 = vld [vmem:[%s1723_s20 + $0x250] sm:$0xff] }
  0x51   : > { %v503_v52 = vadd.f32 %v1728_v1, %v368_v45  ;;  %v504_v53 = vadd.f32 %v1728_v1, %v369_v46  ;;  %v505_v54 = vadd.f32 %v1728_v1, %v370_v47  ;;  %v372_v55 = vmul.f32 %v1718_v0, %v237_v43  ;;  %v247_v43 = vld [vmem:[%s1723_s20 + $0x248] sm:$0xff] }
  0x52   : > { %v628_v56 = vmax.f32 %v500_v48, 0.0  ;;  %v629_v57 = vmax.f32 %v501_v49, 0.0  ;;  %v630_v58 = vmax.f32 %v502_v50, 0.0  ;;  %v506_v59 = vadd.f32 %v1728_v1, %v371_v51  ;;  %v249_v49 = vld [vmem:[%s1723_s20 + $0x258] sm:$0xff]  ;;  %v250_v50 = vld [vmem:[%s1723_s20 + $0x260] sm:$0xff]  ;;  %v251_v51 = vld [vmem:[%s1723_s20 + $0x268] sm:$0xff] }
  0x53   : > { %v631_v60 = vmax.f32 %v503_v52, 0.0  ;;  %v632_v61 = vmax.f32 %v504_v53, 0.0  ;;  %v633_v62 = vmax.f32 %v505_v54, 0.0  ;;  %v507_v63 = vadd.f32 %v1728_v1, %v372_v55 }
  0x54   : > { %v1594_v5 = vpack.c.bf16 %v628_v56, %v628_v56  ;;  %v1595_v6 = vpack.c.bf16 %v629_v57, %v629_v57  ;;  %v1596_v7 = vpack.c.bf16 %v630_v58, %v630_v58  ;;  %v634_v8 = vmax.f32 %v506_v59, 0.0  ;;  %v252_v56 = vld [vmem:[%s1723_s20 + $0x270] sm:$0xff] }
  0x55   : > { %v1597_v12 = vpack.c.bf16 %v631_v60, %v631_v60  ;;  %v1598_v13 = vpack.c.bf16 %v632_v61, %v632_v61  ;;  %v1599_v14 = vpack.c.bf16 %v633_v62, %v633_v62  ;;  %v635_v15 = vmax.f32 %v507_v63, 0.0  ;;  %v253_v61 = vld [vmem:[%s1723_s20 + $0x278] sm:$0xff] }
  0x56   : > { %1269 = vst.msk [vmem:[%s1757_s26 + $0xe0] sm:$0xf] %vm1212_vm0, %v1594_v5  ;;  %1270 = vst.msk [vmem:[%s1757_s26 + $0xe4] sm:$0xf] %vm1212_vm0, %v1595_v6  ;;  %v1600_v17 = vpack.c.bf16 %v634_v8, %v634_v8  ;;  %v373_v18 = vmul.f32 %v1718_v0, %v238_v2  ;;  %v374_v19 = vmul.f32 %v1718_v0, %v239_v3 }
  0x57   : > { %1271 = vst.msk [vmem:[%s1757_s26 + $0xe8] sm:$0xf] %vm1212_vm0, %v1596_v7  ;;  %v375_v20 = vmul.f32 %v1718_v0, %v240_v4  ;;  %1272 = vst.msk [vmem:[%s1757_s26 + $0xec] sm:$0xf] %vm1212_vm0, %v1597_v12  ;;  %v1601_v22 = vpack.c.bf16 %v635_v15, %v635_v15  ;;  %v376_v23 = vmul.f32 %v1718_v0, %v241_v9 }
  0x58   : > { %1273 = vst.msk [vmem:[%s1757_s26 + $0xf0] sm:$0xf] %vm1212_vm0, %v1598_v13  ;;  %1274 = vst.msk [vmem:[%s1757_s26 + $0xf4] sm:$0xf] %vm1212_vm0, %v1599_v14  ;;  %v377_v24 = vmul.f32 %v1718_v0, %v242_v10  ;;  %v378_v25 = vmul.f32 %v1718_v0, %v243_v11  ;;  %v508_v26 = vadd.f32 %v1728_v1, %v373_v18 }
  0x59   : > { %1275 = vst.msk [vmem:[%s1757_s26 + $0xf8] sm:$0xf] %vm1212_vm0, %v1600_v17  ;;  %v509_v27 = vadd.f32 %v1728_v1, %v374_v19  ;;  %v510_v28 = vadd.f32 %v1728_v1, %v375_v20  ;;  %v379_v29 = vmul.f32 %v1718_v0, %v244_v16  ;;  %1276 = vst.msk [vmem:[%s1757_s26 + $0xfc] sm:$0xf] %vm1212_vm0, %v1601_v22  ;;  %v254_v20 = vld [vmem:[%s1723_s20 + $0x280] sm:$0xff]  ;;  %v256_v22 = vld [vmem:[%s1723_s20 + $0x290] sm:$0xff] }
  0x5a   : > { %v511_v30 = vadd.f32 %v1728_v1, %v376_v23  ;;  %v512_v31 = vadd.f32 %v1728_v1, %v377_v24  ;;  %v513_v32 = vadd.f32 %v1728_v1, %v378_v25  ;;  %v380_v33 = vmul.f32 %v1718_v0, %v245_v21  ;;  %v255_v21 = vld [vmem:[%s1723_s20 + $0x288] sm:$0xff] }
  0x5b   : > { %v636_v34 = vmax.f32 %v508_v26, 0.0  ;;  %v637_v35 = vmax.f32 %v509_v27, 0.0  ;;  %v638_v36 = vmax.f32 %v510_v28, 0.0  ;;  %v514_v37 = vadd.f32 %v1728_v1, %v379_v29  ;;  %v257_v27 = vld [vmem:[%s1723_s20 + $0x298] sm:$0xff]  ;;  %v258_v28 = vld [vmem:[%s1723_s20 + $0x2a0] sm:$0xff]  ;;  %v259_v29 = vld [vmem:[%s1723_s20 + $0x2a8] sm:$0xff] }
  0x5c   : > { %v639_v38 = vmax.f32 %v511_v30, 0.0  ;;  %v640_v39 = vmax.f32 %v512_v31, 0.0  ;;  %v641_v40 = vmax.f32 %v513_v32, 0.0  ;;  %v515_v41 = vadd.f32 %v1728_v1, %v380_v33 }
  0x5d   : > { %v1602_v45 = vpack.c.bf16 %v636_v34, %v636_v34  ;;  %v1603_v46 = vpack.c.bf16 %v637_v35, %v637_v35  ;;  %v1604_v47 = vpack.c.bf16 %v638_v36, %v638_v36  ;;  %v642_v48 = vmax.f32 %v514_v37, 0.0  ;;  %v260_v34 = vld [vmem:[%s1723_s20 + $0x2b0] sm:$0xff] }
  0x5e   : > { %v1605_v52 = vpack.c.bf16 %v639_v38, %v639_v38  ;;  %v1606_v53 = vpack.c.bf16 %v640_v39, %v640_v39  ;;  %v1607_v54 = vpack.c.bf16 %v641_v40, %v641_v40  ;;  %v643_v55 = vmax.f32 %v515_v41, 0.0  ;;  %v261_v39 = vld [vmem:[%s1723_s20 + $0x2b8] sm:$0xff] }
  0x5f   : > { %1277 = vst.msk [vmem:[%s1757_s26 + $0x100] sm:$0xf] %vm1212_vm0, %v1602_v45  ;;  %1278 = vst.msk [vmem:[%s1757_s26 + $0x104] sm:$0xf] %vm1212_vm0, %v1603_v46  ;;  %v1608_v57 = vpack.c.bf16 %v642_v48, %v642_v48  ;;  %v381_v58 = vmul.f32 %v1718_v0, %v246_v42  ;;  %v382_v59 = vmul.f32 %v1718_v0, %v247_v43 }
  0x60   : > { %1279 = vst.msk [vmem:[%s1757_s26 + $0x108] sm:$0xf] %vm1212_vm0, %v1604_v47  ;;  %v383_v60 = vmul.f32 %v1718_v0, %v248_v44  ;;  %1280 = vst.msk [vmem:[%s1757_s26 + $0x10c] sm:$0xf] %vm1212_vm0, %v1605_v52  ;;  %v1609_v62 = vpack.c.bf16 %v643_v55, %v643_v55  ;;  %v384_v63 = vmul.f32 %v1718_v0, %v249_v49 }
  0x61   : > { %1281 = vst.msk [vmem:[%s1757_s26 + $0x110] sm:$0xf] %vm1212_vm0, %v1606_v53  ;;  %1282 = vst.msk [vmem:[%s1757_s26 + $0x114] sm:$0xf] %vm1212_vm0, %v1607_v54  ;;  %v385_v2 = vmul.f32 %v1718_v0, %v250_v50  ;;  %v386_v3 = vmul.f32 %v1718_v0, %v251_v51  ;;  %v516_v4 = vadd.f32 %v1728_v1, %v381_v58 }
  0x62   : > { %1283 = vst.msk [vmem:[%s1757_s26 + $0x118] sm:$0xf] %vm1212_vm0, %v1608_v57  ;;  %v517_v5 = vadd.f32 %v1728_v1, %v382_v59  ;;  %v518_v6 = vadd.f32 %v1728_v1, %v383_v60  ;;  %v387_v7 = vmul.f32 %v1718_v0, %v252_v56  ;;  %1284 = vst.msk [vmem:[%s1757_s26 + $0x11c] sm:$0xf] %vm1212_vm0, %v1609_v62  ;;  %v2162_v59 = vld [vmem:[%s2391_s2] ss:$0 sm:$0xff] }
  0x63   : > { %v519_v8 = vadd.f32 %v1728_v1, %v384_v63  ;;  %v520_v9 = vadd.f32 %v1728_v1, %v385_v2  ;;  %v521_v10 = vadd.f32 %v1728_v1, %v386_v3  ;;  %v388_v11 = vmul.f32 %v1718_v0, %v253_v61  ;;  %v263_v61 = vld [vmem:[%s1723_s20 + $0x2c8] sm:$0xff]  ;;  %v264_v62 = vld [vmem:[%s1723_s20 + $0x2d0] sm:$0xff] }
  0x64   : > { %v644_v12 = vmax.f32 %v516_v4, 0.0  ;;  %v645_v13 = vmax.f32 %v517_v5, 0.0  ;;  %v646_v14 = vmax.f32 %v518_v6, 0.0  ;;  %v522_v15 = vadd.f32 %v1728_v1, %v387_v7  ;;  %v265_v4 = vld [vmem:[%s1723_s20 + $0x2d8] sm:$0xff]  ;;  %v266_v5 = vld [vmem:[%s1723_s20 + $0x2e0] sm:$0xff]  ;;  %v267_v6 = vld [vmem:[%s1723_s20 + $0x2e8] sm:$0xff] }
  0x65   : > { %v647_v16 = vmax.f32 %v519_v8, 0.0  ;;  %v648_v17 = vmax.f32 %v520_v9, 0.0  ;;  %v649_v18 = vmax.f32 %v521_v10, 0.0  ;;  %v523_v19 = vadd.f32 %v1728_v1, %v388_v11  ;;  %v268_v11 = vld [vmem:[%s1723_s20 + $0x2f0] sm:$0xff] }
  0x66   : > { %v1610_v23 = vpack.c.bf16 %v644_v12, %v644_v12  ;;  %v1611_v24 = vpack.c.bf16 %v645_v13, %v645_v13  ;;  %v1612_v25 = vpack.c.bf16 %v646_v14, %v646_v14  ;;  %v650_v26 = vmax.f32 %v522_v15, 0.0  ;;  %v2181_v13 = vld [vmem:[%s2390_s1] ss:$0 sm:$0xff] }
  0x67   : > { %v1613_v30 = vpack.c.bf16 %v647_v16, %v647_v16  ;;  %v1614_v31 = vpack.c.bf16 %v648_v17, %v648_v17  ;;  %v1615_v32 = vpack.c.bf16 %v649_v18, %v649_v18  ;;  %v651_v33 = vmax.f32 %v523_v19, 0.0  ;;  %v269_v17 = vld [vmem:[%s1723_s20 + $0x2f8] sm:$0xff] }
  0x68   : > { %1285 = vst.msk [vmem:[%s1757_s26 + $0x120] sm:$0xf] %vm1212_vm0, %v1610_v23  ;;  %1286 = vst.msk [vmem:[%s1757_s26 + $0x124] sm:$0xf] %vm1212_vm0, %v1611_v24  ;;  %v1616_v35 = vpack.c.bf16 %v650_v26, %v650_v26  ;;  %v389_v36 = vmul.f32 %v1718_v0, %v254_v20  ;;  %v390_v37 = vmul.f32 %v1718_v0, %v255_v21 }
  0x69   : > { %1287 = vst.msk [vmem:[%s1757_s26 + $0x128] sm:$0xf] %vm1212_vm0, %v1612_v25  ;;  %v391_v38 = vmul.f32 %v1718_v0, %v256_v22  ;;  %1288 = vst.msk [vmem:[%s1757_s26 + $0x12c] sm:$0xf] %vm1212_vm0, %v1613_v30  ;;  %v1617_v40 = vpack.c.bf16 %v651_v33, %v651_v33  ;;  %v392_v41 = vmul.f32 %v1718_v0, %v257_v27 }
  0x6a   : > { %1289 = vst.msk [vmem:[%s1757_s26 + $0x130] sm:$0xf] %vm1212_vm0, %v1614_v31  ;;  %1290 = vst.msk [vmem:[%s1757_s26 + $0x134] sm:$0xf] %vm1212_vm0, %v1615_v32  ;;  %v393_v42 = vmul.f32 %v1718_v0, %v258_v28  ;;  %v394_v43 = vmul.f32 %v1718_v0, %v259_v29  ;;  %v524_v44 = vadd.f32 %v1728_v1, %v389_v36 }
  0x6b   : > { %1291 = vst.msk [vmem:[%s1757_s26 + $0x138] sm:$0xf] %vm1212_vm0, %v1616_v35  ;;  %v525_v45 = vadd.f32 %v1728_v1, %v390_v37  ;;  %v526_v46 = vadd.f32 %v1728_v1, %v391_v38  ;;  %v395_v47 = vmul.f32 %v1718_v0, %v260_v34  ;;  %1292 = vst.msk [vmem:[%s1757_s26 + $0x13c] sm:$0xf] %vm1212_vm0, %v1617_v40  ;;  %v270_v38 = vld [vmem:[%s1723_s20 + $0x300] sm:$0xff]  ;;  %v272_v40 = vld [vmem:[%s1723_s20 + $0x310] sm:$0xff] }
  0x6c   : > { %v527_v48 = vadd.f32 %v1728_v1, %v392_v41  ;;  %v528_v49 = vadd.f32 %v1728_v1, %v393_v42  ;;  %v529_v50 = vadd.f32 %v1728_v1, %v394_v43  ;;  %v396_v51 = vmul.f32 %v1718_v0, %v261_v39  ;;  %v262_v0 = vld [vmem:[%s1723_s20 + $0x2c0] sm:$0xff]  ;;  %v271_v39 = vld [vmem:[%s1723_s20 + $0x308] sm:$0xff] }
  0x6d   : > { %v652_v52 = vmax.f32 %v524_v44, 0.0  ;;  %v653_v53 = vmax.f32 %v525_v45, 0.0  ;;  %v654_v54 = vmax.f32 %v526_v46, 0.0  ;;  %v530_v55 = vadd.f32 %v1728_v1, %v395_v47  ;;  %v273_v45 = vld [vmem:[%s1723_s20 + $0x318] sm:$0xff]  ;;  %v274_v46 = vld [vmem:[%s1723_s20 + $0x320] sm:$0xff]  ;;  %v275_v47 = vld [vmem:[%s1723_s20 + $0x328] sm:$0xff] }
  0x6e   : > { %v655_v56 = vmax.f32 %v527_v48, 0.0  ;;  %v656_v57 = vmax.f32 %v528_v49, 0.0  ;;  %v657_v58 = vmax.f32 %v529_v50, 0.0  ;;  %v531_v60 = vadd.f32 %v2162_v59, %v396_v51 }
  0x6f   : > { %v1618_v63 = vpack.c.bf16 %v652_v52, %v652_v52  ;;  %v1619_v2 = vpack.c.bf16 %v653_v53, %v653_v53  ;;  %v1620_v1 = vpack.c.bf16 %v654_v54, %v654_v54  ;;  %v658_v3 = vmax.f32 %v530_v55, 0.0  ;;  %v276_v52 = vld [vmem:[%s1723_s20 + $0x330] sm:$0xff] }
  0x70   : > { %v1621_v7 = vpack.c.bf16 %v655_v56, %v655_v56  ;;  %v1622_v8 = vpack.c.bf16 %v656_v57, %v656_v57  ;;  %v1623_v9 = vpack.c.bf16 %v657_v58, %v657_v58  ;;  %v659_v10 = vmax.f32 %v531_v60, 0.0  ;;  %v277_v57 = vld [vmem:[%s1723_s20 + $0x338] sm:$0xff] }
  0x71   : > { %1293 = vst.msk [vmem:[%s1757_s26 + $0x140] sm:$0xf] %vm1212_vm0, %v1618_v63  ;;  %1294 = vst.msk [vmem:[%s1757_s26 + $0x144] sm:$0xf] %vm1212_vm0, %v1619_v2  ;;  %v1624_v12 = vpack.c.bf16 %v658_v3, %v658_v3  ;;  %v397_v14 = vmul.f32 %v2181_v13, %v262_v0  ;;  %v398_v15 = vmul.f32 %v2181_v13, %v263_v61 }
  0x72   : > { %1295 = vst.msk [vmem:[%s1757_s26 + $0x148] sm:$0xf] %vm1212_vm0, %v1620_v1  ;;  %v399_v16 = vmul.f32 %v2181_v13, %v264_v62  ;;  %1296 = vst.msk [vmem:[%s1757_s26 + $0x14c] sm:$0xf] %vm1212_vm0, %v1621_v7  ;;  %v1625_v18 = vpack.c.bf16 %v659_v10, %v659_v10  ;;  %v400_v19 = vmul.f32 %v2181_v13, %v265_v4 }
  0x73   : > { %1297 = vst.msk [vmem:[%s1757_s26 + $0x150] sm:$0xf] %vm1212_vm0, %v1622_v8  ;;  %1298 = vst.msk [vmem:[%s1757_s26 + $0x154] sm:$0xf] %vm1212_vm0, %v1623_v9  ;;  %v401_v20 = vmul.f32 %v2181_v13, %v266_v5  ;;  %v402_v21 = vmul.f32 %v2181_v13, %v267_v6  ;;  %v532_v22 = vadd.f32 %v2162_v59, %v397_v14 }
  0x74   : > { %1299 = vst.msk [vmem:[%s1757_s26 + $0x158] sm:$0xf] %vm1212_vm0, %v1624_v12  ;;  %v533_v23 = vadd.f32 %v2162_v59, %v398_v15  ;;  %v534_v24 = vadd.f32 %v2162_v59, %v399_v16  ;;  %v403_v25 = vmul.f32 %v2181_v13, %v268_v11  ;;  %1300 = vst.msk [vmem:[%s1757_s26 + $0x15c] sm:$0xf] %vm1212_vm0, %v1625_v18  ;;  %v278_v16 = vld [vmem:[%s1723_s20 + $0x340] sm:$0xff]  ;;  %v280_v18 = vld [vmem:[%s1723_s20 + $0x350] sm:$0xff] }
  0x75   : > { %v535_v26 = vadd.f32 %v2162_v59, %v400_v19  ;;  %v536_v27 = vadd.f32 %v2162_v59, %v401_v20  ;;  %v537_v28 = vadd.f32 %v2162_v59, %v402_v21  ;;  %v404_v29 = vmul.f32 %v2181_v13, %v269_v17  ;;  %v279_v17 = vld [vmem:[%s1723_s20 + $0x348] sm:$0xff] }
  0x76   : > { %v660_v30 = vmax.f32 %v532_v22, 0.0  ;;  %v661_v31 = vmax.f32 %v533_v23, 0.0  ;;  %v662_v32 = vmax.f32 %v534_v24, 0.0  ;;  %v538_v33 = vadd.f32 %v2162_v59, %v403_v25  ;;  %v281_v23 = vld [vmem:[%s1723_s20 + $0x358] sm:$0xff]  ;;  %v282_v24 = vld [vmem:[%s1723_s20 + $0x360] sm:$0xff]  ;;  %v283_v25 = vld [vmem:[%s1723_s20 + $0x368] sm:$0xff] }
  0x77   : > { %v663_v34 = vmax.f32 %v535_v26, 0.0  ;;  %v664_v35 = vmax.f32 %v536_v27, 0.0  ;;  %v665_v36 = vmax.f32 %v537_v28, 0.0  ;;  %v539_v37 = vadd.f32 %v2162_v59, %v404_v29 }
  0x78   : > { %v1626_v41 = vpack.c.bf16 %v660_v30, %v660_v30  ;;  %v1627_v42 = vpack.c.bf16 %v661_v31, %v661_v31  ;;  %v1628_v43 = vpack.c.bf16 %v662_v32, %v662_v32  ;;  %v666_v44 = vmax.f32 %v538_v33, 0.0  ;;  %v284_v30 = vld [vmem:[%s1723_s20 + $0x370] sm:$0xff] }
  0x79   : > { %v1629_v48 = vpack.c.bf16 %v663_v34, %v663_v34  ;;  %v1630_v49 = vpack.c.bf16 %v664_v35, %v664_v35  ;;  %v1631_v50 = vpack.c.bf16 %v665_v36, %v665_v36  ;;  %v667_v51 = vmax.f32 %v539_v37, 0.0  ;;  %v285_v35 = vld [vmem:[%s1723_s20 + $0x378] sm:$0xff] }
  0x7a   : > { %1301 = vst.msk [vmem:[%s1757_s26 + $0x160] sm:$0xf] %vm1212_vm0, %v1626_v41  ;;  %1302 = vst.msk [vmem:[%s1757_s26 + $0x164] sm:$0xf] %vm1212_vm0, %v1627_v42  ;;  %v1632_v53 = vpack.c.bf16 %v666_v44, %v666_v44  ;;  %v405_v54 = vmul.f32 %v2181_v13, %v270_v38  ;;  %v406_v55 = vmul.f32 %v2181_v13, %v271_v39 }
  0x7b   : > { %1303 = vst.msk [vmem:[%s1757_s26 + $0x168] sm:$0xf] %vm1212_vm0, %v1628_v43  ;;  %v407_v56 = vmul.f32 %v2181_v13, %v272_v40  ;;  %1304 = vst.msk [vmem:[%s1757_s26 + $0x16c] sm:$0xf] %vm1212_vm0, %v1629_v48  ;;  %v1633_v58 = vpack.c.bf16 %v667_v51, %v667_v51  ;;  %v408_v60 = vmul.f32 %v2181_v13, %v273_v45 }
  0x7c   : > { %1305 = vst.msk [vmem:[%s1757_s26 + $0x170] sm:$0xf] %vm1212_vm0, %v1630_v49  ;;  %1306 = vst.msk [vmem:[%s1757_s26 + $0x174] sm:$0xf] %vm1212_vm0, %v1631_v50  ;;  %v409_v0 = vmul.f32 %v2181_v13, %v274_v46  ;;  %v410_v61 = vmul.f32 %v2181_v13, %v275_v47  ;;  %v540_v62 = vadd.f32 %v2162_v59, %v405_v54 }
  0x7d   : > { %1307 = vst.msk [vmem:[%s1757_s26 + $0x178] sm:$0xf] %vm1212_vm0, %v1632_v53  ;;  %v541_v63 = vadd.f32 %v2162_v59, %v406_v55  ;;  %v542_v2 = vadd.f32 %v2162_v59, %v407_v56  ;;  %v411_v1 = vmul.f32 %v2181_v13, %v276_v52  ;;  %1308 = vst.msk [vmem:[%s1757_s26 + $0x17c] sm:$0xf] %vm1212_vm0, %v1633_v58  ;;  %v286_v56 = vld [vmem:[%s1723_s20 + $0x380] sm:$0xff]  ;;  %v288_v58 = vld [vmem:[%s1723_s20 + $0x390] sm:$0xff] }
  0x7e   : > { %v543_v3 = vadd.f32 %v2162_v59, %v408_v60  ;;  %v544_v4 = vadd.f32 %v2162_v59, %v409_v0  ;;  %v545_v5 = vadd.f32 %v2162_v59, %v410_v61  ;;  %v412_v6 = vmul.f32 %v2181_v13, %v277_v57  ;;  %v287_v57 = vld [vmem:[%s1723_s20 + $0x388] sm:$0xff] }
  0x7f   : > { %v668_v7 = vmax.f32 %v540_v62, 0.0  ;;  %v669_v8 = vmax.f32 %v541_v63, 0.0  ;;  %v670_v9 = vmax.f32 %v542_v2, 0.0  ;;  %v546_v10 = vadd.f32 %v2162_v59, %v411_v1  ;;  %v289_v63 = vld [vmem:[%s1723_s20 + $0x398] sm:$0xff]  ;;  %v290_v2 = vld [vmem:[%s1723_s20 + $0x3a0] sm:$0xff]  ;;  %v291_v1 = vld [vmem:[%s1723_s20 + $0x3a8] sm:$0xff] }
  0x80   : > { %v671_v11 = vmax.f32 %v543_v3, 0.0  ;;  %v672_v12 = vmax.f32 %v544_v4, 0.0  ;;  %v673_v14 = vmax.f32 %v545_v5, 0.0  ;;  %v547_v15 = vadd.f32 %v2162_v59, %v412_v6 }
  0x81   : > { %v1634_v19 = vpack.c.bf16 %v668_v7, %v668_v7  ;;  %v1635_v20 = vpack.c.bf16 %v669_v8, %v669_v8  ;;  %v1636_v21 = vpack.c.bf16 %v670_v9, %v670_v9  ;;  %v674_v22 = vmax.f32 %v546_v10, 0.0  ;;  %v292_v7 = vld [vmem:[%s1723_s20 + $0x3b0] sm:$0xff] }
  0x82   : > { %v1637_v26 = vpack.c.bf16 %v671_v11, %v671_v11  ;;  %v1638_v27 = vpack.c.bf16 %v672_v12, %v672_v12  ;;  %v1639_v28 = vpack.c.bf16 %v673_v14, %v673_v14  ;;  %v675_v29 = vmax.f32 %v547_v15, 0.0  ;;  %v293_v12 = vld [vmem:[%s1723_s20 + $0x3b8] sm:$0xff] }
  0x83   : > { %1309 = vst.msk [vmem:[%s1757_s26 + $0x180] sm:$0xf] %vm1212_vm0, %v1634_v19  ;;  %1310 = vst.msk [vmem:[%s1757_s26 + $0x184] sm:$0xf] %vm1212_vm0, %v1635_v20  ;;  %v1640_v31 = vpack.c.bf16 %v674_v22, %v674_v22  ;;  %v413_v32 = vmul.f32 %v2181_v13, %v278_v16  ;;  %v414_v33 = vmul.f32 %v2181_v13, %v279_v17 }
  0x84   : > { %1311 = vst.msk [vmem:[%s1757_s26 + $0x188] sm:$0xf] %vm1212_vm0, %v1636_v21  ;;  %v415_v34 = vmul.f32 %v2181_v13, %v280_v18  ;;  %1312 = vst.msk [vmem:[%s1757_s26 + $0x18c] sm:$0xf] %vm1212_vm0, %v1637_v26  ;;  %v1641_v36 = vpack.c.bf16 %v675_v29, %v675_v29  ;;  %v416_v37 = vmul.f32 %v2181_v13, %v281_v23 }
  0x85   : > { %1313 = vst.msk [vmem:[%s1757_s26 + $0x190] sm:$0xf] %vm1212_vm0, %v1638_v27  ;;  %1314 = vst.msk [vmem:[%s1757_s26 + $0x194] sm:$0xf] %vm1212_vm0, %v1639_v28  ;;  %v417_v38 = vmul.f32 %v2181_v13, %v282_v24  ;;  %v418_v39 = vmul.f32 %v2181_v13, %v283_v25  ;;  %v548_v40 = vadd.f32 %v2162_v59, %v413_v32 }
  0x86   : > { %1315 = vst.msk [vmem:[%s1757_s26 + $0x198] sm:$0xf] %vm1212_vm0, %v1640_v31  ;;  %v549_v41 = vadd.f32 %v2162_v59, %v414_v33  ;;  %v550_v42 = vadd.f32 %v2162_v59, %v415_v34  ;;  %v419_v43 = vmul.f32 %v2181_v13, %v284_v30  ;;  %1316 = vst.msk [vmem:[%s1757_s26 + $0x19c] sm:$0xf] %vm1212_vm0, %v1641_v36  ;;  %v294_v34 = vld [vmem:[%s1723_s20 + $0x3c0] sm:$0xff]  ;;  %v296_v36 = vld [vmem:[%s1723_s20 + $0x3d0] sm:$0xff] }
  0x87   : > { %v551_v44 = vadd.f32 %v2162_v59, %v416_v37  ;;  %v552_v45 = vadd.f32 %v2162_v59, %v417_v38  ;;  %v553_v46 = vadd.f32 %v2162_v59, %v418_v39  ;;  %v420_v47 = vmul.f32 %v2181_v13, %v285_v35  ;;  %v295_v35 = vld [vmem:[%s1723_s20 + $0x3c8] sm:$0xff] }
  0x88   : > { %v676_v48 = vmax.f32 %v548_v40, 0.0  ;;  %v677_v49 = vmax.f32 %v549_v41, 0.0  ;;  %v678_v50 = vmax.f32 %v550_v42, 0.0  ;;  %v554_v51 = vadd.f32 %v2162_v59, %v419_v43  ;;  %v297_v41 = vld [vmem:[%s1723_s20 + $0x3d8] sm:$0xff]  ;;  %v298_v42 = vld [vmem:[%s1723_s20 + $0x3e0] sm:$0xff]  ;;  %v299_v43 = vld [vmem:[%s1723_s20 + $0x3e8] sm:$0xff] }
  0x89   : > { %v679_v52 = vmax.f32 %v551_v44, 0.0  ;;  %v680_v53 = vmax.f32 %v552_v45, 0.0  ;;  %v681_v54 = vmax.f32 %v553_v46, 0.0  ;;  %v555_v55 = vadd.f32 %v2162_v59, %v420_v47 }
  0x8a   : > { %v1642_v60 = vpack.c.bf16 %v676_v48, %v676_v48  ;;  %v1643_v0 = vpack.c.bf16 %v677_v49, %v677_v49  ;;  %v1644_v61 = vpack.c.bf16 %v678_v50, %v678_v50  ;;  %v682_v62 = vmax.f32 %v554_v51, 0.0  ;;  %v300_v48 = vld [vmem:[%s1723_s20 + $0x3f0] sm:$0xff] }
  0x8b   : > { %v1645_v3 = vpack.c.bf16 %v679_v52, %v679_v52  ;;  %v1646_v4 = vpack.c.bf16 %v680_v53, %v680_v53  ;;  %v1647_v5 = vpack.c.bf16 %v681_v54, %v681_v54  ;;  %v683_v6 = vmax.f32 %v555_v55, 0.0  ;;  %v301_v53 = vld [vmem:[%s1723_s20 + $0x3f8] sm:$0xff] }
  0x8c   : > { %1317 = vst.msk [vmem:[%s1757_s26 + $0x1a0] sm:$0xf] %vm1212_vm0, %v1642_v60  ;;  %1318 = vst.msk [vmem:[%s1757_s26 + $0x1a4] sm:$0xf] %vm1212_vm0, %v1643_v0  ;;  %v1648_v8 = vpack.c.bf16 %v682_v62, %v682_v62  ;;  %v421_v9 = vmul.f32 %v2181_v13, %v286_v56  ;;  %v422_v10 = vmul.f32 %v2181_v13, %v287_v57 }
  0x8d   : > { %1319 = vst.msk [vmem:[%s1757_s26 + $0x1a8] sm:$0xf] %vm1212_vm0, %v1644_v61  ;;  %v423_v11 = vmul.f32 %v2181_v13, %v288_v58  ;;  %1320 = vst.msk [vmem:[%s1757_s26 + $0x1ac] sm:$0xf] %vm1212_vm0, %v1645_v3  ;;  %v1649_v14 = vpack.c.bf16 %v683_v6, %v683_v6  ;;  %v424_v15 = vmul.f32 %v2181_v13, %v289_v63 }
  0x8e   : > { %1321 = vst.msk [vmem:[%s1757_s26 + $0x1b0] sm:$0xf] %vm1212_vm0, %v1646_v4  ;;  %1322 = vst.msk [vmem:[%s1757_s26 + $0x1b4] sm:$0xf] %vm1212_vm0, %v1647_v5  ;;  %v425_v16 = vmul.f32 %v2181_v13, %v290_v2  ;;  %v426_v17 = vmul.f32 %v2181_v13, %v291_v1  ;;  %v556_v18 = vadd.f32 %v2162_v59, %v421_v9 }
  0x8f   : > { %1323 = vst.msk [vmem:[%s1757_s26 + $0x1b8] sm:$0xf] %vm1212_vm0, %v1648_v8  ;;  %v557_v19 = vadd.f32 %v2162_v59, %v422_v10  ;;  %v558_v20 = vadd.f32 %v2162_v59, %v423_v11  ;;  %v427_v21 = vmul.f32 %v2181_v13, %v292_v7  ;;  %1324 = vst.msk [vmem:[%s1757_s26 + $0x1bc] sm:$0xf] %vm1212_vm0, %v1649_v14 }
  0x90   : > { %v559_v22 = vadd.f32 %v2162_v59, %v424_v15  ;;  %v560_v23 = vadd.f32 %v2162_v59, %v425_v16  ;;  %v561_v24 = vadd.f32 %v2162_v59, %v426_v17  ;;  %v428_v25 = vmul.f32 %v2181_v13, %v293_v12 }
  0x91   : > { %v684_v26 = vmax.f32 %v556_v18, 0.0  ;;  %v685_v27 = vmax.f32 %v557_v19, 0.0  ;;  %v686_v28 = vmax.f32 %v558_v20, 0.0  ;;  %v562_v29 = vadd.f32 %v2162_v59, %v427_v21 }
  0x92   : > { %v687_v30 = vmax.f32 %v559_v22, 0.0  ;;  %v688_v31 = vmax.f32 %v560_v23, 0.0  ;;  %v689_v32 = vmax.f32 %v561_v24, 0.0  ;;  %v563_v33 = vadd.f32 %v2162_v59, %v428_v25 }
  0x93   : > { %v1650_v37 = vpack.c.bf16 %v684_v26, %v684_v26  ;;  %v1651_v38 = vpack.c.bf16 %v685_v27, %v685_v27  ;;  %v1652_v39 = vpack.c.bf16 %v686_v28, %v686_v28  ;;  %v690_v40 = vmax.f32 %v562_v29, 0.0 }
  0x94   : > { %v1653_v44 = vpack.c.bf16 %v687_v30, %v687_v30  ;;  %v1654_v45 = vpack.c.bf16 %v688_v31, %v688_v31  ;;  %v1655_v46 = vpack.c.bf16 %v689_v32, %v689_v32  ;;  %v691_v47 = vmax.f32 %v563_v33, 0.0 }
  0x95   : > { %1325 = vst.msk [vmem:[%s1757_s26 + $0x1c0] sm:$0xf] %vm1212_vm0, %v1650_v37  ;;  %1326 = vst.msk [vmem:[%s1757_s26 + $0x1c4] sm:$0xf] %vm1212_vm0, %v1651_v38  ;;  %v1656_v49 = vpack.c.bf16 %v690_v40, %v690_v40  ;;  %v429_v50 = vmul.f32 %v2181_v13, %v294_v34  ;;  %v430_v51 = vmul.f32 %v2181_v13, %v295_v35 }
  0x96   : > { %1327 = vst.msk [vmem:[%s1757_s26 + $0x1c8] sm:$0xf] %vm1212_vm0, %v1652_v39  ;;  %v431_v52 = vmul.f32 %v2181_v13, %v296_v36  ;;  %1328 = vst.msk [vmem:[%s1757_s26 + $0x1cc] sm:$0xf] %vm1212_vm0, %v1653_v44  ;;  %v1657_v54 = vpack.c.bf16 %v691_v47, %v691_v47  ;;  %v432_v55 = vmul.f32 %v2181_v13, %v297_v41 }
  0x97   : > { %1329 = vst.msk [vmem:[%s1757_s26 + $0x1d0] sm:$0xf] %vm1212_vm0, %v1654_v45  ;;  %1330 = vst.msk [vmem:[%s1757_s26 + $0x1d4] sm:$0xf] %vm1212_vm0, %v1655_v46  ;;  %v433_v56 = vmul.f32 %v2181_v13, %v298_v42  ;;  %v434_v57 = vmul.f32 %v2181_v13, %v299_v43  ;;  %v564_v58 = vadd.f32 %v2162_v59, %v429_v50 }
  0x98   : > { %1331 = vst.msk [vmem:[%s1757_s26 + $0x1d8] sm:$0xf] %vm1212_vm0, %v1656_v49  ;;  %v565_v60 = vadd.f32 %v2162_v59, %v430_v51  ;;  %v566_v0 = vadd.f32 %v2162_v59, %v431_v52  ;;  %v435_v61 = vmul.f32 %v2181_v13, %v300_v48  ;;  %1332 = vst.msk [vmem:[%s1757_s26 + $0x1dc] sm:$0xf] %vm1212_vm0, %v1657_v54 }
  0x99   : > { %v567_v62 = vadd.f32 %v2162_v59, %v432_v55  ;;  %v568_v63 = vadd.f32 %v2162_v59, %v433_v56  ;;  %v569_v2 = vadd.f32 %v2162_v59, %v434_v57  ;;  %v436_v1 = vmul.f32 %v2181_v13, %v301_v53 }
  0x9a   : > { %v692_v3 = vmax.f32 %v564_v58, 0.0  ;;  %v693_v4 = vmax.f32 %v565_v60, 0.0  ;;  %v694_v5 = vmax.f32 %v566_v0, 0.0  ;;  %v570_v6 = vadd.f32 %v2162_v59, %v435_v61 }
  0x9b   : > { %v695_v7 = vmax.f32 %v567_v62, 0.0  ;;  %v696_v8 = vmax.f32 %v568_v63, 0.0  ;;  %v697_v9 = vmax.f32 %v569_v2, 0.0  ;;  %v571_v10 = vadd.f32 %v2162_v59, %v436_v1 }
  0x9c   : > { %v1658_v11 = vpack.c.bf16 %v692_v3, %v692_v3  ;;  %v1659_v12 = vpack.c.bf16 %v693_v4, %v693_v4  ;;  %v1660_v13 = vpack.c.bf16 %v694_v5, %v694_v5  ;;  %v698_v14 = vmax.f32 %v570_v6, 0.0 }
  0x9d   : > { %v1661_v15 = vpack.c.bf16 %v695_v7, %v695_v7  ;;  %v1662_v16 = vpack.c.bf16 %v696_v8, %v696_v8  ;;  %v1663_v17 = vpack.c.bf16 %v697_v9, %v697_v9  ;;  %v699_v18 = vmax.f32 %v571_v10, 0.0 }
  0x9e   : > { %1333 = vst.msk [vmem:[%s1757_s26 + $0x1e0] sm:$0xf] %vm1212_vm0, %v1658_v11  ;;  %1334 = vst.msk [vmem:[%s1757_s26 + $0x1e4] sm:$0xf] %vm1212_vm0, %v1659_v12  ;;  %v1664_v19 = vpack.c.bf16 %v698_v14, %v698_v14 }
  0x9f   : > { %1335 = vst.msk [vmem:[%s1757_s26 + $0x1e8] sm:$0xf] %vm1212_vm0, %v1660_v13  ;;  %1336 = vst.msk [vmem:[%s1757_s26 + $0x1ec] sm:$0xf] %vm1212_vm0, %v1661_v15  ;;  %v1665_v59 = vpack.c.bf16 %v699_v18, %v699_v18 }
  0xa0   : > { %1337 = vst.msk [vmem:[%s1757_s26 + $0x1f0] sm:$0xf] %vm1212_vm0, %v1662_v16  ;;  %1338 = vst.msk [vmem:[%s1757_s26 + $0x1f4] sm:$0xf] %vm1212_vm0, %v1663_v17 }
  0xa1   : > { %1339 = vst.msk [vmem:[%s1757_s26 + $0x1f8] sm:$0xf] %vm1212_vm0, %v1664_v19  ;;  %1340 = vst.msk [vmem:[%s1757_s26 + $0x1fc] sm:$0xf] %vm1212_vm0, %v1665_v59 }
  0xa2 PF: > { %s13_s12 = sadd.s32 1, %s1682_s12  }
  0xa3   : > { %p10_p4 = scmp.ge.s32.totalorder %s13_s12, 4  }
  0xa5   :  { %12 = sbr.rel (!%p10_p4) target bundleno = 1 (0x1), region = 62 }

// kernel: generator_forward.25
= control target key start
LH: loop header
LB: loop body
LE: loop exit
PB: predicated region body
PF: predicated region fallthrough
CT: control target
= control target key end

     0   :  { %s2449_s15 = smov 0   ;;  %s2451_s16 = smov 0   ;;  %s2839_s0 = inlined_call_operand.vmem [shape: bf16[4,2048,256], index: 0, kind: input, shape index: {}]   ;;  %s2840_s1 = inlined_call_operand.vmem [shape: bf16[4,256,128], index: 1, kind: input, shape index: {}]   ;;  %s2841_s2 = inlined_call_operand.vmem [shape: f32[1,128], index: 2, kind: input, shape index: {}]   ;;  %s2842_s3 = inlined_call_operand.vmem [shape: f32[4,2048,128], index: 3, kind: output, shape index: {0}]   ;;  %s2843_s4 = inlined_call_operand.vmem [shape: f32[4,2048,128], index: 4, kind: output, shape index: {1}]  }
   0x1   :  { %s2453_s17 = smov 0   ;;  %s2455_s18 = smov 0  }
   0x2   :  { %s2457_s19 = smov 0  }
   0x3 LB: > { %s37_s20 = sadd.s32 1, %s2413_s17  ;;  %s41_s21 = sadd.s32 1, %s2417_s18  ;;  %s2421_s19 = sphi %s2457_s19, %s15_s19   ;;  %s2417_s18 = sphi %s2455_s18, %s2847_s18   ;;  %s2413_s17 = sphi %s2453_s17, %s2846_s17   ;;  %s2409_s16 = sphi %s2451_s16, %s2845_s16   ;;  %s2405_s15 = sphi %s2449_s15, %s2844_s15  }
   0x4   : > { %p39_p0 = scmp.ge.s32.totalorder %s37_s20, 4  ;;  %p1973_p1 = scmp.ge.s32.totalorder %s2421_s19, 1 }
   0x5   : > { %p244_p2 = scmp.lt.s32.totalorder %s2421_s19, 17 }
   0x6   : > { %s2849_s20 = smov (%p39_p0, %s37_s20), 0  ;;  %s2851_s21 = smov (!%p39_p0, %s41_s21), %s2417_s18 }
   0x7   : > { %p245_p3 = pnand %p1973_p1, %p244_p2  ;;  %p43_p4 = scmp.ge.s32.totalorder %s2851_s21, 4 }
   0x8   : > { %p315_p5 = scmp.lt.s32.totalorder (!%p245_p3), %s2409_s16, 3  ;;  %s1974_s22 = sshll.u32 (!%p245_p3), %s2405_s15, 6 }
   0x9   : > { %s2853_s21 = smov (%p43_p4, %s2851_s21), 0  ;;  %248 = sbr.rel (%p245_p3) target bundleno = 416 (0x1a0), region = 32 }
   0xa   : > { %p317_p6 = scmp.lt.s32.totalorder (!%p245_p3), %s1974_s22, 255 }
   0xe   : > { %v2423_v0 = vmov 0   ;;  %s2855_s16 = smov (!%p315_p5, %s2409_s16), 3  ;;  %s2857_s22 = smov (!%p317_p6, %s1974_s22), 255 }
   0xf   : > { %1016 = vmatprep.subr.bf16.mxu0 %v2423_v0  ;;  %2070 = vmatprep.subr.bf16.mxu1 %v2423_v0  ;;  %s2069_s23 = sshll.u32 %s2855_s16, 7  ;;  %s1975_s27 = sshll.u32 %s2857_s22, 1 }
  0x10   : > { %s2487_s26 = scalar_lea.vmem %s2840_s1, %s2069_s23  ;;  %s1976_s28 = sshll.u32 %s2855_s16, 9 }
  0x11   : > { %v2143_v1 = vld [vmem:[%s2487_s26 + $0x38] sm:$0xff]   ;;  %v2144_v2 = vld [vmem:[%s2487_s26 + $0x30] sm:$0xff]   ;;  %v2145_v3 = vld [vmem:[%s2487_s26 + $0x28] sm:$0xff]   ;;  %s324_s29 = sadd.s32 %s1976_s28, %s1975_s27  ;;  %s1981_s8 = sshll.u32 %s2855_s16, 8 }
  0x12   : > { %1017 = vmatpush1.bf16.msra.mxu0 %v2143_v1  ;;  %2086 = vmatpush1.bf16.msra.mxu1 %v2143_v1  ;;  %v2146_v4 = vld [vmem:[%s2487_s26 + $0x20] sm:$0xff]   ;;  %s1977_s30 = sshll.u32 %s324_s29, 2  ;;  %v2147_v5 = vld [vmem:[%s2487_s26 + $0x18] sm:$0xff]   ;;  %v2148_v7 = vld [vmem:[%s2487_s26 + $0x10] sm:$0xff]   ;;  %s2546_s9 = sadd.s32 %s1981_s8, %s2857_s22 }
  0x13   : > { %1018 = vmatprep.subr.bf16.mxu0 %v2423_v0  ;;  %2071 = vmatprep.subr.bf16.mxu1 %v2423_v0  ;;  %s2507_s7 = scalar_lea.vmem %s2839_s0, %s1977_s30  ;;  %v2149_v9 = vld [vmem:[%s2487_s26 + $0x8] sm:$0xff]   ;;  %v2150_v10 = vld [vmem:[%s2487_s26] sm:$0xff]   ;;  %v2151_v11 = vld [vmem:[%s2487_s26 + $0x78] sm:$0xff]   ;;  %s1982_s10 = sshll.u32 %s2546_s9, 3 }
  0x14   : > { %v2161_v6 = vld [vmem:[%s2507_s7 + $0x4] ss:$8 sps:$4 sm:$0xff]   ;;  %v2152_v12 = vld [vmem:[%s2487_s26 + $0x70] sm:$0xff]   ;;  %v2155_v15 = vld [vmem:[%s2487_s26 + $0x58] sm:$0xff]   ;;  %s2623_s15 = scalar_lea.vmem %s2842_s3, %s1982_s10  ;;  %s2644_s23 = scalar_lea.vmem %s2843_s4, %s1982_s10 }
  0x15   : > { %v2164_v8 = vld [vmem:[%s2507_s7 + $0x104] ss:$8 sps:$4 sm:$0xff]   ;;  %1048 = vmatprep.mubr.bf16.mxu0 %v2161_v6  ;;  %v2156_v16 = vld [vmem:[%s2487_s26 + $0x50] sm:$0xff]   ;;  %v2159_v19 = vld [vmem:[%s2507_s7] ss:$8 sps:$4 sm:$0xff]  }
  0x16   : > { %1019 = vmatpush1.bf16.msra.mxu0 %v2144_v2  ;;  %2087 = vmatpush1.bf16.msra.mxu1 %v2144_v2  ;;  %v2153_v13 = vld [vmem:[%s2487_s26 + $0x68] sm:$0xff]   ;;  %v2154_v14 = vld [vmem:[%s2487_s26 + $0x60] sm:$0xff]   ;;  %v2165_v21 = vld [vmem:[%s2507_s7 + $0x14] ss:$8 sps:$4 sm:$0xff]  }
  0x17   : > { %1020 = vmatprep.subr.bf16.mxu0 %v2423_v0  ;;  %2072 = vmatprep.subr.bf16.mxu1 %v2423_v0  ;;  %v2157_v17 = vld [vmem:[%s2487_s26 + $0x48] sm:$0xff]   ;;  %v2158_v18 = vld [vmem:[%s2487_s26 + $0x40] sm:$0xff]   ;;  %v2167_v22 = vld [vmem:[%s2507_s7 + $0x114] ss:$8 sps:$4 sm:$0xff]  }
  0x18   : > { %1176 = vmatprep.mubr.bf16.mxu1 %v2164_v8  ;;  %v2162_v20 = vld [vmem:[%s2507_s7 + $0x100] ss:$8 sps:$4 sm:$0xff]   ;;  %v2169_v23 = vld [vmem:[%s2507_s7 + $0x10] ss:$8 sps:$4 sm:$0xff]   ;;  %v2171_v25 = vld [vmem:[%s2507_s7 + $0x24] ss:$8 sps:$4 sm:$0xff]  }
  0x19   : > { %v2170_v24 = vld [vmem:[%s2507_s7 + $0x110] ss:$8 sps:$4 sm:$0xff]   ;;  %v2173_v26 = vld [vmem:[%s2507_s7 + $0x124] ss:$8 sps:$4 sm:$0xff]   ;;  %v2175_v27 = vld [vmem:[%s2507_s7 + $0x20] ss:$8 sps:$4 sm:$0xff]  }
  0x1a   : > { %1021 = vmatpush1.bf16.msra.mxu0 %v2145_v3  ;;  %2088 = vmatpush1.bf16.msra.mxu1 %v2145_v3  ;;  %v2176_v28 = vld [vmem:[%s2507_s7 + $0x120] ss:$8 sps:$4 sm:$0xff]   ;;  %v2177_v29 = vld [vmem:[%s2507_s7 + $0x34] ss:$8 sps:$4 sm:$0xff]   ;;  %v2181_v31 = vld [vmem:[%s2507_s7 + $0x30] ss:$8 sps:$4 sm:$0xff]  }
  0x1b   : > { %1022 = vmatprep.subr.bf16.mxu0 %v2423_v0  ;;  %2073 = vmatprep.subr.bf16.mxu1 %v2423_v0  ;;  %v2179_v30 = vld [vmem:[%s2507_s7 + $0x134] ss:$8 sps:$4 sm:$0xff]   ;;  %v2182_v32 = vld [vmem:[%s2507_s7 + $0x130] ss:$8 sps:$4 sm:$0xff]   ;;  %v2183_v33 = vld [vmem:[%s2507_s7 + $0x44] ss:$8 sps:$4 sm:$0xff]  }
  0x1c   : > { %v2185_v34 = vld [vmem:[%s2507_s7 + $0x144] ss:$8 sps:$4 sm:$0xff]   ;;  %v2187_v35 = vld [vmem:[%s2507_s7 + $0x40] ss:$8 sps:$4 sm:$0xff]   ;;  %v2189_v37 = vld [vmem:[%s2507_s7 + $0x54] ss:$8 sps:$4 sm:$0xff]  }
  0x1d   : > { %v2188_v36 = vld [vmem:[%s2507_s7 + $0x140] ss:$8 sps:$4 sm:$0xff]   ;;  %v2191_v38 = vld [vmem:[%s2507_s7 + $0x154] ss:$8 sps:$4 sm:$0xff]   ;;  %v2193_v39 = vld [vmem:[%s2507_s7 + $0x50] ss:$8 sps:$4 sm:$0xff]  }
  0x1e   : > { %1023 = vmatpush1.bf16.msra.mxu0 %v2146_v4  ;;  %2089 = vmatpush1.bf16.msra.mxu1 %v2146_v4  ;;  %v2194_v40 = vld [vmem:[%s2507_s7 + $0x150] ss:$8 sps:$4 sm:$0xff]   ;;  %v2195_v41 = vld [vmem:[%s2507_s7 + $0x64] ss:$8 sps:$4 sm:$0xff]   ;;  %v2199_v43 = vld [vmem:[%s2507_s7 + $0x60] ss:$8 sps:$4 sm:$0xff]  }
  0x1f   : > { %1024 = vmatprep.subr.bf16.mxu0 %v2423_v0  ;;  %2074 = vmatprep.subr.bf16.mxu1 %v2423_v0  ;;  %v2197_v42 = vld [vmem:[%s2507_s7 + $0x164] ss:$8 sps:$4 sm:$0xff]   ;;  %v2200_v44 = vld [vmem:[%s2507_s7 + $0x160] ss:$8 sps:$4 sm:$0xff]   ;;  %v2201_v45 = vld [vmem:[%s2507_s7 + $0x74] ss:$8 sps:$4 sm:$0xff]  }
  0x20   : > { %v2203_v46 = vld [vmem:[%s2507_s7 + $0x174] ss:$8 sps:$4 sm:$0xff]   ;;  %v2205_v47 = vld [vmem:[%s2507_s7 + $0x70] ss:$8 sps:$4 sm:$0xff]   ;;  %v2207_v49 = vld [vmem:[%s2507_s7 + $0x84] ss:$8 sps:$4 sm:$0xff]  }
  0x21   : > { %v2206_v48 = vld [vmem:[%s2507_s7 + $0x170] ss:$8 sps:$4 sm:$0xff]   ;;  %v2209_v50 = vld [vmem:[%s2507_s7 + $0x184] ss:$8 sps:$4 sm:$0xff]   ;;  %v2211_v51 = vld [vmem:[%s2507_s7 + $0x80] ss:$8 sps:$4 sm:$0xff]  }
  0x22   : > { %1025 = vmatpush1.bf16.msra.mxu0 %v2147_v5  ;;  %2090 = vmatpush1.bf16.msra.mxu1 %v2147_v5  ;;  %v2212_v52 = vld [vmem:[%s2507_s7 + $0x180] ss:$8 sps:$4 sm:$0xff]   ;;  %v2213_v53 = vld [vmem:[%s2507_s7 + $0x94] ss:$8 sps:$4 sm:$0xff]   ;;  %v2217_v55 = vld [vmem:[%s2507_s7 + $0x90] ss:$8 sps:$4 sm:$0xff]  }
  0x23   : > { %1026 = vmatprep.subr.bf16.mxu0 %v2423_v0  ;;  %2075 = vmatprep.subr.bf16.mxu1 %v2423_v0  ;;  %v2215_v54 = vld [vmem:[%s2507_s7 + $0x194] ss:$8 sps:$4 sm:$0xff]   ;;  %v2218_v56 = vld [vmem:[%s2507_s7 + $0x190] ss:$8 sps:$4 sm:$0xff]   ;;  %v2219_v57 = vld [vmem:[%s2507_s7 + $0xa4] ss:$8 sps:$4 sm:$0xff]  }
  0x24   : > { %v2221_v58 = vld [vmem:[%s2507_s7 + $0x1a4] ss:$8 sps:$4 sm:$0xff]   ;;  %v2223_v59 = vld [vmem:[%s2507_s7 + $0xa0] ss:$8 sps:$4 sm:$0xff]   ;;  %v2225_v61 = vld [vmem:[%s2507_s7 + $0xb4] ss:$8 sps:$4 sm:$0xff]  }
  0x25   : > { %v2224_v60 = vld [vmem:[%s2507_s7 + $0x1a0] ss:$8 sps:$4 sm:$0xff]   ;;  %v2227_v62 = vld [vmem:[%s2507_s7 + $0x1b4] ss:$8 sps:$4 sm:$0xff]   ;;  %v2229_v63 = vld [vmem:[%s2507_s7 + $0xb0] ss:$8 sps:$4 sm:$0xff]  }
  0x26   : > { %1027 = vmatpush1.bf16.msra.mxu0 %v2148_v7  ;;  %2091 = vmatpush1.bf16.msra.mxu1 %v2148_v7  ;;  %v2231_v1 = vld [vmem:[%s2507_s7 + $0xc4] ss:$8 sps:$4 sm:$0xff]   ;;  %v2235_v3 = vld [vmem:[%s2507_s7 + $0xc0] ss:$8 sps:$4 sm:$0xff]   ;;  %v2237_v5 = vld [vmem:[%s2507_s7 + $0xd4] ss:$8 sps:$4 sm:$0xff]  }
  0x27   : > { %1028 = vmatprep.subr.bf16.mxu0 %v2423_v0  ;;  %2076 = vmatprep.subr.bf16.mxu1 %v2423_v0  ;;  %v2233_v2 = vld [vmem:[%s2507_s7 + $0x1c4] ss:$8 sps:$4 sm:$0xff]   ;;  %v2236_v4 = vld [vmem:[%s2507_s7 + $0x1c0] ss:$8 sps:$4 sm:$0xff]   ;;  %v2239_v6 = vld [vmem:[%s2507_s7 + $0x1d4] ss:$8 sps:$4 sm:$0xff]  }
  0x28   : > { %v2241_v7 = vld [vmem:[%s2507_s7 + $0xd0] ss:$8 sps:$4 sm:$0xff]  }
  0x29   : > { %v2242_v8 = vld [vmem:[%s2507_s7 + $0x1d0] ss:$8 sps:$4 sm:$0xff]  }
  0x2a   : > { %1029 = vmatpush1.bf16.msra.mxu0 %v2149_v9  ;;  %2092 = vmatpush1.bf16.msra.mxu1 %v2149_v9  ;;  %v2243_v9 = vld [vmem:[%s2507_s7 + $0xe4] ss:$8 sps:$4 sm:$0xff]  }
  0x2b   : > { %1030 = vmatprep.subr.bf16.mxu0 %v2423_v0  ;;  %2077 = vmatprep.subr.bf16.mxu1 %v2423_v0 }
  0x2e   : > { %1031 = vmatpush1.bf16.msra.mxu0 %v2150_v10  ;;  %2093 = vmatpush1.bf16.msra.mxu1 %v2150_v10  ;;  %v2245_v10 = vld [vmem:[%s2507_s7 + $0x1e4] ss:$8 sps:$4 sm:$0xff]  }
  0x2f   : > { %1032 = vmatprep.subr.bf16.mxu0 %v2423_v0  ;;  %2078 = vmatprep.subr.bf16.mxu1 %v2423_v0 }
  0x32   : > { %1033 = vmatpush2.bf16.msra.mxu0 %v2151_v11  ;;  %2094 = vmatpush2.bf16.msra.mxu1 %v2151_v11  ;;  %v2247_v11 = vld [vmem:[%s2507_s7 + $0xe0] ss:$8 sps:$4 sm:$0xff]  }
  0x33   : > { %1034 = vmatprep.subr.bf16.mxu0 %v2423_v0  ;;  %2079 = vmatprep.subr.bf16.mxu1 %v2423_v0 }
  0x36   : > { %1035 = vmatpush2.bf16.msra.mxu0 %v2152_v12  ;;  %2095 = vmatpush2.bf16.msra.mxu1 %v2152_v12  ;;  %v2248_v12 = vld [vmem:[%s2507_s7 + $0x1e0] ss:$8 sps:$4 sm:$0xff]  }
  0x37   : > { %1036 = vmatprep.subr.bf16.mxu0 %v2423_v0  ;;  %2080 = vmatprep.subr.bf16.mxu1 %v2423_v0 }
  0x3a   : > { %1037 = vmatpush2.bf16.msra.mxu0 %v2153_v13  ;;  %2096 = vmatpush2.bf16.msra.mxu1 %v2153_v13  ;;  %v2249_v13 = vld [vmem:[%s2507_s7 + $0xf4] ss:$8 sps:$4 sm:$0xff]  }
  0x3b   : > { %1038 = vmatprep.subr.bf16.mxu0 %v2423_v0  ;;  %2081 = vmatprep.subr.bf16.mxu1 %v2423_v0 }
  0x3e   : > { %1039 = vmatpush2.bf16.msra.mxu0 %v2154_v14  ;;  %2097 = vmatpush2.bf16.msra.mxu1 %v2154_v14  ;;  %v2251_v14 = vld [vmem:[%s2507_s7 + $0x1f4] ss:$8 sps:$4 sm:$0xff]  }
  0x3f   : > { %1040 = vmatprep.subr.bf16.mxu0 %v2423_v0  ;;  %2082 = vmatprep.subr.bf16.mxu1 %v2423_v0 }
  0x42   : > { %1041 = vmatpush2.bf16.msra.mxu0 %v2155_v15  ;;  %2098 = vmatpush2.bf16.msra.mxu1 %v2155_v15  ;;  %v2253_v15 = vld [vmem:[%s2507_s7 + $0xf0] ss:$8 sps:$4 sm:$0xff]  }
  0x43   : > { %1042 = vmatprep.subr.bf16.mxu0 %v2423_v0  ;;  %2083 = vmatprep.subr.bf16.mxu1 %v2423_v0 }
  0x46   : > { %1043 = vmatpush2.bf16.msra.mxu0 %v2156_v16  ;;  %2099 = vmatpush2.bf16.msra.mxu1 %v2156_v16  ;;  %v2254_v16 = vld [vmem:[%s2507_s7 + $0x1f0] ss:$8 sps:$4 sm:$0xff]  }
  0x47   : > { %1044 = vmatprep.subr.bf16.mxu0 %v2423_v0  ;;  %2084 = vmatprep.subr.bf16.mxu1 %v2423_v0 }
  0x4a   : > { %1045 = vmatpush2.bf16.msra.mxu0 %v2157_v17  ;;  %2100 = vmatpush2.bf16.msra.mxu1 %v2157_v17  ;;  %v2616_v17 = vld [vmem:[%s2841_s2] ss:$0 sm:$0xff] }
  0x4b   : > { %1046 = vmatprep.subr.bf16.mxu0 %v2423_v0  ;;  %2085 = vmatprep.subr.bf16.mxu1 %v2423_v0  ;;  %v2230_v0 = vld [vmem:[%s2507_s7 + $0x1b0] ss:$8 sps:$4 sm:$0xff]  }
  0x4e   : > { %1047 = vmatpush2.bf16.msra.mxu0 %v2158_v18  ;;  %2101 = vmatpush2.bf16.msra.mxu1 %v2158_v18 }
  0x51   : > { %1049 = vmatmul.mubr.bf16.vlgmr.msra.gmra.mxu0 %v2159_v19  ;;  %1177 = vmatmul.mubr.bf16.vlgmr.msra.gmra.mxu1 %v2162_v20 }
  0x52   : > { %1056 = vmatprep.mubr.bf16.mxu0 %v2165_v21  ;;  %1184 = vmatprep.mubr.bf16.mxu1 %v2167_v22 }
  0x59   : > { %1057 = vmatmul.mubr.bf16.gmra.mxu0 %v2169_v23  ;;  %1185 = vmatmul.mubr.bf16.gmra.mxu1 %v2170_v24 }
  0x5a   : > { %1064 = vmatprep.mubr.bf16.mxu0 %v2171_v25  ;;  %1192 = vmatprep.mubr.bf16.mxu1 %v2173_v26 }
  0x61   : > { %1065 = vmatmul.mubr.bf16.gmra.mxu0 %v2175_v27  ;;  %1193 = vmatmul.mubr.bf16.gmra.mxu1 %v2176_v28 }
  0x62   : > { %1072 = vmatprep.mubr.bf16.mxu0 %v2177_v29  ;;  %1200 = vmatprep.mubr.bf16.mxu1 %v2179_v30 }
  0x69   : > { %1073 = vmatmul.mubr.bf16.gmra.mxu0 %v2181_v31  ;;  %1201 = vmatmul.mubr.bf16.gmra.mxu1 %v2182_v32 }
  0x6a   : > { %1080 = vmatprep.mubr.bf16.mxu0 %v2183_v33  ;;  %1208 = vmatprep.mubr.bf16.mxu1 %v2185_v34 }
  0x71   : > { %1081 = vmatmul.mubr.bf16.gmra.mxu0 %v2187_v35  ;;  %1209 = vmatmul.mubr.bf16.gmra.mxu1 %v2188_v36 }
  0x72   : > { %1088 = vmatprep.mubr.bf16.mxu0 %v2189_v37  ;;  %1216 = vmatprep.mubr.bf16.mxu1 %v2191_v38 }
  0x79   : > { %1089 = vmatmul.mubr.bf16.gmra.mxu0 %v2193_v39  ;;  %1217 = vmatmul.mubr.bf16.gmra.mxu1 %v2194_v40 }
  0x7a   : > { %1096 = vmatprep.mubr.bf16.mxu0 %v2195_v41  ;;  %1224 = vmatprep.mubr.bf16.mxu1 %v2197_v42 }
  0x81   : > { %1097 = vmatmul.mubr.bf16.gmra.mxu0 %v2199_v43  ;;  %1225 = vmatmul.mubr.bf16.gmra.mxu1 %v2200_v44 }
  0x82   : > { %1104 = vmatprep.mubr.bf16.mxu0 %v2201_v45  ;;  %1232 = vmatprep.mubr.bf16.mxu1 %v2203_v46 }
  0x89   : > { %1105 = vmatmul.mubr.bf16.gmra.mxu0 %v2205_v47  ;;  %1233 = vmatmul.mubr.bf16.gmra.mxu1 %v2206_v48 }
  0x8a   : > { %1112 = vmatprep.mubr.bf16.mxu0 %v2207_v49  ;;  %1240 = vmatprep.mubr.bf16.mxu1 %v2209_v50 }
  0x91   : > { %1113 = vmatmul.mubr.bf16.gmra.mxu0 %v2211_v51  ;;  %1241 = vmatmul.mubr.bf16.gmra.mxu1 %v2212_v52 }
  0x92   : > { %1120 = vmatprep.mubr.bf16.mxu0 %v2213_v53  ;;  %1248 = vmatprep.mubr.bf16.mxu1 %v2215_v54 }
  0x99   : > { %1121 = vmatmul.mubr.bf16.gmra.mxu0 %v2217_v55  ;;  %1249 = vmatmul.mubr.bf16.gmra.mxu1 %v2218_v56 }
  0x9a   : > { %1128 = vmatprep.mubr.bf16.mxu0 %v2219_v57  ;;  %1256 = vmatprep.mubr.bf16.mxu1 %v2221_v58 }
  0xa1   : > { %1129 = vmatmul.mubr.bf16.gmra.mxu0 %v2223_v59  ;;  %1257 = vmatmul.mubr.bf16.gmra.mxu1 %v2224_v60 }
  0xa2   : > { %1136 = vmatprep.mubr.bf16.mxu0 %v2225_v61  ;;  %1264 = vmatprep.mubr.bf16.mxu1 %v2227_v62 }
  0xa9   : > { %1137 = vmatmul.mubr.bf16.gmra.mxu0 %v2229_v63  ;;  %1265 = vmatmul.mubr.bf16.gmra.mxu1 %v2230_v0 }
  0xaa   : > { %1144 = vmatprep.mubr.bf16.mxu0 %v2231_v1  ;;  %1272 = vmatprep.mubr.bf16.mxu1 %v2233_v2 }
  0xb1   : > { %1145 = vmatmul.mubr.bf16.gmra.mxu0 %v2235_v3  ;;  %1273 = vmatmul.mubr.bf16.gmra.mxu1 %v2236_v4 }
  0xb2   : > { %1152 = vmatprep.mubr.bf16.mxu0 %v2237_v5  ;;  %1280 = vmatprep.mubr.bf16.mxu1 %v2239_v6 }
  0xb9   : > { %1153 = vmatmul.mubr.bf16.gmra.mxu0 %v2241_v7  ;;  %1281 = vmatmul.mubr.bf16.gmra.mxu1 %v2242_v8 }
  0xba   : > { %1160 = vmatprep.mubr.bf16.mxu0 %v2243_v9  ;;  %1288 = vmatprep.mubr.bf16.mxu1 %v2245_v10 }
  0xc1   : > { %1161 = vmatmul.mubr.bf16.gmra.mxu0 %v2247_v11  ;;  %1289 = vmatmul.mubr.bf16.gmra.mxu1 %v2248_v12 }
  0xc2   : > { %1168 = vmatprep.mubr.bf16.mxu0 %v2249_v13  ;;  %1296 = vmatprep.mubr.bf16.mxu1 %v2251_v14 }
  0xc9   : > { %1169 = vmatmul.mubr.bf16.gmra.mxu0 %v2253_v15  ;;  %1297 = vmatmul.mubr.bf16.gmra.mxu1 %v2254_v16 }
 0x111   : > { %v1050_v18 = vpop.f32.mrf.mxu0  ;;  %v1178_v19 = vpop.f32.mrf.mxu1 }
 0x112   : > { %v1507_v20 = vadd.f32 %v2616_v17, %v1050_v18  ;;  %v1539_v21 = vadd.f32 %v2616_v17, %v1178_v19 }
 0x113   : > { %v1052_v22 = vpop.f32.mrf.mxu0  ;;  %v1180_v23 = vpop.f32.mrf.mxu1 }
 0x114   : > { %1571 = vst [vmem:[%s2623_s15] sm:$0xff] %v1507_v20  ;;  %2255 = vtanh.f32 %v1507_v20  ;;  %1603 = vst [vmem:[%s2623_s15 + $0x100] sm:$0xff] %v1539_v21 }
 0x115   : > { %2257 = vtanh.f32 %v1539_v21  ;;  %v1053_v24 = vpop.f32.mrf.mxu0  ;;  %v1181_v25 = vpop.f32.mrf.mxu1 }
 0x116   : > { %v1508_v26 = vadd.f32 %v2616_v17, %v1053_v24  ;;  %v1540_v27 = vadd.f32 %v2616_v17, %v1181_v25 }
 0x117   : > { %v1055_v28 = vpop.f32.mrf.mxu0  ;;  %v1183_v29 = vpop.f32.mrf.mxu1 }
 0x118   : > { %1572 = vst [vmem:[%s2623_s15 + $0x8] sm:$0xff] %v1508_v26  ;;  %2259 = vtanh.f32 %v1508_v26  ;;  %1604 = vst [vmem:[%s2623_s15 + $0x108] sm:$0xff] %v1540_v27 }
 0x119   : > { %2261 = vtanh.f32 %v1540_v27  ;;  %v1058_v30 = vpop.f32.mrf.mxu0  ;;  %v1186_v31 = vpop.f32.mrf.mxu1 }
 0x11a   : > { %v1509_v32 = vadd.f32 %v2616_v17, %v1058_v30  ;;  %v1541_v33 = vadd.f32 %v2616_v17, %v1186_v31 }
 0x11b   : > { %v1060_v34 = vpop.f32.mrf.mxu0  ;;  %v1188_v35 = vpop.f32.mrf.mxu1 }
 0x11c   : > { %1573 = vst [vmem:[%s2623_s15 + $0x10] sm:$0xff] %v1509_v32  ;;  %2263 = vtanh.f32 %v1509_v32  ;;  %1605 = vst [vmem:[%s2623_s15 + $0x110] sm:$0xff] %v1541_v33 }
 0x11d   : > { %2265 = vtanh.f32 %v1541_v33  ;;  %v1061_v36 = vpop.f32.mrf.mxu0  ;;  %v1189_v37 = vpop.f32.mrf.mxu1 }
 0x11e   : > { %v1510_v38 = vadd.f32 %v2616_v17, %v1061_v36  ;;  %v1542_v39 = vadd.f32 %v2616_v17, %v1189_v37 }
 0x11f   : > { %v1063_v40 = vpop.f32.mrf.mxu0  ;;  %v1191_v41 = vpop.f32.mrf.mxu1 }
 0x120   : > { %1574 = vst [vmem:[%s2623_s15 + $0x18] sm:$0xff] %v1510_v38  ;;  %2267 = vtanh.f32 %v1510_v38  ;;  %1606 = vst [vmem:[%s2623_s15 + $0x118] sm:$0xff] %v1542_v39 }
 0x121   : > { %v2256_v42 = vpop.eup %2255  ;;  %2269 = vtanh.f32 %v1542_v39  ;;  %v1066_v43 = vpop.f32.mrf.mxu0 }
 0x122   : > { %v1194_v44 = vpop.f32.mrf.mxu1  ;;  %v2258_v45 = vpop.eup %2257  ;;  %1699 = vst [vmem:[%s2644_s23] sm:$0xff] %v2256_v42  ;;  %v1511_v46 = vadd.f32 %v2616_v17, %v1066_v43 }
 0x123   : > { %v1543_v47 = vadd.f32 %v2616_v17, %v1194_v44  ;;  %1731 = vst [vmem:[%s2644_s23 + $0x100] sm:$0xff] %v2258_v45  ;;  %v1068_v48 = vpop.f32.mrf.mxu0 }
 0x124   : > { %v1196_v49 = vpop.f32.mrf.mxu1  ;;  %1575 = vst [vmem:[%s2623_s15 + $0x20] sm:$0xff] %v1511_v46  ;;  %2271 = vtanh.f32 %v1511_v46 }
 0x125   : > { %1607 = vst [vmem:[%s2623_s15 + $0x120] sm:$0xff] %v1543_v47  ;;  %v2260_v50 = vpop.eup %2259  ;;  %2273 = vtanh.f32 %v1543_v47  ;;  %v1069_v51 = vpop.f32.mrf.mxu0 }
 0x126   : > { %v1197_v52 = vpop.f32.mrf.mxu1  ;;  %v2262_v53 = vpop.eup %2261  ;;  %1700 = vst [vmem:[%s2644_s23 + $0x8] sm:$0xff] %v2260_v50  ;;  %v1512_v54 = vadd.f32 %v2616_v17, %v1069_v51 }
 0x127   : > { %v1544_v55 = vadd.f32 %v2616_v17, %v1197_v52  ;;  %1732 = vst [vmem:[%s2644_s23 + $0x108] sm:$0xff] %v2262_v53  ;;  %v1071_v56 = vpop.f32.mrf.mxu0 }
 0x128   : > { %v1199_v57 = vpop.f32.mrf.mxu1  ;;  %1576 = vst [vmem:[%s2623_s15 + $0x28] sm:$0xff] %v1512_v54  ;;  %2275 = vtanh.f32 %v1512_v54 }
 0x129   : > { %1608 = vst [vmem:[%s2623_s15 + $0x128] sm:$0xff] %v1544_v55  ;;  %v2264_v58 = vpop.eup %2263  ;;  %2277 = vtanh.f32 %v1544_v55  ;;  %v1074_v59 = vpop.f32.mrf.mxu0 }
 0x12a   : > { %v1202_v60 = vpop.f32.mrf.mxu1  ;;  %v2266_v61 = vpop.eup %2265  ;;  %1701 = vst [vmem:[%s2644_s23 + $0x10] sm:$0xff] %v2264_v58  ;;  %v1513_v62 = vadd.f32 %v2616_v17, %v1074_v59 }
 0x12b   : > { %v1545_v63 = vadd.f32 %v2616_v17, %v1202_v60  ;;  %1733 = vst [vmem:[%s2644_s23 + $0x110] sm:$0xff] %v2266_v61  ;;  %v1076_v0 = vpop.f32.mrf.mxu0 }
 0x12c   : > { %v1204_v1 = vpop.f32.mrf.mxu1  ;;  %1577 = vst [vmem:[%s2623_s15 + $0x30] sm:$0xff] %v1513_v62  ;;  %2279 = vtanh.f32 %v1513_v62 }
 0x12d   : > { %1609 = vst [vmem:[%s2623_s15 + $0x130] sm:$0xff] %v1545_v63  ;;  %v2268_v2 = vpop.eup %2267  ;;  %2281 = vtanh.f32 %v1545_v63  ;;  %v1077_v3 = vpop.f32.mrf.mxu0 }
 0x12e   : > { %v1205_v4 = vpop.f32.mrf.mxu1  ;;  %v2270_v5 = vpop.eup %2269  ;;  %1702 = vst [vmem:[%s2644_s23 + $0x18] sm:$0xff] %v2268_v2  ;;  %v1514_v6 = vadd.f32 %v2616_v17, %v1077_v3 }
 0x12f   : > { %v1546_v7 = vadd.f32 %v2616_v17, %v1205_v4  ;;  %1734 = vst [vmem:[%s2644_s23 + $0x118] sm:$0xff] %v2270_v5  ;;  %v1079_v8 = vpop.f32.mrf.mxu0 }
 0x130   : > { %v1207_v9 = vpop.f32.mrf.mxu1  ;;  %1578 = vst [vmem:[%s2623_s15 + $0x38] sm:$0xff] %v1514_v6  ;;  %2283 = vtanh.f32 %v1514_v6 }
 0x131   : > { %1610 = vst [vmem:[%s2623_s15 + $0x138] sm:$0xff] %v1546_v7  ;;  %v2272_v10 = vpop.eup %2271  ;;  %2285 = vtanh.f32 %v1546_v7  ;;  %v1082_v11 = vpop.f32.mrf.mxu0 }
 0x132   : > { %v1210_v12 = vpop.f32.mrf.mxu1  ;;  %v2274_v13 = vpop.eup %2273  ;;  %1703 = vst [vmem:[%s2644_s23 + $0x20] sm:$0xff] %v2272_v10  ;;  %v1515_v14 = vadd.f32 %v2616_v17, %v1082_v11 }
 0x133   : > { %v1547_v15 = vadd.f32 %v2616_v17, %v1210_v12  ;;  %1735 = vst [vmem:[%s2644_s23 + $0x120] sm:$0xff] %v2274_v13  ;;  %v1084_v16 = vpop.f32.mrf.mxu0 }
 0x134   : > { %v1212_v18 = vpop.f32.mrf.mxu1  ;;  %1579 = vst [vmem:[%s2623_s15 + $0x40] sm:$0xff] %v1515_v14  ;;  %2287 = vtanh.f32 %v1515_v14 }
 0x135   : > { %1611 = vst [vmem:[%s2623_s15 + $0x140] sm:$0xff] %v1547_v15  ;;  %v2276_v19 = vpop.eup %2275  ;;  %2289 = vtanh.f32 %v1547_v15  ;;  %v1085_v20 = vpop.f32.mrf.mxu0 }
 0x136   : > { %v1213_v21 = vpop.f32.mrf.mxu1  ;;  %v2278_v22 = vpop.eup %2277  ;;  %1704 = vst [vmem:[%s2644_s23 + $0x28] sm:$0xff] %v2276_v19  ;;  %v1516_v23 = vadd.f32 %v2616_v17, %v1085_v20 }
 0x137   : > { %v1548_v24 = vadd.f32 %v2616_v17, %v1213_v21  ;;  %1736 = vst [vmem:[%s2644_s23 + $0x128] sm:$0xff] %v2278_v22  ;;  %v1087_v25 = vpop.f32.mrf.mxu0 }
 0x138   : > { %v1215_v26 = vpop.f32.mrf.mxu1  ;;  %1580 = vst [vmem:[%s2623_s15 + $0x48] sm:$0xff] %v1516_v23  ;;  %2291 = vtanh.f32 %v1516_v23 }
 0x139   : > { %1612 = vst [vmem:[%s2623_s15 + $0x148] sm:$0xff] %v1548_v24  ;;  %v2280_v27 = vpop.eup %2279  ;;  %2293 = vtanh.f32 %v1548_v24  ;;  %v1090_v28 = vpop.f32.mrf.mxu0 }
 0x13a   : > { %v1218_v29 = vpop.f32.mrf.mxu1  ;;  %v2282_v30 = vpop.eup %2281  ;;  %1705 = vst [vmem:[%s2644_s23 + $0x30] sm:$0xff] %v2280_v27  ;;  %v1517_v31 = vadd.f32 %v2616_v17, %v1090_v28 }
 0x13b   : > { %v1549_v32 = vadd.f32 %v2616_v17, %v1218_v29  ;;  %1737 = vst [vmem:[%s2644_s23 + $0x130] sm:$0xff] %v2282_v30  ;;  %v1092_v33 = vpop.f32.mrf.mxu0 }
 0x13c   : > { %v1220_v34 = vpop.f32.mrf.mxu1  ;;  %1581 = vst [vmem:[%s2623_s15 + $0x50] sm:$0xff] %v1517_v31  ;;  %2295 = vtanh.f32 %v1517_v31 }
 0x13d   : > { %1613 = vst [vmem:[%s2623_s15 + $0x150] sm:$0xff] %v1549_v32  ;;  %v2284_v35 = vpop.eup %2283  ;;  %2297 = vtanh.f32 %v1549_v32  ;;  %v1093_v36 = vpop.f32.mrf.mxu0 }
 0x13e   : > { %v1221_v37 = vpop.f32.mrf.mxu1  ;;  %v2286_v38 = vpop.eup %2285  ;;  %1706 = vst [vmem:[%s2644_s23 + $0x38] sm:$0xff] %v2284_v35  ;;  %v1518_v39 = vadd.f32 %v2616_v17, %v1093_v36 }
 0x13f   : > { %v1550_v40 = vadd.f32 %v2616_v17, %v1221_v37  ;;  %1738 = vst [vmem:[%s2644_s23 + $0x138] sm:$0xff] %v2286_v38  ;;  %v1095_v41 = vpop.f32.mrf.mxu0 }
 0x140   : > { %v1223_v42 = vpop.f32.mrf.mxu1  ;;  %1582 = vst [vmem:[%s2623_s15 + $0x58] sm:$0xff] %v1518_v39  ;;  %2299 = vtanh.f32 %v1518_v39 }
 0x141   : > { %1614 = vst [vmem:[%s2623_s15 + $0x158] sm:$0xff] %v1550_v40  ;;  %v2288_v43 = vpop.eup %2287  ;;  %2301 = vtanh.f32 %v1550_v40  ;;  %v1098_v44 = vpop.f32.mrf.mxu0 }
 0x142   : > { %v1226_v45 = vpop.f32.mrf.mxu1  ;;  %v2290_v46 = vpop.eup %2289  ;;  %1707 = vst [vmem:[%s2644_s23 + $0x40] sm:$0xff] %v2288_v43  ;;  %v1519_v47 = vadd.f32 %v2616_v17, %v1098_v44 }
 0x143   : > { %v1551_v48 = vadd.f32 %v2616_v17, %v1226_v45  ;;  %1739 = vst [vmem:[%s2644_s23 + $0x140] sm:$0xff] %v2290_v46  ;;  %v1100_v49 = vpop.f32.mrf.mxu0 }
 0x144   : > { %v1228_v50 = vpop.f32.mrf.mxu1  ;;  %1583 = vst [vmem:[%s2623_s15 + $0x60] sm:$0xff] %v1519_v47  ;;  %2303 = vtanh.f32 %v1519_v47 }
 0x145   : > { %1615 = vst [vmem:[%s2623_s15 + $0x160] sm:$0xff] %v1551_v48  ;;  %v2292_v51 = vpop.eup %2291  ;;  %2305 = vtanh.f32 %v1551_v48  ;;  %v1101_v52 = vpop.f32.mrf.mxu0 }
 0x146   : > { %v1229_v53 = vpop.f32.mrf.mxu1  ;;  %v2294_v54 = vpop.eup %2293  ;;  %1708 = vst [vmem:[%s2644_s23 + $0x48] sm:$0xff] %v2292_v51  ;;  %v1520_v55 = vadd.f32 %v2616_v17, %v1101_v52 }
 0x147   : > { %v1552_v56 = vadd.f32 %v2616_v17, %v1229_v53  ;;  %1740 = vst [vmem:[%s2644_s23 + $0x148] sm:$0xff] %v2294_v54  ;;  %v1103_v57 = vpop.f32.mrf.mxu0 }
 0x148   : > { %v1231_v58 = vpop.f32.mrf.mxu1  ;;  %1584 = vst [vmem:[%s2623_s15 + $0x68] sm:$0xff] %v1520_v55  ;;  %2307 = vtanh.f32 %v1520_v55 }
 0x149   : > { %1616 = vst [vmem:[%s2623_s15 + $0x168] sm:$0xff] %v1552_v56  ;;  %v2296_v59 = vpop.eup %2295  ;;  %2309 = vtanh.f32 %v1552_v56  ;;  %v1106_v60 = vpop.f32.mrf.mxu0 }
 0x14a   : > { %v1234_v61 = vpop.f32.mrf.mxu1  ;;  %v2298_v62 = vpop.eup %2297  ;;  %1709 = vst [vmem:[%s2644_s23 + $0x50] sm:$0xff] %v2296_v59  ;;  %v1521_v63 = vadd.f32 %v2616_v17, %v1106_v60 }
 0x14b   : > { %v1553_v0 = vadd.f32 %v2616_v17, %v1234_v61  ;;  %1741 = vst [vmem:[%s2644_s23 + $0x150] sm:$0xff] %v2298_v62  ;;  %v1108_v1 = vpop.f32.mrf.mxu0 }
 0x14c   : > { %v1236_v2 = vpop.f32.mrf.mxu1  ;;  %1585 = vst [vmem:[%s2623_s15 + $0x70] sm:$0xff] %v1521_v63  ;;  %2311 = vtanh.f32 %v1521_v63 }
 0x14d   : > { %1617 = vst [vmem:[%s2623_s15 + $0x170] sm:$0xff] %v1553_v0  ;;  %v2300_v3 = vpop.eup %2299  ;;  %2313 = vtanh.f32 %v1553_v0  ;;  %v1109_v4 = vpop.f32.mrf.mxu0 }
 0x14e   : > { %v1237_v5 = vpop.f32.mrf.mxu1  ;;  %v2302_v6 = vpop.eup %2301  ;;  %1710 = vst [vmem:[%s2644_s23 + $0x58] sm:$0xff] %v2300_v3  ;;  %v1522_v7 = vadd.f32 %v2616_v17, %v1109_v4 }
 0x14f   : > { %v1554_v8 = vadd.f32 %v2616_v17, %v1237_v5  ;;  %1742 = vst [vmem:[%s2644_s23 + $0x158] sm:$0xff] %v2302_v6  ;;  %v1111_v9 = vpop.f32.mrf.mxu0 }
 0x150   : > { %v1239_v10 = vpop.f32.mrf.mxu1  ;;  %1586 = vst [vmem:[%s2623_s15 + $0x78] sm:$0xff] %v1522_v7  ;;  %2315 = vtanh.f32 %v1522_v7 }
 0x151   : > { %1618 = vst [vmem:[%s2623_s15 + $0x178] sm:$0xff] %v1554_v8  ;;  %v2304_v11 = vpop.eup %2303  ;;  %2317 = vtanh.f32 %v1554_v8  ;;  %v1114_v12 = vpop.f32.mrf.mxu0 }
 0x152   : > { %v1242_v13 = vpop.f32.mrf.mxu1  ;;  %v2306_v14 = vpop.eup %2305  ;;  %1711 = vst [vmem:[%s2644_s23 + $0x60] sm:$0xff] %v2304_v11  ;;  %v1523_v15 = vadd.f32 %v2616_v17, %v1114_v12 }
 0x153   : > { %v1555_v16 = vadd.f32 %v2616_v17, %v1242_v13  ;;  %1743 = vst [vmem:[%s2644_s23 + $0x160] sm:$0xff] %v2306_v14  ;;  %v1116_v18 = vpop.f32.mrf.mxu0 }
 0x154   : > { %v1244_v19 = vpop.f32.mrf.mxu1  ;;  %1587 = vst [vmem:[%s2623_s15 + $0x80] sm:$0xff] %v1523_v15  ;;  %2319 = vtanh.f32 %v1523_v15 }
 0x155   : > { %1619 = vst [vmem:[%s2623_s15 + $0x180] sm:$0xff] %v1555_v16  ;;  %v2308_v20 = vpop.eup %2307  ;;  %2321 = vtanh.f32 %v1555_v16  ;;  %v1117_v21 = vpop.f32.mrf.mxu0 }
 0x156   : > { %v1245_v22 = vpop.f32.mrf.mxu1  ;;  %v2310_v23 = vpop.eup %2309  ;;  %1712 = vst [vmem:[%s2644_s23 + $0x68] sm:$0xff] %v2308_v20  ;;  %v1524_v24 = vadd.f32 %v2616_v17, %v1117_v21 }
 0x157   : > { %v1556_v25 = vadd.f32 %v2616_v17, %v1245_v22  ;;  %1744 = vst [vmem:[%s2644_s23 + $0x168] sm:$0xff] %v2310_v23  ;;  %v1119_v26 = vpop.f32.mrf.mxu0 }
 0x158   : > { %v1247_v27 = vpop.f32.mrf.mxu1  ;;  %1588 = vst [vmem:[%s2623_s15 + $0x88] sm:$0xff] %v1524_v24  ;;  %2323 = vtanh.f32 %v1524_v24 }
 0x159   : > { %1620 = vst [vmem:[%s2623_s15 + $0x188] sm:$0xff] %v1556_v25  ;;  %v2312_v28 = vpop.eup %2311  ;;  %2325 = vtanh.f32 %v1556_v25  ;;  %v1122_v29 = vpop.f32.mrf.mxu0 }
 0x15a   : > { %v1250_v30 = vpop.f32.mrf.mxu1  ;;  %v2314_v31 = vpop.eup %2313  ;;  %1713 = vst [vmem:[%s2644_s23 + $0x70] sm:$0xff] %v2312_v28  ;;  %v1525_v32 = vadd.f32 %v2616_v17, %v1122_v29 }
 0x15b   : > { %v1557_v33 = vadd.f32 %v2616_v17, %v1250_v30  ;;  %1745 = vst [vmem:[%s2644_s23 + $0x170] sm:$0xff] %v2314_v31  ;;  %v1124_v34 = vpop.f32.mrf.mxu0 }
 0x15c   : > { %v1252_v35 = vpop.f32.mrf.mxu1  ;;  %1589 = vst [vmem:[%s2623_s15 + $0x90] sm:$0xff] %v1525_v32  ;;  %2327 = vtanh.f32 %v1525_v32 }
 0x15d   : > { %1621 = vst [vmem:[%s2623_s15 + $0x190] sm:$0xff] %v1557_v33  ;;  %v2316_v36 = vpop.eup %2315  ;;  %2329 = vtanh.f32 %v1557_v33  ;;  %v1125_v37 = vpop.f32.mrf.mxu0 }
 0x15e   : > { %v1253_v38 = vpop.f32.mrf.mxu1  ;;  %v2318_v39 = vpop.eup %2317  ;;  %1714 = vst [vmem:[%s2644_s23 + $0x78] sm:$0xff] %v2316_v36  ;;  %v1526_v40 = vadd.f32 %v2616_v17, %v1125_v37 }
 0x15f   : > { %v1558_v41 = vadd.f32 %v2616_v17, %v1253_v38  ;;  %1746 = vst [vmem:[%s2644_s23 + $0x178] sm:$0xff] %v2318_v39  ;;  %v1127_v42 = vpop.f32.mrf.mxu0 }
 0x160   : > { %v1255_v43 = vpop.f32.mrf.mxu1  ;;  %1590 = vst [vmem:[%s2623_s15 + $0x98] sm:$0xff] %v1526_v40  ;;  %2331 = vtanh.f32 %v1526_v40 }
 0x161   : > { %1622 = vst [vmem:[%s2623_s15 + $0x198] sm:$0xff] %v1558_v41  ;;  %v2320_v44 = vpop.eup %2319  ;;  %2333 = vtanh.f32 %v1558_v41  ;;  %v1130_v45 = vpop.f32.mrf.mxu0 }
 0x162   : > { %v1258_v46 = vpop.f32.mrf.mxu1  ;;  %v2322_v47 = vpop.eup %2321  ;;  %1715 = vst [vmem:[%s2644_s23 + $0x80] sm:$0xff] %v2320_v44  ;;  %v1527_v48 = vadd.f32 %v2616_v17, %v1130_v45 }
 0x163   : > { %v1559_v49 = vadd.f32 %v2616_v17, %v1258_v46  ;;  %1747 = vst [vmem:[%s2644_s23 + $0x180] sm:$0xff] %v2322_v47  ;;  %v1132_v50 = vpop.f32.mrf.mxu0 }
 0x164   : > { %v1260_v51 = vpop.f32.mrf.mxu1  ;;  %1591 = vst [vmem:[%s2623_s15 + $0xa0] sm:$0xff] %v1527_v48  ;;  %2335 = vtanh.f32 %v1527_v48 }
 0x165   : > { %1623 = vst [vmem:[%s2623_s15 + $0x1a0] sm:$0xff] %v1559_v49  ;;  %v2324_v52 = vpop.eup %2323  ;;  %2337 = vtanh.f32 %v1559_v49  ;;  %v1133_v53 = vpop.f32.mrf.mxu0 }
 0x166   : > { %v1261_v54 = vpop.f32.mrf.mxu1  ;;  %v2326_v55 = vpop.eup %2325  ;;  %1716 = vst [vmem:[%s2644_s23 + $0x88] sm:$0xff] %v2324_v52  ;;  %v1528_v56 = vadd.f32 %v2616_v17, %v1133_v53 }
 0x167   : > { %v1560_v57 = vadd.f32 %v2616_v17, %v1261_v54  ;;  %1748 = vst [vmem:[%s2644_s23 + $0x188] sm:$0xff] %v2326_v55  ;;  %v1135_v58 = vpop.f32.mrf.mxu0 }
 0x168   : > { %v1263_v59 = vpop.f32.mrf.mxu1  ;;  %1592 = vst [vmem:[%s2623_s15 + $0xa8] sm:$0xff] %v1528_v56  ;;  %2339 = vtanh.f32 %v1528_v56 }
 0x169   : > { %1624 = vst [vmem:[%s2623_s15 + $0x1a8] sm:$0xff] %v1560_v57  ;;  %v2328_v60 = vpop.eup %2327  ;;  %2341 = vtanh.f32 %v1560_v57  ;;  %v1138_v61 = vpop.f32.mrf.mxu0 }
 0x16a   : > { %v1266_v62 = vpop.f32.mrf.mxu1  ;;  %v2330_v63 = vpop.eup %2329  ;;  %1717 = vst [vmem:[%s2644_s23 + $0x90] sm:$0xff] %v2328_v60  ;;  %v1529_v0 = vadd.f32 %v2616_v17, %v1138_v61 }
 0x16b   : > { %v1561_v1 = vadd.f32 %v2616_v17, %v1266_v62  ;;  %1749 = vst [vmem:[%s2644_s23 + $0x190] sm:$0xff] %v2330_v63  ;;  %v1140_v2 = vpop.f32.mrf.mxu0 }
 0x16c   : > { %v1268_v3 = vpop.f32.mrf.mxu1  ;;  %1593 = vst [vmem:[%s2623_s15 + $0xb0] sm:$0xff] %v1529_v0  ;;  %2343 = vtanh.f32 %v1529_v0 }
 0x16d   : > { %1625 = vst [vmem:[%s2623_s15 + $0x1b0] sm:$0xff] %v1561_v1  ;;  %v2332_v4 = vpop.eup %2331  ;;  %2345 = vtanh.f32 %v1561_v1  ;;  %v1141_v5 = vpop.f32.mrf.mxu0 }
 0x16e   : > { %v1269_v6 = vpop.f32.mrf.mxu1  ;;  %v2334_v7 = vpop.eup %2333  ;;  %1718 = vst [vmem:[%s2644_s23 + $0x98] sm:$0xff] %v2332_v4  ;;  %v1530_v8 = vadd.f32 %v2616_v17, %v1141_v5 }
 0x16f   : > { %v1562_v9 = vadd.f32 %v2616_v17, %v1269_v6  ;;  %1750 = vst [vmem:[%s2644_s23 + $0x198] sm:$0xff] %v2334_v7  ;;  %v1143_v10 = vpop.f32.mrf.mxu0 }
 0x170   : > { %v1271_v11 = vpop.f32.mrf.mxu1  ;;  %1594 = vst [vmem:[%s2623_s15 + $0xb8] sm:$0xff] %v1530_v8  ;;  %2347 = vtanh.f32 %v1530_v8 }
 0x171   : > { %1626 = vst [vmem:[%s2623_s15 + $0x1b8] sm:$0xff] %v1562_v9  ;;  %v2336_v12 = vpop.eup %2335  ;;  %2349 = vtanh.f32 %v1562_v9  ;;  %v1146_v13 = vpop.f32.mrf.mxu0 }
 0x172   : > { %v1274_v14 = vpop.f32.mrf.mxu1  ;;  %v2338_v15 = vpop.eup %2337  ;;  %1719 = vst [vmem:[%s2644_s23 + $0xa0] sm:$0xff] %v2336_v12  ;;  %v1531_v16 = vadd.f32 %v2616_v17, %v1146_v13 }
 0x173   : > { %v1563_v18 = vadd.f32 %v2616_v17, %v1274_v14  ;;  %1751 = vst [vmem:[%s2644_s23 + $0x1a0] sm:$0xff] %v2338_v15  ;;  %v1148_v19 = vpop.f32.mrf.mxu0 }
 0x174   : > { %v1276_v20 = vpop.f32.mrf.mxu1  ;;  %1595 = vst [vmem:[%s2623_s15 + $0xc0] sm:$0xff] %v1531_v16  ;;  %2351 = vtanh.f32 %v1531_v16 }
 0x175   : > { %1627 = vst [vmem:[%s2623_s15 + $0x1c0] sm:$0xff] %v1563_v18  ;;  %v2340_v21 = vpop.eup %2339  ;;  %2353 = vtanh.f32 %v1563_v18  ;;  %v1149_v22 = vpop.f32.mrf.mxu0 }
 0x176   : > { %v1277_v23 = vpop.f32.mrf.mxu1  ;;  %v2342_v24 = vpop.eup %2341  ;;  %1720 = vst [vmem:[%s2644_s23 + $0xa8] sm:$0xff] %v2340_v21  ;;  %v1532_v25 = vadd.f32 %v2616_v17, %v1149_v22 }
 0x177   : > { %v1564_v26 = vadd.f32 %v2616_v17, %v1277_v23  ;;  %1752 = vst [vmem:[%s2644_s23 + $0x1a8] sm:$0xff] %v2342_v24  ;;  %v1151_v27 = vpop.f32.mrf.mxu0 }
 0x178   : > { %v1279_v28 = vpop.f32.mrf.mxu1  ;;  %1596 = vst [vmem:[%s2623_s15 + $0xc8] sm:$0xff] %v1532_v25  ;;  %2355 = vtanh.f32 %v1532_v25 }
 0x179   : > { %1628 = vst [vmem:[%s2623_s15 + $0x1c8] sm:$0xff] %v1564_v26  ;;  %v2344_v29 = vpop.eup %2343  ;;  %2357 = vtanh.f32 %v1564_v26  ;;  %v1154_v30 = vpop.f32.mrf.mxu0 }
 0x17a   : > { %v1282_v31 = vpop.f32.mrf.mxu1  ;;  %v2346_v32 = vpop.eup %2345  ;;  %1721 = vst [vmem:[%s2644_s23 + $0xb0] sm:$0xff] %v2344_v29  ;;  %v1533_v33 = vadd.f32 %v2616_v17, %v1154_v30 }
 0x17b   : > { %v1565_v34 = vadd.f32 %v2616_v17, %v1282_v31  ;;  %1753 = vst [vmem:[%s2644_s23 + $0x1b0] sm:$0xff] %v2346_v32  ;;  %v1156_v35 = vpop.f32.mrf.mxu0 }
 0x17c   : > { %v1284_v36 = vpop.f32.mrf.mxu1  ;;  %1597 = vst [vmem:[%s2623_s15 + $0xd0] sm:$0xff] %v1533_v33  ;;  %2359 = vtanh.f32 %v1533_v33 }
 0x17d   : > { %1629 = vst [vmem:[%s2623_s15 + $0x1d0] sm:$0xff] %v1565_v34  ;;  %v2348_v37 = vpop.eup %2347  ;;  %2361 = vtanh.f32 %v1565_v34  ;;  %v1157_v38 = vpop.f32.mrf.mxu0 }
 0x17e   : > { %v1285_v39 = vpop.f32.mrf.mxu1  ;;  %v2350_v40 = vpop.eup %2349  ;;  %1722 = vst [vmem:[%s2644_s23 + $0xb8] sm:$0xff] %v2348_v37  ;;  %v1534_v41 = vadd.f32 %v2616_v17, %v1157_v38 }
 0x17f   : > { %v1566_v42 = vadd.f32 %v2616_v17, %v1285_v39  ;;  %1754 = vst [vmem:[%s2644_s23 + $0x1b8] sm:$0xff] %v2350_v40  ;;  %v1159_v43 = vpop.f32.mrf.mxu0 }
 0x180   : > { %v1287_v44 = vpop.f32.mrf.mxu1  ;;  %1598 = vst [vmem:[%s2623_s15 + $0xd8] sm:$0xff] %v1534_v41  ;;  %2363 = vtanh.f32 %v1534_v41 }
 0x181   : > { %1630 = vst [vmem:[%s2623_s15 + $0x1d8] sm:$0xff] %v1566_v42  ;;  %v2352_v45 = vpop.eup %2351  ;;  %2365 = vtanh.f32 %v1566_v42  ;;  %v1162_v46 = vpop.f32.mrf.mxu0 }
 0x182   : > { %v1290_v47 = vpop.f32.mrf.mxu1  ;;  %v2354_v48 = vpop.eup %2353  ;;  %1723 = vst [vmem:[%s2644_s23 + $0xc0] sm:$0xff] %v2352_v45  ;;  %v1535_v49 = vadd.f32 %v2616_v17, %v1162_v46 }
 0x183   : > { %v1567_v50 = vadd.f32 %v2616_v17, %v1290_v47  ;;  %1755 = vst [vmem:[%s2644_s23 + $0x1c0] sm:$0xff] %v2354_v48  ;;  %v1164_v51 = vpop.f32.mrf.mxu0 }
 0x184   : > { %v1292_v52 = vpop.f32.mrf.mxu1  ;;  %1599 = vst [vmem:[%s2623_s15 + $0xe0] sm:$0xff] %v1535_v49  ;;  %2367 = vtanh.f32 %v1535_v49 }
 0x185   : > { %1631 = vst [vmem:[%s2623_s15 + $0x1e0] sm:$0xff] %v1567_v50  ;;  %v2356_v53 = vpop.eup %2355  ;;  %2369 = vtanh.f32 %v1567_v50  ;;  %v1165_v54 = vpop.f32.mrf.mxu0 }
 0x186   : > { %v1293_v55 = vpop.f32.mrf.mxu1  ;;  %v2358_v56 = vpop.eup %2357  ;;  %1724 = vst [vmem:[%s2644_s23 + $0xc8] sm:$0xff] %v2356_v53  ;;  %v1536_v57 = vadd.f32 %v2616_v17, %v1165_v54 }
 0x187   : > { %v1568_v58 = vadd.f32 %v2616_v17, %v1293_v55  ;;  %1756 = vst [vmem:[%s2644_s23 + $0x1c8] sm:$0xff] %v2358_v56  ;;  %v1167_v59 = vpop.f32.mrf.mxu0 }
 0x188   : > { %v1295_v60 = vpop.f32.mrf.mxu1  ;;  %1600 = vst [vmem:[%s2623_s15 + $0xe8] sm:$0xff] %v1536_v57  ;;  %2371 = vtanh.f32 %v1536_v57 }
 0x189   : > { %1632 = vst [vmem:[%s2623_s15 + $0x1e8] sm:$0xff] %v1568_v58  ;;  %v2360_v61 = vpop.eup %2359  ;;  %2373 = vtanh.f32 %v1568_v58  ;;  %v1170_v62 = vpop.f32.mrf.mxu0 }
 0x18a   : > { %v1298_v63 = vpop.f32.mrf.mxu1  ;;  %v2362_v0 = vpop.eup %2361  ;;  %1725 = vst [vmem:[%s2644_s23 + $0xd0] sm:$0xff] %v2360_v61  ;;  %v1537_v1 = vadd.f32 %v2616_v17, %v1170_v62 }
 0x18b   : > { %v1569_v2 = vadd.f32 %v2616_v17, %v1298_v63  ;;  %1757 = vst [vmem:[%s2644_s23 + $0x1d0] sm:$0xff] %v2362_v0  ;;  %v1172_v3 = vpop.f32.mrf.mxu0 }
 0x18c   : > { %v1300_v4 = vpop.f32.mrf.mxu1  ;;  %1601 = vst [vmem:[%s2623_s15 + $0xf0] sm:$0xff] %v1537_v1  ;;  %2375 = vtanh.f32 %v1537_v1 }
 0x18d   : > { %1633 = vst [vmem:[%s2623_s15 + $0x1f0] sm:$0xff] %v1569_v2  ;;  %v2364_v5 = vpop.eup %2363  ;;  %2377 = vtanh.f32 %v1569_v2  ;;  %v1173_v6 = vpop.f32.mrf.mxu0 }
 0x18e   : > { %v1301_v7 = vpop.f32.mrf.mxu1  ;;  %v2366_v8 = vpop.eup %2365  ;;  %1726 = vst [vmem:[%s2644_s23 + $0xd8] sm:$0xff] %v2364_v5  ;;  %v1538_v9 = vadd.f32 %v2616_v17, %v1173_v6 }
 0x18f   : > { %v1570_v10 = vadd.f32 %v2616_v17, %v1301_v7  ;;  %1758 = vst [vmem:[%s2644_s23 + $0x1d8] sm:$0xff] %v2366_v8  ;;  %v1175_v11 = vpop.f32.mrf.mxu0 }
 0x190   : > { %v1303_v12 = vpop.f32.mrf.mxu1  ;;  %1602 = vst [vmem:[%s2623_s15 + $0xf8] sm:$0xff] %v1538_v9  ;;  %2379 = vtanh.f32 %v1538_v9 }
 0x191   : > { %1634 = vst [vmem:[%s2623_s15 + $0x1f8] sm:$0xff] %v1570_v10  ;;  %v2368_v13 = vpop.eup %2367  ;;  %2381 = vtanh.f32 %v1570_v10 }
 0x192   : > { %v2370_v14 = vpop.eup %2369  ;;  %1727 = vst [vmem:[%s2644_s23 + $0xe0] sm:$0xff] %v2368_v13 }
 0x193   : > { %1759 = vst [vmem:[%s2644_s23 + $0x1e0] sm:$0xff] %v2370_v14 }
 0x195   : > { %v2372_v15 = vpop.eup %2371 }
 0x196   : > { %v2374_v16 = vpop.eup %2373  ;;  %1728 = vst [vmem:[%s2644_s23 + $0xe8] sm:$0xff] %v2372_v15 }
 0x197   : > { %1760 = vst [vmem:[%s2644_s23 + $0x1e8] sm:$0xff] %v2374_v16 }
 0x199   : > { %v2376_v17 = vpop.eup %2375 }
 0x19a   : > { %v2378_v18 = vpop.eup %2377  ;;  %1729 = vst [vmem:[%s2644_s23 + $0xf0] sm:$0xff] %v2376_v17 }
 0x19b   : > { %1761 = vst [vmem:[%s2644_s23 + $0x1f0] sm:$0xff] %v2378_v18 }
 0x19d   : > { %v2380_v19 = vpop.eup %2379 }
 0x19e   : > { %v2382_v20 = vpop.eup %2381  ;;  %1730 = vst [vmem:[%s2644_s23 + $0xf8] sm:$0xff] %v2380_v19 }
 0x19f   : > { %1762 = vst [vmem:[%s2644_s23 + $0x1f8] sm:$0xff] %v2382_v20 }
 0x1a0 PF: > { %s15_s19 = sadd.s32 1, %s2421_s19   ;;  %s2844_s15 = smov %s2413_s17 }
 0x1a1   : > { %p12_p7 = scmp.ge.s32.totalorder %s15_s19, 18   ;;  %s2845_s16 = smov %s2417_s18 }
 0x1a2   : > { %s2846_s17 = smov %s2849_s20  ;;  %s2847_s18 = smov %s2853_s21 }
 0x1a3   :  { %14 = sbr.rel (!%p12_p7) target bundleno = 3 (0x3), region = 88 }

</bundles_post_ra>
